<compile_context>
chip_gen: v7x
topology: tpu7x:2x2x1
jax: 0.10.0
libtpu: 0.0.40
codegen_flags: <defaults>
</compile_context>

<pallas_src>
import jax
import jax.numpy as jnp
import numpy as np
from jax.experimental import pallas as pl
from jax.experimental.pallas import tpu as pltpu

LANE = 128


def _round_up(x, m):
    return ((x + m - 1) // m) * m


# ----------------------------------------------------------------------------
# In-kernel helpers
# ----------------------------------------------------------------------------
def _zero_halo_border(halo_ref):
    """Zero only the 1-px border of a (Hh, Wh, Cp) halo scratch."""
    Hh, Wh, Cp = halo_ref.shape
    zrow = jnp.zeros((1, Wh, Cp), halo_ref.dtype)
    halo_ref[0:1, :, :] = zrow
    halo_ref[Hh - 1:Hh, :, :] = zrow
    zcol = jnp.zeros((Hh, 1, Cp), halo_ref.dtype)
    halo_ref[:, 0:1, :] = zcol
    halo_ref[:, Wh - 1:Wh, :] = zcol


def _conv3x3_acc(halo_ref, w_ref, Ho, Wo, Cp):
    """3x3 conv as 9 accumulated MXU dots over shifted windows of the halo.

    halo_ref: (Ho+2, Wo+2, Cp) bf16 (zero border), w_ref: (9, Cp, Cp) bf16.
    Returns (Ho*Wo, Cp) f32.  The chained dot+add lets v7x accumulate in the MRB.
    """
    acc = None
    for dy in range(3):
        for dx in range(3):
            win = halo_ref[dy:dy + Ho, dx:dx + Wo, :].reshape(Ho * Wo, Cp)
            d = jnp.dot(win, w_ref[dy * 3 + dx],
                        preferred_element_type=jnp.float32)
            acc = d if acc is None else acc + d
    return acc


def _phase_conv(halo_ref, wp_ref, entries, Ho, Wo, Cp):
    """Phase of an (upsample-then-3x3-conv), computed at low resolution.

    `entries` is a static list of (packed_tap_index, row_off, col_off); weights
    were pre-summed on the host so each entry is one (Cp, Cp) dot.
    """
    acc = None
    for (t, r, c) in entries:
        win = halo_ref[1 + r:1 + r + Ho, 1 + c:1 + c + Wo, :].reshape(Ho * Wo, Cp)
        d = jnp.dot(win, wp_ref[t], preferred_element_type=jnp.float32)
        acc = d if acc is None else acc + d
    return acc


# ----------------------------------------------------------------------------
# Kernel bodies
# ----------------------------------------------------------------------------
def _make_fused_identity_kernel(H, W, Cp):
    """stride==1: relu(bn1(conv1(relu(bn2(conv2(x))))) + x) in one kernel."""

    def kernel(x_ref, w2_ref, s2_ref, b2_ref, w1_ref, s1_ref, b1_ref,
               o_ref, halo):
        # x halo (zero border only; interior from the input block).
        _zero_halo_border(halo)
        halo[1:H + 1, 1:W + 1, :] = x_ref[0]

        # conv2 + bn2 + relu
        h = _conv3x3_acc(halo, w2_ref, H, W, Cp)
        h = jnp.maximum(h * s2_ref[0] + b2_ref[0], 0.0)

        # Reuse the SAME halo scratch for the intermediate (border stays zero).
        halo[1:H + 1, 1:W + 1, :] = h.reshape(H, W, Cp).astype(halo.dtype)

        # conv1 + bn1 + identity residual + relu
        y = _conv3x3_acc(halo, w1_ref, H, W, Cp)
        res = x_ref[0].reshape(H * W, Cp).astype(jnp.float32)
        o_ref[0] = jnp.maximum(y * s1_ref[0] + b1_ref[0] + res,
                               0.0).astype(o_ref.dtype)

    return kernel


def _make_fused_upsample_kernel(H, W, Cp, s, layout):
    """stride!=1: whole block in one kernel, upsample fused via phase weights.

    out[s*y+a, s*x+b] = sum_r,c W_eff[a,b][r,c] * lo[y+r, x+c]  (zero halo), so
    the nearest-upsampled tensors are never materialized.  Output is written
    phase-major: o_ref block (1, s*s, H*W, Cp).
    """

    def kernel(x_ref, w2_ref, s2_ref, b2_ref, w1p_ref, s1_ref, b1_ref,
               wscp_ref, ssc_ref, bsc_ref, o_ref, xh, hh):
        # x halo (needed for conv2 AND the shortcut ResizeConv2d).
        _zero_halo_border(xh)
        xh[1:H + 1, 1:W + 1, :] = x_ref[0]

        # conv2 + bn2 + relu at low resolution.
        h = _conv3x3_acc(xh, w2_ref, H, W, Cp)
        h = jnp.maximum(h * s2_ref[0] + b2_ref[0], 0.0)
        _zero_halo_border(hh)
        hh[1:H + 1, 1:W + 1, :] = h.reshape(H, W, Cp).astype(hh.dtype)

        # Per output phase: main ResizeConv2d(conv1)+bn1 plus shortcut
        # ResizeConv2d+bn, add, relu.  Only one (H*W, Cp) f32 accumulator pair
        # is live at a time.
        for p in range(s * s):
            y = _phase_conv(hh, w1p_ref, layout[p], H, W, Cp)
            y = y * s1_ref[0] + b1_ref[0]
            sc = _phase_conv(xh, wscp_ref, layout[p], H, W, Cp)
            o_ref[0, p] = jnp.maximum(y + sc * ssc_ref[0] + bsc_ref[0],
                                      0.0).astype(o_ref.dtype)

    return kernel


# ----------------------------------------------------------------------------
# pallas_call wrappers
# ----------------------------------------------------------------------------
def _sb_spec(Cp):
    return pl.BlockSpec((1, Cp), lambda b: (0, 0))


def _compiler_params(vmem_bytes_est):
    try:
        cap = int(pltpu.get_tpu_info().vmem_capacity_bytes)
    except Exception:  # pragma: no cover - conservative fallback
        cap = 64 * 1024 * 1024
    limit = int(min(int(0.75 * cap),
                    max(16 * 1024 * 1024, 2 * int(vmem_bytes_est))))
    return pltpu.CompilerParams(dimension_semantics=("parallel",),
                                vmem_limit_bytes=limit)


def fused_identity_block(x, w2, s2, b2, w1, s1, b1):
    """x: (N,H,W,Cp) bf16; weights (9,Cp,Cp) bf16; scale/bias (1,Cp) f32.
    Returns (N, H*W, Cp) bf16."""
    N, H, W, Cp = x.shape
    HW = H * W
    flops = 2 * 2 * N * HW * 9 * Cp * Cp
    bytes_acc = x.size * 2 + (w2.size + w1.size) * 2 + N * HW * Cp * 2
    vmem_est = (2 * HW * Cp * 2 + 2 * HW * Cp * 2          # in/out (double-buf)
                + 2 * (w2.size + w1.size) * 2              # weights
                + (H + 2) * (W + 2) * Cp * 2               # halo scratch
                + 3 * HW * Cp * 4)                         # f32 temps
    return pl.pallas_call(
        _make_fused_identity_kernel(H, W, Cp),
        out_shape=jax.ShapeDtypeStruct((N, HW, Cp), jnp.bfloat16),
        grid=(N,),
        in_specs=[pl.BlockSpec((1, H, W, Cp), lambda b: (b, 0, 0, 0)),
                  pl.BlockSpec((9, Cp, Cp), lambda b: (0, 0, 0)),
                  _sb_spec(Cp), _sb_spec(Cp),
                  pl.BlockSpec((9, Cp, Cp), lambda b: (0, 0, 0)),
                  _sb_spec(Cp), _sb_spec(Cp)],
        out_specs=pl.BlockSpec((1, HW, Cp), lambda b: (b, 0, 0)),
        scratch_shapes=[pltpu.VMEM((H + 2, W + 2, Cp), jnp.bfloat16)],
        compiler_params=_compiler_params(vmem_est),
        cost_estimate=pl.CostEstimate(flops=int(flops), transcendentals=0,
                                      bytes_accessed=int(bytes_acc)),
    )(x, w2, s2, b2, w1, s1, b1)


def fused_upsample_block(x, w2, s2, b2, w1p, s1, b1, wscp, ssc, bsc, s, layout):
    """Whole stride!=1 block; returns phase-major (N, s*s, H*W, Cp) bf16."""
    N, H, W, Cp = x.shape
    HW = H * W
    T = w1p.shape[0]
    flops = 2 * N * HW * Cp * Cp * (9 + 2 * T)
    bytes_acc = (x.size * 2 + (w2.size + w1p.size + wscp.size) * 2
                 + N * s * s * HW * Cp * 2)
    vmem_est = (2 * HW * Cp * 2 + 2 * s * s * HW * Cp * 2
                + 2 * (w2.size + w1p.size + wscp.size) * 2
                + 2 * (H + 2) * (W + 2) * Cp * 2
                + 3 * HW * Cp * 4)
    return pl.pallas_call(
        _make_fused_upsample_kernel(H, W, Cp, s, layout),
        out_shape=jax.ShapeDtypeStruct((N, s * s, HW, Cp), jnp.bfloat16),
        grid=(N,),
        in_specs=[pl.BlockSpec((1, H, W, Cp), lambda b: (b, 0, 0, 0)),
                  pl.BlockSpec((9, Cp, Cp), lambda b: (0, 0, 0)),
                  _sb_spec(Cp), _sb_spec(Cp),
                  pl.BlockSpec((T, Cp, Cp), lambda b: (0, 0, 0)),
                  _sb_spec(Cp), _sb_spec(Cp),
                  pl.BlockSpec((T, Cp, Cp), lambda b: (0, 0, 0)),
                  _sb_spec(Cp), _sb_spec(Cp)],
        out_specs=pl.BlockSpec((1, s * s, HW, Cp), lambda b: (b, 0, 0, 0)),
        scratch_shapes=[pltpu.VMEM((H + 2, W + 2, Cp), jnp.bfloat16),
                        pltpu.VMEM((H + 2, W + 2, Cp), jnp.bfloat16)],
        compiler_params=_compiler_params(vmem_est),
        cost_estimate=pl.CostEstimate(flops=int(flops), transcendentals=0,
                                      bytes_accessed=int(bytes_acc)),
    )(x, w2, s2, b2, w1p, s1, b1, wscp, ssc, bsc)


# ----------------------------------------------------------------------------
# Host glue: BN folding, weight prep (incl. phase decomposition), forward
# ----------------------------------------------------------------------------
def fold_bn(gamma, beta, mean, var, conv_bias=None, eps=1e-5):
    scale = gamma / jnp.sqrt(var + eps)
    bias = beta - scale * mean
    if conv_bias is not None:
        bias = bias + scale * conv_bias
    return scale, bias


def _prep_weight(w_hwio, Cp):
    """(3,3,Cin,Cout) f32 -> lane-padded (9, Cp, Cp) bf16."""
    _, _, cin, cout = w_hwio.shape
    w = jnp.pad(w_hwio, ((0, 0), (0, 0), (0, Cp - cin), (0, Cp - cout)))
    return w.reshape(9, Cp, Cp).astype(jnp.bfloat16)


def _upconv_taps(s):
    """Static structure of nearest-upsample(s) + 3x3 conv, per output phase."""
    phases = []
    for a in range(s):
        for b in range(s):
            rmap = {}
            for dy in range(3):
                for dx in range(3):
                    r = (a + dy - 1) // s           # floor div, handles -1
                    c = (b + dx - 1) // s
                    rmap.setdefault((r, c), []).append((dy, dx))
            phases.append(rmap)
    return phases


def _prep_upconv_weight(w_hwio, Cp, s):
    """Fold nearest-upsample(s)+conv3x3 into per-phase effective weights.

    Returns (packed (T, Cp, Cp) bf16 weights, static layout: per phase a list
    of (packed_index, row_offset, col_offset))."""
    _, _, cin, cout = w_hwio.shape
    w = jnp.pad(w_hwio, ((0, 0), (0, 0), (0, Cp - cin), (0, Cp - cout)))
    mats, layout, idx = [], [], 0
    for rmap in _upconv_taps(s):
        entries = []
        for (r, c) in sorted(rmap.keys()):
            taps = rmap[(r, c)]
            m = w[taps[0][0], taps[0][1]]
            for (dy, dx) in taps[1:]:
                m = m + w[dy, dx]
            mats.append(m)
            entries.append((idx, r, c))
            idx += 1
        layout.append(entries)
    w_packed = jnp.stack(mats, axis=0).astype(jnp.bfloat16)
    return w_packed, layout


def _prep_scale_bias(scale, bias, Cp):
    c = scale.shape[0]
    scale = jnp.pad(scale, (0, Cp - c)).reshape(1, Cp).astype(jnp.float32)
    bias = jnp.pad(bias, (0, Cp - c)).reshape(1, Cp).astype(jnp.float32)
    return scale, bias


def upsample_nearest(x, s):
    """Host-side nearest upsample (used by the pure-JAX reference only)."""
    if s == 1:
        return x
    N, H, W, C = x.shape
    x = jnp.broadcast_to(x[:, :, None, :, None, :], (N, H, s, W, s, C))
    return x.reshape(N, H * s, W * s, C)


def basic_block_dec(x_nchw, params, stride):
    """Forward pass of BasicBlockDec (eval-mode BN); NCHW in / NCHW out (bf16)."""
    N, C, H, W = x_nchw.shape
    planes = C // stride
    Cp = _round_up(max(C, planes), LANE)      # lane-dense channel width

    # Single prep pass: NCHW->NHWC, bf16 cast, channel pad to 128 lanes.
    x = jnp.transpose(x_nchw, (0, 2, 3, 1)).astype(jnp.bfloat16)
    x = jnp.pad(x, ((0, 0), (0, 0), (0, 0), (0, Cp - C)))

    w2 = _prep_weight(params["w2"], Cp)
    s2, b2 = _prep_scale_bias(*fold_bn(*params["bn2"]), Cp)
    s1, b1 = _prep_scale_bias(
        *fold_bn(*params["bn1"], conv_bias=params.get("b1")), Cp)

    if stride == 1:
        assert planes == C
        w1 = _prep_weight(params["w1"], Cp)
        out = fused_identity_block(x, w2, s2, b2, w1, s1, b1)   # (N, H*W, Cp)
        out = out.reshape(N, H, W, Cp)[..., :planes]
        return jnp.transpose(out, (0, 3, 1, 2))
    else:
        s = stride
        w1p, layout = _prep_upconv_weight(params["w1"], Cp, s)
        wscp, _ = _prep_upconv_weight(params["w_sc"], Cp, s)
        ssc, bsc = _prep_scale_bias(
            *fold_bn(*params["bn_sc"], conv_bias=params["b_sc"]), Cp)
        out = fused_upsample_block(x, w2, s2, b2, w1p, s1, b1,
                                   wscp, ssc, bsc, s, layout)   # (N,s*s,H*W,Cp)
        out = out.reshape(N, s, s, H, W, Cp)[..., :planes]
        out = jnp.transpose(out, (0, 5, 3, 1, 4, 2))            # N,C',H,s,W,s
        return out.reshape(N, planes, H * s, W * s)


# ----------------------------------------------------------------------------
# Parameter init (synthetic, deterministic)
# ----------------------------------------------------------------------------
def init_params(key, in_planes, stride):
    planes = in_planes // stride
    ks = jax.random.split(key, 8)

    def conv_w(k, cin, cout):
        return 0.1 * jax.random.normal(k, (3, 3, cin, cout), jnp.float32)

    def bn_p(k, c):
        k1, k2, k3 = jax.random.split(k, 3)
        gamma = 1.0 + 0.1 * jax.random.normal(k1, (c,), jnp.float32)
        beta = 0.1 * jax.random.normal(k2, (c,), jnp.float32)
        mean = 0.1 * jax.random.normal(k3, (c,), jnp.float32)
        var = jnp.full((c,), 1.05, jnp.float32)
        return gamma, beta, mean, var

    params = {
        "w2": conv_w(ks[0], in_planes, in_planes),   # conv2 (bias=False)
        "bn2": bn_p(ks[1], in_planes),
        "w1": conv_w(ks[2], in_planes, planes),      # conv1
        "bn1": bn_p(ks[3], planes),
    }
    if stride != 1:
        params["b1"] = 0.1 * jax.random.normal(ks[4], (planes,), jnp.float32)
        params["w_sc"] = conv_w(ks[5], in_planes, planes)
        params["b_sc"] = 0.1 * jax.random.normal(ks[6], (planes,), jnp.float32)
        params["bn_sc"] = bn_p(ks[7], planes)
    return params


# ----------------------------------------------------------------------------
# Pure-JAX reference (mirrors the bf16-operand / f32-accumulate choices)
# ----------------------------------------------------------------------------
def _ref_conv(x_bf16, w_f32):
    return jax.lax.conv_general_dilated(
        x_bf16, w_f32.astype(jnp.bfloat16), window_strides=(1, 1),
        padding="SAME", dimension_numbers=("NHWC", "HWIO", "NHWC"),
        preferred_element_type=jnp.float32)


def _ref_block(x_nchw, params, stride):
    x = jnp.transpose(x_nchw, (0, 2, 3, 1)).astype(jnp.bfloat16)
    s2, b2 = fold_bn(*params["bn2"])
    h = jnp.maximum(_ref_conv(x, params["w2"]) * s2 + b2, 0.0)
    hb = h.astype(jnp.bfloat16)
    s1, b1 = fold_bn(*params["bn1"], conv_bias=params.get("b1"))
    if stride == 1:
        out = jnp.maximum(_ref_conv(hb, params["w1"]) * s1 + b1
                          + x.astype(jnp.float32), 0.0)
    else:
        s_sc, b_sc = fold_bn(*params["bn_sc"], conv_bias=params["b_sc"])
        main = _ref_conv(upsample_nearest(hb, stride), params["w1"]) * s1 + b1
        sc = _ref_conv(upsample_nearest(x, stride), params["w_sc"]) * s_sc + b_sc
        out = jnp.maximum(main + sc, 0.0)
    return jnp.transpose(out, (0, 3, 1, 2))


# ----------------------------------------------------------------------------
if __name__ == "__main__":
    key = jax.random.PRNGKey(0)
    kx, kp1, kp2 = jax.random.split(key, 3)

    N, C, H, W = 2, 4, 16, 16
    x = jax.random.normal(kx, (N, C, H, W), jnp.float32)

    # stride = 1 (identity shortcut, whole block in one pallas_call)
    params1 = init_params(kp1, in_planes=C, stride=1)
    fwd1 = jax.jit(lambda xx: basic_block_dec(xx, params1, stride=1))
    y1 = jax.block_until_ready(fwd1(x))
    y1_ref = _ref_block(x, params1, stride=1)
    assert y1.shape == (N, C, H, W)
    np.testing.assert_allclose(np.asarray(y1.astype(jnp.float32)),
                               np.asarray(y1_ref), rtol=2e-2, atol=2e-2)

    # stride = 2 (ResizeConv2d upsampling shortcut, fused into one pallas_call)
    params2 = init_params(kp2, in_planes=C, stride=2)
    fwd2 = jax.jit(lambda xx: basic_block_dec(xx, params2, stride=2))
    y2 = jax.block_until_ready(fwd2(x))
    y2_ref = _ref_block(x, params2, stride=2)
    assert y2.shape == (N, C // 2, 2 * H, 2 * W)
    np.testing.assert_allclose(np.asarray(y2.astype(jnp.float32)),
                               np.asarray(y2_ref), rtol=3e-2, atol=3e-2)

    print("KERNEL_OK")
</pallas_src>

<mosaic_0001>
module attributes {stable_mosaic.version = 11 : i64} {
  func.func @kernel(%arg0: i32, %arg1: memref<1x16x16x128xbf16, #tpu.memory_space<vmem>>, %arg2: memref<9x128x128xbf16, #tpu.memory_space<vmem>>, %arg3: memref<1x128xf32, #tpu.memory_space<vmem>>, %arg4: memref<1x128xf32, #tpu.memory_space<vmem>>, %arg5: memref<9x128x128xbf16, #tpu.memory_space<vmem>>, %arg6: memref<1x128xf32, #tpu.memory_space<vmem>>, %arg7: memref<1x128xf32, #tpu.memory_space<vmem>>, %arg8: memref<1x256x128xbf16, #tpu.memory_space<vmem>>, %arg9: memref<18x18x128xbf16, #tpu.memory_space<vmem>>) attributes {dimension_semantics = [#tpu.dimension_semantics<parallel>], iteration_bounds = array<i64: 2>, scalar_prefetch = 0 : i64, scratch_operands = 1 : i64, tpu.core_type = #tpu.core_type<tc>, window_params = [{transform_indices = @transform_0, window_bounds = array<i64: 1, 16, 16, 128>}, {pipeline_mode = #tpu.pipeline_mode<synchronous>, transform_indices = @transform_1, window_bounds = array<i64: 9, 128, 128>}, {pipeline_mode = #tpu.pipeline_mode<synchronous>, transform_indices = @transform_2, window_bounds = array<i64: 1, 128>}, {pipeline_mode = #tpu.pipeline_mode<synchronous>, transform_indices = @transform_3, window_bounds = array<i64: 1, 128>}, {pipeline_mode = #tpu.pipeline_mode<synchronous>, transform_indices = @transform_4, window_bounds = array<i64: 9, 128, 128>}, {pipeline_mode = #tpu.pipeline_mode<synchronous>, transform_indices = @transform_5, window_bounds = array<i64: 1, 128>}, {pipeline_mode = #tpu.pipeline_mode<synchronous>, transform_indices = @transform_6, window_bounds = array<i64: 1, 128>}, {transform_indices = @transform_7, window_bounds = array<i64: 1, 256, 128>}]} {
    %cst = arith.constant 0.000000e+00 : bf16
    %0 = vector.broadcast %cst : bf16 to vector<1x18x128xbf16>
    %c0 = arith.constant 0 : index
    %c0_0 = arith.constant 0 : index
    %c0_1 = arith.constant 0 : index
    %1 = vector.load %arg9[%c0, %c0_0, %c0_1] : memref<18x18x128xbf16, #tpu.memory_space<vmem>>, vector<1x18x128xbf16>
    tpu.vector_store %arg9[%c0, %c0_0, %c0_1], %0 {strides = array<i32>} : memref<18x18x128xbf16, #tpu.memory_space<vmem>>, vector<1x18x128xbf16>,
    %c17 = arith.constant 17 : index
    %c0_2 = arith.constant 0 : index
    %c0_3 = arith.constant 0 : index
    %2 = vector.load %arg9[%c17, %c0_2, %c0_3] : memref<18x18x128xbf16, #tpu.memory_space<vmem>>, vector<1x18x128xbf16>
    tpu.vector_store %arg9[%c17, %c0_2, %c0_3], %0 {strides = array<i32>} : memref<18x18x128xbf16, #tpu.memory_space<vmem>>, vector<1x18x128xbf16>,
    %cst_4 = arith.constant 0.000000e+00 : bf16
    %3 = vector.broadcast %cst_4 : bf16 to vector<18x1x128xbf16>
    %c0_5 = arith.constant 0 : index
    %c0_6 = arith.constant 0 : index
    %c0_7 = arith.constant 0 : index
    %4 = vector.load %arg9[%c0_5, %c0_6, %c0_7] : memref<18x18x128xbf16, #tpu.memory_space<vmem>>, vector<18x1x128xbf16>
    tpu.vector_store %arg9[%c0_5, %c0_6, %c0_7], %3 {strides = array<i32>} : memref<18x18x128xbf16, #tpu.memory_space<vmem>>, vector<18x1x128xbf16>,
    %c0_8 = arith.constant 0 : index
    %c17_9 = arith.constant 17 : index
    %c0_10 = arith.constant 0 : index
    %5 = vector.load %arg9[%c0_8, %c17_9, %c0_10] : memref<18x18x128xbf16, #tpu.memory_space<vmem>>, vector<18x1x128xbf16>
    tpu.vector_store %arg9[%c0_8, %c17_9, %c0_10], %3 {strides = array<i32>} : memref<18x18x128xbf16, #tpu.memory_space<vmem>>, vector<18x1x128xbf16>,
    %c0_11 = arith.constant 0 : index
    %c0_12 = arith.constant 0 : index
    %c0_13 = arith.constant 0 : index
    %c0_14 = arith.constant 0 : index
    %6 = vector.load %arg1[%c0_11, %c0_12, %c0_13, %c0_14] : memref<1x16x16x128xbf16, #tpu.memory_space<vmem>>, vector<1x16x16x128xbf16>
    %7 = vector.shape_cast %6 : vector<1x16x16x128xbf16> to vector<16x16x128xbf16>
    %c1 = arith.constant 1 : index
    %c1_15 = arith.constant 1 : index
    %c0_16 = arith.constant 0 : index
    %8 = vector.load %arg9[%c1, %c1_15, %c0_16] : memref<18x18x128xbf16, #tpu.memory_space<vmem>>, vector<16x16x128xbf16>
    tpu.vector_store %arg9[%c1, %c1_15, %c0_16], %7 {strides = array<i32>} : memref<18x18x128xbf16, #tpu.memory_space<vmem>>, vector<16x16x128xbf16>,
    %c0_17 = arith.constant 0 : index
    %c0_18 = arith.constant 0 : index
    %c0_19 = arith.constant 0 : index
    %9 = vector.load %arg9[%c0_17, %c0_18, %c0_19] : memref<18x18x128xbf16, #tpu.memory_space<vmem>>, vector<16x16x128xbf16>
    %10 = vector.shape_cast %9 : vector<16x16x128xbf16> to vector<256x128xbf16>
    %c0_20 = arith.constant 0 : index
    %c0_21 = arith.constant 0 : index
    %c0_22 = arith.constant 0 : index
    %11 = vector.load %arg2[%c0_20, %c0_21, %c0_22] : memref<9x128x128xbf16, #tpu.memory_space<vmem>>, vector<1x128x128xbf16>
    %12 = vector.shape_cast %11 : vector<1x128x128xbf16> to vector<128x128xbf16>
    %cst_23 = arith.constant dense<0.000000e+00> : vector<256x128xf32>
    %13 = tpu.matmul %10, %12, %cst_23 {dimension_numbers = #tpu.dot_dimension_numbers<[1], [0], [0], [1], [0, 0, 1, 1], [], []>} : vector<256x128xbf16>, vector<128x128xbf16>, vector<256x128xf32> -> vector<256x128xf32>
    %c0_24 = arith.constant 0 : index
    %c1_25 = arith.constant 1 : index
    %c0_26 = arith.constant 0 : index
    %14 = vector.load %arg9[%c0_24, %c1_25, %c0_26] : memref<18x18x128xbf16, #tpu.memory_space<vmem>>, vector<16x16x128xbf16>
    %15 = vector.shape_cast %14 : vector<16x16x128xbf16> to vector<256x128xbf16>
    %c1_27 = arith.constant 1 : index
    %c0_28 = arith.constant 0 : index
    %c0_29 = arith.constant 0 : index
    %16 = vector.load %arg2[%c1_27, %c0_28, %c0_29] : memref<9x128x128xbf16, #tpu.memory_space<vmem>>, vector<1x128x128xbf16>
    %17 = vector.shape_cast %16 : vector<1x128x128xbf16> to vector<128x128xbf16>
    %cst_30 = arith.constant dense<0.000000e+00> : vector<256x128xf32>
    %18 = tpu.matmul %15, %17, %cst_30 {dimension_numbers = #tpu.dot_dimension_numbers<[1], [0], [0], [1], [0, 0, 1, 1], [], []>} : vector<256x128xbf16>, vector<128x128xbf16>, vector<256x128xf32> -> vector<256x128xf32>
    %19 = arith.addf %13, %18 : vector<256x128xf32>
    %c0_31 = arith.constant 0 : index
    %c2 = arith.constant 2 : index
    %c0_32 = arith.constant 0 : index
    %20 = vector.load %arg9[%c0_31, %c2, %c0_32] : memref<18x18x128xbf16, #tpu.memory_space<vmem>>, vector<16x16x128xbf16>
    %21 = vector.shape_cast %20 : vector<16x16x128xbf16> to vector<256x128xbf16>
    %c2_33 = arith.constant 2 : index
    %c0_34 = arith.constant 0 : index
    %c0_35 = arith.constant 0 : index
    %22 = vector.load %arg2[%c2_33, %c0_34, %c0_35] : memref<9x128x128xbf16, #tpu.memory_space<vmem>>, vector<1x128x128xbf16>
    %23 = vector.shape_cast %22 : vector<1x128x128xbf16> to vector<128x128xbf16>
    %cst_36 = arith.constant dense<0.000000e+00> : vector<256x128xf32>
    %24 = tpu.matmul %21, %23, %cst_36 {dimension_numbers = #tpu.dot_dimension_numbers<[1], [0], [0], [1], [0, 0, 1, 1], [], []>} : vector<256x128xbf16>, vector<128x128xbf16>, vector<256x128xf32> -> vector<256x128xf32>
    %25 = arith.addf %19, %24 : vector<256x128xf32>
    %c1_37 = arith.constant 1 : index
    %c0_38 = arith.constant 0 : index
    %c0_39 = arith.constant 0 : index
    %26 = vector.load %arg9[%c1_37, %c0_38, %c0_39] : memref<18x18x128xbf16, #tpu.memory_space<vmem>>, vector<16x16x128xbf16>
    %27 = vector.shape_cast %26 : vector<16x16x128xbf16> to vector<256x128xbf16>
    %c3 = arith.constant 3 : index
    %c0_40 = arith.constant 0 : index
    %c0_41 = arith.constant 0 : index
    %28 = vector.load %arg2[%c3, %c0_40, %c0_41] : memref<9x128x128xbf16, #tpu.memory_space<vmem>>, vector<1x128x128xbf16>
    %29 = vector.shape_cast %28 : vector<1x128x128xbf16> to vector<128x128xbf16>
    %cst_42 = arith.constant dense<0.000000e+00> : vector<256x128xf32>
    %30 = tpu.matmul %27, %29, %cst_42 {dimension_numbers = #tpu.dot_dimension_numbers<[1], [0], [0], [1], [0, 0, 1, 1], [], []>} : vector<256x128xbf16>, vector<128x128xbf16>, vector<256x128xf32> -> vector<256x128xf32>
    %31 = arith.addf %25, %30 : vector<256x128xf32>
    %c1_43 = arith.constant 1 : index
    %c1_44 = arith.constant 1 : index
    %c0_45 = arith.constant 0 : index
    %32 = vector.load %arg9[%c1_43, %c1_44, %c0_45] : memref<18x18x128xbf16, #tpu.memory_space<vmem>>, vector<16x16x128xbf16>
    %33 = vector.shape_cast %32 : vector<16x16x128xbf16> to vector<256x128xbf16>
    %c4 = arith.constant 4 : index
    %c0_46 = arith.constant 0 : index
    %c0_47 = arith.constant 0 : index
    %34 = vector.load %arg2[%c4, %c0_46, %c0_47] : memref<9x128x128xbf16, #tpu.memory_space<vmem>>, vector<1x128x128xbf16>
    %35 = vector.shape_cast %34 : vector<1x128x128xbf16> to vector<128x128xbf16>
    %cst_48 = arith.constant dense<0.000000e+00> : vector<256x128xf32>
    %36 = tpu.matmul %33, %35, %cst_48 {dimension_numbers = #tpu.dot_dimension_numbers<[1], [0], [0], [1], [0, 0, 1, 1], [], []>} : vector<256x128xbf16>, vector<128x128xbf16>, vector<256x128xf32> -> vector<256x128xf32>
    %37 = arith.addf %31, %36 : vector<256x128xf32>
    %c1_49 = arith.constant 1 : index
    %c2_50 = arith.constant 2 : index
    %c0_51 = arith.constant 0 : index
    %38 = vector.load %arg9[%c1_49, %c2_50, %c0_51] : memref<18x18x128xbf16, #tpu.memory_space<vmem>>, vector<16x16x128xbf16>
    %39 = vector.shape_cast %38 : vector<16x16x128xbf16> to vector<256x128xbf16>
    %c5 = arith.constant 5 : index
    %c0_52 = arith.constant 0 : index
    %c0_53 = arith.constant 0 : index
    %40 = vector.load %arg2[%c5, %c0_52, %c0_53] : memref<9x128x128xbf16, #tpu.memory_space<vmem>>, vector<1x128x128xbf16>
    %41 = vector.shape_cast %40 : vector<1x128x128xbf16> to vector<128x128xbf16>
    %cst_54 = arith.constant dense<0.000000e+00> : vector<256x128xf32>
    %42 = tpu.matmul %39, %41, %cst_54 {dimension_numbers = #tpu.dot_dimension_numbers<[1], [0], [0], [1], [0, 0, 1, 1], [], []>} : vector<256x128xbf16>, vector<128x128xbf16>, vector<256x128xf32> -> vector<256x128xf32>
    %43 = arith.addf %37, %42 : vector<256x128xf32>
    %c2_55 = arith.constant 2 : index
    %c0_56 = arith.constant 0 : index
    %c0_57 = arith.constant 0 : index
    %44 = vector.load %arg9[%c2_55, %c0_56, %c0_57] : memref<18x18x128xbf16, #tpu.memory_space<vmem>>, vector<16x16x128xbf16>
    %45 = vector.shape_cast %44 : vector<16x16x128xbf16> to vector<256x128xbf16>
    %c6 = arith.constant 6 : index
    %c0_58 = arith.constant 0 : index
    %c0_59 = arith.constant 0 : index
    %46 = vector.load %arg2[%c6, %c0_58, %c0_59] : memref<9x128x128xbf16, #tpu.memory_space<vmem>>, vector<1x128x128xbf16>
    %47 = vector.shape_cast %46 : vector<1x128x128xbf16> to vector<128x128xbf16>
    %cst_60 = arith.constant dense<0.000000e+00> : vector<256x128xf32>
    %48 = tpu.matmul %45, %47, %cst_60 {dimension_numbers = #tpu.dot_dimension_numbers<[1], [0], [0], [1], [0, 0, 1, 1], [], []>} : vector<256x128xbf16>, vector<128x128xbf16>, vector<256x128xf32> -> vector<256x128xf32>
    %49 = arith.addf %43, %48 : vector<256x128xf32>
    %c2_61 = arith.constant 2 : index
    %c1_62 = arith.constant 1 : index
    %c0_63 = arith.constant 0 : index
    %50 = vector.load %arg9[%c2_61, %c1_62, %c0_63] : memref<18x18x128xbf16, #tpu.memory_space<vmem>>, vector<16x16x128xbf16>
    %51 = vector.shape_cast %50 : vector<16x16x128xbf16> to vector<256x128xbf16>
    %c7 = arith.constant 7 : index
    %c0_64 = arith.constant 0 : index
    %c0_65 = arith.constant 0 : index
    %52 = vector.load %arg2[%c7, %c0_64, %c0_65] : memref<9x128x128xbf16, #tpu.memory_space<vmem>>, vector<1x128x128xbf16>
    %53 = vector.shape_cast %52 : vector<1x128x128xbf16> to vector<128x128xbf16>
    %cst_66 = arith.constant dense<0.000000e+00> : vector<256x128xf32>
    %54 = tpu.matmul %51, %53, %cst_66 {dimension_numbers = #tpu.dot_dimension_numbers<[1], [0], [0], [1], [0, 0, 1, 1], [], []>} : vector<256x128xbf16>, vector<128x128xbf16>, vector<256x128xf32> -> vector<256x128xf32>
    %55 = arith.addf %49, %54 : vector<256x128xf32>
    %c2_67 = arith.constant 2 : index
    %c2_68 = arith.constant 2 : index
    %c0_69 = arith.constant 0 : index
    %56 = vector.load %arg9[%c2_67, %c2_68, %c0_69] : memref<18x18x128xbf16, #tpu.memory_space<vmem>>, vector<16x16x128xbf16>
    %57 = vector.shape_cast %56 : vector<16x16x128xbf16> to vector<256x128xbf16>
    %c8 = arith.constant 8 : index
    %c0_70 = arith.constant 0 : index
    %c0_71 = arith.constant 0 : index
    %58 = vector.load %arg2[%c8, %c0_70, %c0_71] : memref<9x128x128xbf16, #tpu.memory_space<vmem>>, vector<1x128x128xbf16>
    %59 = vector.shape_cast %58 : vector<1x128x128xbf16> to vector<128x128xbf16>
    %cst_72 = arith.constant dense<0.000000e+00> : vector<256x128xf32>
    %60 = tpu.matmul %57, %59, %cst_72 {dimension_numbers = #tpu.dot_dimension_numbers<[1], [0], [0], [1], [0, 0, 1, 1], [], []>} : vector<256x128xbf16>, vector<128x128xbf16>, vector<256x128xf32> -> vector<256x128xf32>
    %61 = arith.addf %55, %60 : vector<256x128xf32>
    %c0_73 = arith.constant 0 : index
    %c0_74 = arith.constant 0 : index
    %62 = vector.load %arg3[%c0_73, %c0_74] : memref<1x128xf32, #tpu.memory_space<vmem>>, vector<1x128xf32>
    %63 = vector.shape_cast %62 : vector<1x128xf32> to vector<128xf32>
    %64 = vector.shape_cast %63 : vector<128xf32> to vector<1x128xf32>
    %65 = vector.broadcast %64 : vector<1x128xf32> to vector<256x128xf32>
    %66 = arith.mulf %61, %65 : vector<256x128xf32>
    %c0_75 = arith.constant 0 : index
    %c0_76 = arith.constant 0 : index
    %67 = vector.load %arg4[%c0_75, %c0_76] : memref<1x128xf32, #tpu.memory_space<vmem>>, vector<1x128xf32>
    %68 = vector.shape_cast %67 : vector<1x128xf32> to vector<128xf32>
    %69 = vector.shape_cast %68 : vector<128xf32> to vector<1x128xf32>
    %70 = vector.broadcast %69 : vector<1x128xf32> to vector<256x128xf32>
    %71 = arith.addf %66, %70 : vector<256x128xf32>
    %cst_77 = arith.constant 0.000000e+00 : f32
    %72 = vector.broadcast %cst_77 : f32 to vector<256x128xf32>
    %73 = arith.maximumf %71, %72 : vector<256x128xf32>
    %74 = vector.shape_cast %73 : vector<256x128xf32> to vector<16x16x128xf32>
    %75 = arith.truncf %74 : vector<16x16x128xf32> to vector<16x16x128xbf16>
    %c1_78 = arith.constant 1 : index
    %c1_79 = arith.constant 1 : index
    %c0_80 = arith.constant 0 : index
    %76 = vector.load %arg9[%c1_78, %c1_79, %c0_80] : memref<18x18x128xbf16, #tpu.memory_space<vmem>>, vector<16x16x128xbf16>
    tpu.vector_store %arg9[%c1_78, %c1_79, %c0_80], %75 {strides = array<i32>} : memref<18x18x128xbf16, #tpu.memory_space<vmem>>, vector<16x16x128xbf16>,
    %c0_81 = arith.constant 0 : index
    %c0_82 = arith.constant 0 : index
    %c0_83 = arith.constant 0 : index
    %77 = vector.load %arg9[%c0_81, %c0_82, %c0_83] : memref<18x18x128xbf16, #tpu.memory_space<vmem>>, vector<16x16x128xbf16>
    %78 = vector.shape_cast %77 : vector<16x16x128xbf16> to vector<256x128xbf16>
    %c0_84 = arith.constant 0 : index
    %c0_85 = arith.constant 0 : index
    %c0_86 = arith.constant 0 : index
    %79 = vector.load %arg5[%c0_84, %c0_85, %c0_86] : memref<9x128x128xbf16, #tpu.memory_space<vmem>>, vector<1x128x128xbf16>
    %80 = vector.shape_cast %79 : vector<1x128x128xbf16> to vector<128x128xbf16>
    %cst_87 = arith.constant dense<0.000000e+00> : vector<256x128xf32>
    %81 = tpu.matmul %78, %80, %cst_87 {dimension_numbers = #tpu.dot_dimension_numbers<[1], [0], [0], [1], [0, 0, 1, 1], [], []>} : vector<256x128xbf16>, vector<128x128xbf16>, vector<256x128xf32> -> vector<256x128xf32>
    %c0_88 = arith.constant 0 : index
    %c1_89 = arith.constant 1 : index
    %c0_90 = arith.constant 0 : index
    %82 = vector.load %arg9[%c0_88, %c1_89, %c0_90] : memref<18x18x128xbf16, #tpu.memory_space<vmem>>, vector<16x16x128xbf16>
    %83 = vector.shape_cast %82 : vector<16x16x128xbf16> to vector<256x128xbf16>
    %c1_91 = arith.constant 1 : index
    %c0_92 = arith.constant 0 : index
    %c0_93 = arith.constant 0 : index
    %84 = vector.load %arg5[%c1_91, %c0_92, %c0_93] : memref<9x128x128xbf16, #tpu.memory_space<vmem>>, vector<1x128x128xbf16>
    %85 = vector.shape_cast %84 : vector<1x128x128xbf16> to vector<128x128xbf16>
    %cst_94 = arith.constant dense<0.000000e+00> : vector<256x128xf32>
    %86 = tpu.matmul %83, %85, %cst_94 {dimension_numbers = #tpu.dot_dimension_numbers<[1], [0], [0], [1], [0, 0, 1, 1], [], []>} : vector<256x128xbf16>, vector<128x128xbf16>, vector<256x128xf32> -> vector<256x128xf32>
    %87 = arith.addf %81, %86 : vector<256x128xf32>
    %c0_95 = arith.constant 0 : index
    %c2_96 = arith.constant 2 : index
    %c0_97 = arith.constant 0 : index
    %88 = vector.load %arg9[%c0_95, %c2_96, %c0_97] : memref<18x18x128xbf16, #tpu.memory_space<vmem>>, vector<16x16x128xbf16>
    %89 = vector.shape_cast %88 : vector<16x16x128xbf16> to vector<256x128xbf16>
    %c2_98 = arith.constant 2 : index
    %c0_99 = arith.constant 0 : index
    %c0_100 = arith.constant 0 : index
    %90 = vector.load %arg5[%c2_98, %c0_99, %c0_100] : memref<9x128x128xbf16, #tpu.memory_space<vmem>>, vector<1x128x128xbf16>
    %91 = vector.shape_cast %90 : vector<1x128x128xbf16> to vector<128x128xbf16>
    %cst_101 = arith.constant dense<0.000000e+00> : vector<256x128xf32>
    %92 = tpu.matmul %89, %91, %cst_101 {dimension_numbers = #tpu.dot_dimension_numbers<[1], [0], [0], [1], [0, 0, 1, 1], [], []>} : vector<256x128xbf16>, vector<128x128xbf16>, vector<256x128xf32> -> vector<256x128xf32>
    %93 = arith.addf %87, %92 : vector<256x128xf32>
    %c1_102 = arith.constant 1 : index
    %c0_103 = arith.constant 0 : index
    %c0_104 = arith.constant 0 : index
    %94 = vector.load %arg9[%c1_102, %c0_103, %c0_104] : memref<18x18x128xbf16, #tpu.memory_space<vmem>>, vector<16x16x128xbf16>
    %95 = vector.shape_cast %94 : vector<16x16x128xbf16> to vector<256x128xbf16>
    %c3_105 = arith.constant 3 : index
    %c0_106 = arith.constant 0 : index
    %c0_107 = arith.constant 0 : index
    %96 = vector.load %arg5[%c3_105, %c0_106, %c0_107] : memref<9x128x128xbf16, #tpu.memory_space<vmem>>, vector<1x128x128xbf16>
    %97 = vector.shape_cast %96 : vector<1x128x128xbf16> to vector<128x128xbf16>
    %cst_108 = arith.constant dense<0.000000e+00> : vector<256x128xf32>
    %98 = tpu.matmul %95, %97, %cst_108 {dimension_numbers = #tpu.dot_dimension_numbers<[1], [0], [0], [1], [0, 0, 1, 1], [], []>} : vector<256x128xbf16>, vector<128x128xbf16>, vector<256x128xf32> -> vector<256x128xf32>
    %99 = arith.addf %93, %98 : vector<256x128xf32>
    %c1_109 = arith.constant 1 : index
    %c1_110 = arith.constant 1 : index
    %c0_111 = arith.constant 0 : index
    %100 = vector.load %arg9[%c1_109, %c1_110, %c0_111] : memref<18x18x128xbf16, #tpu.memory_space<vmem>>, vector<16x16x128xbf16>
    %101 = vector.shape_cast %100 : vector<16x16x128xbf16> to vector<256x128xbf16>
    %c4_112 = arith.constant 4 : index
    %c0_113 = arith.constant 0 : index
    %c0_114 = arith.constant 0 : index
    %102 = vector.load %arg5[%c4_112, %c0_113, %c0_114] : memref<9x128x128xbf16, #tpu.memory_space<vmem>>, vector<1x128x128xbf16>
    %103 = vector.shape_cast %102 : vector<1x128x128xbf16> to vector<128x128xbf16>
    %cst_115 = arith.constant dense<0.000000e+00> : vector<256x128xf32>
    %104 = tpu.matmul %101, %103, %cst_115 {dimension_numbers = #tpu.dot_dimension_numbers<[1], [0], [0], [1], [0, 0, 1, 1], [], []>} : vector<256x128xbf16>, vector<128x128xbf16>, vector<256x128xf32> -> vector<256x128xf32>
    %105 = arith.addf %99, %104 : vector<256x128xf32>
    %c1_116 = arith.constant 1 : index
    %c2_117 = arith.constant 2 : index
    %c0_118 = arith.constant 0 : index
    %106 = vector.load %arg9[%c1_116, %c2_117, %c0_118] : memref<18x18x128xbf16, #tpu.memory_space<vmem>>, vector<16x16x128xbf16>
    %107 = vector.shape_cast %106 : vector<16x16x128xbf16> to vector<256x128xbf16>
    %c5_119 = arith.constant 5 : index
    %c0_120 = arith.constant 0 : index
    %c0_121 = arith.constant 0 : index
    %108 = vector.load %arg5[%c5_119, %c0_120, %c0_121] : memref<9x128x128xbf16, #tpu.memory_space<vmem>>, vector<1x128x128xbf16>
    %109 = vector.shape_cast %108 : vector<1x128x128xbf16> to vector<128x128xbf16>
    %cst_122 = arith.constant dense<0.000000e+00> : vector<256x128xf32>
    %110 = tpu.matmul %107, %109, %cst_122 {dimension_numbers = #tpu.dot_dimension_numbers<[1], [0], [0], [1], [0, 0, 1, 1], [], []>} : vector<256x128xbf16>, vector<128x128xbf16>, vector<256x128xf32> -> vector<256x128xf32>
    %111 = arith.addf %105, %110 : vector<256x128xf32>
    %c2_123 = arith.constant 2 : index
    %c0_124 = arith.constant 0 : index
    %c0_125 = arith.constant 0 : index
    %112 = vector.load %arg9[%c2_123, %c0_124, %c0_125] : memref<18x18x128xbf16, #tpu.memory_space<vmem>>, vector<16x16x128xbf16>
    %113 = vector.shape_cast %112 : vector<16x16x128xbf16> to vector<256x128xbf16>
    %c6_126 = arith.constant 6 : index
    %c0_127 = arith.constant 0 : index
    %c0_128 = arith.constant 0 : index
    %114 = vector.load %arg5[%c6_126, %c0_127, %c0_128] : memref<9x128x128xbf16, #tpu.memory_space<vmem>>, vector<1x128x128xbf16>
    %115 = vector.shape_cast %114 : vector<1x128x128xbf16> to vector<128x128xbf16>
    %cst_129 = arith.constant dense<0.000000e+00> : vector<256x128xf32>
    %116 = tpu.matmul %113, %115, %cst_129 {dimension_numbers = #tpu.dot_dimension_numbers<[1], [0], [0], [1], [0, 0, 1, 1], [], []>} : vector<256x128xbf16>, vector<128x128xbf16>, vector<256x128xf32> -> vector<256x128xf32>
    %117 = arith.addf %111, %116 : vector<256x128xf32>
    %c2_130 = arith.constant 2 : index
    %c1_131 = arith.constant 1 : index
    %c0_132 = arith.constant 0 : index
    %118 = vector.load %arg9[%c2_130, %c1_131, %c0_132] : memref<18x18x128xbf16, #tpu.memory_space<vmem>>, vector<16x16x128xbf16>
    %119 = vector.shape_cast %118 : vector<16x16x128xbf16> to vector<256x128xbf16>
    %c7_133 = arith.constant 7 : index
    %c0_134 = arith.constant 0 : index
    %c0_135 = arith.constant 0 : index
    %120 = vector.load %arg5[%c7_133, %c0_134, %c0_135] : memref<9x128x128xbf16, #tpu.memory_space<vmem>>, vector<1x128x128xbf16>
    %121 = vector.shape_cast %120 : vector<1x128x128xbf16> to vector<128x128xbf16>
    %cst_136 = arith.constant dense<0.000000e+00> : vector<256x128xf32>
    %122 = tpu.matmul %119, %121, %cst_136 {dimension_numbers = #tpu.dot_dimension_numbers<[1], [0], [0], [1], [0, 0, 1, 1], [], []>} : vector<256x128xbf16>, vector<128x128xbf16>, vector<256x128xf32> -> vector<256x128xf32>
    %123 = arith.addf %117, %122 : vector<256x128xf32>
    %c2_137 = arith.constant 2 : index
    %c2_138 = arith.constant 2 : index
    %c0_139 = arith.constant 0 : index
    %124 = vector.load %arg9[%c2_137, %c2_138, %c0_139] : memref<18x18x128xbf16, #tpu.memory_space<vmem>>, vector<16x16x128xbf16>
    %125 = vector.shape_cast %124 : vector<16x16x128xbf16> to vector<256x128xbf16>
    %c8_140 = arith.constant 8 : index
    %c0_141 = arith.constant 0 : index
    %c0_142 = arith.constant 0 : index
    %126 = vector.load %arg5[%c8_140, %c0_141, %c0_142] : memref<9x128x128xbf16, #tpu.memory_space<vmem>>, vector<1x128x128xbf16>
    %127 = vector.shape_cast %126 : vector<1x128x128xbf16> to vector<128x128xbf16>
    %cst_143 = arith.constant dense<0.000000e+00> : vector<256x128xf32>
    %128 = tpu.matmul %125, %127, %cst_143 {dimension_numbers = #tpu.dot_dimension_numbers<[1], [0], [0], [1], [0, 0, 1, 1], [], []>} : vector<256x128xbf16>, vector<128x128xbf16>, vector<256x128xf32> -> vector<256x128xf32>
    %129 = arith.addf %123, %128 : vector<256x128xf32>
    %c0_144 = arith.constant 0 : index
    %c0_145 = arith.constant 0 : index
    %c0_146 = arith.constant 0 : index
    %c0_147 = arith.constant 0 : index
    %130 = vector.load %arg1[%c0_144, %c0_145, %c0_146, %c0_147] : memref<1x16x16x128xbf16, #tpu.memory_space<vmem>>, vector<1x16x16x128xbf16>
    %131 = vector.shape_cast %130 : vector<1x16x16x128xbf16> to vector<16x16x128xbf16>
    %132 = vector.shape_cast %131 : vector<16x16x128xbf16> to vector<256x128xbf16>
    %133 = arith.extf %132 : vector<256x128xbf16> to vector<256x128xf32>
    %c0_148 = arith.constant 0 : index
    %c0_149 = arith.constant 0 : index
    %134 = vector.load %arg6[%c0_148, %c0_149] : memref<1x128xf32, #tpu.memory_space<vmem>>, vector<1x128xf32>
    %135 = vector.shape_cast %134 : vector<1x128xf32> to vector<128xf32>
    %136 = vector.shape_cast %135 : vector<128xf32> to vector<1x128xf32>
    %137 = vector.broadcast %136 : vector<1x128xf32> to vector<256x128xf32>
    %138 = arith.mulf %129, %137 : vector<256x128xf32>
    %c0_150 = arith.constant 0 : index
    %c0_151 = arith.constant 0 : index
    %139 = vector.load %arg7[%c0_150, %c0_151] : memref<1x128xf32, #tpu.memory_space<vmem>>, vector<1x128xf32>
    %140 = vector.shape_cast %139 : vector<1x128xf32> to vector<128xf32>
    %141 = vector.shape_cast %140 : vector<128xf32> to vector<1x128xf32>
    %142 = vector.broadcast %141 : vector<1x128xf32> to vector<256x128xf32>
    %143 = arith.addf %138, %142 : vector<256x128xf32>
    %144 = arith.addf %143, %133 : vector<256x128xf32>
    %cst_152 = arith.constant 0.000000e+00 : f32
    %145 = vector.broadcast %cst_152 : f32 to vector<256x128xf32>
    %146 = arith.maximumf %144, %145 : vector<256x128xf32>
    %147 = arith.truncf %146 : vector<256x128xf32> to vector<256x128xbf16>
    %c0_153 = arith.constant 0 : index
    %c0_154 = arith.constant 0 : index
    %c0_155 = arith.constant 0 : index
    %148 = vector.load %arg8[%c0_153, %c0_154, %c0_155] : memref<1x256x128xbf16, #tpu.memory_space<vmem>>, vector<1x256x128xbf16>
    %149 = vector.shape_cast %148 : vector<1x256x128xbf16> to vector<256x128xbf16>
    %150 = vector.shape_cast %147 : vector<256x128xbf16> to vector<1x256x128xbf16>
    tpu.vector_store %arg8[%c0_153, %c0_154, %c0_155], %150 {strides = array<i32>} : memref<1x256x128xbf16, #tpu.memory_space<vmem>>, vector<1x256x128xbf16>,
    return
  }
  func.func @transform_0(%arg0: i32) -> (i32, i32, i32, i32) {
    %c0_i32 = arith.constant 0 : i32
    %c0_i32_0 = arith.constant 0 : i32
    %c0_i32_1 = arith.constant 0 : i32
    %c0_i32_2 = arith.constant 0 : i32
    return %arg0, %c0_i32, %c0_i32_0, %c0_i32_1 : i32, i32, i32, i32
  }
  func.func @transform_1(%arg0: i32) -> (i32, i32, i32) {
    %c0_i32 = arith.constant 0 : i32
    %c0_i32_0 = arith.constant 0 : i32
    %c0_i32_1 = arith.constant 0 : i32
    %c0_i32_2 = arith.constant 0 : i32
    return %c0_i32, %c0_i32_0, %c0_i32_1 : i32, i32, i32
  }
  func.func @transform_2(%arg0: i32) -> (i32, i32) {
    %c0_i32 = arith.constant 0 : i32
    %c0_i32_0 = arith.constant 0 : i32
    %c0_i32_1 = arith.constant 0 : i32
    return %c0_i32, %c0_i32_0 : i32, i32
  }
  func.func @transform_3(%arg0: i32) -> (i32, i32) {
    %c0_i32 = arith.constant 0 : i32
    %c0_i32_0 = arith.constant 0 : i32
    %c0_i32_1 = arith.constant 0 : i32
    return %c0_i32, %c0_i32_0 : i32, i32
  }
  func.func @transform_4(%arg0: i32) -> (i32, i32, i32) {
    %c0_i32 = arith.constant 0 : i32
    %c0_i32_0 = arith.constant 0 : i32
    %c0_i32_1 = arith.constant 0 : i32
    %c0_i32_2 = arith.constant 0 : i32
    return %c0_i32, %c0_i32_0, %c0_i32_1 : i32, i32, i32
  }
  func.func @transform_5(%arg0: i32) -> (i32, i32) {
    %c0_i32 = arith.constant 0 : i32
    %c0_i32_0 = arith.constant 0 : i32
    %c0_i32_1 = arith.constant 0 : i32
    return %c0_i32, %c0_i32_0 : i32, i32
  }
  func.func @transform_6(%arg0: i32) -> (i32, i32) {
    %c0_i32 = arith.constant 0 : i32
    %c0_i32_0 = arith.constant 0 : i32
    %c0_i32_1 = arith.constant 0 : i32
    return %c0_i32, %c0_i32_0 : i32, i32
  }
  func.func @transform_7(%arg0: i32) -> (i32, i32, i32) {
    %c0_i32 = arith.constant 0 : i32
    %c0_i32_0 = arith.constant 0 : i32
    %c0_i32_1 = arith.constant 0 : i32
    return %arg0, %c0_i32, %c0_i32_0 : i32, i32, i32
  }
}

</mosaic_0001>

<bundles_post_ra>
// kernel: _lambda_.1
= control target key start
LH: loop header
LB: loop body
LE: loop exit
PB: predicated region body
PF: predicated region fallthrough
CT: control target
= control target key end

     0   :  { %12 = vsyncpa [#allocation4], 0  ;;  %s14771_s24 = smov 0   ;;  %s18009_s0 = inlined_call_operand.vmem [shape: bf16[2,16,16,128], index: 0, kind: input, shape index: {}]   ;;  %s18010_s1 = inlined_call_operand.hbm [shape: bf16[9,128,128], index: 1, kind: input, shape index: {}]   ;;  %s18011_s2 = inlined_call_operand.vmem [shape: f32[1,128], index: 2, kind: input, shape index: {}]   ;;  %s18012_s3 = inlined_call_operand.vmem [shape: f32[1,128], index: 3, kind: input, shape index: {}]   ;;  %s18013_s4 = inlined_call_operand.vmem [shape: bf16[9,128,128], index: 4, kind: input, shape index: {}]   ;;  %s18014_s5 = inlined_call_operand.vmem [shape: f32[1,128], index: 5, kind: input, shape index: {}]   ;;  %s18015_s6 = inlined_call_operand.vmem [shape: f32[1,128], index: 6, kind: input, shape index: {}]   ;;  %s18016_s7 = inlined_call_operand.vmem [shape: bf16[2,256,128], index: 7, kind: output, shape index: {}]  }
   0x1 LB: > { %s14777_s25 = sadd.s32 4294967295, %s14725_s24   ;;  %p11565_p0 = scmp.ge.s32.totalorder %s14725_s24, 1  ;;  %s14725_s24 = sphi %s14771_s24, %s18_s24  }
   0x2   : > { %p201_p1 = scmp.lt.s32.totalorder %s14725_s24, 3  ;;  %s14727_s26 = smov [#allocation3]  }
   0x3   : > { %s213_s27 = sshll.u32 %s14727_s26, 4  ;;  %p18017_p3 = scmp.eq.s32.totalorder %s14777_s25, 0  ;;  %s214_s27 = int_to_ptr.vmem [resolvable:$true] %s213_s27 }
   0x4   : > { %p14781_p2 = pnand %p11565_p0, %p201_p1  ;;  %s14687_s9 = scalar_lea.hbm %s18010_s1, 9216 }
   0x5   : > { %p14688_p6 = scmp.ne.s32.totalorder %s18010_s1, %s14687_s9  ;;  %p14694_p10 = scmp.lt.u32.totalorder %s14687_s9, %s18010_s1 }
   0x6   : > { %s18097_s28 = scalar_select %p14781_p2, 1, 0 }
   0x7   : > { %p14352_p4 = pneg %p14781_p2 }
   0x9   : > { %p14790_p5 = pnand %p18017_p3, %p14352_p4 }
   0xb   : > { %p14689_p7 = pneg %p14790_p5 }
   0xd   : > { %p14690_p8 = pnand %p14689_p7, %p14688_p6 }
   0xf   : > { %p14691_p9 = pneg %p14690_p8 }
  0x11   : > { %p14696_p11 = pnand %p14694_p10, %p14691_p9 }
  0x13   : > { %14699 = shalt.err (!%p14696_p11)
}
  0x14   : > { %s14700_s14 = scalar_lea.vmem %s214_s27, 9216  ;;  %p14708_p1 = scmp.lt.s32.totalorder %s214_s27, %s214_s27 }
  0x15   : > { %p14701_p12 = scmp.ne.s32.totalorder %s214_s27, %s14700_s14  ;;  %p14709_p4 = scmp.lt.s32.totalorder %s14700_s14, %s14700_s14 }
  0x17   : > { %p14703_p13 = pnand %p14701_p12, %p14689_p7  ;;  %p14710_p3 = por %p14709_p4, %p14708_p1 }
  0x19   : > { %p14704_p0 = pneg %p14703_p13 }
  0x1b   : > { %p14711_p2 = pnand %p14710_p3, %p14704_p0 }
  0x1d   : > { %14714 = shalt.err (!%p14711_p2)
}
  0x1e   : > { %s14728_s15 = smov 64   ;;  %s14729_s16 = smov 4  }
  0x1f   : > { %14355 = dma.hbm_to_vmem [thread:$0]  (!%p14790_p5), %s18010_s1, 9216, %s214_s27, [#allocation4], %s14728_s15, %s14728_s15, %s14729_s16  }
  0x20   : > { %p18099_p6 = scmp.ne.s32.totalorder %s18097_s28, 0 }
  0x22   : > { %252 = sbr.rel (%p18099_p6) target bundleno = 1770 (0x6ea), region = 48 }
  0x29   : > { %p18100_p8 = scmp.eq.s32.totalorder %s14777_s25, 0 }
  0x2b   : > { %14720 = dma.done.wait (%p18100_p8), [#allocation4], 9216   ;;  %p18101_p7 = pmov %p18100_p8 }
  0x2c   : > { %v14730_v0 = vmov 0   ;;  %p284_p2 = scmp.lt.s32.totalorder %s14777_s25, 1  ;;  %v14370_v1 = vld [vmem:[#allocation3 + $0x40] sm:$0xff]   ;;  %v14371_v2 = vld [vmem:[#allocation3 + $0x48] sm:$0xff]   ;;  %vm302_vm0 = vcmask 1040384   ;;  %v14372_v3 = vld [vmem:[#allocation3 + $0x50] sm:$0xff]  }
  0x2d   : > { %14722 = vsyncadd (%p18101_p7), [#allocation4], 4294958080  ;;  %295 = vst [vmem:[#allocation2] sm:$0xf] %v14730_v0  ;;  %12972 = vmatprep.subr.bf16.mxu0 %v14370_v1  ;;  %vm303_vm1 = vsmask.f32 256 }
  0x2e   : > { %296 = vst [vmem:[#allocation2 + $0x4] sm:$0xf] %v14730_v0  ;;  %297 = vst [vmem:[#allocation2 + $0x8] sm:$0x1] %v14730_v0  ;;  %s18302_s25 = smov (!%p284_p2, %s14777_s25), 1  ;;  %12973 = vmatpush3.bf16.msra.mxu0 %v14370_v1  ;;  %v18102_v4 = vmov 0 }
  0x2f   : > { %299 = vst [vmem:[#allocation2 + $0xcc] sm:$0xf] %v14730_v0  ;;  %300 = vst [vmem:[#allocation2 + $0xd0] sm:$0xf] %v14730_v0  ;;  %vm359_vm2 = vsmask.f32 7938  ;;  %12974 = vmatprep.subr.bf16.mxu0 %v14371_v2 }
  0x30   : > { %301 = vst [vmem:[#allocation2 + $0xd4] sm:$0x1] %v14730_v0  ;;  %s12300_s19 = sshll.u32 %s18302_s25, 7  ;;  %vm14822_vm3 = vmand %vm302_vm0, %vm303_vm1  ;;  %v18105_v5 = vmov 0  ;;  %vm447_vm5 = vsmask.f32 4368 }
  0x31   : > { %v18103_v4 = vsel %vm14822_vm3, 4294967295, %v18102_v4  ;;  %vm14827_vm4 = vmand %vm302_vm0, %vm359_vm2  ;;  %v14373_v6 = vld [vmem:[#allocation3 + $0x58] sm:$0xff]   ;;  %s14836_s22 = scalar_lea.vmem %s18009_s0, %s12300_s19  ;;  %v308_v14 = vld [vmem:[#allocation2 + $0xc] sm:$0x1]  ;;  %vm770_vm6 = vcmask 1043456   ;;  %v18108_v34 = vmov 0  ;;  %s17921_s8 = scalar_lea.vmem %s18016_s7, %s12300_s19 }
  0x32   : > { %18104 = vst [vmem:[#allocation6_spill] sm:$0xff] %v18103_v4  ;;  %v18106_v5 = vsel %vm14827_vm4, 4294967295, %v18105_v5  ;;  %12975 = vmatpush3.bf16.msra.mxu0 %v14371_v2  ;;  %vm948_vm7 = vsmask.f32 3328  ;;  %v309_v15 = vsel %vm14822_vm3, 0, %v308_v14  ;;  %v14374_v23 = vld [vmem:[#allocation3 + $0x60] sm:$0xff]   ;;  %vm14856_vm8 = vmand %vm770_vm6, %vm359_vm2 }
  0x33   : > { %18107 = vst [vmem:[#allocation7_spill] sm:$0xff] %v18106_v5  ;;  %12976 = vmatprep.subr.bf16.mxu0 %v14372_v3  ;;  %v364_v16 = vld [vmem:[#allocation2 + $0x14] sm:$0x1]  ;;  %v415_v17 = vld [vmem:[%s14836_s22] sm:$0xf]  ;;  %v18109_v34 = vsel %vm14856_vm8, 4294967295, %v18108_v34  ;;  %vm14865_vm10 = vmor %vm303_vm1, %vm447_vm5 }
  0x34   : > { %v305_v7 = vld [vmem:[#allocation2] sm:$0x1]  ;;  %310 = vst [vmem:[#allocation2 + $0xc] sm:$0x1] %v309_v15  ;;  %v365_v20 = vsel %vm14827_vm4, 0, %v364_v16  ;;  %v450_v22 = vshrl.u32 %v415_v17, 16 }
  0x35   : > { %v361_v8 = vld [vmem:[#allocation2 + $0x8] sm:$0x1]  ;;  %v885_v9 = vld [vmem:[#allocation2 + $0x4] sm:$0xf]  ;;  %v306_v10 = vsel %vm14822_vm3, 0, %v305_v7  ;;  %v453_v24 = vshll.u32 %v415_v17, 16 }
  0x36   : > { %v362_v11 = vsel %vm14827_vm4, 0, %v361_v8  ;;  %v961_v12 = vshll.u32 %v885_v9, 16  ;;  %v965_v13 = vshrl.u32 %v885_v9, 16  ;;  %307 = vst [vmem:[#allocation2] sm:$0x1] %v306_v10  ;;  %12977 = vmatpush3.bf16.msra.mxu0 %v14372_v3  ;;  %v452_v27 = vrot.slane %v450_v22, 7 }
  0x37   : > { %363 = vst [vmem:[#allocation2 + $0x8] sm:$0x1] %v362_v11  ;;  %v416_v21 = vld [vmem:[%s14836_s22 + $0x4] sm:$0xf]  ;;  %12978 = vmatprep.subr.bf16.mxu0 %v14373_v6  ;;  %366 = vst [vmem:[#allocation2 + $0x14] sm:$0x1] %v365_v20 }
  0x38   : > { %v14845_v18 = vrot.slane %v961_v12, 5  ;;  %v967_v19 = vrot.slane %v965_v13, 4  ;;  %v458_v25 = vshrl.u32 %v416_v21, 16  ;;  %v461_v26 = vshll.u32 %v416_v21, 16  ;;  %v311_v28 = vld [vmem:[#allocation2 + $0x18] sm:$0x1] }
  0x39   : > { %v312_v31 = vsel %vm14822_vm3, 0, %v311_v28  ;;  %v367_v32 = vld [vmem:[#allocation2 + $0x20] sm:$0x1]  ;;  %v417_v33 = vld [vmem:[%s14836_s22 + $0x8] sm:$0xf]  ;;  %18110 = vst [vmem:[#allocation8_spill] sm:$0xff] %v18109_v34  ;;  %v455_v35 = vor.u32 %v453_v24, %v452_v27 }
  0x3a   : > { %v968_v29 = vor.u32 %v967_v19, %v14845_v18  ;;  %v460_v30 = vrot.slane %v458_v25, 7  ;;  %12979 = vmatpush3.bf16.msra.mxu0 %v14373_v6  ;;  %vm949_vm9 = vsmask.f32 7440  ;;  %v456_v36 = vrot.slane %v452_v27, 4  ;;  %313 = vst [vmem:[#allocation2 + $0x18] sm:$0x1] %v312_v31 }
  0x3b   : > { %v368_v37 = vsel %vm14827_vm4, 0, %v367_v32  ;;  %v418_v38 = vld [vmem:[%s14836_s22 + $0xc] sm:$0xf]  ;;  %12980 = vmatprep.subr.bf16.mxu0 %v14374_v23  ;;  %v14375_v39 = vld [vmem:[#allocation3 + $0x68] sm:$0xff]   ;;  %v18111_v40 = vmov 0  ;;  %v467_v43 = vshrl.u32 %v417_v33, 16  ;;  %vm14880_vm11 = vmor %vm948_vm7, %vm949_vm9 }
  0x3c   : > { %v18112_v40 = vsel %vm14865_vm10, 4294967295, %v18111_v40  ;;  %v463_v41 = vor.u32 %v461_v26, %v460_v30  ;;  %v465_v42 = vrot.slane %v460_v30, 4  ;;  %369 = vst [vmem:[#allocation2 + $0x20] sm:$0x1] %v368_v37  ;;  %v470_v44 = vshll.u32 %v417_v33, 16  ;;  %v14376_v61 = vld [vmem:[#allocation3 + $0x70] sm:$0xff]  }
  0x3d   : > { %18113 = vst [vmem:[#allocation9_spill] sm:$0xff] %v18112_v40  ;;  %v884_v45 = vld [vmem:[#allocation2] sm:$0xf]  ;;  %v475_v47 = vshrl.u32 %v418_v38, 16  ;;  %v478_v48 = vshll.u32 %v418_v38, 16  ;;  %v14869_v52 = vrot.slane %v968_v29, 4 }
  0x3e   : > { %v932_v46 = vld [vmem:[#allocation2 + $0x8] sm:$0x1]  ;;  %v314_v49 = vld [vmem:[#allocation2 + $0x24] sm:$0x1]  ;;  %v952_v50 = vshrl.u32 %v884_v45, 16  ;;  %v955_v51 = vshll.u32 %v884_v45, 16  ;;  %12981 = vmatpush3.bf16.msra.mxu0 %v14374_v23  ;;  %v464_v55 = vsel %vm14865_vm10, %v456_v36, %v463_v41 }
  0x3f   : > { %v971_v53 = vshll.u32 %v932_v46, 16  ;;  %v772_v54 = vld [vmem:[#allocation2 + $0xc] sm:$0xf]  ;;  %v776_v57 = vld [vmem:[#allocation2 + $0x14] sm:$0x1]  ;;  %v469_v58 = vrot.slane %v467_v43, 7  ;;  %12982 = vmatprep.subr.bf16.mxu0 %v14375_v39 }
  0x40   : > { %v773_v56 = vsel %vm14856_vm8, %v455_v35, %v772_v54  ;;  %v477_v59 = vrot.slane %v475_v47, 7  ;;  %v370_v60 = vld [vmem:[#allocation2 + $0x2c] sm:$0x1]  ;;  %v954_v62 = vrot.slane %v952_v50, 4  ;;  %v957_v63 = vrot.slane %v955_v51, 5  ;;  %v14377_v22 = vld [vmem:[#allocation3 + $0x78] sm:$0xff]  }
  0x41   : > { %v973_v0 = vrot.slane %v971_v53, 5  ;;  %774 = vst [vmem:[#allocation2 + $0xc] sm:$0xf] %v773_v56  ;;  %775 = vst [vmem:[#allocation2 + $0x10] sm:$0xf] %v464_v55  ;;  %v777_v1 = vsel %vm14822_vm3, %v465_v42, %v776_v57  ;;  %v472_v6 = vor.u32 %v470_v44, %v469_v58  ;;  %v473_v7 = vrot.slane %v469_v58, 4 }
  0x42   : > { %v419_v2 = vld [vmem:[%s14836_s22 + $0x10] sm:$0xf]  ;;  %778 = vst [vmem:[#allocation2 + $0x14] sm:$0x1] %v777_v1  ;;  %v480_v8 = vor.u32 %v478_v48, %v477_v59  ;;  %v482_v9 = vrot.slane %v477_v59, 4  ;;  %v958_v11 = vor.u32 %v957_v63, %v954_v62  ;;  %v315_v13 = vsel %vm14822_vm3, 0, %v314_v49  ;;  %12983 = vmatpush3.bf16.msra.mxu0 %v14375_v39 }
  0x43   : > { %v420_v10 = vld [vmem:[%s14836_s22 + $0x14] sm:$0xf]  ;;  %v779_v12 = vld [vmem:[#allocation2 + $0x18] sm:$0xf]  ;;  %v371_v14 = vsel %vm14827_vm4, 0, %v370_v60  ;;  %v484_v19 = vshrl.u32 %v419_v2, 16  ;;  %12984 = vmatprep.subr.bf16.mxu0 %v14376_v61  ;;  %v974_v24 = vsel %vm14880_vm11, %v14869_v52, %v973_v0 }
  0x44   : > { %v481_v15 = vsel %vm14865_vm10, %v473_v7, %v480_v8  ;;  %v780_v16 = vsel %vm14856_vm8, %v472_v6, %v779_v12  ;;  %v783_v17 = vld [vmem:[#allocation2 + $0x20] sm:$0x1]  ;;  %316 = vst [vmem:[#allocation2 + $0x24] sm:$0x1] %v315_v13  ;;  %372 = vst [vmem:[#allocation2 + $0x2c] sm:$0x1] %v371_v14 }
  0x45   : > { %v487_v20 = vshll.u32 %v419_v2, 16  ;;  %v317_v21 = vld [vmem:[#allocation2 + $0x30] sm:$0x1]  ;;  %v959_v23 = vrot.slane %v958_v11, 4  ;;  %781 = vst [vmem:[#allocation2 + $0x18] sm:$0xf] %v780_v16  ;;  %v784_v25 = vsel %vm14822_vm3, %v482_v9, %v783_v17 }
  0x46   : > { %782 = vst [vmem:[#allocation2 + $0x1c] sm:$0xf] %v481_v15  ;;  %v492_v26 = vshrl.u32 %v420_v10, 16  ;;  %v373_v27 = vld [vmem:[#allocation2 + $0x38] sm:$0x1]  ;;  %v486_v28 = vrot.slane %v484_v19, 7  ;;  %12985 = vmatpush3.bf16.msra.mxu0 %v14376_v61 }
  0x47   : > { %785 = vst [vmem:[#allocation2 + $0x20] sm:$0x1] %v784_v25  ;;  %v495_v29 = vshll.u32 %v420_v10, 16  ;;  %v318_v30 = vsel %vm14822_vm3, 0, %v317_v21  ;;  %v374_v31 = vsel %vm14827_vm4, 0, %v373_v27  ;;  %v964_v33 = vsel %vm14880_vm11, %v959_v23, %v14845_v18  ;;  %v14906_v35 = vld [vmem:[#allocation3] sm:$0xff]   ;;  %12986 = vmatprep.subr.bf16.mxu0 %v14377_v22 }
  0x48   : > { %v421_v32 = vld [vmem:[%s14836_s22 + $0x18] sm:$0xf]  ;;  %v494_v36 = vrot.slane %v492_v26, 7  ;;  %319 = vst [vmem:[#allocation2 + $0x30] sm:$0x1] %v318_v30  ;;  %v11574_v39 = vcombine.low %v964_v33, %v974_v24  ;;  %v489_v43 = vor.u32 %v487_v20, %v486_v28  ;;  %v490_v44 = vrot.slane %v486_v28, 4 }
  0x49   : > { %375 = vst [vmem:[#allocation2 + $0x38] sm:$0x1] %v374_v31  ;;  %v14909_v37 = vld [vmem:[%s14836_s22 + $0x1c] sm:$0xf]  ;;  %v501_v38 = vshrl.u32 %v421_v32, 16  ;;  %v504_v45 = vshll.u32 %v421_v32, 16 }
  0x4a   : > { %v886_v41 = vld [vmem:[#allocation2 + $0xc] sm:$0xf]  ;;  %v887_v42 = vld [vmem:[#allocation2 + $0x10] sm:$0xf]  ;;  %v933_v46 = vld [vmem:[#allocation2 + $0x14] sm:$0x1]  ;;  %12988 = vmatprep.mubr.bf16.mxu0 %v11574_v39  ;;  %v497_v51 = vor.u32 %v495_v29, %v494_v36  ;;  %12987 = vmatpush3.bf16.msra.mxu0 %v14377_v22 }
  0x4b   : > { %v976_v47 = vshrl.u32 %v886_v41, 16  ;;  %v979_v48 = vshll.u32 %v886_v41, 16  ;;  %v985_v18 = vshll.u32 %v887_v42, 16  ;;  %v989_v49 = vshrl.u32 %v887_v42, 16  ;;  %v786_v58 = vld [vmem:[#allocation2 + $0x24] sm:$0xf]  ;;  %13020 = vmatprep.subr.bf16.mxu0 %v14906_v35 }
  0x4c   : > { %v995_v50 = vshll.u32 %v933_v46, 16  ;;  %v499_v52 = vrot.slane %v494_v36, 4  ;;  %v509_v53 = vshrl.u32 %v14909_v37, 16  ;;  %v888_v60 = vld [vmem:[#allocation2 + $0x18] sm:$0xf]  ;;  %v498_v62 = vsel %vm14865_vm10, %v490_v44, %v497_v51  ;;  %v14379_v29 = vld [vmem:[#allocation3 + $0x8] sm:$0xff]  }
  0x4d   : > { %v978_v54 = vrot.slane %v976_v47, 4  ;;  %v981_v55 = vrot.slane %v979_v48, 5  ;;  %v987_v56 = vrot.slane %v985_v18, 5  ;;  %v991_v57 = vrot.slane %v989_v49, 4  ;;  %v889_v61 = vld [vmem:[#allocation2 + $0x1c] sm:$0xf] }
  0x4e   : > { %v997_v59 = vrot.slane %v995_v50, 5  ;;  %v787_v63 = vsel %vm14856_vm8, %v489_v43, %v786_v58  ;;  %v503_v0 = vrot.slane %v501_v38, 7  ;;  %v934_v6 = vld [vmem:[#allocation2 + $0x20] sm:$0x1]  ;;  %v1000_v7 = vshrl.u32 %v888_v60, 16 }
  0x4f   : > { %v982_v1 = vor.u32 %v981_v55, %v978_v54  ;;  %v992_v2 = vor.u32 %v991_v57, %v987_v56  ;;  %v1003_v8 = vshll.u32 %v888_v60, 16  ;;  %788 = vst [vmem:[#allocation2 + $0x24] sm:$0xf] %v787_v63  ;;  %789 = vst [vmem:[#allocation2 + $0x28] sm:$0xf] %v498_v62  ;;  %v1009_v10 = vshll.u32 %v889_v61, 16 }
  0x50   : > { %v790_v9 = vld [vmem:[#allocation2 + $0x2c] sm:$0x1]  ;;  %v1013_v11 = vshrl.u32 %v889_v61, 16  ;;  %v1019_v12 = vshll.u32 %v934_v6, 16  ;;  %v320_v14 = vld [vmem:[#allocation2 + $0x3c] sm:$0x1]  ;;  %v506_v24 = vor.u32 %v504_v45, %v503_v0 }
  0x51   : > { %v791_v13 = vsel %vm14822_vm3, %v499_v52, %v790_v9  ;;  %v983_v15 = vrot.slane %v982_v1, 4  ;;  %v993_v16 = vrot.slane %v992_v2, 4  ;;  %v1002_v17 = vrot.slane %v1000_v7, 4  ;;  %v793_v20 = vld [vmem:[#allocation2 + $0x30] sm:$0xf] }
  0x52   : > { %v1005_v19 = vrot.slane %v1003_v8, 5  ;;  %792 = vst [vmem:[#allocation2 + $0x2c] sm:$0x1] %v791_v13  ;;  %v1011_v21 = vrot.slane %v1009_v10, 5  ;;  %v1015_v22 = vrot.slane %v1013_v11, 4  ;;  %v1021_v23 = vrot.slane %v1019_v12, 5 }
  0x53   : > { %v376_v25 = vld [vmem:[#allocation2 + $0x44] sm:$0x1]  ;;  %v988_v26 = vsel %vm14880_vm11, %v983_v15, %v987_v56  ;;  %v998_v27 = vsel %vm14880_vm11, %v993_v16, %v997_v59  ;;  %v507_v30 = vrot.slane %v503_v0, 4  ;;  %v797_v31 = vld [vmem:[#allocation2 + $0x38] sm:$0x1]  ;;  %v511_v36 = vrot.slane %v509_v53, 7 }
  0x54   : > { %v1006_v28 = vor.u32 %v1005_v19, %v1002_v17  ;;  %v11575_v32 = vcombine.low %v988_v26, %v998_v27  ;;  %v1016_v33 = vor.u32 %v1015_v22, %v1011_v21  ;;  %v512_v38 = vshll.u32 %v14909_v37, 16  ;;  %v423_v44 = vld [vmem:[%s14836_s22 + $0x20] sm:$0xf]  ;;  %v424_v52 = vld [vmem:[%s14836_s22 + $0x24] sm:$0xf]  ;;  %v14381_v15 = vld [vmem:[#allocation3 + $0x18] sm:$0xff]  }
  0x55   : > { %v794_v41 = vsel %vm14856_vm8, %v506_v24, %v793_v20  ;;  %v321_v42 = vsel %vm14822_vm3, 0, %v320_v14  ;;  %v377_v43 = vsel %vm14827_vm4, 0, %v376_v25  ;;  %v516_v18 = vrot.slane %v511_v36, 4  ;;  %v323_v58 = vld [vmem:[#allocation2 + $0x48] sm:$0x1] }
  0x56   : > { %v1007_v39 = vrot.slane %v1006_v28, 4  ;;  %12989 = vmatmul.mubr.bf16.vlgmr.msra.gmra.mrb[0].mxu0 %v11575_v32  ;;  %v1017_v45 = vrot.slane %v1016_v33, 4  ;;  %v890_v46 = vld [vmem:[#allocation2 + $0x24] sm:$0xf]  ;;  %v891_v47 = vld [vmem:[#allocation2 + $0x28] sm:$0xf]  ;;  %v514_v48 = vor.u32 %v512_v38, %v511_v36 }
  0x57   : > { %795 = vst [vmem:[#allocation2 + $0x30] sm:$0xf] %v794_v41  ;;  %322 = vst [vmem:[#allocation2 + $0x3c] sm:$0x1] %v321_v42  ;;  %13021 = vmatpush3.bf16.msra.mxu0 %v14906_v35  ;;  %v1024_v49 = vshrl.u32 %v890_v46, 16  ;;  %v1027_v50 = vshll.u32 %v890_v46, 16  ;;  %v798_v57 = vsel %vm14822_vm3, %v516_v18, %v797_v31 }
  0x58   : > { %378 = vst [vmem:[#allocation2 + $0x44] sm:$0x1] %v377_v43  ;;  %v1012_v37 = vsel %vm14880_vm11, %v1007_v39, %v1011_v21  ;;  %v1033_v51 = vshll.u32 %v891_v47, 16  ;;  %v1022_v53 = vsel %vm14880_vm11, %v1017_v45, %v1021_v23  ;;  %v1037_v55 = vshrl.u32 %v891_v47, 16  ;;  %13022 = vmatprep.subr.bf16.mxu0 %v14379_v29  ;;  %v14380_v35 = vld [vmem:[#allocation3 + $0x10] sm:$0xff]   ;;  %v14382_v47 = vld [vmem:[#allocation3 + $0x20] sm:$0xff]  }
  0x59   : > { %v935_v54 = vld [vmem:[#allocation2 + $0x2c] sm:$0x1]  ;;  %v515_v56 = vsel %vm14865_vm10, %v507_v30, %v514_v48  ;;  %v11576_v59 = vcombine.low %v1012_v37, %v1022_v53  ;;  %v1026_v60 = vrot.slane %v1024_v49, 4  ;;  %v1029_v61 = vrot.slane %v1027_v50, 5  ;;  %799 = vst [vmem:[#allocation2 + $0x38] sm:$0x1] %v798_v57 }
  0x5a   : > { %v1035_v62 = vrot.slane %v1033_v51, 5  ;;  %796 = vst [vmem:[#allocation2 + $0x34] sm:$0xf] %v515_v56  ;;  %v379_v63 = vld [vmem:[#allocation2 + $0x50] sm:$0x1]  ;;  %v1039_v0 = vrot.slane %v1037_v55, 4 }
  0x5b   : > { %v1043_v1 = vshll.u32 %v935_v54, 16  ;;  %v518_v2 = vshrl.u32 %v423_v44, 16  ;;  %v521_v6 = vshll.u32 %v423_v44, 16  ;;  %12992 = vmatprep.mubr.bf16.mxu0 %v11576_v59  ;;  %v1030_v7 = vor.u32 %v1029_v61, %v1026_v60  ;;  %13023 = vmatpush3.bf16.msra.mxu0 %v14379_v29  ;;  %v425_v25 = vld [vmem:[%s14836_s22 + $0x28] sm:$0xf] }
  0x5c   : > { %v526_v8 = vshrl.u32 %v424_v52, 16  ;;  %v529_v9 = vshll.u32 %v424_v52, 16  ;;  %v324_v10 = vsel %vm14822_vm3, 0, %v323_v58  ;;  %v1040_v11 = vor.u32 %v1039_v0, %v1035_v62  ;;  %13024 = vmatprep.subr.bf16.mxu0 %v14380_v35  ;;  %v426_v31 = vld [vmem:[%s14836_s22 + $0x2c] sm:$0xf] }
  0x5d   : > { %v1045_v12 = vrot.slane %v1043_v1, 5  ;;  %v520_v13 = vrot.slane %v518_v2, 7  ;;  %325 = vst [vmem:[#allocation2 + $0x48] sm:$0x1] %v324_v10  ;;  %v380_v14 = vsel %vm14827_vm4, 0, %v379_v63  ;;  %v1031_v16 = vrot.slane %v1030_v7, 4 }
  0x5e   : > { %v892_v17 = vld [vmem:[#allocation2 + $0x30] sm:$0xf]  ;;  %v528_v19 = vrot.slane %v526_v8, 7  ;;  %v800_v20 = vld [vmem:[#allocation2 + $0x3c] sm:$0xf]  ;;  %v1041_v21 = vrot.slane %v1040_v11, 4 }
  0x5f   : > { %381 = vst [vmem:[#allocation2 + $0x50] sm:$0x1] %v380_v14  ;;  %v1048_v22 = vshrl.u32 %v892_v17, 16  ;;  %v1051_v23 = vshll.u32 %v892_v17, 16  ;;  %v523_v24 = vor.u32 %v521_v6, %v520_v13  ;;  %v1036_v26 = vsel %vm14880_vm11, %v1031_v16, %v1035_v62  ;;  %v804_v30 = vld [vmem:[#allocation2 + $0x44] sm:$0x1]  ;;  %13025 = vmatpush3.bf16.msra.mxu0 %v14380_v35 }
  0x60   : > { %v524_v27 = vrot.slane %v520_v13, 4  ;;  %v531_v28 = vor.u32 %v529_v9, %v528_v19  ;;  %v533_v29 = vrot.slane %v528_v19, 4  ;;  %v1046_v32 = vsel %vm14880_vm11, %v1041_v21, %v1045_v12  ;;  %v936_v36 = vld [vmem:[#allocation2 + $0x38] sm:$0x1]  ;;  %v326_v42 = vld [vmem:[#allocation2 + $0x54] sm:$0x1]  ;;  %13026 = vmatprep.subr.bf16.mxu0 %v14381_v15 }
  0x61   : > { %v893_v33 = vld [vmem:[#allocation2 + $0x34] sm:$0xf]  ;;  %v1050_v38 = vrot.slane %v1048_v22, 4  ;;  %v1053_v39 = vrot.slane %v1051_v23, 5  ;;  %v801_v41 = vsel %vm14856_vm8, %v523_v24, %v800_v20  ;;  %v11577_v43 = vcombine.low %v1036_v26, %v1046_v32  ;;  %v382_v50 = vld [vmem:[#allocation2 + $0x5c] sm:$0x1] }
  0x62   : > { %v1057_v44 = vshll.u32 %v893_v33, 16  ;;  %v1061_v45 = vshrl.u32 %v893_v33, 16  ;;  %v1067_v46 = vshll.u32 %v936_v36, 16  ;;  %802 = vst [vmem:[#allocation2 + $0x3c] sm:$0xf] %v801_v41  ;;  %v532_v18 = vsel %vm14865_vm10, %v524_v27, %v531_v28  ;;  %v14383_v1 = vld [vmem:[#allocation3 + $0x28] sm:$0xff]  }
  0x63   : > { %v1054_v48 = vor.u32 %v1053_v39, %v1050_v38  ;;  %v805_v37 = vsel %vm14822_vm3, %v533_v29, %v804_v30  ;;  %v535_v49 = vshrl.u32 %v425_v25, 16  ;;  %v427_v51 = vld [vmem:[%s14836_s22 + $0x30] sm:$0xf]  ;;  %12993 = vmatmul.mubr.bf16.gmra.mrb[4].mxu0 %v11577_v43  ;;  %803 = vst [vmem:[#allocation2 + $0x40] sm:$0xf] %v532_v18  ;;  %v538_v55 = vshll.u32 %v425_v25, 16 }
  0x64   : > { %v1059_v52 = vrot.slane %v1057_v44, 5  ;;  %v1063_v53 = vrot.slane %v1061_v45, 4  ;;  %v1069_v54 = vrot.slane %v1067_v46, 5  ;;  %806 = vst [vmem:[#allocation2 + $0x44] sm:$0x1] %v805_v37  ;;  %v543_v35 = vshrl.u32 %v426_v31, 16  ;;  %13027 = vmatpush3.bf16.msra.mxu0 %v14381_v15 }
  0x65   : > { %v1055_v56 = vrot.slane %v1054_v48, 4  ;;  %v537_v57 = vrot.slane %v535_v49, 7  ;;  %v546_v58 = vshll.u32 %v426_v31, 16  ;;  %v14959_v59 = vld [vmem:[%s14836_s22 + $0x34] sm:$0xf]  ;;  %v327_v62 = vsel %vm14822_vm3, 0, %v326_v42  ;;  %13028 = vmatprep.subr.bf16.mxu0 %v14382_v47 }
  0x66   : > { %v1064_v60 = vor.u32 %v1063_v53, %v1059_v52  ;;  %v807_v61 = vld [vmem:[#allocation2 + $0x48] sm:$0xf]  ;;  %v383_v63 = vsel %vm14827_vm4, 0, %v382_v50  ;;  %v552_v0 = vshrl.u32 %v427_v51, 16  ;;  %v545_v8 = vrot.slane %v543_v35, 7  ;;  %v14385_v42 = vld [vmem:[#allocation3 + $0x38] sm:$0xff]  }
  0x67   : > { %v1060_v2 = vsel %vm14880_vm11, %v1055_v56, %v1059_v52  ;;  %v540_v6 = vor.u32 %v538_v55, %v537_v57  ;;  %v541_v7 = vrot.slane %v537_v57, 4  ;;  %328 = vst [vmem:[#allocation2 + $0x54] sm:$0x1] %v327_v62  ;;  %384 = vst [vmem:[#allocation2 + $0x5c] sm:$0x1] %v383_v63  ;;  %v555_v12 = vshll.u32 %v427_v51, 16 }
  0x68   : > { %v1065_v9 = vrot.slane %v1064_v60, 4  ;;  %v811_v10 = vld [vmem:[#allocation2 + $0x50] sm:$0x1]  ;;  %v554_v11 = vrot.slane %v552_v0, 7  ;;  %v560_v13 = vshrl.u32 %v14959_v59, 16  ;;  %v14384_v14 = vld [vmem:[#allocation3 + $0x30] sm:$0xff]   ;;  %v548_v16 = vor.u32 %v546_v58, %v545_v8  ;;  %13029 = vmatpush3.bf16.msra.mxu0 %v14382_v47 }
  0x69   : > { %v894_v15 = vld [vmem:[#allocation2 + $0x3c] sm:$0xf]  ;;  %v550_v17 = vrot.slane %v545_v8, 4  ;;  %v808_v19 = vsel %vm14856_vm8, %v540_v6, %v807_v61  ;;  %v563_v20 = vshll.u32 %v14959_v59, 16  ;;  %v329_v21 = vld [vmem:[#allocation2 + $0x60] sm:$0x1]  ;;  %13030 = vmatprep.subr.bf16.mxu0 %v14383_v1 }
  0x6a   : > { %v1070_v22 = vsel %vm14880_vm11, %v1065_v9, %v1069_v54  ;;  %v1072_v23 = vshrl.u32 %v894_v15, 16  ;;  %v1075_v24 = vshll.u32 %v894_v15, 16  ;;  %809 = vst [vmem:[#allocation2 + $0x48] sm:$0xf] %v808_v19  ;;  %v557_v25 = vor.u32 %v555_v12, %v554_v11  ;;  %v385_v26 = vld [vmem:[#allocation2 + $0x68] sm:$0x1] }
  0x6b   : > { %v11578_v27 = vcombine.low %v1060_v2, %v1070_v22  ;;  %v895_v28 = vld [vmem:[#allocation2 + $0x40] sm:$0xf]  ;;  %v937_v29 = vld [vmem:[#allocation2 + $0x44] sm:$0x1]  ;;  %v549_v30 = vsel %vm14865_vm10, %v541_v7, %v548_v16  ;;  %v812_v31 = vsel %vm14822_vm3, %v550_v17, %v811_v10  ;;  %v558_v32 = vrot.slane %v554_v11, 4  ;;  %v14991_v6 = vld [vmem:[#allocation3 + $0x80] sm:$0xff]  }
  0x6c   : > { %v429_v33 = vld [vmem:[%s14836_s22 + $0x38] sm:$0xf]  ;;  %v1074_v36 = vrot.slane %v1072_v23, 4  ;;  %v1077_v38 = vrot.slane %v1075_v24, 5  ;;  %v1081_v39 = vshll.u32 %v895_v28, 16  ;;  %v1085_v41 = vshrl.u32 %v895_v28, 16  ;;  %13031 = vmatpush3.bf16.msra.mxu0 %v14383_v1 }
  0x6d   : > { %810 = vst [vmem:[#allocation2 + $0x4c] sm:$0xf] %v549_v30  ;;  %813 = vst [vmem:[#allocation2 + $0x50] sm:$0x1] %v812_v31  ;;  %12996 = vmatprep.mubr.bf16.mxu0 %v11578_v27  ;;  %v1091_v43 = vshll.u32 %v937_v29, 16  ;;  %v562_v44 = vrot.slane %v560_v13, 7  ;;  %13032 = vmatprep.subr.bf16.mxu0 %v14384_v14 }
  0x6e   : > { %v330_v45 = vsel %vm14822_vm3, 0, %v329_v21  ;;  %v386_v46 = vsel %vm14827_vm4, 0, %v385_v26  ;;  %v430_v47 = vld [vmem:[%s14836_s22 + $0x3c] sm:$0xf]  ;;  %v1078_v48 = vor.u32 %v1077_v38, %v1074_v36  ;;  %v1083_v18 = vrot.slane %v1081_v39, 5 }
  0x6f   : > { %v1087_v37 = vrot.slane %v1085_v41, 4  ;;  %v814_v49 = vld [vmem:[#allocation2 + $0x54] sm:$0xf]  ;;  %v818_v50 = vld [vmem:[#allocation2 + $0x5c] sm:$0x1]  ;;  %v1093_v51 = vrot.slane %v1091_v43, 5  ;;  %v565_v52 = vor.u32 %v563_v20, %v562_v44 }
  0x70   : > { %331 = vst [vmem:[#allocation2 + $0x60] sm:$0x1] %v330_v45  ;;  %387 = vst [vmem:[#allocation2 + $0x68] sm:$0x1] %v386_v46  ;;  %v567_v53 = vrot.slane %v562_v44, 4  ;;  %v815_v54 = vsel %vm14856_vm8, %v557_v25, %v814_v49  ;;  %v1079_v55 = vrot.slane %v1078_v48, 4  ;;  %13033 = vmatpush3.bf16.msra.mxu0 %v14384_v14 }
  0x71   : > { %v1088_v56 = vor.u32 %v1087_v37, %v1083_v18  ;;  %816 = vst [vmem:[#allocation2 + $0x54] sm:$0xf] %v815_v54  ;;  %v569_v57 = vshrl.u32 %v429_v33, 16  ;;  %v572_v35 = vshll.u32 %v429_v33, 16  ;;  %v896_v58 = vld [vmem:[#allocation2 + $0x48] sm:$0xf]  ;;  %v566_v59 = vsel %vm14865_vm10, %v558_v32, %v565_v52  ;;  %13034 = vmatprep.subr.bf16.mxu0 %v14385_v42 }
  0x72   : > { %v819_v60 = vsel %vm14822_vm3, %v567_v53, %v818_v50  ;;  %v577_v61 = vshrl.u32 %v430_v47, 16  ;;  %v580_v62 = vshll.u32 %v430_v47, 16  ;;  %v1084_v63 = vsel %vm14880_vm11, %v1079_v55, %v1083_v18  ;;  %817 = vst [vmem:[#allocation2 + $0x58] sm:$0xf] %v566_v59  ;;  %v332_v15 = vld [vmem:[#allocation2 + $0x6c] sm:$0x1] }
  0x73   : > { %v1089_v0 = vrot.slane %v1088_v56, 4  ;;  %v1096_v1 = vshrl.u32 %v896_v58, 16  ;;  %v1099_v2 = vshll.u32 %v896_v58, 16  ;;  %820 = vst [vmem:[#allocation2 + $0x5c] sm:$0x1] %v819_v60  ;;  %v571_v9 = vrot.slane %v569_v57, 7 }
  0x74   : > { %v14993_v7 = vld [vmem:[#allocation2 + $0x4c] sm:$0xf]  ;;  %v938_v8 = vld [vmem:[#allocation2 + $0x50] sm:$0x1]  ;;  %v579_v10 = vrot.slane %v577_v61, 7  ;;  %13035 = vmatpush3.bf16.msra.mxu0 %v14385_v42  ;;  %v333_v47 = vsel %vm14822_vm3, 0, %v332_v15 }
  0x75   : > { %v1094_v11 = vsel %vm14880_vm11, %v1089_v0, %v1093_v51  ;;  %v1098_v12 = vrot.slane %v1096_v1, 4  ;;  %v1101_v13 = vrot.slane %v1099_v2, 5  ;;  %v1105_v14 = vshll.u32 %v14993_v7, 16  ;;  %v388_v22 = vld [vmem:[#allocation2 + $0x74] sm:$0x1]  ;;  %13068 = vmatprep.subr.bf16.mxu0 %v14991_v6 }
  0x76   : > { %v11579_v16 = vcombine.low %v1084_v63, %v1094_v11  ;;  %v1109_v17 = vshrl.u32 %v14993_v7, 16  ;;  %v1115_v19 = vshll.u32 %v938_v8, 16  ;;  %v574_v20 = vor.u32 %v572_v35, %v571_v9  ;;  %v431_v28 = vld [vmem:[%s14836_s22 + $0x40] sm:$0xf]  ;;  %v432_v36 = vld [vmem:[%s14836_s22 + $0x44] sm:$0xf] }
  0x77   : > { %v821_v21 = vld [vmem:[#allocation2 + $0x60] sm:$0xf]  ;;  %v1102_v23 = vor.u32 %v1101_v13, %v1098_v12  ;;  %v1107_v24 = vrot.slane %v1105_v14, 5  ;;  %v575_v25 = vrot.slane %v571_v9, 4  ;;  %v582_v26 = vor.u32 %v580_v62, %v579_v10  ;;  %v825_v27 = vld [vmem:[#allocation2 + $0x68] sm:$0x1] }
  0x78   : > { %12997 = vmatmul.mubr.bf16.gmra.mrb[8].mxu0 %v11579_v16  ;;  %v1111_v29 = vrot.slane %v1109_v17, 4  ;;  %v1117_v30 = vrot.slane %v1115_v19, 5  ;;  %v15001_v31 = vld [vmem:[#allocation2 + $0x54] sm:$0xf]  ;;  %v584_v32 = vrot.slane %v579_v10, 4  ;;  %v822_v33 = vsel %vm14856_vm8, %v574_v20, %v821_v21 }
  0x79   : > { %v1103_v38 = vrot.slane %v1102_v23, 4  ;;  %v1120_v39 = vshrl.u32 %v15001_v31, 16  ;;  %v1123_v41 = vshll.u32 %v15001_v31, 16  ;;  %v583_v42 = vsel %vm14865_vm10, %v575_v25, %v582_v26  ;;  %823 = vst [vmem:[#allocation2 + $0x60] sm:$0xf] %v822_v33 }
  0x7a   : > { %v1112_v43 = vor.u32 %v1111_v29, %v1107_v24  ;;  %v15010_v44 = vld [vmem:[#allocation2 + $0x58] sm:$0xf]  ;;  %v939_v45 = vld [vmem:[#allocation2 + $0x5c] sm:$0x1]  ;;  %824 = vst [vmem:[#allocation2 + $0x64] sm:$0xf] %v583_v42  ;;  %v826_v46 = vsel %vm14822_vm3, %v584_v32, %v825_v27 }
  0x7b   : > { %v389_v48 = vsel %vm14827_vm4, 0, %v388_v22  ;;  %v1108_v18 = vsel %vm14880_vm11, %v1103_v38, %v1107_v24  ;;  %v1122_v37 = vrot.slane %v1120_v39, 4  ;;  %v1125_v49 = vrot.slane %v1123_v41, 5  ;;  %827 = vst [vmem:[#allocation2 + $0x68] sm:$0x1] %v826_v46 }
  0x7c   : > { %v1129_v50 = vshll.u32 %v15010_v44, 16  ;;  %334 = vst [vmem:[#allocation2 + $0x6c] sm:$0x1] %v333_v47  ;;  %390 = vst [vmem:[#allocation2 + $0x74] sm:$0x1] %v389_v48  ;;  %v1113_v51 = vrot.slane %v1112_v43, 4 }
  0x7d   : > { %v1133_v52 = vshrl.u32 %v15010_v44, 16  ;;  %v1139_v53 = vshll.u32 %v939_v45, 16  ;;  %v586_v54 = vshrl.u32 %v431_v28, 16  ;;  %v1126_v55 = vor.u32 %v1125_v49, %v1122_v37  ;;  %v335_v58 = vld [vmem:[#allocation2 + $0x78] sm:$0x1] }
  0x7e   : > { %v1131_v56 = vrot.slane %v1129_v50, 5  ;;  %v589_v57 = vshll.u32 %v431_v28, 16  ;;  %v594_v35 = vshrl.u32 %v432_v36, 16  ;;  %v1118_v59 = vsel %vm14880_vm11, %v1113_v51, %v1117_v30  ;;  %v391_v19 = vld [vmem:[#allocation2 + $0x80] sm:$0x1] }
  0x7f   : > { %v1135_v60 = vrot.slane %v1133_v52, 4  ;;  %v1141_v61 = vrot.slane %v1139_v53, 5  ;;  %v588_v62 = vrot.slane %v586_v54, 7  ;;  %v11580_v63 = vcombine.low %v1108_v18, %v1118_v59  ;;  %v433_v20 = vld [vmem:[%s14836_s22 + $0x48] sm:$0xf] }
  0x80   : > { %v1127_v0 = vrot.slane %v1126_v55, 4  ;;  %v596_v1 = vrot.slane %v594_v35, 7  ;;  %v597_v2 = vshll.u32 %v432_v36, 16  ;;  %v15024_v9 = vld [vmem:[#allocation2 + $0x60] sm:$0xf]  ;;  %v336_v12 = vsel %vm14822_vm3, 0, %v335_v58 }
  0x81   : > { %v1136_v8 = vor.u32 %v1135_v60, %v1131_v56  ;;  %v591_v10 = vor.u32 %v589_v57, %v588_v62  ;;  %v592_v11 = vrot.slane %v588_v62, 4  ;;  %13000 = vmatprep.mubr.bf16.mxu0 %v11580_v63  ;;  %v15030_v14 = vld [vmem:[#allocation2 + $0x64] sm:$0xf]  ;;  %v1144_v15 = vshrl.u32 %v15024_v9, 16  ;;  %337 = vst [vmem:[#allocation2 + $0x78] sm:$0x1] %v336_v12 }
  0x82   : > { %v1132_v13 = vsel %vm14880_vm11, %v1127_v0, %v1131_v56  ;;  %v1147_v16 = vshll.u32 %v15024_v9, 16  ;;  %v599_v17 = vor.u32 %v597_v2, %v596_v1  ;;  %v940_v22 = vld [vmem:[#allocation2 + $0x68] sm:$0x1]  ;;  %v1153_v23 = vshll.u32 %v15030_v14, 16  ;;  %v434_v26 = vld [vmem:[%s14836_s22 + $0x4c] sm:$0xf] }
  0x83   : > { %v1137_v21 = vrot.slane %v1136_v8, 4  ;;  %v1157_v24 = vshrl.u32 %v15030_v14, 16  ;;  %v601_v25 = vrot.slane %v596_v1, 4  ;;  %v338_v27 = vld [vmem:[#allocation2 + $0x84] sm:$0x1]  ;;  %v1146_v28 = vrot.slane %v1144_v15, 4 }
  0x84   : > { %v1149_v29 = vrot.slane %v1147_v16, 5  ;;  %v1163_v30 = vshll.u32 %v940_v22, 16  ;;  %v600_v32 = vsel %vm14865_vm10, %v592_v11, %v599_v17  ;;  %v828_v33 = vld [vmem:[#allocation2 + $0x6c] sm:$0xf]  ;;  %v1155_v39 = vrot.slane %v1153_v23, 5 }
  0x85   : > { %v394_v36 = vld [vmem:[#allocation2 + $0x8c] sm:$0x1]  ;;  %v1142_v38 = vsel %vm14880_vm11, %v1137_v21, %v1141_v61  ;;  %v1159_v41 = vrot.slane %v1157_v24, 4  ;;  %v829_v42 = vsel %vm14856_vm8, %v591_v10, %v828_v33  ;;  %831 = vst [vmem:[#allocation2 + $0x70] sm:$0xf] %v600_v32  ;;  %v392_v49 = vsel %vm14827_vm4, 0, %v391_v19 }
  0x86   : > { %v832_v43 = vld [vmem:[#allocation2 + $0x74] sm:$0x1]  ;;  %v435_v45 = vld [vmem:[%s14836_s22 + $0x50] sm:$0xf]  ;;  %v11581_v46 = vcombine.low %v1132_v13, %v1142_v38  ;;  %v1150_v47 = vor.u32 %v1149_v29, %v1146_v28  ;;  %v1165_v48 = vrot.slane %v1163_v30, 5  ;;  %v603_v50 = vshrl.u32 %v433_v20, 16 }
  0x87   : > { %830 = vst [vmem:[#allocation2 + $0x6c] sm:$0xf] %v829_v42  ;;  %v833_v18 = vsel %vm14822_vm3, %v601_v25, %v832_v43  ;;  %v1160_v37 = vor.u32 %v1159_v41, %v1155_v39  ;;  %v606_v51 = vshll.u32 %v433_v20, 16  ;;  %v436_v52 = vld [vmem:[%s14836_s22 + $0x54] sm:$0xf]  ;;  %v611_v54 = vshrl.u32 %v434_v26, 16 }
  0x88   : > { %834 = vst [vmem:[#allocation2 + $0x74] sm:$0x1] %v833_v18  ;;  %13001 = vmatmul.mubr.bf16.gmra.mrb[12].mxu0 %v11581_v46  ;;  %v1151_v53 = vrot.slane %v1150_v47, 4  ;;  %393 = vst [vmem:[#allocation2 + $0x80] sm:$0x1] %v392_v49  ;;  %v614_v55 = vshll.u32 %v434_v26, 16 }
  0x89   : > { %v339_v56 = vsel %vm14822_vm3, 0, %v338_v27  ;;  %v1161_v57 = vrot.slane %v1160_v37, 4  ;;  %v605_v35 = vrot.slane %v603_v50, 7  ;;  %v395_v58 = vsel %vm14827_vm4, 0, %v394_v36  ;;  %v835_v62 = vld [vmem:[#allocation2 + $0x78] sm:$0xf] }
  0x8a   : > { %340 = vst [vmem:[#allocation2 + $0x84] sm:$0x1] %v339_v56  ;;  %v620_v59 = vshrl.u32 %v435_v45, 16  ;;  %v1156_v60 = vsel %vm14880_vm11, %v1151_v53, %v1155_v39  ;;  %v613_v61 = vrot.slane %v611_v54, 7  ;;  %396 = vst [vmem:[#allocation2 + $0x8c] sm:$0x1] %v395_v58 }
  0x8b   : > { %v623_v63 = vshll.u32 %v435_v45, 16  ;;  %v628_v0 = vshrl.u32 %v436_v52, 16  ;;  %v1166_v1 = vsel %vm14880_vm11, %v1161_v57, %v1165_v48  ;;  %v608_v2 = vor.u32 %v606_v51, %v605_v35  ;;  %v341_v23 = vld [vmem:[#allocation2 + $0x90] sm:$0x1]  ;;  %v397_v24 = vld [vmem:[#allocation2 + $0x98] sm:$0x1] }
  0x8c   : > { %v609_v8 = vrot.slane %v605_v35, 4  ;;  %v622_v10 = vrot.slane %v620_v59, 7  ;;  %v11582_v11 = vcombine.low %v1156_v60, %v1166_v1  ;;  %v15058_v12 = vld [vmem:[#allocation2 + $0x70] sm:$0xf]  ;;  %v616_v13 = vor.u32 %v614_v55, %v613_v61  ;;  %v437_v30 = vld [vmem:[%s14836_s22 + $0x58] sm:$0xf] }
  0x8d   : > { %v618_v15 = vrot.slane %v613_v61, 4  ;;  %v630_v16 = vrot.slane %v628_v0, 7  ;;  %v1177_v19 = vshll.u32 %v15058_v12, 16  ;;  %v1181_v20 = vshrl.u32 %v15058_v12, 16  ;;  %v438_v41 = vld [vmem:[%s14836_s22 + $0x5c] sm:$0xf] }
  0x8e   : > { %v15060_v17 = vld [vmem:[#allocation2 + $0x6c] sm:$0xf]  ;;  %v836_v21 = vsel %vm14856_vm8, %v608_v2, %v835_v62  ;;  %v625_v22 = vor.u32 %v623_v63, %v622_v10  ;;  %13004 = vmatprep.mubr.bf16.mxu0 %v11582_v11  ;;  %v617_v28 = vsel %vm14865_vm10, %v609_v8, %v616_v13  ;;  %v626_v29 = vrot.slane %v622_v10, 4  ;;  %v344_v42 = vld [vmem:[#allocation2 + $0x9c] sm:$0x1] }
  0x8f   : > { %v941_v25 = vld [vmem:[#allocation2 + $0x74] sm:$0x1]  ;;  %v1168_v26 = vshrl.u32 %v15060_v17, 16  ;;  %v1171_v27 = vshll.u32 %v15060_v17, 16  ;;  %837 = vst [vmem:[#allocation2 + $0x78] sm:$0xf] %v836_v21 }
  0x90   : > { %v1179_v32 = vrot.slane %v1177_v19, 5  ;;  %v1183_v33 = vrot.slane %v1181_v20, 4  ;;  %v1187_v36 = vshll.u32 %v941_v25, 16  ;;  %838 = vst [vmem:[#allocation2 + $0x7c] sm:$0xf] %v617_v28  ;;  %v631_v39 = vshll.u32 %v436_v52, 16 }
  0x91   : > { %v839_v38 = vld [vmem:[#allocation2 + $0x80] sm:$0x1]  ;;  %v1170_v43 = vrot.slane %v1168_v26, 4  ;;  %v1173_v45 = vrot.slane %v1171_v27, 5  ;;  %v635_v47 = vrot.slane %v630_v16, 4  ;;  %v342_v56 = vsel %vm14822_vm3, 0, %v341_v23 }
  0x92   : > { %v840_v46 = vsel %vm14822_vm3, %v618_v15, %v839_v38  ;;  %v842_v48 = vld [vmem:[#allocation2 + $0x84] sm:$0xf]  ;;  %v1184_v37 = vor.u32 %v1183_v33, %v1179_v32  ;;  %v1189_v49 = vrot.slane %v1187_v36, 5  ;;  %v633_v50 = vor.u32 %v631_v39, %v630_v16  ;;  %v846_v53 = vld [vmem:[#allocation2 + $0x8c] sm:$0x1] }
  0x93   : > { %v400_v18 = vld [vmem:[#allocation2 + $0xa4] sm:$0x1]  ;;  %841 = vst [vmem:[#allocation2 + $0x80] sm:$0x1] %v840_v46  ;;  %v843_v51 = vsel %vm14856_vm8, %v625_v22, %v842_v48  ;;  %v15077_v54 = vld [vmem:[%s14836_s22 + $0x60] sm:$0xf]  ;;  %v1174_v52 = vor.u32 %v1173_v45, %v1170_v43  ;;  %v847_v55 = vsel %vm14822_vm3, %v635_v47, %v846_v53 }
  0x94   : > { %844 = vst [vmem:[#allocation2 + $0x84] sm:$0xf] %v843_v51  ;;  %v398_v57 = vsel %vm14827_vm4, 0, %v397_v24  ;;  %v1185_v35 = vrot.slane %v1184_v37, 4  ;;  %v634_v58 = vsel %vm14865_vm10, %v626_v29, %v633_v50  ;;  %848 = vst [vmem:[#allocation2 + $0x8c] sm:$0x1] %v847_v55 }
  0x95   : > { %343 = vst [vmem:[#allocation2 + $0x90] sm:$0x1] %v342_v56  ;;  %399 = vst [vmem:[#allocation2 + $0x98] sm:$0x1] %v398_v57  ;;  %v637_v59 = vshrl.u32 %v437_v30, 16  ;;  %v640_v60 = vshll.u32 %v437_v30, 16 }
  0x96   : > { %v1175_v61 = vrot.slane %v1174_v52, 4  ;;  %845 = vst [vmem:[#allocation2 + $0x88] sm:$0xf] %v634_v58  ;;  %v645_v62 = vshrl.u32 %v438_v41, 16  ;;  %v648_v63 = vshll.u32 %v438_v41, 16  ;;  %v345_v0 = vsel %vm14822_vm3, 0, %v344_v42 }
  0x97   : > { %v1190_v1 = vsel %vm14880_vm11, %v1185_v35, %v1189_v49  ;;  %v15091_v2 = vld [vmem:[#allocation2 + $0x78] sm:$0xf]  ;;  %v639_v8 = vrot.slane %v637_v59, 7  ;;  %346 = vst [vmem:[#allocation2 + $0x9c] sm:$0x1] %v345_v0  ;;  %v401_v10 = vsel %vm14827_vm4, 0, %v400_v18 }
  0x98   : > { %v654_v11 = vshrl.u32 %v15077_v54, 16  ;;  %v1180_v13 = vsel %vm14880_vm11, %v1175_v61, %v1179_v32  ;;  %v15098_v15 = vld [vmem:[#allocation2 + $0x7c] sm:$0xf]  ;;  %v1192_v16 = vshrl.u32 %v15091_v2, 16  ;;  %v1195_v19 = vshll.u32 %v15091_v2, 16 }
  0x99   : > { %v647_v20 = vrot.slane %v645_v62, 7  ;;  %402 = vst [vmem:[#allocation2 + $0xa4] sm:$0x1] %v401_v10  ;;  %v11583_v21 = vcombine.low %v1180_v13, %v1190_v1  ;;  %v1201_v22 = vshll.u32 %v15098_v15, 16  ;;  %v1205_v23 = vshrl.u32 %v15098_v15, 16 }
  0x9a   : > { %v642_v24 = vor.u32 %v640_v60, %v639_v8  ;;  %v942_v25 = vld [vmem:[#allocation2 + $0x80] sm:$0x1]  ;;  %v1194_v26 = vrot.slane %v1192_v16, 4  ;;  %v1197_v27 = vrot.slane %v1195_v19, 5  ;;  %v643_v28 = vrot.slane %v639_v8, 4 }
  0x9b   : > { %v650_v29 = vor.u32 %v648_v63, %v647_v20  ;;  %13005 = vmatmul.mubr.bf16.gmra.mrb[16].mxu0 %v11583_v21  ;;  %v1203_v30 = vrot.slane %v1201_v22, 5  ;;  %v1207_v32 = vrot.slane %v1205_v23, 4  ;;  %v1211_v33 = vshll.u32 %v942_v25, 16  ;;  %v15104_v36 = vld [vmem:[#allocation2 + $0x84] sm:$0xf] }
  0x9c   : > { %v652_v38 = vrot.slane %v647_v20, 4  ;;  %v1198_v39 = vor.u32 %v1197_v27, %v1194_v26  ;;  %v943_v41 = vld [vmem:[#allocation2 + $0x8c] sm:$0x1]  ;;  %v1216_v42 = vshrl.u32 %v15104_v36, 16  ;;  %v1219_v43 = vshll.u32 %v15104_v36, 16 }
  0x9d   : > { %v651_v45 = vsel %vm14865_vm10, %v643_v28, %v650_v29  ;;  %v849_v46 = vld [vmem:[#allocation2 + $0x90] sm:$0xf]  ;;  %v440_v47 = vld [vmem:[%s14836_s22 + $0x64] sm:$0xf]  ;;  %v1208_v48 = vor.u32 %v1207_v32, %v1203_v30  ;;  %v1213_v18 = vrot.slane %v1211_v33, 5  ;;  %v1235_v49 = vshll.u32 %v943_v41, 16 }
  0x9e   : > { %v15111_v37 = vld [vmem:[#allocation2 + $0x88] sm:$0xf]  ;;  %v850_v50 = vsel %vm14856_vm8, %v642_v24, %v849_v46  ;;  %852 = vst [vmem:[#allocation2 + $0x94] sm:$0xf] %v651_v45  ;;  %v853_v51 = vld [vmem:[#allocation2 + $0x98] sm:$0x1] }
  0x9f   : > { %v1199_v53 = vrot.slane %v1198_v39, 4  ;;  %v1218_v52 = vrot.slane %v1216_v42, 4  ;;  %v1221_v55 = vrot.slane %v1219_v43, 5  ;;  %v1225_v56 = vshll.u32 %v15111_v37, 16  ;;  %851 = vst [vmem:[#allocation2 + $0x90] sm:$0xf] %v850_v50 }
  0xa0   : > { %v347_v57 = vld [vmem:[#allocation2 + $0xa8] sm:$0x1]  ;;  %v1209_v35 = vrot.slane %v1208_v48, 4  ;;  %v1229_v58 = vshrl.u32 %v15111_v37, 16  ;;  %v1237_v59 = vrot.slane %v1235_v49, 5  ;;  %v854_v60 = vsel %vm14822_vm3, %v652_v38, %v853_v51 }
  0xa1   : > { %v403_v61 = vld [vmem:[#allocation2 + $0xb0] sm:$0x1]  ;;  %v15120_v62 = vld [vmem:[%s14836_s22 + $0x68] sm:$0xf]  ;;  %v1204_v63 = vsel %vm14880_vm11, %v1199_v53, %v1203_v30  ;;  %v1222_v0 = vor.u32 %v1221_v55, %v1218_v52  ;;  %v1227_v1 = vrot.slane %v1225_v56, 5  ;;  %v656_v8 = vrot.slane %v654_v11, 7 }
  0xa2   : > { %855 = vst [vmem:[#allocation2 + $0x98] sm:$0x1] %v854_v60  ;;  %v1214_v10 = vsel %vm14880_vm11, %v1209_v35, %v1213_v18  ;;  %v1231_v13 = vrot.slane %v1229_v58, 4  ;;  %v657_v16 = vshll.u32 %v15077_v54, 16  ;;  %v662_v19 = vshrl.u32 %v440_v47, 16 }
  0xa3   : > { %v856_v20 = vld [vmem:[#allocation2 + $0x9c] sm:$0xf]  ;;  %v11584_v21 = vcombine.low %v1204_v63, %v1214_v10  ;;  %v1223_v22 = vrot.slane %v1222_v0, 4  ;;  %v660_v23 = vrot.slane %v656_v8, 4  ;;  %v665_v24 = vshll.u32 %v440_v47, 16 }
  0xa4   : > { %v1232_v25 = vor.u32 %v1231_v13, %v1227_v1  ;;  %v659_v26 = vor.u32 %v657_v16, %v656_v8  ;;  %v664_v27 = vrot.slane %v662_v19, 7  ;;  %v348_v28 = vsel %vm14822_vm3, 0, %v347_v57  ;;  %v860_v54 = vld [vmem:[#allocation2 + $0xa4] sm:$0x1]  ;;  %v442_v32 = vld [vmem:[%s14836_s22 + $0x6c] sm:$0xf] }
  0xa5   : > { %13008 = vmatprep.mubr.bf16.mxu0 %v11584_v21  ;;  %v1228_v11 = vsel %vm14880_vm11, %v1223_v22, %v1227_v1  ;;  %v15131_v29 = vld [vmem:[#allocation2 + $0x94] sm:$0xf]  ;;  %349 = vst [vmem:[#allocation2 + $0xa8] sm:$0x1] %v348_v28  ;;  %v404_v30 = vsel %vm14827_vm4, 0, %v403_v61  ;;  %v671_v33 = vshrl.u32 %v15120_v62, 16 }
  0xa6   : > { %v674_v38 = vshll.u32 %v15120_v62, 16  ;;  %v1233_v39 = vrot.slane %v1232_v25, 4  ;;  %v15138_v41 = vld [vmem:[#allocation2 + $0x90] sm:$0xf]  ;;  %v1249_v42 = vshll.u32 %v15131_v29, 16  ;;  %v1253_v43 = vshrl.u32 %v15131_v29, 16 }
  0xa7   : > { %v667_v45 = vor.u32 %v665_v24, %v664_v27  ;;  %405 = vst [vmem:[#allocation2 + $0xb0] sm:$0x1] %v404_v30  ;;  %v350_v46 = vld [vmem:[#allocation2 + $0xb4] sm:$0x1]  ;;  %v1240_v47 = vshrl.u32 %v15138_v41, 16  ;;  %v1243_v48 = vshll.u32 %v15138_v41, 16  ;;  %v857_v49 = vsel %vm14856_vm8, %v659_v26, %v856_v20 }
  0xa8   : > { %v669_v18 = vrot.slane %v664_v27, 4  ;;  %v1238_v50 = vsel %vm14880_vm11, %v1233_v39, %v1237_v59  ;;  %v1251_v53 = vrot.slane %v1249_v42, 5  ;;  %v1255_v52 = vrot.slane %v1253_v43, 4  ;;  %858 = vst [vmem:[#allocation2 + $0x9c] sm:$0xf] %v857_v49 }
  0xa9   : > { %v15148_v51 = vld [vmem:[#allocation2 + $0x98] sm:$0x1]  ;;  %v668_v55 = vsel %vm14865_vm10, %v660_v23, %v667_v45  ;;  %v406_v56 = vld [vmem:[#allocation2 + $0xbc] sm:$0x1]  ;;  %v443_v57 = vld [vmem:[%s14836_s22 + $0x70] sm:$0xf]  ;;  %v11585_v35 = vcombine.low %v1228_v11, %v1238_v50 }
  0xaa   : > { %v1242_v58 = vrot.slane %v1240_v47, 4  ;;  %v1245_v60 = vrot.slane %v1243_v48, 5  ;;  %v1259_v61 = vshll.u32 %v15148_v51, 16  ;;  %859 = vst [vmem:[#allocation2 + $0xa0] sm:$0xf] %v668_v55  ;;  %v1256_v62 = vor.u32 %v1255_v52, %v1251_v53 }
  0xab   : > { %v861_v59 = vsel %vm14822_vm3, %v669_v18, %v860_v54  ;;  %v673_v63 = vrot.slane %v671_v33, 7  ;;  %v679_v0 = vshrl.u32 %v442_v32, 16  ;;  %v444_v1 = vld [vmem:[%s14836_s22 + $0x74] sm:$0xf]  ;;  %13009 = vmatmul.mubr.bf16.gmra.mrb[20].mxu0 %v11585_v35  ;;  %v682_v13 = vshll.u32 %v442_v32, 16 }
  0xac   : > { %v1246_v8 = vor.u32 %v1245_v60, %v1242_v58  ;;  %v1261_v10 = vrot.slane %v1259_v61, 5  ;;  %862 = vst [vmem:[#allocation2 + $0xa4] sm:$0x1] %v861_v59  ;;  %v351_v16 = vsel %vm14822_vm3, 0, %v350_v46  ;;  %v1257_v19 = vrot.slane %v1256_v62, 4 }
  0xad   : > { %v676_v20 = vor.u32 %v674_v38, %v673_v63  ;;  %v677_v21 = vrot.slane %v673_v63, 4  ;;  %v681_v22 = vrot.slane %v679_v0, 7  ;;  %v863_v23 = vld [vmem:[#allocation2 + $0xa8] sm:$0xf]  ;;  %352 = vst [vmem:[#allocation2 + $0xb4] sm:$0x1] %v351_v16 }
  0xae   : > { %v1247_v24 = vrot.slane %v1246_v8, 4  ;;  %v407_v25 = vsel %vm14827_vm4, 0, %v406_v56  ;;  %v688_v26 = vshrl.u32 %v443_v57, 16  ;;  %v691_v27 = vshll.u32 %v443_v57, 16  ;;  %v867_v32 = vld [vmem:[#allocation2 + $0xb0] sm:$0x1] }
  0xaf   : > { %v1262_v28 = vsel %vm14880_vm11, %v1257_v19, %v1261_v10  ;;  %v684_v11 = vor.u32 %v682_v13, %v681_v22  ;;  %v686_v54 = vrot.slane %v681_v22, 4  ;;  %v864_v30 = vsel %vm14856_vm8, %v676_v20, %v863_v23  ;;  %408 = vst [vmem:[#allocation2 + $0xbc] sm:$0x1] %v407_v25  ;;  %v15167_v38 = vld [vmem:[#allocation2 + $0x9c] sm:$0xf] }
  0xb0   : > { %v1252_v33 = vsel %vm14880_vm11, %v1247_v24, %v1251_v53  ;;  %865 = vst [vmem:[#allocation2 + $0xa8] sm:$0xf] %v864_v30  ;;  %v690_v39 = vrot.slane %v688_v26, 7  ;;  %v696_v42 = vshrl.u32 %v444_v1, 16  ;;  %v699_v43 = vshll.u32 %v444_v1, 16 }
  0xb1   : > { %v11586_v45 = vcombine.low %v1252_v33, %v1262_v28  ;;  %v15169_v46 = vld [vmem:[#allocation2 + $0xa0] sm:$0xf]  ;;  %v1264_v47 = vshrl.u32 %v15167_v38, 16  ;;  %v1267_v48 = vshll.u32 %v15167_v38, 16  ;;  %v685_v18 = vsel %vm14865_vm10, %v677_v21, %v684_v11 }
  0xb2   : > { %v1273_v49 = vshll.u32 %v15169_v46, 16  ;;  %v1277_v50 = vshrl.u32 %v15169_v46, 16  ;;  %866 = vst [vmem:[#allocation2 + $0xac] sm:$0xf] %v685_v18  ;;  %v868_v53 = vsel %vm14822_vm3, %v686_v54, %v867_v32  ;;  %v693_v52 = vor.u32 %v691_v27, %v690_v39 }
  0xb3   : > { %13012 = vmatprep.mubr.bf16.mxu0 %v11586_v45  ;;  %v15179_v55 = vld [vmem:[#allocation2 + $0xa4] sm:$0x1]  ;;  %v1266_v56 = vrot.slane %v1264_v47, 4  ;;  %v1269_v57 = vrot.slane %v1267_v48, 5  ;;  %869 = vst [vmem:[#allocation2 + $0xb0] sm:$0x1] %v868_v53 }
  0xb4   : > { %v694_v35 = vrot.slane %v690_v39, 4  ;;  %v698_v58 = vrot.slane %v696_v42, 7  ;;  %v1275_v60 = vrot.slane %v1273_v49, 5  ;;  %v1279_v61 = vrot.slane %v1277_v50, 4  ;;  %v870_v59 = vld [vmem:[#allocation2 + $0xb4] sm:$0xf] }
  0xb5   : > { %v1283_v62 = vshll.u32 %v15179_v55, 16  ;;  %v1270_v63 = vor.u32 %v1269_v57, %v1266_v56  ;;  %v871_v8 = vsel %vm14856_vm8, %v693_v52, %v870_v59  ;;  %vm1978_vm12 = vcmask 1042432  }
  0xb6   : > { %v701_v0 = vor.u32 %v699_v43, %v698_v58  ;;  %v703_v1 = vrot.slane %v698_v58, 4  ;;  %v1280_v10 = vor.u32 %v1279_v61, %v1275_v60  ;;  %872 = vst [vmem:[#allocation2 + $0xb4] sm:$0xf] %v871_v8  ;;  %v874_v16 = vld [vmem:[#allocation2 + $0xbc] sm:$0x1]  ;;  %vm1979_vm13 = vcmask 1046532  }
  0xb7   : > { %v1285_v13 = vrot.slane %v1283_v62, 5  ;;  %v1271_v19 = vrot.slane %v1270_v63, 4  ;;  %v15184_v20 = vld [vmem:[#allocation2 + $0xa8] sm:$0xf]  ;;  %vm15266_vm14 = vmor %vm1978_vm12, %vm1979_vm13 }
  0xb8   : > { %v702_v21 = vsel %vm14865_vm10, %v694_v35, %v701_v0  ;;  %v875_v22 = vsel %vm14822_vm3, %v703_v1, %v874_v16  ;;  %v1281_v23 = vrot.slane %v1280_v10, 4  ;;  %v1288_v24 = vshrl.u32 %v15184_v20, 16 }
  0xb9   : > { %v1291_v25 = vshll.u32 %v15184_v20, 16  ;;  %873 = vst [vmem:[#allocation2 + $0xb8] sm:$0xf] %v702_v21  ;;  %876 = vst [vmem:[#allocation2 + $0xbc] sm:$0x1] %v875_v22  ;;  %v1276_v26 = vsel %vm14880_vm11, %v1271_v19, %v1275_v60 }
  0xba   : > { %v15194_v27 = vld [vmem:[#allocation2 + $0xac] sm:$0xf]  ;;  %v1286_v28 = vsel %vm14880_vm11, %v1281_v23, %v1285_v13  ;;  %v15198_v11 = vld [vmem:[#allocation2 + $0xb0] sm:$0x1]  ;;  %v1290_v54 = vrot.slane %v1288_v24, 4 }
  0xbb   : > { %v1293_v30 = vrot.slane %v1291_v25, 5  ;;  %v1297_v32 = vshll.u32 %v15194_v27, 16  ;;  %v11587_v33 = vcombine.low %v1276_v26, %v1286_v28  ;;  %v1301_v39 = vshrl.u32 %v15194_v27, 16  ;;  %v15222_v25 = vld [vmem:[#allocation2 + $0x4] sm:$0xf] }
  0xbc   : > { %v1307_v42 = vshll.u32 %v15198_v11, 16  ;;  %v14611_v26 = vld [vmem:[#allocation2] sm:$0xf]  ;;  %v15587_v34 = vld [vmem:[#allocation2 + $0xac] sm:$0xf] }
  0xbd   : > { %v1294_v43 = vor.u32 %v1293_v30, %v1290_v54  ;;  %v1299_v45 = vrot.slane %v1297_v32, 5  ;;  %13013 = vmatmul.mubr.bf16.gmra.mrb[24].mxu0 %v11587_v33  ;;  %v1303_v47 = vrot.slane %v1301_v39, 4  ;;  %v15203_v48 = vld [vmem:[#allocation2 + $0xb4] sm:$0xf]  ;;  %v11598_v28 = vcombine.low %v14611_v26, %v15222_v25  ;;  %v14612_v30 = vld [vmem:[#allocation2 + $0xc] sm:$0xf] }
  0xbe   : > { %v1312_v49 = vshrl.u32 %v15203_v48, 16  ;;  %v1315_v50 = vshll.u32 %v15203_v48, 16  ;;  %v1309_v52 = vrot.slane %v1307_v42, 5  ;;  %v15225_v32 = vld [vmem:[#allocation2 + $0x10] sm:$0xf]  ;;  %18120 = vst [vmem:[#allocation12_spill] sm:$0xff] %v15587_v34 }
  0xbf   : > { %v1295_v18 = vrot.slane %v1294_v43, 4  ;;  %v1304_v53 = vor.u32 %v1303_v47, %v1299_v45  ;;  %v11599_v33 = vcombine.low %v14612_v30, %v15225_v32  ;;  %v14614_v39 = vld [vmem:[#allocation2 + $0x18] sm:$0xf]  ;;  %v15228_v42 = vld [vmem:[#allocation2 + $0x1c] sm:$0xf]  ;;  %v14394_v47 = vld [vmem:[#allocation3 + $0x90] sm:$0xff]  }
  0xc0   : > { %v15207_v56 = vld [vmem:[#allocation2 + $0xb8] sm:$0xf]  ;;  %v15209_v57 = vld [vmem:[#allocation2 + $0xbc] sm:$0x1]  ;;  %v1314_v35 = vrot.slane %v1312_v49, 4  ;;  %v1317_v58 = vrot.slane %v1315_v50, 5  ;;  %v11600_v43 = vcombine.low %v14614_v39, %v15228_v42 }
  0xc1   : > { %v1321_v60 = vshll.u32 %v15207_v56, 16  ;;  %v1300_v61 = vsel %vm14880_vm11, %v1295_v18, %v1299_v45  ;;  %v1305_v62 = vrot.slane %v1304_v53, 4  ;;  %v1325_v59 = vshrl.u32 %v15207_v56, 16  ;;  %v14391_v45 = vld [vmem:[#allocation3 + $0x88] sm:$0xff]   ;;  %v15232_v49 = vld [vmem:[#allocation2 + $0x28] sm:$0xf] }
  0xc2   : > { %v1331_v63 = vshll.u32 %v15209_v57, 16  ;;  %v1318_v0 = vor.u32 %v1317_v58, %v1314_v35  ;;  %v14616_v18 = vld [vmem:[#allocation2 + $0x24] sm:$0xf]  ;;  %v14618_v53 = vld [vmem:[#allocation2 + $0x30] sm:$0xf] }
  0xc3   : > { %v1323_v1 = vrot.slane %v1321_v60, 5  ;;  %v1310_v8 = vsel %vm14880_vm11, %v1305_v62, %v1309_v52  ;;  %v1327_v10 = vrot.slane %v1325_v59, 4  ;;  %v11601_v50 = vcombine.low %v14616_v18, %v15232_v49  ;;  %v15235_v52 = vld [vmem:[#allocation2 + $0x34] sm:$0xf]  ;;  %v14620_v60 = vld [vmem:[#allocation2 + $0x3c] sm:$0xf] }
  0xc4   : > { %v11588_v13 = vcombine.low %v1300_v61, %v1310_v8  ;;  %v1319_v16 = vrot.slane %v1318_v0, 4  ;;  %v1333_v21 = vrot.slane %v1331_v63, 5  ;;  %v11602_v35 = vcombine.low %v14618_v53, %v15235_v52  ;;  %v14397_v58 = vld [vmem:[#allocation3 + $0x98] sm:$0xff]   ;;  %v15238_v61 = vld [vmem:[#allocation2 + $0x40] sm:$0xf] }
  0xc5   : > { %v1328_v19 = vor.u32 %v1327_v10, %v1323_v1  ;;  %v11603_v62 = vcombine.low %v14620_v60, %v15238_v61  ;;  %v14403_v59 = vld [vmem:[#allocation3 + $0xa8] sm:$0xff]   ;;  %v14622_v63 = vld [vmem:[#allocation2 + $0x48] sm:$0xf]  ;;  %v11605_v8 = vcombine.low %v15001_v31, %v15010_v44  ;;  %v14409_v10 = vld [vmem:[#allocation3 + $0xb8] sm:$0xff]   ;;  %v11608_v31 = vcombine.low %v15091_v2, %v15098_v15 }
  0xc6   : > { %13016 = vmatprep.mubr.bf16.mxu0 %v11588_v13  ;;  %v1324_v22 = vsel %vm14880_vm11, %v1319_v16, %v1323_v1  ;;  %v11604_v0 = vcombine.low %v14622_v63, %v14993_v7  ;;  %v14406_v1 = vld [vmem:[#allocation3 + $0xb0] sm:$0xff]   ;;  %v11606_v13 = vcombine.low %v15024_v9, %v15030_v14  ;;  %v15246_v7 = vld [vmem:[#allocation3 + $0xc0] sm:$0xff]   ;;  %v11607_v16 = vcombine.low %v15060_v17, %v15058_v12  ;;  %v1930_v9 = vld [vmem:[#allocation2] sm:$0xe] }
  0xc7   : > { %v1329_v23 = vrot.slane %v1328_v19, 4  ;;  %v11609_v44 = vcombine.low %v15104_v36, %v15111_v37  ;;  %v353_v14 = vld [vmem:[#allocation2 + $0xc0] sm:$0x1]  ;;  %v14623_v19 = vld [vmem:[#allocation2 + $0x8] sm:$0x1]  ;;  %v1983_v15 = vrot.slane %v15222_v25, 5 }
  0xc8   : > { %v354_v12 = vsel %vm14822_vm3, 0, %v353_v14  ;;  %v445_v17 = vld [vmem:[%s14836_s22 + $0x78] sm:$0xf]  ;;  %v446_v2 = vld [vmem:[%s14836_s22 + $0x7c] sm:$0xf]  ;;  %v11622_v36 = vrot.slane %v1930_v9, 9 }
  0xc9   : > { %v1334_v24 = vsel %vm14880_vm11, %v1329_v23, %v1333_v21  ;;  %v1986_v21 = vrot.slane %v14623_v19, 5  ;;  %355 = vst [vmem:[#allocation2 + $0xc0] sm:$0x1] %v354_v12  ;;  %v705_v23 = vshrl.u32 %v445_v17, 16  ;;  %v708_v26 = vshll.u32 %v445_v17, 16 }
  0xca   : > { %v11589_v54 = vcombine.low %v1324_v22, %v1334_v24  ;;  %v11610_v22 = vcombine.low %v15138_v41, %v15131_v29  ;;  %v713_v24 = vshrl.u32 %v446_v2, 16  ;;  %v716_v29 = vshll.u32 %v446_v2, 16  ;;  %v14626_v17 = vld [vmem:[#allocation2 + $0x2c] sm:$0x1] }
  0xcb   : > { %v707_v37 = vrot.slane %v705_v23, 7  ;;  %v11611_v41 = vcombine.low %v15167_v38, %v15169_v46  ;;  %v1985_v30 = vrot.slane %v1983_v15, 4  ;;  %v1931_v38 = vld [vmem:[#allocation2 + $0xc] sm:$0xe]  ;;  %v1990_v53 = vrot.slane %v15225_v32, 5 }
  0xcc   : > { %13017 = vmatmul.mubr.bf16.gmra.mrb[28].mxu0 %v11589_v54  ;;  %v11623_v63 = vrot.slane %v1931_v38, 9  ;;  %v2011_v14 = vrot.slane %v15235_v52, 5  ;;  %v2007_v2 = vrot.slane %v14626_v17, 5  ;;  %v14629_v38 = vld [vmem:[#allocation2 + $0x44] sm:$0x1] }
  0xcd   : > { %13036 = vmatprep.mubr.bf16.mxu0 %v11598_v28  ;;  %v15262_v28 = vrot.slane %v713_v24, 7  ;;  %v711_v25 = vrot.slane %v707_v37, 4 }
  0xce   : > { %v2013_v24 = vrot.slane %v2011_v14, 4 }
  0xcf   : > { %v718_v39 = vor.u32 %v716_v29, %v15262_v28 }
  0xd4   : > { %13037 = vmatmul.mubr.bf16.vlgmr.msra.gmra.mrb[0].mxu0 %v11599_v33  ;;  %v710_v33 = vor.u32 %v708_v26, %v707_v37  ;;  %v2018_v26 = vrot.slane %v15238_v61, 5 }
  0xd5   : > { %13069 = vmatpush3.bf16.msra.mxu0 %v14991_v6  ;;  %13040 = vmatprep.mubr.bf16.mxu0 %v11600_v43  ;;  %v14400_v6 = vld [vmem:[#allocation3 + $0xa0] sm:$0xff]   ;;  %v11612_v43 = vcombine.low %v15184_v20, %v15194_v27  ;;  %v1984_v20 = vsel %vm15266_vm14, %v11622_v36, %v1983_v15  ;;  %v14411_v15 = vld [vmem:[#allocation3 + $0xc8] sm:$0xff]  }
  0xd6   : > { %13070 = vmatprep.subr.bf16.mxu0 %v14391_v45  ;;  %v14627_v36 = vld [vmem:[#allocation2 + $0x38] sm:$0x1] }
  0xd7   : > { %v2014_v37 = vrot.slane %v14627_v36, 5 }
  0xd9   : > { %13071 = vmatpush3.bf16.msra.mxu0 %v14391_v45  ;;  %v877_v45 = vld [vmem:[#allocation2 + $0xc0] sm:$0xf] }
  0xda   : > { %13072 = vmatprep.subr.bf16.mxu0 %v14394_v47  ;;  %v878_v18 = vsel %vm14856_vm8, %v710_v33, %v877_v45  ;;  %v14412_v33 = vld [vmem:[#allocation3 + $0xd0] sm:$0xff]  }
  0xdb   : > { %879 = vst [vmem:[#allocation2 + $0xc0] sm:$0xf] %v878_v18  ;;  %v2020_v18 = vrot.slane %v2018_v26, 4 }
  0xdc   : > { %13041 = vmatmul.mubr.bf16.gmra.mrb[4].mxu0 %v11601_v50  ;;  %v1932_v50 = vld [vmem:[#allocation2 + $0x18] sm:$0xe] }
  0xdd   : > { %13044 = vmatprep.mubr.bf16.mxu0 %v11602_v35  ;;  %13073 = vmatpush3.bf16.msra.mxu0 %v14394_v47  ;;  %v719_v47 = vsel %vm14865_vm10, %v711_v25, %v718_v39  ;;  %v1997_v35 = vrot.slane %v15228_v42, 5  ;;  %v1933_v42 = vld [vmem:[#allocation2 + $0x24] sm:$0xe]  ;;  %v14628_v25 = vld [vmem:[#allocation2 + $0x4c] sm:$0xf] }
  0xde   : > { %13074 = vmatprep.subr.bf16.mxu0 %v14397_v58  ;;  %880 = vst [vmem:[#allocation2 + $0xc4] sm:$0xf] %v719_v47  ;;  %v1936_v39 = vld [vmem:[#allocation2 + $0x48] sm:$0xe] }
  0xdf   : > { %v11628_v61 = vrot.slane %v1936_v39, 9 }
  0xe1   : > { %13075 = vmatpush3.bf16.msra.mxu0 %v14397_v58  ;;  %v1987_v58 = vsel %vm15266_vm14, %v1985_v30, %v1986_v21  ;;  %v11625_v21 = vrot.slane %v1933_v42, 9  ;;  %v1935_v30 = vld [vmem:[#allocation2 + $0x3c] sm:$0xe]  ;;  %v1938_v42 = vld [vmem:[#allocation2 + $0x60] sm:$0xe] }
  0xe2   : > { %13076 = vmatprep.subr.bf16.mxu0 %v14400_v6  ;;  %v11627_v47 = vrot.slane %v1935_v30, 9 }
  0xe4   : > { %13045 = vmatmul.mubr.bf16.gmra.mrb[8].mxu0 %v11603_v62  ;;  %v11613_v62 = vcombine.low %v15203_v48, %v15207_v56 }
  0xe5   : > { %13048 = vmatprep.mubr.bf16.mxu0 %v11604_v0  ;;  %13077 = vmatpush3.bf16.msra.mxu0 %v14400_v6  ;;  %v14624_v6 = vld [vmem:[#allocation2 + $0x14] sm:$0x1]  ;;  %v1992_v0 = vrot.slane %v1990_v53, 4 }
  0xe6   : > { %13078 = vmatprep.subr.bf16.mxu0 %v14403_v59  ;;  %v1993_v60 = vrot.slane %v14624_v6, 5  ;;  %v2019_v6 = vsel %vm15266_vm14, %v11627_v47, %v2018_v26  ;;  %v14416_v26 = vld [vmem:[#allocation3 + $0xf0] sm:$0xff]   ;;  %v14638_v47 = vld [vmem:[#allocation2 + $0x80] sm:$0x1] }
  0xe9   : > { %13079 = vmatpush3.bf16.msra.mxu0 %v14403_v59  ;;  %v11638_v59 = vcombine.low %v1984_v20, %v1987_v58  ;;  %v14413_v58 = vld [vmem:[#allocation3 + $0xd8] sm:$0xff]  }
  0xea   : > { %13080 = vmatprep.subr.bf16.mxu0 %v14406_v1 }
  0xec   : > { %13049 = vmatmul.mubr.bf16.gmra.mrb[12].mxu0 %v11605_v8  ;;  %v1999_v8 = vrot.slane %v1997_v35, 4 }
  0xed   : > { %13052 = vmatprep.mubr.bf16.mxu0 %v11606_v13  ;;  %13081 = vmatpush3.bf16.msra.mxu0 %v14406_v1  ;;  %v11624_v1 = vrot.slane %v1932_v50, 9  ;;  %v1934_v13 = vld [vmem:[#allocation2 + $0x30] sm:$0xe]  ;;  %v2021_v50 = vrot.slane %v14629_v38, 5 }
  0xee   : > { %13082 = vmatprep.subr.bf16.mxu0 %v14409_v10  ;;  %v11626_v23 = vrot.slane %v1934_v13, 9  ;;  %v14417_v38 = vld [vmem:[#allocation3 + $0xf8] sm:$0xff]  }
  0xef   : > { %v1998_v48 = vsel %vm15266_vm14, %v11624_v1, %v1997_v35  ;;  %v14630_v35 = vld [vmem:[#allocation2 + $0x50] sm:$0x1] }
  0xf0   : > { %v2012_v29 = vsel %vm15266_vm14, %v11626_v23, %v2011_v14  ;;  %v2028_v20 = vrot.slane %v14630_v35, 5  ;;  %v11630_v14 = vrot.slane %v1938_v42, 9  ;;  %v14639_v35 = vld [vmem:[#allocation2 + $0x88] sm:$0xf] }
  0xf1   : > { %13083 = vmatpush3.bf16.msra.mxu0 %v14409_v10  ;;  %v14625_v10 = vld [vmem:[#allocation2 + $0x20] sm:$0x1] }
  0xf2   : > { %13116 = vmatprep.subr.bf16.mxu0 %v15246_v7  ;;  %v2000_v32 = vrot.slane %v14625_v10, 5 }
  0xf4   : > { %13053 = vmatmul.mubr.bf16.gmra.mrb[16].mxu0 %v11607_v16  ;;  %v1991_v16 = vsel %vm15266_vm14, %v11623_v63, %v1990_v53  ;;  %v2001_v9 = vsel %vm15266_vm14, %v1999_v8, %v2000_v32  ;;  %v14632_v8 = vld [vmem:[#allocation2 + $0x64] sm:$0xf]  ;;  %v14414_v32 = vld [vmem:[#allocation3 + $0xe0] sm:$0xff]  }
  0xf5   : > { %13056 = vmatprep.mubr.bf16.mxu0 %v11608_v31  ;;  %v1994_v31 = vsel %vm15266_vm14, %v1992_v0, %v1993_v60  ;;  %v2022_v60 = vsel %vm15266_vm14, %v2020_v18, %v2021_v50  ;;  %v2039_v10 = vrot.slane %v14632_v8, 5  ;;  %v2056_v18 = vrot.slane %v14638_v47, 5 }
  0xf6   : > { %v11639_v19 = vcombine.low %v1991_v16, %v1994_v31  ;;  %v11643_v13 = vcombine.low %v2019_v6, %v2022_v60  ;;  %v14640_v60 = vld [vmem:[#allocation2 + $0x94] sm:$0xf]  ;;  %v720_v47 = vrot.slane %v15262_v28, 4  ;;  %v15361_v28 = vld [vmem:[#allocation2 + $0x10] sm:$0xf] }
  0xfc   : > { %13057 = vmatmul.mubr.bf16.gmra.mrb[20].mxu0 %v11609_v44  ;;  %v2004_v44 = vrot.slane %v15232_v49, 5 }
  0xfd   : > { %13060 = vmatprep.mubr.bf16.mxu0 %v11610_v22  ;;  %v11640_v22 = vcombine.low %v1998_v48, %v2001_v9  ;;  %v14633_v48 = vld [vmem:[#allocation2 + $0x5c] sm:$0x1] }
  0xfe   : > { %v2006_v12 = vrot.slane %v2004_v44, 4  ;;  %v2005_v49 = vsel %vm15266_vm14, %v11625_v21, %v2004_v44  ;;  %v2035_v9 = vrot.slane %v14633_v48, 5  ;;  %v14634_v21 = vld [vmem:[#allocation2 + $0x68] sm:$0x1] }
 0x100   : > { %v2008_v52 = vsel %vm15266_vm14, %v2006_v12, %v2007_v2  ;;  %v14415_v12 = vld [vmem:[#allocation3 + $0xe8] sm:$0xff]  }
 0x104   : > { %13061 = vmatmul.mubr.bf16.gmra.mrb[24].mxu0 %v11611_v41  ;;  %v2015_v41 = vsel %vm15266_vm14, %v2013_v24, %v2014_v37  ;;  %v2040_v24 = vsel %vm15266_vm14, %v11630_v14, %v2039_v10  ;;  %v1939_v37 = vld [vmem:[#allocation2 + $0x6c] sm:$0xe] }
 0x105   : > { %13064 = vmatprep.mubr.bf16.mxu0 %v11612_v43  ;;  %v11641_v43 = vcombine.low %v2005_v49, %v2008_v52  ;;  %v11642_v45 = vcombine.low %v2012_v29, %v2015_v41  ;;  %v14636_v49 = vld [vmem:[#allocation2 + $0x7c] sm:$0xf]  ;;  %v1940_v29 = vld [vmem:[#allocation2 + $0x78] sm:$0xe] }
 0x106   : > { %v2053_v52 = vrot.slane %v14636_v49, 5 }
 0x10c   : > { %13065 = vmatmul.mubr.bf16.gmra.mrb[28].mxu0 %v11613_v62  ;;  %v1937_v62 = vld [vmem:[#allocation2 + $0x54] sm:$0xe] }
 0x10d   : > { %13084 = vmatprep.mubr.bf16.mxu0 %v11638_v59  ;;  %v14631_v59 = vld [vmem:[#allocation2 + $0x58] sm:$0xf]  ;;  %v11629_v31 = vrot.slane %v1937_v62, 9  ;;  %v2067_v62 = vrot.slane %v14640_v60, 5 }
 0x10e   : > { %v2032_v63 = vrot.slane %v14631_v59, 5  ;;  %v14420_v59 = vld [vmem:[#allocation3 + $0x100] sm:$0xff]  }
 0x10f   : > { %v2804_v60 = vld [vmem:[#allocation2 + $0x18] sm:$0xf] }
 0x110   : > { %v2034_v44 = vrot.slane %v2032_v63, 4  ;;  %v2033_v17 = vsel %vm15266_vm14, %v11629_v31, %v2032_v63  ;;  %v1942_v63 = vld [vmem:[#allocation2 + $0x90] sm:$0xe]  ;;  %v2070_v31 = vrot.slane %v15148_v51, 5  ;;  %v2081_v51 = vrot.slane %v15194_v27, 5 }
 0x111   : > { %v2088_v27 = vrot.slane %v15207_v56, 5 }
 0x112   : > { %v2036_v2 = vsel %vm15266_vm14, %v2034_v44, %v2035_v9  ;;  %v2074_v9 = vrot.slane %v15169_v46, 5  ;;  %v2084_v46 = vrot.slane %v15198_v11, 5 }
 0x113   : > { %v11645_v41 = vcombine.low %v2033_v17, %v2036_v2 }
 0x114   : > { %13085 = vmatmul.mubr.bf16.vlgmr.msra.gmra.mrb[0].mxu0 %v11639_v19  ;;  %v2041_v19 = vrot.slane %v2039_v10, 4 }
 0x115   : > { %13117 = vmatpush3.bf16.msra.mxu0 %v15246_v7  ;;  %13088 = vmatprep.mubr.bf16.mxu0 %v11640_v22  ;;  %v2025_v7 = vrot.slane %v14628_v25, 5  ;;  %v2042_v22 = vrot.slane %v14634_v21, 5  ;;  %v1943_v21 = vld [vmem:[#allocation2 + $0x9c] sm:$0xe] }
 0x116   : > { %13118 = vmatprep.subr.bf16.mxu0 %v14411_v15  ;;  %v11635_v2 = vrot.slane %v1943_v21, 9 }
 0x117   : > { %v2027_v53 = vrot.slane %v2025_v7, 4  ;;  %v2026_v0 = vsel %vm15266_vm14, %v11628_v61, %v2025_v7  ;;  %v2043_v36 = vsel %vm15266_vm14, %v2041_v19, %v2042_v22  ;;  %v14637_v7 = vld [vmem:[#allocation2 + $0x74] sm:$0x1]  ;;  %v1944_v22 = vld [vmem:[#allocation2 + $0xa8] sm:$0xe] }
 0x118   : > { %v11646_v30 = vcombine.low %v2040_v24, %v2043_v36  ;;  %v2049_v39 = vrot.slane %v14637_v7, 5  ;;  %v11636_v24 = vrot.slane %v1944_v22, 9  ;;  %v2083_v36 = vrot.slane %v2081_v51, 4  ;;  %v14428_v22 = vld [vmem:[#allocation2 + $0x60] sm:$0xff]  }
 0x119   : > { %13119 = vmatpush3.bf16.msra.mxu0 %v14411_v15  ;;  %v2029_v1 = vsel %vm15266_vm14, %v2027_v53, %v2028_v20  ;;  %v14635_v15 = vld [vmem:[#allocation2 + $0x70] sm:$0xf]  ;;  %v1941_v53 = vld [vmem:[#allocation2 + $0x84] sm:$0xe]  ;;  %v2060_v20 = vrot.slane %v14639_v35, 5 }
 0x11a   : > { %13120 = vmatprep.subr.bf16.mxu0 %v14412_v33  ;;  %v11644_v16 = vcombine.low %v2026_v0, %v2029_v1  ;;  %v2046_v23 = vrot.slane %v14635_v15, 5  ;;  %v11633_v8 = vrot.slane %v1941_v53, 9  ;;  %v2076_v15 = vrot.slane %v2074_v9, 4  ;;  %v14426_v53 = vld [vmem:[#allocation3 + $0x110] sm:$0xff]   ;;  %v14422_v35 = vld [vmem:[#allocation2 + $0x30] sm:$0xff]  }
 0x11b   : > { %v2062_v10 = vrot.slane %v2060_v20, 4 }
 0x11c   : > { %13089 = vmatmul.mubr.bf16.gmra.mrb[4].mxu0 %v11641_v43  ;;  %v2048_v25 = vrot.slane %v2046_v23, 4  ;;  %v11632_v43 = vrot.slane %v1940_v29, 9  ;;  %v2061_v44 = vsel %vm15266_vm14, %v11633_v8, %v2060_v20  ;;  %v14424_v20 = vld [vmem:[#allocation2 + $0x3c] sm:$0xff]   ;;  %v14427_v8 = vld [vmem:[#allocation2 + $0x54] sm:$0xff]  }
 0x11d   : > { %13092 = vmatprep.mubr.bf16.mxu0 %v11642_v45  ;;  %13121 = vmatpush3.bf16.msra.mxu0 %v14412_v33  ;;  %v11631_v33 = vrot.slane %v1939_v37, 9  ;;  %v2055_v45 = vrot.slane %v2053_v52, 4  ;;  %v2075_v37 = vsel %vm15266_vm14, %v11635_v2, %v2074_v9  ;;  %v14438_v9 = vld [vmem:[#allocation3 + $0x130] sm:$0xff]  }
 0x11e   : > { %13122 = vmatprep.subr.bf16.mxu0 %v14413_v58  ;;  %v2050_v61 = vsel %vm15266_vm14, %v2048_v25, %v2049_v39  ;;  %v409_v25 = vld [vmem:[#allocation2 + $0xc8] sm:$0x1]  ;;  %v14430_v2 = vld [vmem:[#allocation2 + $0x6c] sm:$0xff]  }
 0x11f   : > { %v2047_v50 = vsel %vm15266_vm14, %v11631_v33, %v2046_v23  ;;  %v2057_v6 = vsel %vm15266_vm14, %v2055_v45, %v2056_v18  ;;  %v2077_v23 = vrot.slane %v15179_v55, 5  ;;  %v2085_v55 = vsel %vm15266_vm14, %v2083_v36, %v2084_v46  ;;  %v14418_v45 = vld [vmem:[#allocation2 + $0xc] sm:$0xff]   ;;  %v2807_v36 = vld [vmem:[#allocation2 + $0x24] sm:$0xf] }
 0x120   : > { %v11647_v0 = vcombine.low %v2047_v50, %v2050_v61  ;;  %v2091_v33 = vrot.slane %v15209_v57, 5  ;;  %v410_v39 = vsel %vm14827_vm4, 0, %v409_v25  ;;  %v14419_v57 = vld [vmem:[#allocation2 + $0x18] sm:$0xff]   ;;  %v14423_v61 = vld [vmem:[#allocation3 + $0x108] sm:$0xff]  }
 0x121   : > { %13123 = vmatpush3.bf16.msra.mxu0 %v14413_v58  ;;  %v2054_v58 = vsel %vm15266_vm14, %v11632_v43, %v2053_v52  ;;  %v2078_v49 = vsel %vm15266_vm14, %v2076_v15, %v2077_v23  ;;  %v2082_v52 = vsel %vm15266_vm14, %v11636_v24, %v2081_v51  ;;  %411 = vst [vmem:[#allocation2 + $0xc8] sm:$0x1] %v410_v39  ;;  %v14441_v24 = vld [vmem:[#allocation3 + $0x138] sm:$0xff]   ;;  %v15390_v25 = vld [vmem:[#allocation3 + $0x140] sm:$0xff]  }
 0x122   : > { %13124 = vmatprep.subr.bf16.mxu0 %v14414_v32  ;;  %v11648_v1 = vcombine.low %v2054_v58, %v2057_v6  ;;  %v11651_v29 = vcombine.low %v2075_v37, %v2078_v49  ;;  %v14429_v58 = vld [vmem:[#allocation3 + $0x118] sm:$0xff]   ;;  %v2801_v6 = vld [vmem:[#allocation2 + $0xc] sm:$0xf] }
 0x124   : > { %13093 = vmatmul.mubr.bf16.gmra.mrb[8].mxu0 %v11643_v13  ;;  %v11634_v13 = vrot.slane %v1942_v63, 9  ;;  %v2850_v63 = vshrl.u32 %v2801_v6, 16 }
 0x125   : > { %13096 = vmatprep.mubr.bf16.mxu0 %v11644_v16  ;;  %13125 = vmatpush3.bf16.msra.mxu0 %v14414_v32  ;;  %v14641_v32 = vld [vmem:[#allocation2 + $0x8c] sm:$0x1]  ;;  %v2069_v16 = vrot.slane %v2067_v62, 4 }
 0x126   : > { %13126 = vmatprep.subr.bf16.mxu0 %v14415_v12  ;;  %v2063_v42 = vrot.slane %v14641_v32, 5  ;;  %v2068_v14 = vsel %vm15266_vm14, %v11634_v13, %v2067_v62  ;;  %v14432_v62 = vld [vmem:[#allocation3 + $0x120] sm:$0xff]   ;;  %v2874_v32 = vshrl.u32 %v2804_v60, 16  ;;  %v15365_v13 = vld [vmem:[#allocation2 + $0x14] sm:$0x1] }
 0x127   : > { %v2071_v19 = vsel %vm15266_vm14, %v2069_v16, %v2070_v31  ;;  %v15367_v16 = vld [vmem:[#allocation2 + $0x1c] sm:$0xf]  ;;  %v2852_v31 = vrot.slane %v2850_v63, 4  ;;  %v14434_v63 = vld [vmem:[#allocation2 + $0x90] sm:$0xff]  }
 0x128   : > { %v2064_v48 = vsel %vm15266_vm14, %v2062_v10, %v2063_v42  ;;  %v11650_v17 = vcombine.low %v2068_v14, %v2071_v19  ;;  %v881_v18 = vld [vmem:[#allocation2 + $0xc8] sm:$0x1]  ;;  %v2863_v10 = vshrl.u32 %v15361_v28, 16  ;;  %v14435_v42 = vld [vmem:[#allocation3 + $0x128] sm:$0xff]   ;;  %v2876_v51 = vrot.slane %v2874_v32, 4 }
 0x129   : > { %13127 = vmatpush3.bf16.msra.mxu0 %v14415_v12  ;;  %v11649_v12 = vcombine.low %v2061_v44, %v2064_v48  ;;  %v882_v50 = vsel %vm14822_vm3, %v720_v47, %v881_v18  ;;  %v15369_v44 = vld [vmem:[#allocation2 + $0x20] sm:$0x1]  ;;  %v2877_v48 = vshll.u32 %v2804_v60, 16  ;;  %v2887_v15 = vshrl.u32 %v15367_v16, 16  ;;  %v2810_v18 = vld [vmem:[#allocation2 + $0x30] sm:$0xf] }
 0x12a   : > { %13128 = vmatprep.subr.bf16.mxu0 %v14416_v26  ;;  %883 = vst [vmem:[#allocation2 + $0xc8] sm:$0x1] %v882_v50  ;;  %v2865_v21 = vrot.slane %v2863_v10, 4  ;;  %v2893_v23 = vshll.u32 %v15369_v44, 16  ;;  %v2922_v60 = vshrl.u32 %v2810_v18, 16 }
 0x12b   : > { %v2813_v32 = vld [vmem:[#allocation2 + $0x3c] sm:$0xf] }
 0x12c   : > { %13097 = vmatmul.mubr.bf16.gmra.mrb[12].mxu0 %v11645_v41  ;;  %v11652_v41 = vcombine.low %v2082_v52, %v2085_v55  ;;  %v2889_v55 = vrot.slane %v2887_v15, 4  ;;  %v14437_v15 = vld [vmem:[#allocation2 + $0xa8] sm:$0xff]  }
 0x12d   : > { %13100 = vmatprep.mubr.bf16.mxu0 %v11646_v30  ;;  %13129 = vmatpush3.bf16.msra.mxu0 %v14416_v26  ;;  %v1945_v26 = vld [vmem:[#allocation2 + $0xb4] sm:$0xe]  ;;  %v2090_v30 = vrot.slane %v2088_v27, 4 }
 0x12e   : > { %13130 = vmatprep.subr.bf16.mxu0 %v14417_v38  ;;  %v11637_v11 = vrot.slane %v1945_v26, 9  ;;  %v15382_v26 = vld [vmem:[#allocation2 + $0x28] sm:$0xf] }
 0x12f   : > { %v2092_v56 = vsel %vm15266_vm14, %v2090_v30, %v2091_v33  ;;  %v2898_v30 = vshrl.u32 %v2807_v36, 16  ;;  %v14431_v33 = vld [vmem:[#allocation2 + $0x78] sm:$0xff]   ;;  %v2907_v39 = vshll.u32 %v15382_v26, 16 }
 0x130   : > { %v2089_v7 = vsel %vm15266_vm14, %v11637_v11, %v2088_v27  ;;  %v2879_v27 = vrot.slane %v2877_v48, 5  ;;  %v15388_v11 = vrot.slane %v2893_v23, 5  ;;  %v2924_v48 = vrot.slane %v2922_v60, 4  ;;  %v2819_v60 = vld [vmem:[#allocation2 + $0x54] sm:$0xf] }
 0x131   : > { %13131 = vmatpush3.bf16.msra.mxu0 %v14417_v38  ;;  %v11653_v43 = vcombine.low %v2089_v7, %v2092_v56  ;;  %v14421_v38 = vld [vmem:[#allocation2 + $0x24] sm:$0xff]   ;;  %v2901_v7 = vshll.u32 %v2807_v36, 16  ;;  %v14439_v36 = vld [vmem:[#allocation2 + $0xb4] sm:$0xff]  }
 0x132   : > { %13164 = vmatprep.subr.bf16.mxu0 %v14420_v59  ;;  %v14433_v56 = vld [vmem:[#allocation2 + $0x84] sm:$0xff]  }
 0x134   : > { %13101 = vmatmul.mubr.bf16.gmra.mrb[16].mxu0 %v11647_v0  ;;  %v14425_v0 = vld [vmem:[#allocation2 + $0x48] sm:$0xff]  }
 0x135   : > { %13104 = vmatprep.mubr.bf16.mxu0 %v11648_v1  ;;  %v2859_v1 = vshll.u32 %v15361_v28, 16 }
 0x137   : > { %v15371_v19 = vrot.slane %v2859_v1, 5  ;;  %v14436_v1 = vld [vmem:[#allocation2 + $0x9c] sm:$0xff]  }
 0x139   : > { %v2866_v37 = vor.u32 %v2865_v21, %v15371_v19 }
 0x13c   : > { %13105 = vmatmul.mubr.bf16.gmra.mrb[20].mxu0 %v11649_v12  ;;  %v2869_v12 = vshll.u32 %v15365_v13, 16 }
 0x13d   : > { %13108 = vmatprep.mubr.bf16.mxu0 %v11650_v17  ;;  %v2883_v17 = vshll.u32 %v15367_v16, 16 }
 0x13e   : > { %v15378_v49 = vrot.slane %v2869_v12, 5 }
 0x13f   : > { %v15380_v52 = vrot.slane %v2883_v17, 5  ;;  %v2946_v17 = vshrl.u32 %v2813_v32, 16 }
 0x141   : > { %v2890_v47 = vor.u32 %v2889_v55, %v15380_v52 }
 0x144   : > { %13109 = vmatmul.mubr.bf16.gmra.mrb[24].mxu0 %v11651_v29 }
 0x145   : > { %13112 = vmatprep.mubr.bf16.mxu0 %v11652_v41  ;;  %v15386_v41 = vrot.slane %v2866_v37, 4 }
 0x14c   : > { %13113 = vmatmul.mubr.bf16.gmra.mrb[28].mxu0 %v11653_v43  ;;  %v2911_v43 = vshrl.u32 %v15382_v26, 16 }
 0x14d   : > { %13132 = vmatprep.mubr.bf16.mxu0 %v14418_v45  ;;  %v2880_v45 = vor.u32 %v2879_v27, %v2876_v51  ;;  %v15415_v51 = vld [vmem:[#allocation2 + $0x40] sm:$0xf] }
 0x14e   : > { %v2959_v37 = vshrl.u32 %v15415_v51, 16 }
 0x14f   : > { %v15400_v50 = vrot.slane %v2880_v45, 4 }
 0x154   : > { %13133 = vmatmul.mubr.bf16.vlgmr.msra.gmra.mrb[0].mxu0 %v14419_v57  ;;  %v15395_v57 = vld [vmem:[#allocation2 + $0x2c] sm:$0x1] }
 0x155   : > { %13165 = vmatpush3.bf16.msra.mxu0 %v14420_v59  ;;  %13136 = vmatprep.mubr.bf16.mxu0 %v14421_v38  ;;  %v2853_v59 = vshll.u32 %v2801_v6, 16  ;;  %v15397_v38 = vld [vmem:[#allocation2 + $0x34] sm:$0xf]  ;;  %v2917_v6 = vshll.u32 %v15395_v57, 16 }
 0x156   : > { %13166 = vmatprep.subr.bf16.mxu0 %v14423_v61 }
 0x157   : > { %v2855_v14 = vrot.slane %v2853_v59, 5  ;;  %v2931_v59 = vshll.u32 %v15397_v38, 16  ;;  %v15419_v12 = vrot.slane %v2917_v6, 5 }
 0x159   : > { %13167 = vmatpush3.bf16.msra.mxu0 %v14423_v61  ;;  %v2856_v46 = vor.u32 %v2855_v14, %v2852_v31  ;;  %v15402_v61 = vrot.slane %v2890_v47, 4  ;;  %v15413_v14 = vrot.slane %v2931_v59, 5  ;;  %v15436_v47 = vld [vmem:[#allocation2 + $0x4c] sm:$0xf] }
 0x15a   : > { %13168 = vmatprep.subr.bf16.mxu0 %v14426_v53 }
 0x15b   : > { %v15384_v29 = vrot.slane %v2856_v46, 4  ;;  %v2955_v46 = vshll.u32 %v15415_v51, 16 }
 0x15c   : > { %13137 = vmatmul.mubr.bf16.gmra.mrb[4].mxu0 %v14422_v35  ;;  %v2903_v35 = vrot.slane %v2901_v7, 5  ;;  %v2872_v7 = vsel %vm14880_vm11, %v15386_v41, %v15378_v49  ;;  %v2979_v49 = vshll.u32 %v15436_v47, 16  ;;  %v2983_v41 = vshrl.u32 %v15436_v47, 16 }
 0x15d   : > { %13140 = vmatprep.mubr.bf16.mxu0 %v14424_v20  ;;  %13169 = vmatpush3.bf16.msra.mxu0 %v14426_v53  ;;  %v2900_v53 = vrot.slane %v2898_v30, 4  ;;  %v15404_v20 = vld [vmem:[#allocation2 + $0x38] sm:$0x1]  ;;  %v2816_v30 = vld [vmem:[#allocation2 + $0x48] sm:$0xf] }
 0x15e   : > { %13170 = vmatprep.subr.bf16.mxu0 %v14429_v58  ;;  %v2941_v10 = vshll.u32 %v15404_v20, 16  ;;  %v2973_v6 = vshll.u32 %v2816_v30, 16 }
 0x161   : > { %13171 = vmatpush3.bf16.msra.mxu0 %v14429_v58  ;;  %v15406_v58 = vrot.slane %v2907_v39, 5 }
 0x162   : > { %13172 = vmatprep.subr.bf16.mxu0 %v14432_v62 }
 0x164   : > { %13141 = vmatmul.mubr.bf16.gmra.mrb[8].mxu0 %v14425_v0  ;;  %v2913_v0 = vrot.slane %v2911_v43, 4  ;;  %v2948_v43 = vrot.slane %v2946_v17, 4  ;;  %v2822_v17 = vld [vmem:[#allocation2 + $0x60] sm:$0xf] }
 0x165   : > { %13144 = vmatprep.mubr.bf16.mxu0 %v14427_v8  ;;  %13173 = vmatpush3.bf16.msra.mxu0 %v14432_v62  ;;  %v2925_v62 = vshll.u32 %v2810_v18, 16  ;;  %v2935_v8 = vshrl.u32 %v15397_v38, 16  ;;  %v15438_v18 = vrot.slane %v2955_v46, 5 }
 0x166   : > { %13174 = vmatprep.subr.bf16.mxu0 %v14435_v42  ;;  %v2914_v31 = vor.u32 %v2913_v0, %v15406_v58  ;;  %v2886_v0 = vsel %vm14880_vm11, %v15400_v50, %v15380_v52 }
 0x167   : > { %v2937_v21 = vrot.slane %v2935_v8, 4  ;;  %v2997_v8 = vshll.u32 %v2819_v60, 16 }
 0x168   : > { %v15421_v23 = vrot.slane %v2914_v31, 4 }
 0x169   : > { %13175 = vmatpush3.bf16.msra.mxu0 %v14435_v42  ;;  %v2904_v42 = vor.u32 %v2903_v35, %v2900_v53  ;;  %v2938_v55 = vor.u32 %v2937_v21, %v15413_v14  ;;  %v2961_v53 = vrot.slane %v2959_v37, 4  ;;  %v2970_v35 = vshrl.u32 %v2816_v30, 16 }
 0x16a   : > { %13176 = vmatprep.subr.bf16.mxu0 %v14438_v9  ;;  %v2920_v52 = vsel %vm14880_vm11, %v15421_v23, %v15419_v12  ;;  %v2985_v12 = vrot.slane %v2983_v41, 4  ;;  %v2999_v23 = vrot.slane %v2997_v8, 5  ;;  %v3018_v30 = vshrl.u32 %v2822_v17, 16  ;;  %v15488_v41 = vld [vmem:[#allocation2 + $0x70] sm:$0xf] }
 0x16b   : > { %v2939_v39 = vrot.slane %v2938_v55, 4  ;;  %v2962_v21 = vor.u32 %v2961_v53, %v15438_v18  ;;  %v15481_v55 = vld [vmem:[#allocation2 + $0x5c] sm:$0x1] }
 0x16c   : > { %13145 = vmatmul.mubr.bf16.gmra.mrb[12].mxu0 %v14428_v22  ;;  %v15417_v22 = vrot.slane %v2904_v42, 4  ;;  %v2896_v42 = vsel %vm14880_vm11, %v15402_v61, %v15388_v11  ;;  %v15469_v61 = vld [vmem:[#allocation2 + $0x50] sm:$0x1]  ;;  %v3020_v8 = vrot.slane %v3018_v30, 4 }
 0x16d   : > { %13148 = vmatprep.mubr.bf16.mxu0 %v14430_v2  ;;  %13177 = vmatpush3.bf16.msra.mxu0 %v14438_v9  ;;  %v2927_v9 = vrot.slane %v2925_v62, 5  ;;  %v2949_v2 = vshll.u32 %v2813_v32, 16  ;;  %v15442_v62 = vld [vmem:[#allocation2 + $0x58] sm:$0xf] }
 0x16e   : > { %13178 = vmatprep.subr.bf16.mxu0 %v14441_v24  ;;  %v3007_v32 = vshrl.u32 %v15442_v62, 16  ;;  %v2910_v31 = vsel %vm14880_vm11, %v15417_v22, %v15406_v58 }
 0x16f   : > { %v2928_v27 = vor.u32 %v2927_v9, %v2924_v48  ;;  %v2951_v45 = vrot.slane %v2949_v2, 5  ;;  %v2972_v48 = vrot.slane %v2970_v35, 4  ;;  %v2975_v9 = vrot.slane %v2973_v6, 5 }
 0x170   : > { %v15474_v2 = vrot.slane %v2979_v49, 5  ;;  %v3009_v46 = vrot.slane %v3007_v32, 4  ;;  %v2825_v49 = vld [vmem:[#allocation2 + $0x6c] sm:$0xf] }
 0x171   : > { %13179 = vmatpush3.bf16.msra.mxu0 %v14441_v24  ;;  %v15423_v24 = vrot.slane %v2941_v10, 5  ;;  %v2952_v59 = vor.u32 %v2951_v45, %v2948_v43  ;;  %v3003_v10 = vshll.u32 %v15442_v62, 16  ;;  %v2976_v37 = vor.u32 %v2975_v9, %v2972_v48  ;;  %v2828_v48 = vld [vmem:[#allocation2 + $0x78] sm:$0xf]  ;;  %v15501_v9 = vld [vmem:[#allocation2 + $0x7c] sm:$0xf] }
 0x172   : > { %13212 = vmatprep.subr.bf16.mxu0 %v15390_v25  ;;  %v11687_v43 = vcombine.low %v2886_v0, %v2896_v42  ;;  %v11688_v45 = vcombine.low %v2910_v31, %v2920_v52  ;;  %v2986_v35 = vor.u32 %v2985_v12, %v15474_v2  ;;  %v15503_v52 = vld [vmem:[#allocation2 + $0x68] sm:$0x1] }
 0x173   : > { %v2944_v58 = vsel %vm14880_vm11, %v2939_v39, %v15423_v24  ;;  %v2953_v22 = vrot.slane %v2952_v59, 4  ;;  %v2963_v24 = vrot.slane %v2962_v21, 4  ;;  %v15490_v59 = vrot.slane %v2976_v37, 4 }
 0x174   : > { %13149 = vmatmul.mubr.bf16.gmra.mrb[16].mxu0 %v14431_v33  ;;  %v2862_v33 = vsel %vm14880_vm11, %v15384_v29, %v15371_v19  ;;  %v14440_v19 = vld [vmem:[#allocation2 + $0xc0] sm:$0xff]   ;;  %v3045_v21 = vshll.u32 %v2825_v49, 16  ;;  %v3075_v37 = vshll.u32 %v15501_v9, 16 }
 0x175   : > { %13152 = vmatprep.mubr.bf16.mxu0 %v14433_v56  ;;  %v2929_v56 = vrot.slane %v2928_v27, 4  ;;  %v15440_v29 = vld [vmem:[#allocation2 + $0x44] sm:$0x1]  ;;  %v2989_v27 = vshll.u32 %v15469_v61, 16  ;;  %v2958_v0 = vsel %vm14880_vm11, %v2953_v22, %v15438_v18  ;;  %v2987_v18 = vrot.slane %v2986_v35, 4 }
 0x176   : > { %v2965_v11 = vshll.u32 %v15440_v29, 16  ;;  %v2982_v35 = vsel %vm14880_vm11, %v15490_v59, %v15474_v2  ;;  %v15530_v2 = vld [vmem:[#allocation2 + $0x88] sm:$0xf] }
 0x177   : > { %v2934_v50 = vsel %vm14880_vm11, %v2929_v56, %v15413_v14 }
 0x178   : > { %v11689_v53 = vcombine.low %v2934_v50, %v2944_v58  ;;  %v3042_v50 = vshrl.u32 %v2825_v49, 16  ;;  %v14445_v49 = vld [vmem:[#allocation3 + $0x158] sm:$0xff]  }
 0x17c   : > { %13153 = vmatmul.mubr.bf16.gmra.mrb[20].mxu0 %v14434_v63  ;;  %v11686_v63 = vcombine.low %v2862_v33, %v2872_v7  ;;  %v3021_v33 = vshll.u32 %v2822_v17, 16  ;;  %v2967_v7 = vrot.slane %v2965_v11, 5  ;;  %v3051_v11 = vshll.u32 %v15488_v41, 16 }
 0x17d   : > { %13156 = vmatprep.mubr.bf16.mxu0 %v14436_v1  ;;  %v2994_v1 = vshrl.u32 %v2819_v60, 16  ;;  %v3055_v17 = vshrl.u32 %v15488_v41, 16 }
 0x17e   : > { %v2968_v32 = vsel %vm14880_vm11, %v2963_v24, %v2967_v7  ;;  %v3037_v7 = vshll.u32 %v15503_v52, 16 }
 0x17f   : > { %v2996_v14 = vrot.slane %v2994_v1, 4  ;;  %v15492_v1 = vrot.slane %v2989_v27, 5  ;;  %v3079_v27 = vshrl.u32 %v15501_v9, 16  ;;  %v11690_v30 = vcombine.low %v2958_v0, %v2968_v32 }
 0x180   : > { %v15528_v0 = vrot.slane %v3075_v37, 5  ;;  %v14446_v37 = vld [vmem:[#allocation3 + $0x160] sm:$0xff]  }
 0x181   : > { %v3000_v6 = vor.u32 %v2999_v23, %v2996_v14  ;;  %v14444_v14 = vld [vmem:[#allocation3 + $0x150] sm:$0xff]   ;;  %v3066_v23 = vshrl.u32 %v2828_v48, 16  ;;  %v3081_v32 = vrot.slane %v3079_v27, 4 }
 0x183   : > { %v3001_v58 = vrot.slane %v3000_v6, 4  ;;  %v2992_v6 = vsel %vm14880_vm11, %v2987_v18, %v15492_v1  ;;  %v3099_v18 = vshll.u32 %v15530_v2, 16 }
 0x184   : > { %13157 = vmatmul.mubr.bf16.gmra.mrb[24].mxu0 %v14437_v15  ;;  %v15476_v15 = vld [vmem:[#allocation2 + $0x64] sm:$0xf] }
 0x185   : > { %13160 = vmatprep.mubr.bf16.mxu0 %v14439_v36  ;;  %v15478_v36 = vrot.slane %v3003_v10, 5  ;;  %v3027_v56 = vshll.u32 %v15476_v15, 16  ;;  %v3031_v39 = vshrl.u32 %v15476_v15, 16  ;;  %v3023_v10 = vrot.slane %v3021_v33, 5 }
 0x187   : > { %v3010_v60 = vor.u32 %v3009_v46, %v15478_v36  ;;  %v15499_v42 = vrot.slane %v3027_v56, 5  ;;  %v3033_v31 = vrot.slane %v3031_v39, 4  ;;  %v3069_v46 = vshll.u32 %v2828_v48, 16  ;;  %v15539_v48 = vld [vmem:[#allocation2 + $0x80] sm:$0x1] }
 0x188   : > { %v3024_v33 = vor.u32 %v3023_v10, %v3020_v8  ;;  %v3044_v56 = vrot.slane %v3042_v50, 4  ;;  %v3047_v39 = vrot.slane %v3045_v21, 5  ;;  %v2831_v8 = vld [vmem:[#allocation2 + $0x84] sm:$0xf] }
 0x189   : > { %v3011_v22 = vrot.slane %v3010_v60, 4  ;;  %v3034_v24 = vor.u32 %v3033_v31, %v15499_v42  ;;  %v3006_v60 = vsel %vm14880_vm11, %v3001_v58, %v15478_v36  ;;  %v3071_v10 = vrot.slane %v3069_v46, 5 }
 0x18a   : > { %v15532_v59 = vrot.slane %v3024_v33, 4  ;;  %v15536_v31 = vrot.slane %v3037_v7, 5  ;;  %v3048_v50 = vor.u32 %v3047_v39, %v3044_v56  ;;  %v3103_v58 = vshrl.u32 %v15530_v2, 16  ;;  %v15556_v7 = vld [vmem:[#allocation2 + $0x94] sm:$0xf] }
 0x18b   : > { %v15534_v1 = vrot.slane %v3034_v24, 4  ;;  %v3085_v46 = vshll.u32 %v15539_v48, 16  ;;  %v15554_v24 = vld [vmem:[#allocation2 + $0x8c] sm:$0x1] }
 0x18c   : > { %13161 = vmatmul.mubr.bf16.gmra.mrb[28].mxu0 %v14440_v19  ;;  %v3013_v19 = vshll.u32 %v15481_v55, 16  ;;  %v3049_v56 = vrot.slane %v3048_v50, 4  ;;  %v3127_v50 = vshrl.u32 %v15556_v7, 16 }
 0x18d   : > { %13180 = vmatprep.mubr.bf16.mxu0 %v11686_v63  ;;  %v14443_v63 = vld [vmem:[#allocation3 + $0x148] sm:$0xff]  }
 0x18e   : > { %v3015_v12 = vrot.slane %v3013_v19, 5 }
 0x190   : > { %v3016_v19 = vsel %vm14880_vm11, %v3011_v22, %v3015_v12  ;;  %v11691_v22 = vcombine.low %v2982_v35, %v2992_v6  ;;  %v2837_v6 = vld [vmem:[#allocation2 + $0x9c] sm:$0xf] }
 0x191   : > { %v11692_v27 = vcombine.low %v3006_v60, %v3016_v19  ;;  %v15558_v60 = vrot.slane %v3099_v18, 5  ;;  %v3105_v19 = vrot.slane %v3103_v58, 4 }
 0x194   : > { %13181 = vmatmul.mubr.bf16.vlgmr.msra.gmra.mrb[0].mxu0 %v11687_v43  ;;  %v15514_v43 = vrot.slane %v3051_v11, 5  ;;  %v3090_v11 = vshrl.u32 %v2831_v8, 16 }
 0x195   : > { %13213 = vmatpush3.bf16.msra.mxu0 %v15390_v25  ;;  %13184 = vmatprep.mubr.bf16.mxu0 %v11688_v45  ;;  %v15512_v25 = vld [vmem:[#allocation2 + $0x74] sm:$0x1]  ;;  %v3057_v45 = vrot.slane %v3055_v17, 4  ;;  %v3093_v17 = vshll.u32 %v2831_v8, 16 }
 0x196   : > { %13214 = vmatprep.subr.bf16.mxu0 %v14443_v63  ;;  %v3061_v36 = vshll.u32 %v15512_v25, 16 }
 0x197   : > { %v3058_v21 = vor.u32 %v3057_v45, %v15514_v43  ;;  %v3092_v45 = vrot.slane %v3090_v11, 4  ;;  %v3095_v35 = vrot.slane %v3093_v17, 5  ;;  %v3054_v11 = vsel %vm14880_vm11, %v3049_v56, %v15514_v43 }
 0x198   : > { %v3063_v33 = vrot.slane %v3061_v36, 5  ;;  %v3123_v36 = vshll.u32 %v15556_v7, 16 }
 0x199   : > { %13215 = vmatpush3.bf16.msra.mxu0 %v14443_v63  ;;  %v3068_v63 = vrot.slane %v3066_v23, 4  ;;  %v3082_v23 = vor.u32 %v3081_v32, %v15528_v0  ;;  %v3059_v39 = vrot.slane %v3058_v21, 4  ;;  %v3138_v21 = vshrl.u32 %v2837_v6, 16 }
 0x19a   : > { %13216 = vmatprep.subr.bf16.mxu0 %v14444_v14 }
 0x19b   : > { %v3072_v12 = vor.u32 %v3071_v10, %v3068_v63  ;;  %v15560_v63 = vld [vmem:[#allocation2 + $0xa0] sm:$0xf]  ;;  %v3083_v32 = vrot.slane %v3082_v23, 4  ;;  %v3064_v17 = vsel %vm14880_vm11, %v3059_v39, %v3063_v33  ;;  %v3106_v23 = vor.u32 %v3105_v19, %v15558_v60  ;;  %v15578_v33 = vld [vmem:[#allocation2 + $0x98] sm:$0x1]  ;;  %v14448_v39 = vld [vmem:[#allocation3 + $0x170] sm:$0xff]  }
 0x19c   : > { %13185 = vmatmul.mubr.bf16.gmra.mrb[4].mxu0 %v11689_v53  ;;  %v2834_v53 = vld [vmem:[#allocation2 + $0x90] sm:$0xf]  ;;  %v3147_v18 = vshll.u32 %v15560_v63, 16  ;;  %v3151_v58 = vshrl.u32 %v15560_v63, 16  ;;  %18118 = vst [vmem:[#allocation10_spill] sm:$0xff] %v15578_v33  ;;  %v11694_v19 = vcombine.low %v3054_v11, %v3064_v17 }
 0x19d   : > { %13188 = vmatprep.mubr.bf16.mxu0 %v11690_v30  ;;  %13217 = vmatpush3.bf16.msra.mxu0 %v14444_v14  ;;  %v3030_v30 = vsel %vm14880_vm11, %v15532_v59, %v15499_v42  ;;  %v3040_v14 = vsel %vm14880_vm11, %v15534_v1, %v15536_v31  ;;  %v3114_v42 = vshrl.u32 %v2834_v53, 16  ;;  %v3117_v8 = vshll.u32 %v2834_v53, 16  ;;  %v14447_v31 = vld [vmem:[#allocation3 + $0x168] sm:$0xff]   ;;  %v2843_v11 = vld [vmem:[#allocation2 + $0xb4] sm:$0xf] }
 0x19e   : > { %13218 = vmatprep.subr.bf16.mxu0 %v14445_v49  ;;  %v3073_v10 = vrot.slane %v3072_v12, 4  ;;  %v3087_v59 = vrot.slane %v3085_v46, 5  ;;  %v3109_v1 = vshll.u32 %v15554_v24, 16  ;;  %v3096_v12 = vor.u32 %v3095_v35, %v3092_v45  ;;  %v15591_v17 = vld [vmem:[#allocation2 + $0xb8] sm:$0xf] }
 0x19f   : > { %v3116_v46 = vrot.slane %v3114_v42, 4  ;;  %v3119_v53 = vrot.slane %v3117_v8, 5  ;;  %v11693_v35 = vcombine.low %v3030_v30, %v3040_v14  ;;  %v15582_v42 = vld [vmem:[#allocation2 + $0xa4] sm:$0x1]  ;;  %v15584_v8 = vrot.slane %v3147_v18, 5  ;;  %18121 = vst [vmem:[#allocation13_spill] sm:$0xff] %v15591_v17 }
 0x1a0   : > { %v3088_v43 = vsel %vm14880_vm11, %v3083_v32, %v3087_v59  ;;  %v3111_v56 = vrot.slane %v3109_v1, 5  ;;  %18119 = vst [vmem:[#allocation11_spill] sm:$0xff] %v15582_v42  ;;  %v3097_v40 = vrot.slane %v3096_v12, 4  ;;  %v3107_v32 = vrot.slane %v3106_v23, 4 }
 0x1a1   : > { %13219 = vmatpush3.bf16.msra.mxu0 %v14445_v49  ;;  %v3141_v49 = vshll.u32 %v2837_v6, 16  ;;  %v15580_v6 = vrot.slane %v3123_v36, 5  ;;  %v3120_v59 = vor.u32 %v3119_v53, %v3116_v46  ;;  %v3133_v1 = vshll.u32 %v15578_v33, 16  ;;  %v15607_v33 = vld [vmem:[#allocation2 + $0xc4] sm:$0xf] }
 0x1a2   : > { %13220 = vmatprep.subr.bf16.mxu0 %v14446_v37  ;;  %v3175_v12 = vshrl.u32 %v15587_v34, 16  ;;  %v3102_v23 = vsel %vm14880_vm11, %v3097_v40, %v15558_v60  ;;  %v3112_v46 = vsel %vm14880_vm11, %v3107_v32, %v3111_v56  ;;  %v15605_v60 = vld [vmem:[#allocation2 + $0xb0] sm:$0x1] }
 0x1a3   : > { %v3143_v45 = vrot.slane %v3141_v49, 5  ;;  %v3121_v53 = vrot.slane %v3120_v59, 4 }
 0x1a4   : > { %13189 = vmatmul.mubr.bf16.gmra.mrb[8].mxu0 %v11691_v22  ;;  %v3078_v22 = vsel %vm14880_vm11, %v3073_v10, %v15528_v0  ;;  %v3153_v0 = vrot.slane %v3151_v58, 4  ;;  %v2840_v10 = vld [vmem:[#allocation2 + $0xa8] sm:$0xf]  ;;  %v3177_v59 = vrot.slane %v3175_v12, 4 }
 0x1a5   : > { %13192 = vmatprep.mubr.bf16.mxu0 %v11692_v27  ;;  %13221 = vmatpush3.bf16.msra.mxu0 %v14446_v37  ;;  %v3129_v37 = vrot.slane %v3127_v50, 4  ;;  %v3140_v27 = vrot.slane %v3138_v21, 4  ;;  %v11695_v36 = vcombine.low %v3078_v22, %v3088_v43  ;;  %v14449_v50 = vld [vmem:[#allocation3 + $0x178] sm:$0xff]   ;;  %v3157_v21 = vshll.u32 %v15582_v42, 16 }
 0x1a6   : > { %13222 = vmatprep.subr.bf16.mxu0 %v14447_v31  ;;  %v3162_v49 = vshrl.u32 %v2840_v10, 16  ;;  %v3154_v18 = vor.u32 %v3153_v0, %v15584_v8  ;;  %v3165_v58 = vshll.u32 %v2840_v10, 16  ;;  %v3135_v22 = vrot.slane %v3133_v1, 5  ;;  %v2846_v1 = vld [vmem:[#allocation2 + $0xc0] sm:$0xf] }
 0x1a7   : > { %v3130_v30 = vor.u32 %v3129_v37, %v15580_v6  ;;  %v3144_v14 = vor.u32 %v3143_v45, %v3140_v27  ;;  %v3186_v43 = vshrl.u32 %v2843_v11, 16  ;;  %v3189_v37 = vshll.u32 %v2843_v11, 16 }
 0x1a8   : > { %v3195_v27 = vshll.u32 %v15591_v17, 16  ;;  %v3199_v45 = vshrl.u32 %v15591_v17, 16  ;;  %v3159_v10 = vrot.slane %v3157_v21, 5  ;;  %v3164_v5 = vrot.slane %v3162_v49, 4  ;;  %v15616_v49 = vld [vmem:[#allocation2 + $0xbc] sm:$0x1] }
 0x1a9   : > { %13223 = vmatpush3.bf16.msra.mxu0 %v14447_v31  ;;  %v3171_v31 = vshll.u32 %v15587_v34, 16  ;;  %v3145_v0 = vrot.slane %v3144_v14, 4  ;;  %v3155_v40 = vrot.slane %v3154_v18, 4  ;;  %v3167_v56 = vrot.slane %v3165_v58, 5 }
 0x1aa   : > { %13224 = vmatprep.subr.bf16.mxu0 %v14448_v39  ;;  %v3188_v11 = vrot.slane %v3186_v43, 4  ;;  %v3191_v34 = vrot.slane %v3189_v37, 5  ;;  %v3197_v42 = vrot.slane %v3195_v27, 5  ;;  %v3201_v17 = vrot.slane %v3199_v45, 4 }
 0x1ab   : > { %v3173_v32 = vrot.slane %v3171_v31, 5  ;;  %v3181_v21 = vshll.u32 %v15605_v60, 16  ;;  %v3160_v18 = vsel %vm14880_vm11, %v3155_v40, %v3159_v10  ;;  %v3168_v58 = vor.u32 %v3167_v56, %v3164_v5 }
 0x1ac   : > { %13193 = vmatmul.mubr.bf16.gmra.mrb[12].mxu0 %v11693_v35  ;;  %v15603_v35 = vld [vmem:[#allocation3 + $0x180] sm:$0xff]   ;;  %v3210_v12 = vshrl.u32 %v2846_v1, 16 }
 0x1ad   : > { %13196 = vmatprep.mubr.bf16.mxu0 %v11694_v19  ;;  %13225 = vmatpush3.bf16.msra.mxu0 %v14448_v39  ;;  %v3131_v19 = vrot.slane %v3130_v30, 4  ;;  %v11696_v39 = vcombine.low %v3102_v23, %v3112_v46  ;;  %v3126_v30 = vsel %vm14880_vm11, %v3121_v53, %v15580_v6  ;;  %v3178_v31 = vor.u32 %v3177_v59, %v3173_v32 }
 0x1ae   : > { %13226 = vmatprep.subr.bf16.mxu0 %v14449_v50  ;;  %v3213_v6 = vshll.u32 %v2846_v1, 16  ;;  %v3219_v23 = vshll.u32 %v15607_v33, 16  ;;  %v3223_v46 = vshrl.u32 %v15607_v33, 16  ;;  %v3192_v53 = vor.u32 %v3191_v34, %v3188_v11 }
 0x1af   : > { %v3136_v14 = vsel %vm14880_vm11, %v3131_v19, %v3135_v22  ;;  %v3202_v22 = vor.u32 %v3201_v17, %v3197_v42  ;;  %v3169_v27 = vrot.slane %v3168_v58, 4  ;;  %v3183_v45 = vrot.slane %v3181_v21, 5 }
 0x1b0   : > { %v11697_v43 = vcombine.low %v3126_v30, %v3136_v14  ;;  %v3212_v19 = vrot.slane %v3210_v12, 4  ;;  %v3221_v5 = vrot.slane %v3219_v23, 5  ;;  %v3225_v10 = vrot.slane %v3223_v46, 4  ;;  %v356_v23 = vld [vmem:[#allocation2 + $0xcc] sm:$0x1] }
 0x1b1   : > { %13227 = vmatpush3.bf16.msra.mxu0 %v14449_v50  ;;  %v3150_v50 = vsel %vm14880_vm11, %v3145_v0, %v15584_v8  ;;  %v3179_v8 = vrot.slane %v3178_v31, 4  ;;  %v3215_v0 = vrot.slane %v3213_v6, 5  ;;  %v3193_v40 = vrot.slane %v3192_v53, 4 }
 0x1b2   : > { %13260 = vmatprep.subr.bf16.mxu0 %v15603_v35  ;;  %v11698_v37 = vcombine.low %v3150_v50, %v3160_v18  ;;  %v3203_v56 = vrot.slane %v3202_v22, 4  ;;  %v3174_v34 = vsel %vm14880_vm11, %v3169_v27, %v3173_v32  ;;  %v3226_v11 = vor.u32 %v3225_v10, %v3221_v5  ;;  %v3555_v18 = vld [vmem:[#allocation2 + $0xc] sm:$0xe]  ;;  %v3556_v27 = vld [vmem:[#allocation2 + $0x18] sm:$0xe] }
 0x1b3   : > { %v3184_v17 = vsel %vm14880_vm11, %v3179_v8, %v3183_v45  ;;  %v3216_v1 = vor.u32 %v3215_v0, %v3212_v19  ;;  %v3198_v14 = vsel %vm14880_vm11, %v3193_v40, %v3197_v42  ;;  %v3621_v50 = vrot.slane %v15361_v28, 5  ;;  %v3557_v45 = vld [vmem:[#allocation2 + $0x24] sm:$0xe] }
 0x1b4   : > { %13197 = vmatmul.mubr.bf16.gmra.mrb[16].mxu0 %v11695_v36  ;;  %v3205_v36 = vshll.u32 %v15616_v49, 16  ;;  %v11699_v58 = vcombine.low %v3174_v34, %v3184_v17  ;;  %v3227_v12 = vrot.slane %v3226_v11, 4  ;;  %v11710_v46 = vrot.slane %v3555_v18, 9  ;;  %v3558_v11 = vld [vmem:[#allocation2 + $0x30] sm:$0xe] }
 0x1b5   : > { %13200 = vmatprep.mubr.bf16.mxu0 %v11696_v39  ;;  %v15626_v39 = vld [vmem:[#allocation2 + $0xc8] sm:$0x1]  ;;  %v3217_v32 = vrot.slane %v3216_v1, 4  ;;  %v3623_v53 = vrot.slane %v3621_v50, 4  ;;  %v3624_v22 = vrot.slane %v15365_v13, 5  ;;  %v3635_v8 = vrot.slane %v15382_v26, 5 }
 0x1b6   : > { %v3207_v59 = vrot.slane %v3205_v36, 5  ;;  %v3229_v30 = vshll.u32 %v15626_v39, 16  ;;  %v357_v36 = vsel %vm14822_vm3, 0, %v356_v23  ;;  %v11711_v10 = vrot.slane %v3556_v27, 9 }
 0x1b7   : > { %358 = vst [vmem:[#allocation2 + $0xcc] sm:$0x1] %v357_v36  ;;  %v3222_v28 = vsel %vm14880_vm11, %v3217_v32, %v3221_v5  ;;  %v3625_v13 = vsel %vm15266_vm14, %v3623_v53, %v3624_v22  ;;  %v3631_v5 = vrot.slane %v15369_v44, 5  ;;  %v3642_v26 = vrot.slane %v15397_v38, 5  ;;  %v14452_v53 = vld [vmem:[#allocation3 + $0x190] sm:$0xff]  }
 0x1b8   : > { %v3208_v21 = vsel %vm14880_vm11, %v3203_v56, %v3207_v59  ;;  %v3231_v6 = vrot.slane %v3229_v30, 5  ;;  %v11712_v56 = vrot.slane %v3557_v45, 9  ;;  %v3637_v59 = vrot.slane %v3635_v8, 4  ;;  %v3561_v22 = vld [vmem:[#allocation2 + $0x54] sm:$0xe] }
 0x1b9   : > { %v11700_v31 = vcombine.low %v3198_v14, %v3208_v21  ;;  %v3649_v30 = vrot.slane %v15415_v51, 5  ;;  %v3644_v18 = vrot.slane %v3642_v26, 4  ;;  %v3652_v38 = vrot.slane %v15440_v29, 5  ;;  %v3560_v29 = vld [vmem:[#allocation2 + $0x48] sm:$0xe] }
 0x1ba   : > { %v3232_v42 = vsel %vm14880_vm11, %v3227_v12, %v3231_v6  ;;  %v3636_v1 = vsel %vm15266_vm14, %v11712_v56, %v3635_v8  ;;  %v3656_v23 = vrot.slane %v15436_v47, 5  ;;  %v11716_v47 = vrot.slane %v3561_v22, 9  ;;  %v14453_v8 = vld [vmem:[#allocation3 + $0x198] sm:$0xff]  }
 0x1bb   : > { %v11701_v19 = vcombine.low %v3222_v28, %v3232_v42  ;;  %v3651_v12 = vrot.slane %v3649_v30, 4  ;;  %v11715_v42 = vrot.slane %v3560_v29, 9  ;;  %v3666_v27 = vrot.slane %v15481_v55, 5 }
 0x1bc   : > { %13201 = vmatmul.mubr.bf16.gmra.mrb[20].mxu0 %v11697_v43  ;;  %v3628_v43 = vrot.slane %v15367_v16, 5  ;;  %v3638_v16 = vrot.slane %v15395_v57, 5  ;;  %v3559_v57 = vld [vmem:[#allocation2 + $0x3c] sm:$0xe]  ;;  %v3677_v55 = vrot.slane %v15488_v41, 5  ;;  %v3705_v29 = vrot.slane %v15560_v63, 5 }
 0x1bd   : > { %13204 = vmatprep.mubr.bf16.mxu0 %v11698_v37  ;;  %v3622_v37 = vsel %vm15266_vm14, %v11710_v46, %v3621_v50  ;;  %v11713_v50 = vrot.slane %v3558_v11, 9  ;;  %v11714_v32 = vrot.slane %v3559_v57, 9  ;;  %v3653_v46 = vsel %vm15266_vm14, %v3651_v12, %v3652_v38 }
 0x1be   : > { %v11726_v0 = vcombine.low %v3622_v37, %v3625_v13  ;;  %v3630_v40 = vrot.slane %v3628_v43, 4  ;;  %v3629_v34 = vsel %vm15266_vm14, %v11711_v10, %v3628_v43  ;;  %v3639_v44 = vsel %vm15266_vm14, %v3637_v59, %v3638_v16  ;;  %v3562_v10 = vld [vmem:[#allocation2 + $0x60] sm:$0xe] }
 0x1bf   : > { %v11728_v21 = vcombine.low %v3636_v1, %v3639_v44  ;;  %v3643_v6 = vsel %vm15266_vm14, %v11713_v50, %v3642_v26  ;;  %v3658_v43 = vrot.slane %v3656_v23, 4  ;;  %v3659_v37 = vrot.slane %v15469_v61, 5  ;;  %v14455_v44 = vld [vmem:[#allocation3 + $0x1a8] sm:$0xff]  }
 0x1c0   : > { %v3632_v17 = vsel %vm15266_vm14, %v3630_v40, %v3631_v5  ;;  %v3657_v45 = vsel %vm15266_vm14, %v11715_v42, %v3656_v23  ;;  %v14454_v40 = vld [vmem:[#allocation3 + $0x1a0] sm:$0xff]   ;;  %v3563_v5 = vld [vmem:[#allocation2 + $0x6c] sm:$0xe]  ;;  %v11717_v16 = vrot.slane %v3562_v10, 9  ;;  %v3679_v26 = vrot.slane %v3677_v55, 4  ;;  %v18125_v10 = vld [vmem:[#allocation13_spill] sm:$0xff] }
 0x1c1   : > { %v11727_v14 = vcombine.low %v3629_v34, %v3632_v17  ;;  %v3673_v17 = vrot.slane %v15503_v52, 5  ;;  %v3680_v1 = vrot.slane %v15512_v25, 5  ;;  %v3564_v25 = vld [vmem:[#allocation2 + $0x78] sm:$0xe]  ;;  %v3565_v50 = vld [vmem:[#allocation2 + $0x84] sm:$0xe] }
 0x1c2   : > { %v3687_v12 = vrot.slane %v15539_v48, 5 }
 0x1c3   : > { %v3681_v57 = vsel %vm15266_vm14, %v3679_v26, %v3680_v1  ;;  %v3722_v26 = vrot.slane %v15616_v49, 5 }
 0x1c4   : > { %13205 = vmatmul.mubr.bf16.gmra.mrb[24].mxu0 %v11699_v58  ;;  %v3645_v58 = vrot.slane %v15404_v20, 5  ;;  %v3650_v20 = vsel %vm15266_vm14, %v11714_v32, %v3649_v30  ;;  %v3684_v30 = vrot.slane %v15501_v9, 5  ;;  %v11720_v9 = vrot.slane %v3565_v50, 9 }
 0x1c5   : > { %13208 = vmatprep.mubr.bf16.mxu0 %v11700_v31  ;;  %v14451_v31 = vld [vmem:[#allocation3 + $0x188] sm:$0xff]   ;;  %v11730_v28 = vcombine.low %v3650_v20, %v3653_v46  ;;  %v3698_v20 = vrot.slane %v15556_v7, 5 }
 0x1c6   : > { %v3646_v51 = vsel %vm15266_vm14, %v3644_v18, %v3645_v58  ;;  %v3686_v32 = vrot.slane %v3684_v30, 4 }
 0x1c7   : > { %v11729_v36 = vcombine.low %v3643_v6, %v3646_v51  ;;  %v3694_v6 = vrot.slane %v15554_v24, 5  ;;  %v14457_v51 = vld [vmem:[#allocation3 + $0x1b8] sm:$0xff]   ;;  %v3700_v42 = vrot.slane %v3698_v20, 4 }
 0x1c8   : > { %v3688_v23 = vsel %vm15266_vm14, %v3686_v32, %v3687_v12  ;;  %v3566_v24 = vld [vmem:[#allocation2 + $0x90] sm:$0xe]  ;;  %v14458_v32 = vld [vmem:[#allocation2 + $0x18] sm:$0xff]   ;;  %v14459_v12 = vld [vmem:[#allocation2 + $0x24] sm:$0xff]  }
 0x1cc   : > { %13209 = vmatmul.mubr.bf16.gmra.mrb[28].mxu0 %v11701_v19  ;;  %v3670_v19 = vrot.slane %v15476_v15, 5  ;;  %v11718_v15 = vrot.slane %v3563_v5, 9 }
 0x1cd   : > { %13228 = vmatprep.mubr.bf16.mxu0 %v11726_v0 }
 0x1ce   : > { %v3672_v34 = vrot.slane %v3670_v19, 4  ;;  %v3671_v41 = vsel %vm15266_vm14, %v11717_v16, %v3670_v19  ;;  %v3678_v52 = vsel %vm15266_vm14, %v11718_v15, %v3677_v55  ;;  %v3719_v55 = vrot.slane %v18125_v10, 5 }
 0x1cf   : > { %v11734_v58 = vcombine.low %v3678_v52, %v3681_v57 }
 0x1d0   : > { %v3674_v11 = vsel %vm15266_vm14, %v3672_v34, %v3673_v17  ;;  %v3715_v34 = vrot.slane %v15605_v60, 5  ;;  %v3721_v15 = vrot.slane %v3719_v55, 4 }
 0x1d1   : > { %v11733_v18 = vcombine.low %v3671_v41, %v3674_v11  ;;  %v3726_v41 = vrot.slane %v15607_v33, 5 }
 0x1d2   : > { %v3723_v60 = vsel %vm15266_vm14, %v3721_v15, %v3722_v26 }
 0x1d4   : > { %13229 = vmatmul.mubr.bf16.vlgmr.msra.gmra.mrb[0].mxu0 %v11727_v14  ;;  %v3691_v14 = vrot.slane %v15530_v2, 5 }
 0x1d5   : > { %13261 = vmatpush3.bf16.msra.mxu0 %v15603_v35  ;;  %13232 = vmatprep.mubr.bf16.mxu0 %v11728_v21  ;;  %v3663_v35 = vrot.slane %v15442_v62, 5  ;;  %v3660_v62 = vsel %vm15266_vm14, %v3658_v43, %v3659_v37  ;;  %v14456_v21 = vld [vmem:[#allocation3 + $0x1b0] sm:$0xff]   ;;  %v18122_v43 = vld [vmem:[#allocation10_spill] sm:$0xff] }
 0x1d6   : > { %13262 = vmatprep.subr.bf16.mxu0 %v14451_v31  ;;  %v11731_v56 = vcombine.low %v3657_v45, %v3660_v62  ;;  %v3693_v38 = vrot.slane %v3691_v14, 4  ;;  %v3692_v48 = vsel %vm15266_vm14, %v11720_v9, %v3691_v14  ;;  %v3701_v37 = vrot.slane %v18122_v43, 5  ;;  %v18124_v45 = vld [vmem:[#allocation12_spill] sm:$0xff]  ;;  %v14461_v9 = vld [vmem:[#allocation2 + $0x30] sm:$0xff]  }
 0x1d7   : > { %v3665_v13 = vrot.slane %v3663_v35, 4  ;;  %v3664_v61 = vsel %vm15266_vm14, %v11716_v47, %v3663_v35  ;;  %v3567_v35 = vld [vmem:[#allocation2 + $0x9c] sm:$0xe]  ;;  %v3707_v47 = vrot.slane %v3705_v29, 4  ;;  %v3712_v62 = vrot.slane %v18124_v45, 5 }
 0x1d8   : > { %v3695_v46 = vsel %vm15266_vm14, %v3693_v38, %v3694_v6  ;;  %v11722_v7 = vrot.slane %v3567_v35, 9  ;;  %v3729_v14 = vrot.slane %v15626_v39, 5  ;;  %v14463_v39 = vld [vmem:[#allocation3 + $0x1c8] sm:$0xff]   ;;  %v14466_v38 = vld [vmem:[#allocation3 + $0x1d0] sm:$0xff]   ;;  %v14481_v35 = vld [vmem:[#allocation3 + $0x1f8] sm:$0xff]  }
 0x1d9   : > { %13263 = vmatpush3.bf16.msra.mxu0 %v14451_v31  ;;  %v3667_v0 = vsel %vm15266_vm14, %v3665_v13, %v3666_v27  ;;  %v11719_v31 = vrot.slane %v3564_v25, 9  ;;  %v18123_v13 = vld [vmem:[#allocation11_spill] sm:$0xff]  ;;  %v3714_v16 = vrot.slane %v3712_v62, 4  ;;  %v3728_v25 = vrot.slane %v3726_v41, 4 }
 0x1da   : > { %13264 = vmatprep.subr.bf16.mxu0 %v14452_v53  ;;  %v11732_v59 = vcombine.low %v3664_v61, %v3667_v0  ;;  %v3708_v27 = vrot.slane %v18123_v13, 5  ;;  %v3706_v19 = vsel %vm15266_vm14, %v11722_v7, %v3705_v29  ;;  %v3568_v0 = vld [vmem:[#allocation2 + $0xa8] sm:$0xe]  ;;  %v14462_v6 = vld [vmem:[#allocation2 + $0x3c] sm:$0xff]   ;;  %v14468_v29 = vld [vmem:[#allocation2 + $0x6c] sm:$0xff]  }
 0x1db   : > { %v3685_v2 = vsel %vm15266_vm14, %v11719_v31, %v3684_v30  ;;  %v3570_v30 = vld [vmem:[#allocation2 + $0xc0] sm:$0xe]  ;;  %v3730_v33 = vsel %vm15266_vm14, %v3728_v25, %v3729_v14  ;;  %v4443_v13 = vld [vmem:[#allocation2 + $0x24] sm:$0xf]  ;;  %v15765_v25 = vld [vmem:[#allocation2 + $0x2c] sm:$0x1] }
 0x1dc   : > { %13233 = vmatmul.mubr.bf16.gmra.mrb[4].mxu0 %v11729_v36  ;;  %v11735_v22 = vcombine.low %v3685_v2, %v3688_v23  ;;  %v11736_v36 = vcombine.low %v3692_v48, %v3695_v46  ;;  %v3709_v61 = vsel %vm15266_vm14, %v3707_v47, %v3708_v27  ;;  %v11725_v49 = vrot.slane %v3570_v30, 9  ;;  %v14469_v2 = vld [vmem:[#allocation3 + $0x1d8] sm:$0xff]   ;;  %v14472_v23 = vld [vmem:[#allocation3 + $0x1e0] sm:$0xff]   ;;  %v14467_v48 = vld [vmem:[#allocation2 + $0x60] sm:$0xff]  }
 0x1dd   : > { %13236 = vmatprep.mubr.bf16.mxu0 %v11730_v28  ;;  %13265 = vmatpush3.bf16.msra.mxu0 %v14452_v53  ;;  %v14460_v53 = vld [vmem:[#allocation3 + $0x1c0] sm:$0xff]   ;;  %v11721_v28 = vrot.slane %v3566_v24, 9  ;;  %v14475_v46 = vld [vmem:[#allocation3 + $0x1e8] sm:$0xff]   ;;  %v14478_v24 = vld [vmem:[#allocation3 + $0x1f0] sm:$0xff]   ;;  %v4513_v45 = vshrl.u32 %v4443_v13, 16 }
 0x1de   : > { %13266 = vmatprep.subr.bf16.mxu0 %v14453_v8  ;;  %v3727_v50 = vsel %vm15266_vm14, %v11725_v49, %v3726_v41  ;;  %v14473_v27 = vld [vmem:[#allocation2 + $0x90] sm:$0xff]   ;;  %v14474_v41 = vld [vmem:[#allocation2 + $0x9c] sm:$0xff]  }
 0x1df   : > { %v3699_v63 = vsel %vm15266_vm14, %v11721_v28, %v3698_v20  ;;  %v11741_v31 = vcombine.low %v3727_v50, %v3730_v33  ;;  %v14465_v20 = vld [vmem:[#allocation2 + $0x54] sm:$0xff]   ;;  %v15763_v49 = vld [vmem:[#allocation2 + $0x40] sm:$0xf] }
 0x1e0   : > { %v15744_v28 = vld [vmem:[#allocation3 + $0x200] sm:$0xff]  }
 0x1e1   : > { %13267 = vmatpush3.bf16.msra.mxu0 %v14453_v8  ;;  %v3702_v8 = vsel %vm15266_vm14, %v3700_v42, %v3701_v37  ;;  %v14471_v42 = vld [vmem:[#allocation2 + $0x84] sm:$0xff]  }
 0x1e2   : > { %13268 = vmatprep.subr.bf16.mxu0 %v14454_v40  ;;  %v11737_v5 = vcombine.low %v3699_v63, %v3702_v8  ;;  %v15748_v63 = vld [vmem:[#allocation2 + $0x28] sm:$0xf]  ;;  %v4446_v8 = vld [vmem:[#allocation2 + $0x30] sm:$0xf] }
 0x1e4   : > { %13237 = vmatmul.mubr.bf16.gmra.mrb[8].mxu0 %v11731_v56  ;;  %v11738_v56 = vcombine.low %v3706_v19, %v3709_v61  ;;  %v15751_v19 = vld [vmem:[#allocation2 + $0x34] sm:$0xf]  ;;  %v4449_v61 = vld [vmem:[#allocation2 + $0x3c] sm:$0xf] }
 0x1e5   : > { %13240 = vmatprep.mubr.bf16.mxu0 %v11732_v59  ;;  %13269 = vmatpush3.bf16.msra.mxu0 %v14454_v40  ;;  %v3569_v40 = vld [vmem:[#allocation2 + $0xb4] sm:$0xe]  ;;  %v11723_v59 = vrot.slane %v3568_v0, 9  ;;  %v4550_v15 = vshrl.u32 %v15751_v19, 16  ;;  %v4561_v26 = vshrl.u32 %v4449_v61, 16 }
 0x1e6   : > { %13270 = vmatprep.subr.bf16.mxu0 %v14455_v44  ;;  %v11724_v17 = vrot.slane %v3569_v40, 9 }
 0x1e7   : > { %v3713_v1 = vsel %vm15266_vm14, %v11723_v59, %v3712_v62  ;;  %v4516_v62 = vshll.u32 %v4443_v13, 16  ;;  %v4526_v59 = vshrl.u32 %v15748_v63, 16  ;;  %v14477_v13 = vld [vmem:[#allocation2 + $0xb4] sm:$0xff]  }
 0x1e8   : > { %v3720_v11 = vsel %vm15266_vm14, %v11724_v17, %v3719_v55  ;;  %v4546_v17 = vshll.u32 %v15751_v19, 16 }
 0x1e9   : > { %13271 = vmatpush3.bf16.msra.mxu0 %v14455_v44  ;;  %v3716_v44 = vsel %vm15266_vm14, %v3714_v16, %v3715_v34  ;;  %v11740_v57 = vcombine.low %v3720_v11, %v3723_v60  ;;  %v4537_v16 = vshrl.u32 %v4446_v8, 16  ;;  %v4540_v34 = vshll.u32 %v4446_v8, 16  ;;  %v14476_v11 = vld [vmem:[#allocation2 + $0xa8] sm:$0xff]  }
 0x1ea   : > { %13272 = vmatprep.subr.bf16.mxu0 %v14456_v21  ;;  %v11739_v52 = vcombine.low %v3713_v1, %v3716_v44  ;;  %v4564_v1 = vshll.u32 %v4449_v61, 16  ;;  %v4515_v44 = vrot.slane %v4513_v45, 4 }
 0x1eb   : > { %v4539_v50 = vrot.slane %v4537_v16, 4  ;;  %v4542_v33 = vrot.slane %v4540_v34, 5 }
 0x1ec   : > { %13241 = vmatmul.mubr.bf16.gmra.mrb[12].mxu0 %v11733_v18  ;;  %v15769_v18 = vld [vmem:[#allocation2 + $0x38] sm:$0x1] }
 0x1ed   : > { %13244 = vmatprep.mubr.bf16.mxu0 %v11734_v58  ;;  %13273 = vmatpush3.bf16.msra.mxu0 %v14456_v21  ;;  %v412_v21 = vld [vmem:[#allocation2 + $0xd4] sm:$0x1] }
 0x1ee   : > { %13274 = vmatprep.subr.bf16.mxu0 %v14457_v51  ;;  %v413_v58 = vsel %vm14827_vm4, 0, %v412_v21  ;;  %v4528_v21 = vrot.slane %v4526_v59, 4 }
 0x1ef   : > { %414 = vst [vmem:[#allocation2 + $0xd4] sm:$0x1] %v413_v58  ;;  %v15771_v58 = vrot.slane %v4546_v17, 5 }
 0x1f1   : > { %13275 = vmatpush3.bf16.msra.mxu0 %v14457_v51  ;;  %v14464_v51 = vld [vmem:[#allocation2 + $0x48] sm:$0xff]  }
 0x1f2   : > { %13308 = vmatprep.subr.bf16.mxu0 %v14460_v53 }
 0x1f4   : > { %13245 = vmatmul.mubr.bf16.gmra.mrb[16].mxu0 %v11735_v22  ;;  %v4440_v22 = vld [vmem:[#allocation2 + $0x18] sm:$0xf] }
 0x1f5   : > { %13248 = vmatprep.mubr.bf16.mxu0 %v11736_v36  ;;  %v15742_v36 = vld [vmem:[#allocation2 + $0x1c] sm:$0xf]  ;;  %v4489_v43 = vshrl.u32 %v4440_v22, 16  ;;  %v4492_v37 = vshll.u32 %v4440_v22, 16 }
 0x1f6   : > { %v4498_v7 = vshll.u32 %v15742_v36, 16  ;;  %v4502_v47 = vshrl.u32 %v15742_v36, 16 }
 0x1f7   : > { %v4491_v0 = vrot.slane %v4489_v43, 4  ;;  %v4494_v10 = vrot.slane %v4492_v37, 5  ;;  %v15784_v37 = vld [vmem:[#allocation2 + $0x4c] sm:$0xf] }
 0x1f8   : > { %v15753_v55 = vrot.slane %v4498_v7, 5  ;;  %v4504_v40 = vrot.slane %v4502_v47, 4 }
 0x1f9   : > { %v4495_v60 = vor.u32 %v4494_v10, %v4491_v0 }
 0x1fa   : > { %v4505_v30 = vor.u32 %v4504_v40, %v15753_v55 }
 0x1fc   : > { %13249 = vmatmul.mubr.bf16.gmra.mrb[20].mxu0 %v11737_v5  ;;  %v15755_v5 = vld [vmem:[#allocation2 + $0x20] sm:$0x1] }
 0x1fd   : > { %13252 = vmatprep.mubr.bf16.mxu0 %v11738_v56  ;;  %v4522_v56 = vshll.u32 %v15748_v63, 16 }
 0x1ff   : > { %v15767_v14 = vrot.slane %v4522_v56, 5 }
 0x204   : > { %13253 = vmatmul.mubr.bf16.gmra.mrb[24].mxu0 %v11739_v52  ;;  %v4508_v52 = vshll.u32 %v15755_v5, 16 }
 0x205   : > { %13256 = vmatprep.mubr.bf16.mxu0 %v11740_v57  ;;  %v4518_v57 = vrot.slane %v4516_v62, 5  ;;  %v14479_v62 = vld [vmem:[#allocation2 + $0xc0] sm:$0xff]  }
 0x20c   : > { %13257 = vmatmul.mubr.bf16.gmra.mrb[28].mxu0 %v11741_v31  ;;  %v4552_v31 = vrot.slane %v4550_v15, 4 }
 0x20d   : > { %13276 = vmatprep.mubr.bf16.mxu0 %v14458_v32  ;;  %v4563_v32 = vrot.slane %v4561_v26, 4  ;;  %v4598_v26 = vshrl.u32 %v15784_v37, 16 }
 0x214   : > { %13277 = vmatmul.mubr.bf16.vlgmr.msra.gmra.mrb[0].mxu0 %v14459_v12  ;;  %v4566_v12 = vrot.slane %v4564_v1, 5  ;;  %v4455_v1 = vld [vmem:[#allocation2 + $0x54] sm:$0xf] }
 0x215   : > { %13309 = vmatpush3.bf16.msra.mxu0 %v14460_v53  ;;  %13280 = vmatprep.mubr.bf16.mxu0 %v14461_v9  ;;  %v14470_v53 = vld [vmem:[#allocation2 + $0x78] sm:$0xff]   ;;  %v15773_v9 = vld [vmem:[#allocation2 + $0x44] sm:$0x1] }
 0x216   : > { %13310 = vmatprep.subr.bf16.mxu0 %v14463_v39  ;;  %v4580_v22 = vshll.u32 %v15773_v9, 16 }
 0x218   : > { %v15805_v16 = vrot.slane %v4580_v22, 5 }
 0x219   : > { %13311 = vmatpush3.bf16.msra.mxu0 %v14463_v39  ;;  %v4570_v39 = vshll.u32 %v15763_v49, 16 }
 0x21a   : > { %13312 = vmatprep.subr.bf16.mxu0 %v14466_v38 }
 0x21c   : > { %13281 = vmatmul.mubr.bf16.gmra.mrb[4].mxu0 %v14462_v6  ;;  %v4496_v6 = vrot.slane %v4495_v60, 4  ;;  %v15818_v60 = vld [vmem:[#allocation2 + $0xd4] sm:$0x1] }
 0x21d   : > { %13284 = vmatprep.mubr.bf16.mxu0 %v14464_v51  ;;  %13313 = vmatpush3.bf16.msra.mxu0 %v14466_v38  ;;  %v4574_v38 = vshrl.u32 %v15763_v49, 16  ;;  %v4510_v51 = vrot.slane %v4508_v52, 5 }
 0x21e   : > { %13314 = vmatprep.subr.bf16.mxu0 %v14469_v2 }
 0x21f   : > { %v4576_v43 = vrot.slane %v4574_v38, 4 }
 0x221   : > { %13315 = vmatpush3.bf16.msra.mxu0 %v14469_v2  ;;  %v4519_v2 = vor.u32 %v4518_v57, %v4515_v44  ;;  %v4458_v57 = vld [vmem:[#allocation2 + $0x60] sm:$0xf] }
 0x222   : > { %13316 = vmatprep.subr.bf16.mxu0 %v14472_v23 }
 0x223   : > { %v15789_v8 = vrot.slane %v4519_v2, 4 }
 0x224   : > { %13285 = vmatmul.mubr.bf16.gmra.mrb[8].mxu0 %v14465_v20  ;;  %v4452_v20 = vld [vmem:[#allocation2 + $0x48] sm:$0xf] }
 0x225   : > { %13288 = vmatprep.mubr.bf16.mxu0 %v14467_v48  ;;  %13317 = vmatpush3.bf16.msra.mxu0 %v14472_v23  ;;  %v4532_v23 = vshll.u32 %v15765_v25, 16  ;;  %v4506_v48 = vrot.slane %v4505_v30, 4  ;;  %v4585_v7 = vshrl.u32 %v4452_v20, 16  ;;  %v4588_v47 = vshll.u32 %v4452_v20, 16  ;;  %v15830_v20 = vld [vmem:[#allocation2 + $0x50] sm:$0x1] }
 0x226   : > { %13318 = vmatprep.subr.bf16.mxu0 %v14475_v46  ;;  %v4525_v44 = vsel %vm14880_vm11, %v15789_v8, %v15767_v14 }
 0x227   : > { %v15791_v45 = vrot.slane %v4532_v23, 5  ;;  %v4511_v61 = vsel %vm14880_vm11, %v4506_v48, %v4510_v51  ;;  %v4587_v17 = vrot.slane %v4585_v7, 4  ;;  %v4590_v15 = vrot.slane %v4588_v47, 5  ;;  %v14480_v23 = vld [vmem:[#allocation2 + $0xcc] sm:$0xff]  }
 0x228   : > { %v4600_v51 = vrot.slane %v4598_v26, 4 }
 0x229   : > { %13319 = vmatpush3.bf16.msra.mxu0 %v14475_v46  ;;  %v4529_v46 = vor.u32 %v4528_v21, %v15767_v14  ;;  %v5209_v21 = vld [vmem:[#allocation2 + $0xcc] sm:$0xe] }
 0x22a   : > { %13320 = vmatprep.subr.bf16.mxu0 %v14478_v24 }
 0x22b   : > { %v15795_v0 = vrot.slane %v4529_v46, 4 }
 0x22c   : > { %13289 = vmatmul.mubr.bf16.gmra.mrb[12].mxu0 %v14468_v29  ;;  %v4556_v29 = vshll.u32 %v15769_v18, 16 }
 0x22d   : > { %13292 = vmatprep.mubr.bf16.mxu0 %v14470_v53  ;;  %13321 = vmatpush3.bf16.msra.mxu0 %v14478_v24  ;;  %v4543_v24 = vor.u32 %v4542_v33, %v4539_v50  ;;  %v4553_v53 = vor.u32 %v4552_v31, %v15771_v58  ;;  %v4535_v52 = vsel %vm14880_vm11, %v15795_v0, %v15791_v45  ;;  %v5368_v33 = vrot.slane %v15818_v60, 5  ;;  %v4461_v0 = vld [vmem:[#allocation2 + $0x6c] sm:$0xf] }
 0x22e   : > { %13322 = vmatprep.subr.bf16.mxu0 %v14481_v35  ;;  %v15799_v40 = vrot.slane %v4556_v29, 5  ;;  %v4609_v31 = vshrl.u32 %v4455_v1, 16 }
 0x22f   : > { %v15797_v10 = vrot.slane %v4543_v24, 4  ;;  %v15801_v56 = vrot.slane %v4553_v53, 4  ;;  %v4633_v24 = vshrl.u32 %v4458_v57, 16  ;;  %v4636_v53 = vshll.u32 %v4458_v57, 16  ;;  %v15872_v57 = vld [vmem:[#allocation2 + $0x68] sm:$0x1] }
 0x230   : > { %v4611_v47 = vrot.slane %v4609_v31, 4 }
 0x231   : > { %13323 = vmatpush3.bf16.msra.mxu0 %v14481_v35  ;;  %v4567_v35 = vor.u32 %v4566_v12, %v4563_v32  ;;  %v4612_v32 = vshll.u32 %v4455_v1, 16  ;;  %v15828_v12 = vld [vmem:[#allocation2 + $0x64] sm:$0xf]  ;;  %v4549_v7 = vsel %vm14880_vm11, %v15797_v10, %v15771_v58  ;;  %v4559_v8 = vsel %vm14880_vm11, %v15801_v56, %v15799_v40  ;;  %v15860_v58 = vld [vmem:[#allocation2 + $0x5c] sm:$0x1] }
 0x232   : > { %13356 = vmatprep.subr.bf16.mxu0 %v15744_v28  ;;  %v4646_v22 = vshrl.u32 %v15828_v12, 16  ;;  %v15867_v56 = vld [vmem:[#allocation2 + $0x70] sm:$0xf]  ;;  %v4628_v1 = vshll.u32 %v15860_v58, 16 }
 0x233   : > { %v15803_v59 = vrot.slane %v4567_v35, 4  ;;  %v4642_v35 = vshll.u32 %v15828_v12, 16  ;;  %v4666_v31 = vshll.u32 %v15867_v56, 16 }
 0x234   : > { %13293 = vmatmul.mubr.bf16.gmra.mrb[16].mxu0 %v14471_v42  ;;  %v15782_v42 = vrot.slane %v4570_v39, 5  ;;  %v11813_v39 = vrot.slane %v5209_v21, 9  ;;  %v4657_v21 = vshrl.u32 %v4461_v0, 16 }
 0x235   : > { %13296 = vmatprep.mubr.bf16.mxu0 %v14473_v27  ;;  %v4501_v27 = vsel %vm14880_vm11, %v4496_v6, %v15753_v55  ;;  %v4594_v55 = vshll.u32 %v15784_v37, 16  ;;  %v4591_v6 = vor.u32 %v4590_v15, %v4587_v17  ;;  %v15869_v17 = vrot.slane %v4642_v35, 5 }
 0x236   : > { %v4577_v34 = vor.u32 %v4576_v43, %v15782_v42  ;;  %v11774_v30 = vcombine.low %v4501_v27, %v4511_v61  ;;  %v4573_v45 = vsel %vm14880_vm11, %v15803_v59, %v15782_v42  ;;  %v4604_v61 = vshll.u32 %v15830_v20, 16  ;;  %v14487_v27 = vld [vmem:[#allocation3 + $0x228] sm:$0xff]  }
 0x237   : > { %v15826_v14 = vrot.slane %v4594_v55, 5  ;;  %v4592_v55 = vrot.slane %v4591_v6, 4  ;;  %v4635_v42 = vrot.slane %v4633_v24, 4  ;;  %v4638_v59 = vrot.slane %v4636_v53, 5  ;;  %v14483_v24 = vld [vmem:[#allocation3 + $0x208] sm:$0xff]  }
 0x238   : > { %v4578_v38 = vrot.slane %v4577_v34, 4  ;;  %v4648_v15 = vrot.slane %v4646_v22, 4  ;;  %v15883_v35 = vrot.slane %v4628_v1, 5  ;;  %v4659_v22 = vrot.slane %v4657_v21, 4 }
 0x23a   : > { %v4583_v10 = vsel %vm14880_vm11, %v4578_v38, %v15805_v16 }
 0x23b   : > { %v11777_v38 = vcombine.low %v4573_v45, %v4583_v10  ;;  %v15892_v45 = vld [vmem:[#allocation2 + $0x88] sm:$0xf] }
 0x23c   : > { %13297 = vmatmul.mubr.bf16.gmra.mrb[20].mxu0 %v14474_v41  ;;  %v15814_v41 = vld [vmem:[#allocation2 + $0x58] sm:$0xf]  ;;  %v4714_v21 = vshll.u32 %v15892_v45, 16 }
 0x23d   : > { %13300 = vmatprep.mubr.bf16.mxu0 %v14476_v11  ;;  %v15816_v11 = vld [vmem:[#allocation2 + $0xd0] sm:$0xf]  ;;  %v4618_v48 = vshll.u32 %v15814_v41, 16  ;;  %v4622_v46 = vshrl.u32 %v15814_v41, 16 }
 0x23e   : > { %v5365_v50 = vrot.slane %v15816_v11, 5 }
 0x23f   : > { %v15865_v34 = vrot.slane %v4618_v48, 5  ;;  %v4624_v40 = vrot.slane %v4622_v46, 4  ;;  %v4464_v48 = vld [vmem:[#allocation2 + $0x78] sm:$0xf]  ;;  %v15879_v46 = vld [vmem:[#allocation2 + $0x7c] sm:$0xf] }
 0x240   : > { %v5367_v2 = vrot.slane %v5365_v50, 4  ;;  %v15836_v29 = vsel %vm15266_vm14, %v11813_v39, %v5365_v50  ;;  %v4660_v50 = vshll.u32 %v4461_v0, 16  ;;  %v11775_v39 = vcombine.low %v4525_v44, %v4535_v52 }
 0x241   : > { %18127 = vst [vmem:[#allocation10_spill] sm:$0xff] %v15836_v29  ;;  %v4625_v6 = vor.u32 %v4624_v40, %v15865_v34  ;;  %v4597_v44 = vsel %vm14880_vm11, %v4592_v55, %v15826_v14  ;;  %v4684_v0 = vshll.u32 %v4464_v48, 16  ;;  %v4690_v10 = vshll.u32 %v15879_v46, 16  ;;  %v15978_v29 = vld [vmem:[#allocation2 + $0xb8] sm:$0xf] }
 0x242   : > { %v15842_v43 = vsel %vm15266_vm14, %v5367_v2, %v5368_v33  ;;  %v4606_v33 = vrot.slane %v4604_v61, 5  ;;  %v4649_v2 = vor.u32 %v4648_v15, %v15869_v17  ;;  %v4681_v61 = vshrl.u32 %v4464_v48, 16  ;;  %v14484_v15 = vld [vmem:[#allocation3 + $0x210] sm:$0xff]   ;;  %18131 = vst [vmem:[#allocation7_spill] sm:$0xff] %v15978_v29 }
 0x243   : > { %18128 = vst [vmem:[#allocation11_spill] sm:$0xff] %v15842_v43  ;;  %v4694_v40 = vshrl.u32 %v15879_v46, 16 }
 0x244   : > { %13301 = vmatmul.mubr.bf16.gmra.mrb[24].mxu0 %v14477_v13  ;;  %v4614_v13 = vrot.slane %v4612_v32, 5  ;;  %v4670_v32 = vshrl.u32 %v15867_v56, 16 }
 0x245   : > { %13304 = vmatprep.mubr.bf16.mxu0 %v14479_v62  ;;  %v4601_v62 = vor.u32 %v4600_v51, %v15826_v14  ;;  %v4639_v51 = vor.u32 %v4638_v59, %v4635_v42  ;;  %v4626_v14 = vrot.slane %v4625_v6, 4  ;;  %v4650_v42 = vrot.slane %v4649_v2, 4 }
 0x246   : > { %v4615_v26 = vor.u32 %v4614_v13, %v4611_v47  ;;  %v4662_v47 = vrot.slane %v4660_v50, 5  ;;  %v4672_v13 = vrot.slane %v4670_v32, 4  ;;  %v4718_v50 = vshrl.u32 %v15892_v45, 16 }
 0x247   : > { %v4602_v16 = vrot.slane %v4601_v62, 4  ;;  %v15894_v62 = vld [vmem:[#allocation2 + $0x74] sm:$0x1]  ;;  %v4640_v55 = vrot.slane %v4639_v51, 4  ;;  %v15905_v6 = vrot.slane %v4690_v10, 5  ;;  %v4696_v51 = vrot.slane %v4694_v40, 4 }
 0x248   : > { %v15881_v53 = vrot.slane %v4615_v26, 4  ;;  %v4676_v32 = vshll.u32 %v15894_v62, 16 }
 0x249   : > { %v4607_v52 = vsel %vm14880_vm11, %v4602_v16, %v4606_v33  ;;  %v4663_v33 = vor.u32 %v4662_v47, %v4659_v22  ;;  %v4645_v48 = vsel %vm14880_vm11, %v4640_v55, %v15869_v17  ;;  %v14485_v47 = vld [vmem:[#allocation3 + $0x218] sm:$0xff]   ;;  %v4697_v40 = vor.u32 %v4696_v51, %v15905_v6 }
 0x24a   : > { %v11778_v16 = vcombine.low %v4597_v44, %v4607_v52  ;;  %v4621_v2 = vsel %vm14880_vm11, %v15881_v53, %v15865_v34  ;;  %v4470_v44 = vld [vmem:[#allocation2 + $0x90] sm:$0xf]  ;;  %v15921_v34 = vld [vmem:[#allocation2 + $0x94] sm:$0xf] }
 0x24b   : > { %v15923_v53 = vrot.slane %v4663_v33, 4  ;;  %v4732_v55 = vshll.u32 %v4470_v44, 16  ;;  %v14486_v33 = vld [vmem:[#allocation3 + $0x220] sm:$0xff]  }
 0x24c   : > { %13305 = vmatmul.mubr.bf16.gmra.mrb[28].mxu0 %v14480_v23  ;;  %v4652_v23 = vshll.u32 %v15872_v57, 16 }
 0x24d   : > { %13324 = vmatprep.mubr.bf16.mxu0 %v11774_v30  ;;  %v11776_v30 = vcombine.low %v4549_v7, %v4559_v8  ;;  %v15890_v7 = vrot.slane %v4666_v31, 5  ;;  %v4467_v8 = vld [vmem:[#allocation2 + $0x84] sm:$0xf] }
 0x24e   : > { %v4654_v59 = vrot.slane %v4652_v23, 5  ;;  %v4705_v26 = vshrl.u32 %v4467_v8, 16  ;;  %v4708_v1 = vshll.u32 %v4467_v8, 16  ;;  %v4631_v23 = vsel %vm14880_vm11, %v4626_v14, %v15883_v35 }
 0x24f   : > { %v4673_v31 = vor.u32 %v4672_v13, %v15890_v7  ;;  %v15919_v13 = vrot.slane %v4714_v21, 5  ;;  %v4720_v8 = vrot.slane %v4718_v50, 4  ;;  %v4729_v14 = vshrl.u32 %v4470_v44, 16 }
 0x250   : > { %v4655_v22 = vsel %vm14880_vm11, %v4650_v42, %v4654_v59  ;;  %v4710_v52 = vrot.slane %v4708_v1, 5  ;;  %v4738_v42 = vshll.u32 %v15921_v34, 16  ;;  %v4742_v59 = vshrl.u32 %v15921_v34, 16 }
 0x251   : > { %v15925_v35 = vrot.slane %v4673_v31, 4  ;;  %v4721_v21 = vor.u32 %v4720_v8, %v15919_v13  ;;  %v11780_v31 = vcombine.low %v4645_v48, %v4655_v22  ;;  %v4734_v44 = vrot.slane %v4732_v55, 5  ;;  %v4476_v48 = vld [vmem:[#allocation2 + $0xa8] sm:$0xf]  ;;  %v15951_v8 = vld [vmem:[#allocation2 + $0xac] sm:$0xf] }
 0x252   : > { %v15949_v22 = vrot.slane %v4738_v42, 5 }
 0x254   : > { %13325 = vmatmul.mubr.bf16.vlgmr.msra.gmra.mrb[0].mxu0 %v11775_v39  ;;  %v4683_v39 = vrot.slane %v4681_v61, 4  ;;  %v15927_v61 = vrot.slane %v4676_v32, 5 }
 0x255   : > { %13357 = vmatpush3.bf16.msra.mxu0 %v15744_v28  ;;  %13328 = vmatprep.mubr.bf16.mxu0 %v11776_v30  ;;  %v15903_v28 = vld [vmem:[#allocation2 + $0x80] sm:$0x1]  ;;  %v4686_v30 = vrot.slane %v4684_v0, 5  ;;  %v15930_v0 = vld [vmem:[#allocation2 + $0x8c] sm:$0x1] }
 0x256   : > { %13358 = vmatprep.subr.bf16.mxu0 %v14483_v24  ;;  %v4700_v17 = vshll.u32 %v15903_v28, 16  ;;  %v4724_v50 = vshll.u32 %v15930_v0, 16 }
 0x257   : > { %v4687_v10 = vor.u32 %v4686_v30, %v4683_v39  ;;  %v15945_v39 = vld [vmem:[#allocation2 + $0x98] sm:$0x1]  ;;  %v15947_v30 = vld [vmem:[#allocation2 + $0xa0] sm:$0xf] }
 0x258   : > { %v4702_v32 = vrot.slane %v4700_v17, 5  ;;  %v4748_v17 = vshll.u32 %v15945_v39, 16 }
 0x259   : > { %13359 = vmatpush3.bf16.msra.mxu0 %v14483_v24  ;;  %v4707_v24 = vrot.slane %v4705_v26, 4  ;;  %v11779_v26 = vcombine.low %v4621_v2, %v4631_v23  ;;  %v4688_v51 = vrot.slane %v4687_v10, 4  ;;  %v4698_v2 = vrot.slane %v4697_v40, 4 }
 0x25a   : > { %13360 = vmatprep.subr.bf16.mxu0 %v14484_v15  ;;  %v4731_v23 = vrot.slane %v4729_v14, 4  ;;  %v4762_v10 = vshll.u32 %v15947_v30, 16  ;;  %v4766_v40 = vshrl.u32 %v15947_v30, 16  ;;  %v4777_v14 = vshrl.u32 %v4476_v48, 16 }
 0x25b   : > { %v4711_v1 = vor.u32 %v4710_v52, %v4707_v24  ;;  %v4744_v24 = vrot.slane %v4742_v59, 4  ;;  %v4693_v55 = vsel %vm14880_vm11, %v4688_v51, %v15905_v6  ;;  %v4703_v42 = vsel %vm14880_vm11, %v4698_v2, %v4702_v32  ;;  %v15969_v32 = vld [vmem:[#allocation2 + $0xa4] sm:$0x1]  ;;  %v14488_v2 = vld [vmem:[#allocation3 + $0x230] sm:$0xff]  }
 0x25c   : > { %13329 = vmatmul.mubr.bf16.gmra.mrb[4].mxu0 %v11777_v38  ;;  %v4473_v38 = vld [vmem:[#allocation2 + $0x9c] sm:$0xf]  ;;  %v4786_v59 = vshll.u32 %v15951_v8, 16  ;;  %v4750_v51 = vrot.slane %v4748_v17, 5  ;;  %18129 = vst [vmem:[#allocation12_spill] sm:$0xff] %v15969_v32  ;;  %v4772_v17 = vshll.u32 %v15969_v32, 16 }
 0x25d   : > { %13332 = vmatprep.mubr.bf16.mxu0 %v11778_v16  ;;  %13361 = vmatpush3.bf16.msra.mxu0 %v14484_v15  ;;  %v4669_v16 = vsel %vm14880_vm11, %v15923_v53, %v15890_v7  ;;  %v4679_v15 = vsel %vm14880_vm11, %v15925_v35, %v15927_v61  ;;  %v4753_v7 = vshrl.u32 %v4473_v38, 16  ;;  %v4756_v52 = vshll.u32 %v4473_v38, 16  ;;  %v4485_v32 = vld [vmem:[#allocation2 + $0xcc] sm:$0xf] }
 0x25e   : > { %13362 = vmatprep.subr.bf16.mxu0 %v14485_v47  ;;  %v4712_v53 = vrot.slane %v4711_v1, 4  ;;  %v4722_v35 = vrot.slane %v4721_v21, 4  ;;  %v4726_v61 = vrot.slane %v4724_v50, 5  ;;  %v4790_v1 = vshrl.u32 %v15951_v8, 16 }
 0x25f   : > { %v4735_v21 = vor.u32 %v4734_v44, %v4731_v23  ;;  %v4745_v50 = vor.u32 %v4744_v24, %v15949_v22  ;;  %v4755_v38 = vrot.slane %v4753_v7, 4  ;;  %v4758_v4 = vrot.slane %v4756_v52, 5  ;;  %v15973_v7 = vld [vmem:[#allocation2 + $0xb0] sm:$0x1] }
 0x260   : > { %v4727_v6 = vsel %vm14880_vm11, %v4722_v35, %v4726_v61  ;;  %v11781_v44 = vcombine.low %v4669_v16, %v4679_v15  ;;  %v11782_v24 = vcombine.low %v4693_v55, %v4703_v42  ;;  %18130 = vst [vmem:[#allocation13_spill] sm:$0xff] %v15973_v7  ;;  %v15975_v52 = vrot.slane %v4786_v59, 5  ;;  %v4482_v55 = vld [vmem:[#allocation2 + $0xc0] sm:$0xf]  ;;  %v15982_v42 = vld [vmem:[#allocation2 + $0xc4] sm:$0xf] }
 0x261   : > { %13363 = vmatpush3.bf16.msra.mxu0 %v14485_v47  ;;  %v4780_v47 = vshll.u32 %v4476_v48, 16  ;;  %v15971_v48 = vrot.slane %v4762_v10, 5  ;;  %v4736_v43 = vrot.slane %v4735_v21, 4  ;;  %v4746_v35 = vrot.slane %v4745_v50, 4 }
 0x262   : > { %13364 = vmatprep.subr.bf16.mxu0 %v14486_v33  ;;  %v4759_v61 = vor.u32 %v4758_v4, %v4755_v38 }
 0x263   : > { %v4782_v23 = vrot.slane %v4780_v47, 5  ;;  %v4741_v21 = vsel %vm14880_vm11, %v4736_v43, %v15949_v22  ;;  %v4751_v50 = vsel %vm14880_vm11, %v4746_v35, %v4750_v51 }
 0x264   : > { %13333 = vmatmul.mubr.bf16.gmra.mrb[8].mxu0 %v11779_v26  ;;  %v4717_v26 = vsel %vm14880_vm11, %v4712_v53, %v15919_v13  ;;  %v4792_v13 = vrot.slane %v4790_v1, 4  ;;  %v4479_v53 = vld [vmem:[#allocation2 + $0xb4] sm:$0xf]  ;;  %v4814_v1 = vshrl.u32 %v15978_v29, 16  ;;  %v4760_v38 = vrot.slane %v4759_v61, 4 }
 0x265   : > { %13336 = vmatprep.mubr.bf16.mxu0 %v11780_v31  ;;  %13365 = vmatpush3.bf16.msra.mxu0 %v14486_v33  ;;  %v4768_v33 = vrot.slane %v4766_v40, 4  ;;  %v4779_v31 = vrot.slane %v4777_v14, 4  ;;  %v11783_v10 = vcombine.low %v4717_v26, %v4727_v6  ;;  %v14489_v40 = vld [vmem:[#allocation3 + $0x238] sm:$0xff]   ;;  %v4796_v14 = vshll.u32 %v15973_v7, 16  ;;  %v15994_v7 = vld [vmem:[#allocation2 + $0xbc] sm:$0x1] }
 0x266   : > { %13366 = vmatprep.subr.bf16.mxu0 %v14487_v27  ;;  %v4801_v47 = vshrl.u32 %v4479_v53, 16  ;;  %v4793_v4 = vor.u32 %v4792_v13, %v15975_v52  ;;  %v4804_v59 = vshll.u32 %v4479_v53, 16  ;;  %v4774_v26 = vrot.slane %v4772_v17, 5 }
 0x267   : > { %v4769_v16 = vor.u32 %v4768_v33, %v15971_v48  ;;  %v4783_v15 = vor.u32 %v4782_v23, %v4779_v31  ;;  %v4825_v6 = vshrl.u32 %v4482_v55, 16  ;;  %v4828_v33 = vshll.u32 %v4482_v55, 16 }
 0x268   : > { %v4834_v31 = vshll.u32 %v15982_v42, 16  ;;  %v4838_v23 = vshrl.u32 %v15982_v42, 16  ;;  %v4803_v53 = vrot.slane %v4801_v47, 4  ;;  %v4806_v43 = vrot.slane %v4804_v59, 5  ;;  %v16002_v47 = vld [vmem:[#allocation2 + $0xc8] sm:$0x1] }
 0x269   : > { %13367 = vmatpush3.bf16.msra.mxu0 %v14487_v27  ;;  %v4810_v27 = vshll.u32 %v15978_v29, 16  ;;  %v4784_v13 = vrot.slane %v4783_v15, 4  ;;  %v4794_v29 = vrot.slane %v4793_v4, 4  ;;  %v4816_v51 = vrot.slane %v4814_v1, 4 }
 0x26a   : > { %13368 = vmatprep.subr.bf16.mxu0 %v14488_v2  ;;  %v11784_v35 = vcombine.low %v4741_v21, %v4751_v50  ;;  %v4830_v61 = vrot.slane %v4828_v33, 5  ;;  %v4836_v17 = vrot.slane %v4834_v31, 5  ;;  %v4840_v55 = vrot.slane %v4838_v23, 4 }
 0x26b   : > { %v4812_v22 = vrot.slane %v4810_v27, 5  ;;  %v4807_v59 = vor.u32 %v4806_v43, %v4803_v53  ;;  %v4849_v1 = vshrl.u32 %v4485_v32, 16  ;;  %v4858_v21 = vshll.u32 %v15816_v11, 16 }
 0x26c   : > { %13337 = vmatmul.mubr.bf16.gmra.mrb[12].mxu0 %v11781_v44  ;;  %v4770_v44 = vrot.slane %v4769_v16, 4  ;;  %v4765_v16 = vsel %vm14880_vm11, %v4760_v38, %v15971_v48  ;;  %v4852_v48 = vshll.u32 %v4485_v32, 16  ;;  %v4862_v50 = vshrl.u32 %v15816_v11, 16 }
 0x26d   : > { %13340 = vmatprep.mubr.bf16.mxu0 %v11782_v24  ;;  %13369 = vmatpush3.bf16.msra.mxu0 %v14488_v2  ;;  %v4798_v24 = vrot.slane %v4796_v14, 5  ;;  %v4827_v2 = vrot.slane %v4825_v6, 4  ;;  %v4820_v14 = vshll.u32 %v15994_v7, 16  ;;  %v4817_v27 = vor.u32 %v4816_v51, %v4812_v22 }
 0x26e   : > { %13370 = vmatprep.subr.bf16.mxu0 %v14489_v40  ;;  %v4775_v15 = vsel %vm14880_vm11, %v4770_v44, %v4774_v26  ;;  %v4841_v26 = vor.u32 %v4840_v55, %v4836_v17  ;;  %v4808_v31 = vrot.slane %v4807_v59, 4  ;;  %v4851_v44 = vrot.slane %v4849_v1, 4 }
 0x26f   : > { %v4799_v4 = vsel %vm14880_vm11, %v4794_v29, %v4798_v24  ;;  %v4831_v38 = vor.u32 %v4830_v61, %v4827_v2  ;;  %v11785_v6 = vcombine.low %v4765_v16, %v4775_v15  ;;  %v4822_v23 = vrot.slane %v4820_v14, 5  ;;  %v5194_v14 = vld [vmem:[#allocation2 + $0x18] sm:$0xe] }
 0x270   : > { %v4854_v29 = vrot.slane %v4852_v48, 5  ;;  %v4864_v24 = vrot.slane %v4862_v50, 4  ;;  %v4842_v43 = vrot.slane %v4841_v26, 4  ;;  %v4813_v11 = vsel %vm14880_vm11, %v4808_v31, %v4812_v22  ;;  %v5195_v26 = vld [vmem:[#allocation2 + $0x24] sm:$0xe] }
 0x271   : > { %13371 = vmatpush3.bf16.msra.mxu0 %v14489_v40  ;;  %v4789_v40 = vsel %vm14880_vm11, %v4784_v13, %v15975_v52  ;;  %v4818_v52 = vrot.slane %v4817_v27, 4  ;;  %v4860_v13 = vrot.slane %v4858_v21, 5  ;;  %v4832_v53 = vrot.slane %v4831_v38, 4 }
 0x272   : > { %v11786_v33 = vcombine.low %v4789_v40, %v4799_v4  ;;  %v4868_v61 = vshll.u32 %v15818_v60, 16  ;;  %v5260_v15 = vrot.slane %v15742_v36, 5  ;;  %v11798_v1 = vrot.slane %v5194_v14, 9 }
 0x273   : > { %v4823_v51 = vsel %vm14880_vm11, %v4818_v52, %v4822_v23  ;;  %v4865_v2 = vor.u32 %v4864_v24, %v4860_v13  ;;  %v4837_v55 = vsel %vm14880_vm11, %v4832_v53, %v4836_v17  ;;  %v5263_v21 = vrot.slane %v15755_v5, 5  ;;  %v5196_v5 = vld [vmem:[#allocation2 + $0x30] sm:$0xe] }
 0x274   : > { %13341 = vmatmul.mubr.bf16.gmra.mrb[16].mxu0 %v11783_v10  ;;  %v4844_v10 = vshll.u32 %v16002_v47, 16  ;;  %v11787_v40 = vcombine.low %v4813_v11, %v4823_v51  ;;  %v4870_v27 = vrot.slane %v4868_v61, 5  ;;  %v5262_v48 = vrot.slane %v5260_v15, 4 }
 0x275   : > { %13344 = vmatprep.mubr.bf16.mxu0 %v11784_v35  ;;  %v4855_v35 = vor.u32 %v4854_v29, %v4851_v44  ;;  %v4866_v59 = vrot.slane %v4865_v2, 4  ;;  %v5267_v36 = vrot.slane %v15748_v63, 5  ;;  %v5261_v50 = vsel %vm15266_vm14, %v11798_v1, %v5260_v15 }
 0x276   : > { %v4846_v32 = vrot.slane %v4844_v10, 5  ;;  %v5264_v38 = vsel %vm15266_vm14, %v5262_v48, %v5263_v21  ;;  %v5274_v10 = vrot.slane %v15751_v19, 5  ;;  %v11799_v31 = vrot.slane %v5195_v26, 9  ;;  %v5201_v26 = vld [vmem:[#allocation2 + $0x6c] sm:$0xe] }
 0x277   : > { %v4856_v22 = vrot.slane %v4855_v35, 4  ;;  %v4871_v17 = vsel %vm14880_vm11, %v4866_v59, %v4870_v27  ;;  %v5269_v52 = vrot.slane %v5267_v36, 4  ;;  %v5270_v23 = vrot.slane %v15765_v25, 5 }
 0x278   : > { %v4847_v16 = vsel %vm14880_vm11, %v4842_v43, %v4846_v32  ;;  %v11800_v44 = vrot.slane %v5196_v5, 9  ;;  %v5276_v29 = vrot.slane %v5274_v10, 4  ;;  %v5277_v63 = vrot.slane %v15769_v18, 5  ;;  %v5197_v43 = vld [vmem:[#allocation2 + $0x3c] sm:$0xe] }
 0x279   : > { %v11788_v4 = vcombine.low %v4837_v55, %v4847_v16  ;;  %v4861_v60 = vsel %vm14880_vm11, %v4856_v22, %v4860_v13  ;;  %v5268_v13 = vsel %vm15266_vm14, %v11799_v31, %v5267_v36  ;;  %v5271_v24 = vsel %vm15266_vm14, %v5269_v52, %v5270_v23  ;;  %v5198_v18 = vld [vmem:[#allocation2 + $0x48] sm:$0xe] }
 0x27a   : > { %v5281_v19 = vrot.slane %v15763_v49, 5  ;;  %v5275_v53 = vsel %vm15266_vm14, %v11800_v44, %v5274_v10  ;;  %v5278_v25 = vsel %vm15266_vm14, %v5276_v29, %v5277_v63  ;;  %v5288_v32 = vrot.slane %v15784_v37, 5 }
 0x27b   : > { %v11815_v11 = vcombine.low %v5268_v13, %v5271_v24  ;;  %v11816_v51 = vcombine.low %v5275_v53, %v5278_v25  ;;  %v11801_v35 = vrot.slane %v5197_v43, 9  ;;  %v5284_v61 = vrot.slane %v15773_v9, 5  ;;  %v5203_v24 = vld [vmem:[#allocation2 + $0x84] sm:$0xe] }
 0x27c   : > { %13345 = vmatmul.mubr.bf16.gmra.mrb[20].mxu0 %v11785_v6  ;;  %v11789_v6 = vcombine.low %v4861_v60, %v4871_v17  ;;  %v5283_v2 = vrot.slane %v5281_v19, 4  ;;  %v11802_v55 = vrot.slane %v5198_v18, 9  ;;  %v5290_v16 = vrot.slane %v5288_v32, 4 }
 0x27d   : > { %13348 = vmatprep.mubr.bf16.mxu0 %v11786_v33  ;;  %v11814_v33 = vcombine.low %v5261_v50, %v5264_v38  ;;  %v5291_v49 = vrot.slane %v15830_v20, 5  ;;  %v5282_v15 = vsel %vm15266_vm14, %v11801_v35, %v5281_v19  ;;  %v5295_v37 = vrot.slane %v15814_v41, 5  ;;  %v5200_v20 = vld [vmem:[#allocation2 + $0x60] sm:$0xe] }
 0x27e   : > { %v5285_v14 = vsel %vm15266_vm14, %v5283_v2, %v5284_v61  ;;  %v5302_v22 = vrot.slane %v15828_v12, 5  ;;  %v5298_v21 = vrot.slane %v15860_v58, 5  ;;  %v11804_v60 = vrot.slane %v5200_v20, 9  ;;  %v18133_v20 = vld [vmem:[#allocation13_spill] sm:$0xff] }
 0x27f   : > { %v5292_v9 = vsel %vm15266_vm14, %v5290_v16, %v5291_v49  ;;  %v11817_v59 = vcombine.low %v5282_v15, %v5285_v14  ;;  %v5297_v48 = vrot.slane %v5295_v37, 4  ;;  %v5305_v41 = vrot.slane %v15872_v57, 5  ;;  %v5202_v57 = vld [vmem:[#allocation2 + $0x78] sm:$0xe] }
 0x280   : > { %v5304_v17 = vrot.slane %v5302_v22, 4  ;;  %v5309_v12 = vrot.slane %v15867_v56, 5  ;;  %v5303_v38 = vsel %vm15266_vm14, %v11804_v60, %v5302_v22  ;;  %v5316_v10 = vrot.slane %v15879_v46, 5  ;;  %v5207_v60 = vld [vmem:[#allocation2 + $0xb4] sm:$0xe] }
 0x281   : > { %v5299_v50 = vsel %vm15266_vm14, %v5297_v48, %v5298_v21  ;;  %v5312_v52 = vrot.slane %v15894_v62, 5  ;;  %v11806_v23 = vrot.slane %v5202_v57, 9  ;;  %v5319_v56 = vrot.slane %v15903_v28, 5  ;;  %v5204_v28 = vld [vmem:[#allocation2 + $0x90] sm:$0xe] }
 0x282   : > { %v5306_v58 = vsel %vm15266_vm14, %v5304_v17, %v5305_v41  ;;  %v5311_v31 = vrot.slane %v5309_v12, 4  ;;  %v5318_v44 = vrot.slane %v5316_v10, 4  ;;  %v5323_v46 = vrot.slane %v15892_v45, 5  ;;  %v5208_v41 = vld [vmem:[#allocation2 + $0xc0] sm:$0xe] }
 0x283   : > { %v5317_v13 = vsel %vm15266_vm14, %v11806_v23, %v5316_v10  ;;  %v5330_v19 = vrot.slane %v15921_v34, 5  ;;  %v11807_v43 = vrot.slane %v5203_v24, 9  ;;  %v5326_v18 = vrot.slane %v15930_v0, 5  ;;  %v6329_v24 = vld [vmem:[#allocation2] sm:$0xf] }
 0x284   : > { %13349 = vmatmul.mubr.bf16.gmra.mrb[24].mxu0 %v11787_v40  ;;  %v5289_v40 = vsel %vm15266_vm14, %v11802_v55, %v5288_v32  ;;  %v5313_v63 = vsel %vm15266_vm14, %v5311_v31, %v5312_v52  ;;  %v5320_v62 = vsel %vm15266_vm14, %v5318_v44, %v5319_v56  ;;  %v5325_v32 = vrot.slane %v5323_v46, 4  ;;  %v5205_v55 = vld [vmem:[#allocation2 + $0x9c] sm:$0xe]  ;;  %v14490_v44 = vld [vmem:[%s18013_s4 + $0x40] sm:$0xff]   ;;  %v14491_v56 = vld [vmem:[%s18013_s4 + $0x48] sm:$0xff]  }
 0x285   : > { %13352 = vmatprep.mubr.bf16.mxu0 %v11788_v4  ;;  %v5199_v4 = vld [vmem:[#allocation2 + $0x54] sm:$0xe]  ;;  %v11818_v27 = vcombine.low %v5289_v40, %v5292_v9  ;;  %v11822_v25 = vcombine.low %v5317_v13, %v5320_v62  ;;  %v5333_v45 = vrot.slane %v15945_v39, 5  ;;  %v5324_v35 = vsel %vm15266_vm14, %v11807_v43, %v5323_v46  ;;  %v5206_v39 = vld [vmem:[#allocation2 + $0xa8] sm:$0xe]  ;;  %v18135_v52 = vld [vmem:[#allocation10_spill] sm:$0xff]  ;;  %13404 = vmatprep.subr.bf16.mxu1 %v14490_v44 }
 0x286   : > { %v11803_v1 = vrot.slane %v5199_v4, 9  ;;  %v5327_v2 = vsel %vm15266_vm14, %v5325_v32, %v5326_v18  ;;  %v5337_v34 = vrot.slane %v15947_v30, 5  ;;  %v5344_v16 = vrot.slane %v15951_v8, 5  ;;  %v18132_v40 = vld [vmem:[#allocation12_spill] sm:$0xff]  ;;  %v18134_v8 = vld [vmem:[#allocation7_spill] sm:$0xff]  ;;  %13405 = vmatpush3.bf16.msra.mxu1 %v14490_v44  ;;  %v14496_v62 = vld [vmem:[%s18013_s4 + $0x70] sm:$0xff]  }
 0x287   : > { %v11823_v49 = vcombine.low %v5324_v35, %v5327_v2  ;;  %v11809_v14 = vrot.slane %v5205_v55, 9  ;;  %v5340_v9 = vrot.slane %v18132_v40, 5  ;;  %v11810_v4 = vrot.slane %v5206_v39, 9  ;;  %13406 = vmatprep.subr.bf16.mxu1 %v14491_v56  ;;  %v14494_v46 = vld [vmem:[%s18013_s4 + $0x60] sm:$0xff]   ;;  %v14495_v13 = vld [vmem:[%s18013_s4 + $0x68] sm:$0xff]  }
 0x288   : > { %v5296_v36 = vsel %vm15266_vm14, %v11803_v1, %v5295_v37  ;;  %v5339_v37 = vrot.slane %v5337_v34, 4  ;;  %v5346_v22 = vrot.slane %v5344_v16, 4  ;;  %v5347_v30 = vrot.slane %v18133_v20, 5 }
 0x289   : > { %v11819_v5 = vcombine.low %v5296_v36, %v5299_v50  ;;  %v5351_v1 = vrot.slane %v18134_v8, 5  ;;  %v5345_v48 = vsel %vm15266_vm14, %v11810_v4, %v5344_v16  ;;  %v5358_v17 = vrot.slane %v15982_v42, 5 }
 0x28a   : > { %v5348_v21 = vsel %vm15266_vm14, %v5346_v22, %v5347_v30  ;;  %v5361_v57 = vrot.slane %v16002_v47, 5  ;;  %v18136_v47 = vld [vmem:[#allocation11_spill] sm:$0xff]  ;;  %13407 = vmatpush3.bf16.msra.mxu1 %v14491_v56 }
 0x28b   : > { %v11826_v50 = vcombine.low %v5345_v48, %v5348_v21  ;;  %v5360_v10 = vrot.slane %v5358_v17, 4  ;;  %v18137_v23 = vcombine.low %v18135_v52, %v18136_v47 }
 0x28c   : > { %13353 = vmatmul.mubr.bf16.gmra.mrb[28].mxu0 %v11789_v6  ;;  %v11820_v6 = vcombine.low %v5303_v38, %v5306_v58  ;;  %v5353_v38 = vrot.slane %v5351_v1, 4  ;;  %v5354_v58 = vrot.slane %v15994_v7, 5 }
 0x28d   : > { %13372 = vmatprep.mubr.bf16.mxu0 %v11814_v33  ;;  %v11805_v33 = vrot.slane %v5201_v26, 9  ;;  %v11812_v26 = vrot.slane %v5208_v41, 9 }
 0x28f   : > { %v5310_v29 = vsel %vm15266_vm14, %v11805_v33, %v5309_v12  ;;  %v11811_v12 = vrot.slane %v5207_v60, 9  ;;  %v5359_v42 = vsel %vm15266_vm14, %v11812_v26, %v5358_v17  ;;  %v5362_v33 = vsel %vm15266_vm14, %v5360_v10, %v5361_v57 }
 0x290   : > { %v11821_v53 = vcombine.low %v5310_v29, %v5313_v63  ;;  %v11828_v7 = vcombine.low %v5359_v42, %v5362_v33  ;;  %v14492_v29 = vld [vmem:[%s18013_s4 + $0x50] sm:$0xff]   ;;  %v14493_v63 = vld [vmem:[%s18013_s4 + $0x58] sm:$0xff]  }
 0x291   : > { %13408 = vmatprep.subr.bf16.mxu1 %v14492_v29 }
 0x292   : > { %13409 = vmatpush3.bf16.msra.mxu1 %v14492_v29 }
 0x293   : > { %13410 = vmatprep.subr.bf16.mxu1 %v14493_v63 }
 0x294   : > { %13373 = vmatmul.mubr.bf16.vlgmr.msra.gmra.mrb[0].mxu0 %v11815_v11  ;;  %v11808_v11 = vrot.slane %v5204_v28, 9  ;;  %v6394_v28 = vshrl.u32 %v6329_v24, 16 }
 0x295   : > { %13376 = vmatprep.mubr.bf16.mxu0 %v11816_v51  ;;  %v5332_v51 = vrot.slane %v5330_v19, 4 }
 0x296   : > { %v5331_v61 = vsel %vm15266_vm14, %v11808_v11, %v5330_v19  ;;  %13411 = vmatpush3.bf16.msra.mxu1 %v14493_v63  ;;  %v6330_v19 = vld [vmem:[#allocation2 + $0x4] sm:$0xf]  ;;  %v6396_v32 = vrot.slane %v6394_v28, 4  ;;  %v6224_v63 = vld [vmem:[#allocation2 + $0x18] sm:$0xf] }
 0x297   : > { %v5334_v0 = vsel %vm15266_vm14, %v5332_v51, %v5333_v45  ;;  %13412 = vmatprep.subr.bf16.mxu1 %v14494_v46  ;;  %v6407_v43 = vshrl.u32 %v6330_v19, 16  ;;  %v6377_v45 = vld [vmem:[#allocation2 + $0x8] sm:$0x1] }
 0x298   : > { %v11824_v15 = vcombine.low %v5331_v61, %v5334_v0  ;;  %v14497_v61 = vld [vmem:[%s18013_s4 + $0x78] sm:$0xff]  }
 0x299   : > { %v6409_v51 = vrot.slane %v6407_v43, 4 }
 0x29a   : > { %13413 = vmatpush3.bf16.msra.mxu1 %v14494_v46 }
 0x29b   : > { %13414 = vmatprep.subr.bf16.mxu1 %v14495_v13 }
 0x29c   : > { %13377 = vmatmul.mubr.bf16.gmra.mrb[4].mxu0 %v11817_v59  ;;  %v5338_v59 = vsel %vm15266_vm14, %v11809_v14, %v5337_v34  ;;  %v6413_v34 = vshll.u32 %v6377_v45, 16  ;;  %v16149_v14 = vld [vmem:[%s18013_s4] sm:$0xff]  }
 0x29d   : > { %13380 = vmatprep.mubr.bf16.mxu0 %v11818_v27  ;;  %v5341_v27 = vsel %vm15266_vm14, %v5339_v37, %v5340_v9  ;;  %v16155_v37 = vld [vmem:[%s18011_s2] ss:$0 sm:$0xff] }
 0x29e   : > { %v11825_v36 = vcombine.low %v5338_v59, %v5341_v27  ;;  %13415 = vmatpush3.bf16.msra.mxu1 %v14495_v13  ;;  %v6415_v16 = vrot.slane %v6413_v34, 5  ;;  %v16160_v9 = vld [vmem:[%s18012_s3] ss:$0 sm:$0xff] }
 0x29f   : > { %13416 = vmatprep.subr.bf16.mxu1 %v14496_v62 }
 0x2a2   : > { %13417 = vmatpush3.bf16.msra.mxu1 %v14496_v62 }
 0x2a3   : > { %13418 = vmatprep.subr.bf16.mxu1 %v14497_v61 }
 0x2a4   : > { %13381 = vmatmul.mubr.bf16.gmra.mrb[8].mxu0 %v11819_v5  ;;  %v5352_v5 = vsel %vm15266_vm14, %v11811_v12, %v5351_v1 }
 0x2a5   : > { %13384 = vmatprep.mubr.bf16.mxu0 %v11820_v6  ;;  %v5355_v6 = vsel %vm15266_vm14, %v5353_v38, %v5354_v58 }
 0x2a6   : > { %v11827_v31 = vcombine.low %v5352_v5, %v5355_v6  ;;  %13419 = vmatpush3.bf16.msra.mxu1 %v14497_v61  ;;  %v6221_v61 = vld [vmem:[#allocation2 + $0x14] sm:$0x1] }
 0x2a7   : > { %13452 = vmatprep.subr.bf16.mxu1 %v16149_v14 }
 0x2ac   : > { %13385 = vmatmul.mubr.bf16.gmra.mrb[12].mxu0 %v11821_v53  ;;  %v6397_v53 = vshll.u32 %v6329_v24, 16 }
 0x2ad   : > { %13388 = vmatprep.mubr.bf16.mxu0 %v11822_v25  ;;  %v6403_v25 = vshll.u32 %v6330_v19, 16 }
 0x2ae   : > { %v6399_v18 = vrot.slane %v6397_v53, 5 }
 0x2af   : > { %v6405_v11 = vrot.slane %v6403_v25, 5 }
 0x2b0   : > { %v6400_v35 = vor.u32 %v6399_v18, %v6396_v32  ;;  %v6228_v18 = vld [vmem:[#allocation2 + $0x20] sm:$0x1] }
 0x2b1   : > { %v6410_v2 = vor.u32 %v6409_v51, %v6405_v11 }
 0x2b2   : > { %v6401_v0 = vrot.slane %v6400_v35, 4 }
 0x2b3   : > { %v6411_v55 = vrot.slane %v6410_v2, 4 }
 0x2b4   : > { %13389 = vmatmul.mubr.bf16.gmra.mrb[16].mxu0 %v11823_v49  ;;  %v6406_v39 = vsel %vm14880_vm11, %v6401_v0, %v6405_v11 }
 0x2b5   : > { %13392 = vmatprep.mubr.bf16.mxu0 %v11824_v15  ;;  %v6416_v49 = vsel %vm14880_vm11, %v6411_v55, %v6415_v16  ;;  %v14642_v55 = vld [vmem:[#allocation2 + $0xc] sm:$0xf] }
 0x2b6   : > { %v11888_v15 = vcombine.low %v6406_v39, %v6416_v49 }
 0x2b8   : > { %13420 = vmatprep.mubr.bf16.mxu1 %v11888_v15 }
 0x2bc   : > { %13393 = vmatmul.mubr.bf16.gmra.mrb[20].mxu0 %v11825_v36 }
 0x2bd   : > { %13396 = vmatprep.mubr.bf16.mxu0 %v11826_v50 }
 0x2c4   : > { %13397 = vmatmul.mubr.bf16.gmra.mrb[24].mxu0 %v11827_v31 }
 0x2c5   : > { %13400 = vmatprep.mubr.bf16.mxu0 %v11828_v7 }
 0x2cc   : > { %13401 = vmatmul.mubr.bf16.gmra.mrb[28].mxu0 %v18137_v23 }
 0x367   : > { %v13374_v40 = vpop.f32.mrb[0].mxu0 }
 0x368   : > { %v5701_v4 = vmul.f32 %v13374_v40, %v16155_v37  ;;  %v5533_v22 = vpop.f32.mrb[1].mxu0 }
 0x369   : > { %v5699_v20 = vmul.f32 %v16155_v37, %v5533_v22  ;;  %v13375_v30 = vpop.f32.mrb[2].mxu0 }
 0x36a   : > { %v5740_v59 = vadd.f32 %v16160_v9, %v5701_v4  ;;  %v5702_v27 = vmul.f32 %v13375_v30, %v16155_v37  ;;  %v5536_v8 = vpop.f32.mrb[3].mxu0 }
 0x36b   : > { %v5738_v1 = vadd.f32 %v16160_v9, %v5699_v20  ;;  %v5700_v48 = vmul.f32 %v16155_v37, %v5536_v8 }
 0x36c   : > { %v5772_v21 = vmax.f32 %v5740_v59, 0.0  ;;  %v5741_v60 = vadd.f32 %v16160_v9, %v5702_v27 }
 0x36d   : > { %v5770_v17 = vmax.f32 %v5738_v1, 0.0  ;;  %v5739_v41 = vadd.f32 %v16160_v9, %v5700_v48 }
 0x36e   : > { %v12304_v36 = vpack.c.bf16 %v5772_v21, %v5772_v21  ;;  %v5773_v50 = vmax.f32 %v5741_v60, 0.0 }
 0x36f   : > { %v12302_v12 = vpack.c.bf16 %v5770_v17, %v5770_v17  ;;  %v5771_v38 = vmax.f32 %v5739_v41, 0.0  ;;  %v13378_v58 = vpop.f32.mrb[4].mxu0 }
 0x370   : > { %v5916_v26 = vshrl.u32 %v12304_v36, 16  ;;  %v5919_v10 = vshll.u32 %v12304_v36, 16  ;;  %v12305_v57 = vpack.c.bf16 %v5773_v50, %v5773_v50  ;;  %v5705_v5 = vmul.f32 %v13378_v58, %v16155_v37  ;;  %v5549_v6 = vpop.f32.mrb[5].mxu0  ;;  %v6238_v58 = vld [vmem:[#allocation2 + $0x30] sm:$0xf] }
 0x371   : > { %v5899_v42 = vshrl.u32 %v12302_v12, 16  ;;  %v5902_v33 = vshll.u32 %v12302_v12, 16  ;;  %v12303_v31 = vpack.c.bf16 %v5771_v38, %v5771_v38  ;;  %v5703_v7 = vmul.f32 %v16155_v37, %v5549_v6  ;;  %v13379_v52 = vpop.f32.mrb[6].mxu0 }
 0x372   : > { %v5918_v47 = vrot.slane %v5916_v26, 7  ;;  %v5924_v23 = vshrl.u32 %v12305_v57, 16  ;;  %v5927_v44 = vshll.u32 %v12305_v57, 16  ;;  %v5744_v56 = vadd.f32 %v16160_v9, %v5705_v5  ;;  %v5552_v29 = vpop.f32.mrb[7].mxu0 }
 0x373   : > { %v5901_v46 = vrot.slane %v5899_v42, 7  ;;  %v5907_v13 = vshrl.u32 %v12303_v31, 16  ;;  %v5910_v62 = vshll.u32 %v12303_v31, 16  ;;  %v5742_v24 = vadd.f32 %v16160_v9, %v5703_v7 }
 0x374   : > { %v5921_v19 = vor.u32 %v5919_v10, %v5918_v47  ;;  %v5922_v28 = vrot.slane %v5918_v47, 4  ;;  %v5926_v53 = vrot.slane %v5924_v23, 7  ;;  %v5776_v25 = vmax.f32 %v5744_v56, 0.0 }
 0x375   : > { %v5904_v43 = vor.u32 %v5902_v33, %v5901_v46  ;;  %v5905_v32 = vrot.slane %v5901_v46, 4  ;;  %v5909_v11 = vrot.slane %v5907_v13, 7  ;;  %v5774_v51 = vmax.f32 %v5742_v24, 0.0  ;;  %v6231_v33 = vld [vmem:[#allocation2 + $0x24] sm:$0xf] }
 0x376   : > { %v6225_v35 = vsel %vm14856_vm8, %v5921_v19, %v6224_v63  ;;  %v5929_v2 = vor.u32 %v5927_v44, %v5926_v53  ;;  %v5931_v34 = vrot.slane %v5926_v53, 4  ;;  %v12308_v0 = vpack.c.bf16 %v5776_v25, %v5776_v25 }
 0x377   : > { %6226 = vst [vmem:[#allocation2 + $0x18] sm:$0xf] %v6225_v35  ;;  %v6218_v16 = vsel %vm14856_vm8, %v5904_v43, %v14642_v55  ;;  %v5912_v39 = vor.u32 %v5910_v62, %v5909_v11  ;;  %v5914_v49 = vrot.slane %v5909_v11, 4  ;;  %v12306_v15 = vpack.c.bf16 %v5774_v51, %v5774_v51  ;;  %v13382_v40 = vpop.f32.mrb[8].mxu0 }
 0x378   : > { %6219 = vst [vmem:[#allocation2 + $0xc] sm:$0xf] %v6218_v16  ;;  %v5930_v22 = vsel %vm14865_vm10, %v5922_v28, %v5929_v2  ;;  %v6229_v30 = vsel %vm14822_vm3, %v5931_v34, %v6228_v18  ;;  %v5950_v59 = vshrl.u32 %v12308_v0, 16  ;;  %v5953_v27 = vshll.u32 %v12308_v0, 16  ;;  %v5565_v8 = vpop.f32.mrb[9].mxu0 }
 0x379   : > { %6227 = vst [vmem:[#allocation2 + $0x1c] sm:$0xf] %v5930_v22  ;;  %6230 = vst [vmem:[#allocation2 + $0x20] sm:$0x1] %v6229_v30  ;;  %v5913_v1 = vsel %vm14865_vm10, %v5905_v32, %v5912_v39  ;;  %v6222_v48 = vsel %vm14822_vm3, %v5914_v49, %v6221_v61  ;;  %v5933_v21 = vshrl.u32 %v12306_v15, 16  ;;  %v5936_v60 = vshll.u32 %v12306_v15, 16 }
 0x37a   : > { %v13383_v17 = vpop.f32.mrb[10].mxu0  ;;  %6220 = vst [vmem:[#allocation2 + $0x10] sm:$0xf] %v5913_v1  ;;  %6223 = vst [vmem:[#allocation2 + $0x14] sm:$0x1] %v6222_v48  ;;  %v16186_v41 = vrot.slane %v5950_v59, 7  ;;  %v5706_v36 = vmul.f32 %v13379_v52, %v16155_v37  ;;  %v5704_v50 = vmul.f32 %v16155_v37, %v5552_v29  ;;  %v5709_v12 = vmul.f32 %v13382_v40, %v16155_v37 }
 0x37b   : > { %v5568_v38 = vpop.f32.mrb[11].mxu0  ;;  %v16191_v26 = vrot.slane %v5933_v21, 7  ;;  %v5707_v10 = vmul.f32 %v16155_v37, %v5565_v8  ;;  %v5710_v57 = vmul.f32 %v13383_v17, %v16155_v37  ;;  %v6242_v49 = vld [vmem:[#allocation2 + $0x38] sm:$0x1]  ;;  %v6235_v8 = vld [vmem:[#allocation2 + $0x2c] sm:$0x1] }
 0x37c   : > { %v5708_v5 = vmul.f32 %v16155_v37, %v5568_v38  ;;  %v5955_v6 = vor.u32 %v5953_v27, %v16186_v41  ;;  %v5956_v42 = vrot.slane %v16186_v41, 4  ;;  %v5745_v31 = vadd.f32 %v16160_v9, %v5706_v36 }
 0x37d   : > { %v5743_v7 = vadd.f32 %v16160_v9, %v5704_v50  ;;  %v5938_v52 = vor.u32 %v5936_v60, %v16191_v26  ;;  %v5939_v47 = vrot.slane %v16191_v26, 4  ;;  %v5748_v23 = vadd.f32 %v16160_v9, %v5709_v12  ;;  %v6245_v26 = vld [vmem:[#allocation2 + $0x3c] sm:$0xf] }
 0x37e   : > { %v5746_v44 = vadd.f32 %v16160_v9, %v5707_v10  ;;  %v6239_v56 = vsel %vm14856_vm8, %v5955_v6, %v6238_v58  ;;  %v5777_v29 = vmax.f32 %v5745_v31, 0.0  ;;  %v5749_v46 = vadd.f32 %v16160_v9, %v5710_v57  ;;  %v6252_v58 = vld [vmem:[#allocation2 + $0x48] sm:$0xf] }
 0x37f   : > { %v5775_v63 = vmax.f32 %v5743_v7, 0.0  ;;  %6240 = vst [vmem:[#allocation2 + $0x30] sm:$0xf] %v6239_v56  ;;  %v6232_v13 = vsel %vm14856_vm8, %v5938_v52, %v6231_v33  ;;  %v5780_v62 = vmax.f32 %v5748_v23, 0.0  ;;  %v5747_v19 = vadd.f32 %v16160_v9, %v5708_v5  ;;  %v13386_v28 = vpop.f32.mrb[12].mxu0 }
 0x380   : > { %v5778_v24 = vmax.f32 %v5746_v44, 0.0  ;;  %6233 = vst [vmem:[#allocation2 + $0x24] sm:$0xf] %v6232_v13  ;;  %v12309_v53 = vpack.c.bf16 %v5777_v29, %v5777_v29  ;;  %v5781_v43 = vmax.f32 %v5749_v46, 0.0  ;;  %v5713_v32 = vmul.f32 %v13386_v28, %v16155_v37  ;;  %v5581_v18 = vpop.f32.mrb[13].mxu0 }
 0x381   : > { %v12307_v25 = vpack.c.bf16 %v5775_v63, %v5775_v63  ;;  %v12312_v11 = vpack.c.bf16 %v5780_v62, %v5780_v62  ;;  %v5779_v35 = vmax.f32 %v5747_v19, 0.0  ;;  %v5711_v2 = vmul.f32 %v16155_v37, %v5581_v18  ;;  %v13387_v34 = vpop.f32.mrb[14].mxu0 }
 0x382   : > { %v12310_v51 = vpack.c.bf16 %v5778_v24, %v5778_v24  ;;  %v5958_v61 = vshrl.u32 %v12309_v53, 16  ;;  %v5961_v0 = vshll.u32 %v12309_v53, 16  ;;  %v5584_v39 = vpop.f32.mrb[15].mxu0  ;;  %v12313_v1 = vpack.c.bf16 %v5781_v43, %v5781_v43 }
 0x383   : > { %v5941_v55 = vshrl.u32 %v12307_v25, 16  ;;  %v5944_v16 = vshll.u32 %v12307_v25, 16  ;;  %v5984_v15 = vshrl.u32 %v12312_v11, 16  ;;  %v5987_v40 = vshll.u32 %v12312_v11, 16 }
 0x384   : > { %v5967_v22 = vshrl.u32 %v12310_v51, 16  ;;  %v5970_v30 = vshll.u32 %v12310_v51, 16  ;;  %v5960_v59 = vrot.slane %v5958_v61, 7  ;;  %v12311_v48 = vpack.c.bf16 %v5779_v35, %v5779_v35 }
 0x385   : > { %v5943_v27 = vrot.slane %v5941_v55, 7  ;;  %v5986_v21 = vrot.slane %v5984_v15, 7  ;;  %v5752_v17 = vadd.f32 %v16160_v9, %v5713_v32  ;;  %v5750_v41 = vadd.f32 %v16160_v9, %v5711_v2  ;;  %v6256_v32 = vld [vmem:[#allocation2 + $0x50] sm:$0x1] }
 0x386   : > { %v5969_v60 = vrot.slane %v5967_v22, 7  ;;  %v5963_v36 = vor.u32 %v5961_v0, %v5960_v59  ;;  %v5965_v50 = vrot.slane %v5960_v59, 4  ;;  %v5992_v29 = vshrl.u32 %v12313_v1, 16  ;;  %v6249_v0 = vld [vmem:[#allocation2 + $0x44] sm:$0x1] }
 0x387   : > { %v5946_v12 = vor.u32 %v5944_v16, %v5943_v27  ;;  %v5948_v38 = vrot.slane %v5943_v27, 4  ;;  %v5989_v10 = vor.u32 %v5987_v40, %v5986_v21  ;;  %v5990_v57 = vrot.slane %v5986_v21, 4  ;;  %v13390_v33 = vpop.f32.mrb[16].mxu0 }
 0x388   : > { %v5972_v5 = vor.u32 %v5970_v30, %v5969_v60  ;;  %v5973_v6 = vrot.slane %v5969_v60, 4  ;;  %v5964_v31 = vsel %vm14865_vm10, %v5956_v42, %v5963_v36  ;;  %v6243_v7 = vsel %vm14822_vm3, %v5965_v50, %v6242_v49  ;;  %v5597_v44 = vpop.f32.mrb[17].mxu0 }
 0x389   : > { %v5947_v52 = vsel %vm14865_vm10, %v5939_v47, %v5946_v12  ;;  %v6236_v23 = vsel %vm14822_vm3, %v5948_v38, %v6235_v8  ;;  %6241 = vst [vmem:[#allocation2 + $0x34] sm:$0xf] %v5964_v31  ;;  %6244 = vst [vmem:[#allocation2 + $0x38] sm:$0x1] %v6243_v7  ;;  %v6253_v56 = vsel %vm14856_vm8, %v5989_v10, %v6252_v58  ;;  %v5995_v63 = vshll.u32 %v12313_v1, 16  ;;  %v13391_v46 = vpop.f32.mrb[18].mxu0 }
 0x38a   : > { %6234 = vst [vmem:[#allocation2 + $0x28] sm:$0xf] %v5947_v52  ;;  %6237 = vst [vmem:[#allocation2 + $0x2c] sm:$0x1] %v6236_v23  ;;  %v6246_v42 = vsel %vm14856_vm8, %v5972_v5, %v6245_v26  ;;  %v5975_v47 = vshrl.u32 %v12311_v48, 16  ;;  %v5978_v13 = vshll.u32 %v12311_v48, 16  ;;  %v5714_v53 = vmul.f32 %v13387_v34, %v16155_v37 }
 0x38b   : > { %6254 = vst [vmem:[#allocation2 + $0x48] sm:$0xf] %v6253_v56  ;;  %6247 = vst [vmem:[#allocation2 + $0x3c] sm:$0xf] %v6246_v42  ;;  %v5784_v62 = vmax.f32 %v5752_v17, 0.0  ;;  %v5782_v24 = vmax.f32 %v5750_v41, 0.0  ;;  %v5712_v25 = vmul.f32 %v16155_v37, %v5584_v39  ;;  %v5717_v43 = vmul.f32 %v13390_v33, %v16155_v37 }
 0x38c   : > { %v16226_v19 = vpop.f32.mrb[19].mxu0  ;;  %v5994_v28 = vrot.slane %v5992_v29, 7  ;;  %v5977_v18 = vrot.slane %v5975_v47, 7  ;;  %v5715_v35 = vmul.f32 %v16155_v37, %v5597_v44  ;;  %v5753_v55 = vadd.f32 %v16160_v9, %v5714_v53  ;;  %v6266_v17 = vld [vmem:[#allocation2 + $0x60] sm:$0xf] }
 0x38d   : > { %v12316_v11 = vpack.c.bf16 %v5784_v62, %v5784_v62  ;;  %v12314_v51 = vpack.c.bf16 %v5782_v24, %v5782_v24  ;;  %v5751_v16 = vadd.f32 %v16160_v9, %v5712_v25  ;;  %v5756_v50 = vadd.f32 %v16160_v9, %v5717_v43  ;;  %v6259_v10 = vld [vmem:[#allocation2 + $0x54] sm:$0xf]  ;;  %v6331_v29 = vld [vmem:[#allocation2 + $0xc] sm:$0xf]  ;;  %v6270_v47 = vld [vmem:[#allocation2 + $0x68] sm:$0x1] }
 0x38e   : > { %v5997_v2 = vor.u32 %v5995_v63, %v5994_v28  ;;  %v5999_v61 = vrot.slane %v5994_v28, 4  ;;  %v5980_v49 = vor.u32 %v5978_v13, %v5977_v18  ;;  %v5982_v15 = vrot.slane %v5977_v18, 4 }
 0x38f   : > { %v6018_v34 = vshrl.u32 %v12316_v11, 16  ;;  %v6021_v40 = vshll.u32 %v12316_v11, 16  ;;  %v6001_v30 = vshrl.u32 %v12314_v51, 16  ;;  %v6004_v59 = vshll.u32 %v12314_v51, 16  ;;  %v16238_v27 = vpop.f32.mrb[20].mxu0 }
 0x390   : > { %v5998_v39 = vsel %vm14865_vm10, %v5990_v57, %v5997_v2  ;;  %v6257_v22 = vsel %vm14822_vm3, %v5999_v61, %v6256_v32  ;;  %v5981_v8 = vsel %vm14865_vm10, %v5973_v6, %v5980_v49  ;;  %v6250_v1 = vsel %vm14822_vm3, %v5982_v15, %v6249_v0  ;;  %v16244_v60 = vpop.f32.mrb[21].mxu0  ;;  %v6263_v61 = vld [vmem:[#allocation2 + $0x5c] sm:$0x1] }
 0x391   : > { %6255 = vst [vmem:[#allocation2 + $0x4c] sm:$0xf] %v5998_v39  ;;  %6258 = vst [vmem:[#allocation2 + $0x50] sm:$0x1] %v6257_v22  ;;  %v6020_v48 = vrot.slane %v6018_v34, 7  ;;  %v5785_v21 = vmax.f32 %v5753_v55, 0.0  ;;  %v5754_v12 = vadd.f32 %v16160_v9, %v5715_v35  ;;  %v5718_v5 = vmul.f32 %v13391_v46, %v16155_v37 }
 0x392   : > { %6248 = vst [vmem:[#allocation2 + $0x40] sm:$0xf] %v5981_v8  ;;  %6251 = vst [vmem:[#allocation2 + $0x44] sm:$0x1] %v6250_v1  ;;  %v6003_v41 = vrot.slane %v6001_v30, 7  ;;  %v5783_v36 = vmax.f32 %v5751_v16, 0.0  ;;  %v5716_v25 = vmul.f32 %v16155_v37, %v16226_v19 }
 0x393   : > { %v16248_v38 = vpop.f32.mrb[22].mxu0  ;;  %v6023_v58 = vor.u32 %v6021_v40, %v6020_v48  ;;  %v6024_v26 = vrot.slane %v6020_v48, 4  ;;  %v12317_v57 = vpack.c.bf16 %v5785_v21, %v5785_v21  ;;  %v5788_v52 = vmax.f32 %v5756_v50, 0.0  ;;  %v6280_v30 = vld [vmem:[#allocation2 + $0x78] sm:$0xf] }
 0x394   : > { %v16251_v6 = vpop.f32.mrb[23].mxu0  ;;  %v6006_v33 = vor.u32 %v6004_v59, %v6003_v41  ;;  %v6007_v31 = vrot.slane %v6003_v41, 4  ;;  %v12315_v7 = vpack.c.bf16 %v5783_v36, %v5783_v36  ;;  %v5786_v42 = vmax.f32 %v5754_v12, 0.0  ;;  %v6332_v1 = vld [vmem:[#allocation2 + $0x10] sm:$0xf] }
 0x395   : > { %v6267_v23 = vsel %vm14856_vm8, %v6023_v58, %v6266_v17  ;;  %v6026_v44 = vshrl.u32 %v12317_v57, 16  ;;  %v6029_v56 = vshll.u32 %v12317_v57, 16  ;;  %v12320_v62 = vpack.c.bf16 %v5788_v52, %v5788_v52  ;;  %v6273_v36 = vld [vmem:[#allocation2 + $0x6c] sm:$0xf] }
 0x396   : > { %6268 = vst [vmem:[#allocation2 + $0x60] sm:$0xf] %v6267_v23  ;;  %v6260_v63 = vsel %vm14856_vm8, %v6006_v33, %v6259_v10  ;;  %v6009_v13 = vshrl.u32 %v12315_v7, 16  ;;  %v6012_v46 = vshll.u32 %v12315_v7, 16  ;;  %v12318_v28 = vpack.c.bf16 %v5786_v42, %v5786_v42  ;;  %v6378_v10 = vld [vmem:[#allocation2 + $0x14] sm:$0x1] }
 0x397   : > { %6261 = vst [vmem:[#allocation2 + $0x54] sm:$0xf] %v6260_v63  ;;  %v6028_v24 = vrot.slane %v6026_v44, 7  ;;  %v5757_v53 = vadd.f32 %v16160_v9, %v5718_v5  ;;  %v6052_v32 = vshrl.u32 %v12320_v62, 16  ;;  %v6055_v18 = vshll.u32 %v12320_v62, 16  ;;  %v16260_v51 = vpop.f32.mrb[24].mxu0 }
 0x398   : > { %v6011_v43 = vrot.slane %v6009_v13, 7  ;;  %v6418_v11 = vshrl.u32 %v6331_v29, 16  ;;  %v6035_v0 = vshrl.u32 %v12318_v28, 16  ;;  %v6038_v55 = vshll.u32 %v12318_v28, 16  ;;  %v16262_v16 = vpop.f32.mrb[25].mxu0 }
 0x399   : > { %v6031_v35 = vor.u32 %v6029_v56, %v6028_v24  ;;  %v6033_v2 = vrot.slane %v6028_v24, 4  ;;  %v16264_v34 = vrot.slane %v6052_v32, 7  ;;  %v5789_v40 = vmax.f32 %v5757_v53, 0.0  ;;  %v16266_v39 = vpop.f32.mrb[26].mxu0  ;;  %v6333_v7 = vld [vmem:[#allocation2 + $0x18] sm:$0xf] }
 0x39a   : > { %v6014_v49 = vor.u32 %v6012_v46, %v6011_v43  ;;  %v6016_v15 = vrot.slane %v6011_v43, 4  ;;  %v16272_v59 = vrot.slane %v6035_v0, 7  ;;  %v5755_v8 = vadd.f32 %v16160_v9, %v5716_v25  ;;  %v16275_v48 = vpop.f32.mrb[27].mxu0  ;;  %v6334_v42 = vld [vmem:[#allocation2 + $0x1c] sm:$0xf] }
 0x39b   : > { %v6032_v19 = vsel %vm14865_vm10, %v6024_v26, %v6031_v35  ;;  %v6271_v22 = vsel %vm14822_vm3, %v6033_v2, %v6270_v47  ;;  %v6057_v41 = vor.u32 %v6055_v18, %v16264_v34  ;;  %v6058_v50 = vrot.slane %v16264_v34, 4  ;;  %v6284_v63 = vld [vmem:[#allocation2 + $0x80] sm:$0x1] }
 0x39c   : > { %6269 = vst [vmem:[#allocation2 + $0x64] sm:$0xf] %v6032_v19  ;;  %6272 = vst [vmem:[#allocation2 + $0x68] sm:$0x1] %v6271_v22  ;;  %v6015_v21 = vsel %vm14865_vm10, %v6007_v31, %v6014_v49  ;;  %v6264_v17 = vsel %vm14822_vm3, %v6016_v15, %v6263_v61  ;;  %v6040_v12 = vor.u32 %v6038_v55, %v16272_v59  ;;  %v5787_v26 = vmax.f32 %v5755_v8, 0.0 }
 0x39d   : > { %6262 = vst [vmem:[#allocation2 + $0x58] sm:$0xf] %v6015_v21  ;;  %6265 = vst [vmem:[#allocation2 + $0x5c] sm:$0x1] %v6264_v17  ;;  %v12321_v58 = vpack.c.bf16 %v5789_v40, %v5789_v40  ;;  %v6281_v57 = vsel %vm14856_vm8, %v6057_v41, %v6280_v30  ;;  %v6420_v5 = vrot.slane %v6418_v11, 4  ;;  %v6421_v33 = vshll.u32 %v6331_v29, 16 }
 0x39e   : > { %v6427_v31 = vshll.u32 %v6332_v1, 16  ;;  %6282 = vst [vmem:[#allocation2 + $0x78] sm:$0xf] %v6281_v57  ;;  %v6041_v52 = vrot.slane %v16272_v59, 4  ;;  %v6274_v23 = vsel %vm14856_vm8, %v6040_v12, %v6273_v36  ;;  %v12319_v56 = vpack.c.bf16 %v5787_v26, %v5787_v26  ;;  %v6277_v49 = vld [vmem:[#allocation2 + $0x74] sm:$0x1] }
 0x39f   : > { %v6060_v44 = vshrl.u32 %v12321_v58, 16  ;;  %6275 = vst [vmem:[#allocation2 + $0x6c] sm:$0xf] %v6274_v23  ;;  %v6423_v47 = vrot.slane %v6421_v33, 5  ;;  %v6431_v46 = vshrl.u32 %v6332_v1, 16  ;;  %v6437_v62 = vshll.u32 %v6378_v10, 16 }
 0x3a0   : > { %v6429_v13 = vrot.slane %v6427_v31, 5  ;;  %v16289_v24 = vpop.f32.mrb[28].mxu0  ;;  %v6063_v28 = vshll.u32 %v12321_v58, 16  ;;  %v6043_v53 = vshrl.u32 %v12319_v56, 16  ;;  %v6046_v25 = vshll.u32 %v12319_v56, 16 }
 0x3a1   : > { %v6062_v29 = vrot.slane %v6060_v44, 7  ;;  %v16291_v43 = vpop.f32.mrb[29].mxu0  ;;  %v6424_v32 = vor.u32 %v6423_v47, %v6420_v5  ;;  %v6433_v18 = vrot.slane %v6431_v46, 4  ;;  %v6439_v11 = vrot.slane %v6437_v62, 5  ;;  %v6379_v22 = vld [vmem:[#allocation2 + $0x20] sm:$0x1] }
 0x3a2   : > { %v6442_v35 = vshrl.u32 %v6333_v7, 16  ;;  %v16293_v2 = vpop.f32.mrb[30].mxu0  ;;  %v6045_v55 = vrot.slane %v6043_v53, 7  ;;  %v6445_v15 = vshll.u32 %v6333_v7, 16  ;;  %v6451_v59 = vshll.u32 %v6334_v42, 16 }
 0x3a3   : > { %v6065_v61 = vor.u32 %v6063_v28, %v6062_v29  ;;  %v6067_v0 = vrot.slane %v6062_v29, 4  ;;  %v16295_v34 = vpop.f32.mrb[31].mxu0  ;;  %v6425_v40 = vrot.slane %v6424_v32, 4  ;;  %v6434_v19 = vor.u32 %v6433_v18, %v6429_v13  ;;  %v6335_v23 = vld [vmem:[#allocation2 + $0x24] sm:$0xf] }
 0x3a4   : > { %v6444_v30 = vrot.slane %v6442_v35, 4  ;;  %v6048_v21 = vor.u32 %v6046_v25, %v6045_v55  ;;  %v6050_v17 = vrot.slane %v6045_v55, 4  ;;  %v6447_v12 = vrot.slane %v6445_v15, 5  ;;  %v6336_v29 = vld [vmem:[#allocation2 + $0x28] sm:$0xf] }
 0x3a5   : > { %v6066_v8 = vsel %vm14865_vm10, %v6058_v50, %v6065_v61  ;;  %v6285_v1 = vsel %vm14822_vm3, %v6067_v0, %v6284_v63  ;;  %v6430_v41 = vsel %vm14880_vm11, %v6425_v40, %v6429_v13  ;;  %v6435_v36 = vrot.slane %v6434_v19, 4  ;;  %v14500_v0 = vld [vmem:[%s18013_s4 + $0x10] sm:$0xff]  }
 0x3a6   : > { %6283 = vst [vmem:[#allocation2 + $0x7c] sm:$0xf] %v6066_v8  ;;  %6286 = vst [vmem:[#allocation2 + $0x80] sm:$0x1] %v6285_v1  ;;  %v6453_v58 = vrot.slane %v6451_v59, 5  ;;  %v6049_v26 = vsel %vm14865_vm10, %v6041_v52, %v6048_v21  ;;  %v6278_v10 = vsel %vm14822_vm3, %v6050_v17, %v6277_v49  ;;  %v6455_v50 = vshrl.u32 %v6334_v42, 16 }
 0x3a7   : > { %v6461_v57 = vshll.u32 %v6379_v22, 16  ;;  %6276 = vst [vmem:[#allocation2 + $0x70] sm:$0xf] %v6049_v26  ;;  %6279 = vst [vmem:[#allocation2 + $0x74] sm:$0x1] %v6278_v10  ;;  %v6440_v5 = vsel %vm14880_vm11, %v6435_v36, %v6439_v11  ;;  %v6448_v33 = vor.u32 %v6447_v12, %v6444_v30  ;;  %v5721_v31 = vmul.f32 %v16238_v27, %v16155_v37  ;;  %v14499_v52 = vld [vmem:[%s18013_s4 + $0x8] sm:$0xff]  }
 0x3a8   : > { %v5719_v7 = vmul.f32 %v16155_v37, %v16244_v60  ;;  %v11889_v44 = vcombine.low %v6430_v41, %v6440_v5  ;;  %v6457_v56 = vrot.slane %v6455_v50, 4  ;;  %v5722_v63 = vmul.f32 %v16248_v38, %v16155_v37  ;;  %v6294_v17 = vld [vmem:[#allocation2 + $0x90] sm:$0xf]  ;;  %v14501_v26 = vld [vmem:[%s18013_s4 + $0x18] sm:$0xff]  }
 0x3a9   : > { %v6463_v42 = vrot.slane %v6461_v57, 5  ;;  %v6449_v47 = vrot.slane %v6448_v33, 4  ;;  %v5760_v13 = vadd.f32 %v16160_v9, %v5721_v31  ;;  %v5720_v27 = vmul.f32 %v16155_v37, %v16251_v6  ;;  %v6287_v57 = vld [vmem:[#allocation2 + $0x84] sm:$0xf] }
 0x3aa   : > { %v5758_v46 = vadd.f32 %v16160_v9, %v5719_v7  ;;  %13421 = vmatmul.mubr.bf16.vlgmr.msra.gmra.mrb[0].mxu1 %v11889_v44  ;;  %v6458_v60 = vor.u32 %v6457_v56, %v6453_v58  ;;  %v5761_v62 = vadd.f32 %v16160_v9, %v5722_v63  ;;  %v6466_v28 = vshrl.u32 %v6335_v23, 16 }
 0x3ab   : > { %v6469_v53 = vshll.u32 %v6335_v23, 16  ;;  %v6454_v25 = vsel %vm14880_vm11, %v6449_v47, %v6453_v58  ;;  %13453 = vmatpush3.bf16.msra.mxu1 %v16149_v14  ;;  %v5792_v38 = vmax.f32 %v5760_v13, 0.0  ;;  %v5759_v18 = vadd.f32 %v16160_v9, %v5720_v27  ;;  %v6298_v13 = vld [vmem:[#allocation2 + $0x98] sm:$0x1] }
 0x3ac   : > { %v5790_v32 = vmax.f32 %v5758_v46, 0.0  ;;  %v6459_v11 = vrot.slane %v6458_v60, 4  ;;  %v5793_v35 = vmax.f32 %v5761_v62, 0.0  ;;  %v6468_v61 = vrot.slane %v6466_v28, 4  ;;  %13454 = vmatprep.subr.bf16.mxu1 %v14499_v52  ;;  %v14502_v28 = vld [vmem:[%s18013_s4 + $0x20] sm:$0xff]  }
 0x3ad   : > { %v6471_v6 = vrot.slane %v6469_v53, 5  ;;  %v12324_v55 = vpack.c.bf16 %v5792_v38, %v5792_v38  ;;  %v5791_v15 = vmax.f32 %v5759_v18, 0.0  ;;  %v6475_v40 = vshll.u32 %v6336_v29, 16  ;;  %v6291_v38 = vld [vmem:[#allocation2 + $0x8c] sm:$0x1] }
 0x3ae   : > { %v12322_v49 = vpack.c.bf16 %v5790_v32, %v5790_v32  ;;  %v6464_v14 = vsel %vm14880_vm11, %v6459_v11, %v6463_v42  ;;  %v12325_v19 = vpack.c.bf16 %v5793_v35, %v5793_v35  ;;  %v6479_v30 = vshrl.u32 %v6336_v29, 16  ;;  %v16337_v29 = vld [vmem:[#allocation2 + $0x30] sm:$0xf]  ;;  %v16346_v11 = vld [vmem:[#allocation2 + $0x34] sm:$0xf] }
 0x3af   : > { %v6472_v22 = vor.u32 %v6471_v6, %v6468_v61  ;;  %v11890_v59 = vcombine.low %v6454_v25, %v6464_v14  ;;  %v6086_v8 = vshrl.u32 %v12324_v55, 16  ;;  %v6089_v1 = vshll.u32 %v12324_v55, 16  ;;  %13455 = vmatpush3.bf16.msra.mxu1 %v14499_v52  ;;  %v6380_v52 = vld [vmem:[#allocation2 + $0x2c] sm:$0x1]  ;;  %v6381_v55 = vld [vmem:[#allocation2 + $0x38] sm:$0x1] }
 0x3b0   : > { %v6069_v21 = vshrl.u32 %v12322_v49, 16  ;;  %v6072_v41 = vshll.u32 %v12322_v49, 16  ;;  %v6094_v36 = vshrl.u32 %v12325_v19, 16  ;;  %v6097_v12 = vshll.u32 %v12325_v19, 16  ;;  %13456 = vmatprep.subr.bf16.mxu1 %v14500_v0  ;;  %v14503_v19 = vld [vmem:[%s18013_s4 + $0x28] sm:$0xff]  }
 0x3b1   : > { %v12323_v58 = vpack.c.bf16 %v5791_v15, %v5791_v15  ;;  %13424 = vmatprep.mubr.bf16.mxu1 %v11890_v59  ;;  %v6088_v10 = vrot.slane %v6086_v8, 7  ;;  %v6473_v5 = vrot.slane %v6472_v22, 4  ;;  %v6477_v33 = vrot.slane %v6475_v40, 5 }
 0x3b2   : > { %v6071_v50 = vrot.slane %v6069_v21, 7  ;;  %v6096_v31 = vrot.slane %v6094_v36, 7  ;;  %v6481_v44 = vrot.slane %v6479_v30, 4  ;;  %v6485_v18 = vshll.u32 %v6380_v52, 16 }
 0x3b3   : > { %v6077_v7 = vshrl.u32 %v12323_v58, 16  ;;  %v6080_v23 = vshll.u32 %v12323_v58, 16  ;;  %v6091_v56 = vor.u32 %v6089_v1, %v6088_v10  ;;  %v6092_v42 = vrot.slane %v6088_v10, 4  ;;  %13457 = vmatpush3.bf16.msra.mxu1 %v14500_v0  ;;  %v16363_v1 = vld [vmem:[#allocation2 + $0x3c] sm:$0xf] }
 0x3b4   : > { %v6074_v63 = vor.u32 %v6072_v41, %v6071_v50  ;;  %v6075_v47 = vrot.slane %v6071_v50, 4  ;;  %v6099_v46 = vor.u32 %v6097_v12, %v6096_v31  ;;  %v6101_v27 = vrot.slane %v6096_v31, 4  ;;  %13458 = vmatprep.subr.bf16.mxu1 %v14501_v26 }
 0x3b5   : > { %v6079_v60 = vrot.slane %v6077_v7, 7  ;;  %v6478_v62 = vsel %vm14880_vm11, %v6473_v5, %v6477_v33  ;;  %v6295_v53 = vsel %vm14856_vm8, %v6091_v56, %v6294_v17  ;;  %v6482_v32 = vor.u32 %v6481_v44, %v6477_v33  ;;  %v16382_v56 = vld [vmem:[#allocation2 + $0x40] sm:$0xf] }
 0x3b6   : > { %v6288_v25 = vsel %vm14856_vm8, %v6074_v63, %v6287_v57  ;;  %6296 = vst [vmem:[#allocation2 + $0x90] sm:$0xf] %v6295_v53  ;;  %v6100_v35 = vsel %vm14865_vm10, %v6092_v42, %v6099_v46  ;;  %v6299_v61 = vsel %vm14822_vm3, %v6101_v27, %v6298_v13  ;;  %v6487_v15 = vrot.slane %v6485_v18, 5 }
 0x3b7   : > { %6289 = vst [vmem:[#allocation2 + $0x84] sm:$0xf] %v6288_v25  ;;  %v6082_v6 = vor.u32 %v6080_v23, %v6079_v60  ;;  %v6084_v0 = vrot.slane %v6079_v60, 4  ;;  %6297 = vst [vmem:[#allocation2 + $0x94] sm:$0xf] %v6100_v35  ;;  %v6483_v49 = vrot.slane %v6482_v32, 4  ;;  %13459 = vmatpush3.bf16.msra.mxu1 %v14501_v26  ;;  %v5725_v10 = vmul.f32 %v16260_v51, %v16155_v37 }
 0x3b8   : > { %6300 = vst [vmem:[#allocation2 + $0x98] sm:$0x1] %v6299_v61  ;;  %v6490_v40 = vshrl.u32 %v16337_v29, 16  ;;  %v6493_v14 = vshll.u32 %v16337_v29, 16  ;;  %v6499_v59 = vshll.u32 %v16346_v11, 16  ;;  %v6503_v8 = vshrl.u32 %v16346_v11, 16  ;;  %13460 = vmatprep.subr.bf16.mxu1 %v14502_v28 }
 0x3b9   : > { %v6083_v22 = vsel %vm14865_vm10, %v6075_v47, %v6082_v6  ;;  %v6292_v30 = vsel %vm14822_vm3, %v6084_v0, %v6291_v38  ;;  %v6488_v21 = vsel %vm14880_vm11, %v6483_v49, %v6487_v15  ;;  %v6509_v36 = vshll.u32 %v6381_v55, 16  ;;  %v14504_v51 = vld [vmem:[%s18013_s4 + $0x30] sm:$0xff]   ;;  %v6382_v35 = vld [vmem:[#allocation2 + $0x44] sm:$0x1] }
 0x3ba   : > { %6290 = vst [vmem:[#allocation2 + $0x88] sm:$0xf] %v6083_v22  ;;  %6293 = vst [vmem:[#allocation2 + $0x8c] sm:$0x1] %v6292_v30  ;;  %v6492_v17 = vrot.slane %v6490_v40, 4  ;;  %v6495_v41 = vrot.slane %v6493_v14, 5  ;;  %v11891_v12 = vcombine.low %v6478_v62, %v6488_v21  ;;  %v5723_v5 = vmul.f32 %v16155_v37, %v16262_v16 }
 0x3bb   : > { %v6501_v58 = vrot.slane %v6499_v59, 5  ;;  %v6505_v26 = vrot.slane %v6503_v8, 4  ;;  %v6511_v57 = vrot.slane %v6509_v36, 5  ;;  %v5726_v33 = vmul.f32 %v16266_v39, %v16155_v37  ;;  %13461 = vmatpush3.bf16.msra.mxu1 %v14502_v28  ;;  %v16399_v15 = vld [vmem:[%s18013_s4 + $0x80] sm:$0xff]  }
 0x3bc   : > { %v6496_v50 = vor.u32 %v6495_v41, %v6492_v17  ;;  %13425 = vmatmul.mubr.bf16.gmra.mrb[4].mxu1 %v11891_v12  ;;  %v5764_v7 = vadd.f32 %v16160_v9, %v5725_v10  ;;  %v5724_v23 = vmul.f32 %v16155_v37, %v16275_v48  ;;  %v6514_v52 = vshrl.u32 %v16363_v1, 16  ;;  %13462 = vmatprep.subr.bf16.mxu1 %v14503_v19  ;;  %v6308_v17 = vld [vmem:[#allocation2 + $0xa8] sm:$0xf] }
 0x3bd   : > { %v6506_v31 = vor.u32 %v6505_v26, %v6501_v58  ;;  %v5762_v16 = vadd.f32 %v16160_v9, %v5723_v5  ;;  %v5765_v39 = vadd.f32 %v16160_v9, %v5726_v33  ;;  %v6517_v42 = vshll.u32 %v16363_v1, 16 }
 0x3be   : > { %v6497_v44 = vrot.slane %v6496_v50, 4  ;;  %v5796_v47 = vmax.f32 %v5764_v7, 0.0  ;;  %v5763_v37 = vadd.f32 %v16160_v9, %v5724_v23  ;;  %v6516_v48 = vrot.slane %v6514_v52, 4  ;;  %v14505_v9 = vld [vmem:[%s18013_s4 + $0x38] sm:$0xff]  }
 0x3bf   : > { %v6507_v63 = vrot.slane %v6506_v31, 4  ;;  %v5794_v46 = vmax.f32 %v5762_v16, 0.0  ;;  %v5797_v27 = vmax.f32 %v5765_v39, 0.0  ;;  %v6519_v60 = vrot.slane %v6517_v42, 5  ;;  %13463 = vmatpush3.bf16.msra.mxu1 %v14503_v19  ;;  %v6301_v50 = vld [vmem:[#allocation2 + $0x9c] sm:$0xf] }
 0x3c0   : > { %v6502_v13 = vsel %vm14880_vm11, %v6497_v44, %v6501_v58  ;;  %v12328_v28 = vpack.c.bf16 %v5796_v47, %v5796_v47  ;;  %v5795_v53 = vmax.f32 %v5763_v37, 0.0  ;;  %v6523_v25 = vshll.u32 %v16382_v56, 16  ;;  %13464 = vmatprep.subr.bf16.mxu1 %v14504_v51  ;;  %v16405_v44 = vld [vmem:[#allocation2 + $0x48] sm:$0xf]  ;;  %v16409_v47 = vld [vmem:[#allocation2 + $0x4c] sm:$0xf] }
 0x3c1   : > { %v6512_v62 = vsel %vm14880_vm11, %v6507_v63, %v6511_v57  ;;  %v12326_v32 = vpack.c.bf16 %v5794_v46, %v5794_v46  ;;  %v12329_v18 = vpack.c.bf16 %v5797_v27, %v5797_v27  ;;  %v6520_v61 = vor.u32 %v6519_v60, %v6516_v48  ;;  %v6312_v57 = vld [vmem:[#allocation2 + $0xb0] sm:$0x1] }
 0x3c2   : > { %v11892_v38 = vcombine.low %v6502_v13, %v6512_v62  ;;  %v6120_v6 = vshrl.u32 %v12328_v28, 16  ;;  %v6123_v0 = vshll.u32 %v12328_v28, 16  ;;  %v12327_v55 = vpack.c.bf16 %v5795_v53, %v5795_v53  ;;  %v16411_v37 = vld [vmem:[#allocation2 + $0x50] sm:$0x1] }
 0x3c3   : > { %v16394_v49 = vrot.slane %v6523_v25, 5  ;;  %v6103_v40 = vshrl.u32 %v12326_v32, 16  ;;  %v6106_v14 = vshll.u32 %v12326_v32, 16  ;;  %v6128_v19 = vshrl.u32 %v12329_v18, 16  ;;  %13465 = vmatpush3.bf16.msra.mxu1 %v14504_v51  ;;  %v6305_v51 = vld [vmem:[#allocation2 + $0xa4] sm:$0x1] }
 0x3c4   : > { %13428 = vmatprep.mubr.bf16.mxu1 %v11892_v38  ;;  %v6131_v22 = vshll.u32 %v12329_v18, 16  ;;  %v6122_v30 = vrot.slane %v6120_v6, 7  ;;  %v6111_v59 = vshrl.u32 %v12327_v55, 16  ;;  %v6114_v8 = vshll.u32 %v12327_v55, 16  ;;  %13466 = vmatprep.subr.bf16.mxu1 %v14505_v9 }
 0x3c5   : > { %v6521_v21 = vrot.slane %v6520_v61, 4  ;;  %v6105_v41 = vrot.slane %v6103_v40, 7  ;;  %v6130_v36 = vrot.slane %v6128_v19, 7  ;;  %v6527_v12 = vshrl.u32 %v16382_v56, 16  ;;  %v14643_v61 = vld [vmem:[%s18011_s2] ss:$0 sm:$0xff] }
 0x3c6   : > { %v6533_v58 = vshll.u32 %v6382_v35, 16  ;;  %v6125_v26 = vor.u32 %v6123_v0, %v6122_v30  ;;  %v6126_v10 = vrot.slane %v6122_v30, 4  ;;  %v6113_v5 = vrot.slane %v6111_v59, 7  ;;  %v16435_v19 = vld [vmem:[#allocation2 + $0x54] sm:$0xf] }
 0x3c7   : > { %v6526_v33 = vsel %vm14880_vm11, %v6521_v21, %v16394_v49  ;;  %v6108_v31 = vor.u32 %v6106_v14, %v6105_v41  ;;  %v6109_v7 = vrot.slane %v6105_v41, 4  ;;  %v6133_v23 = vor.u32 %v6131_v22, %v6130_v36  ;;  %13467 = vmatpush3.bf16.msra.mxu1 %v14505_v9  ;;  %v14644_v30 = vld [vmem:[%s18012_s3] ss:$0 sm:$0xff] }
 0x3c8   : > { %v6135_v52 = vrot.slane %v6130_v36, 4  ;;  %v6309_v16 = vsel %vm14856_vm8, %v6125_v26, %v6308_v17  ;;  %v6116_v39 = vor.u32 %v6114_v8, %v6113_v5  ;;  %v6118_v42 = vrot.slane %v6113_v5, 4  ;;  %13500 = vmatprep.subr.bf16.mxu1 %v16399_v15 }
 0x3c9   : > { %v6529_v63 = vrot.slane %v6527_v12, 4  ;;  %6310 = vst [vmem:[#allocation2 + $0xa8] sm:$0xf] %v6309_v16  ;;  %v6302_v48 = vsel %vm14856_vm8, %v6108_v31, %v6301_v50  ;;  %v6134_v13 = vsel %vm14865_vm10, %v6126_v10, %v6133_v23  ;;  %v6535_v27 = vrot.slane %v6533_v58, 5 }
 0x3ca   : > { %v6313_v46 = vsel %vm14822_vm3, %v6135_v52, %v6312_v57  ;;  %6303 = vst [vmem:[#allocation2 + $0x9c] sm:$0xf] %v6302_v48  ;;  %6311 = vst [vmem:[#allocation2 + $0xac] sm:$0xf] %v6134_v13  ;;  %v6117_v60 = vsel %vm14865_vm10, %v6109_v7, %v6116_v39  ;;  %v6306_v62 = vsel %vm14822_vm3, %v6118_v42, %v6305_v51  ;;  %v6538_v53 = vshrl.u32 %v16405_v44, 16 }
 0x3cb   : > { %6314 = vst [vmem:[#allocation2 + $0xb0] sm:$0x1] %v6313_v46  ;;  %v6530_v28 = vor.u32 %v6529_v63, %v16394_v49  ;;  %6304 = vst [vmem:[#allocation2 + $0xa0] sm:$0xf] %v6117_v60  ;;  %v6541_v25 = vshll.u32 %v16405_v44, 16  ;;  %v6547_v9 = vshll.u32 %v16409_v47, 16  ;;  %v5729_v6 = vmul.f32 %v14643_v61, %v16289_v24 }
 0x3cc   : > { %6307 = vst [vmem:[#allocation2 + $0xa4] sm:$0x1] %v6306_v62  ;;  %v6551_v38 = vshrl.u32 %v16409_v47, 16  ;;  %v6557_v32 = vshll.u32 %v16411_v37, 16  ;;  %v6540_v35 = vrot.slane %v6538_v53, 4  ;;  %v5727_v0 = vmul.f32 %v14643_v61, %v16291_v43 }
 0x3cd   : > { %v6531_v18 = vrot.slane %v6530_v28, 4  ;;  %v6543_v55 = vrot.slane %v6541_v25, 5  ;;  %v6549_v49 = vrot.slane %v6547_v9, 5  ;;  %v5768_v59 = vadd.f32 %v14644_v30, %v5729_v6  ;;  %v16450_v51 = vld [vmem:[#allocation2 + $0x58] sm:$0xf] }
 0x3ce   : > { %v6553_v40 = vrot.slane %v6551_v38, 4  ;;  %v6559_v14 = vrot.slane %v6557_v32, 5  ;;  %v5766_v8 = vadd.f32 %v14644_v30, %v5727_v0  ;;  %v5730_v21 = vmul.f32 %v14643_v61, %v16293_v2  ;;  %v6322_v13 = vld [vmem:[#allocation2 + $0xc0] sm:$0xf]  ;;  %v16454_v6 = vld [vmem:[#allocation2 + $0x5c] sm:$0x1] }
 0x3cf   : > { %v6536_v22 = vsel %vm14880_vm11, %v6531_v18, %v6535_v27  ;;  %v6544_v17 = vor.u32 %v6543_v55, %v6540_v35  ;;  %v5728_v41 = vmul.f32 %v14643_v61, %v16295_v34  ;;  %v5800_v36 = vmax.f32 %v5768_v59, 0.0  ;;  %v6315_v27 = vld [vmem:[#allocation2 + $0xb4] sm:$0xf] }
 0x3d0   : > { %v11893_v24 = vcombine.low %v6526_v33, %v6536_v22  ;;  %v6554_v43 = vor.u32 %v6553_v40, %v6549_v49  ;;  %v5798_v12 = vmax.f32 %v5766_v8, 0.0  ;;  %v5769_v58 = vadd.f32 %v14644_v30, %v5730_v21  ;;  %v16456_v21 = vld [vmem:[#allocation2 + $0x60] sm:$0xf] }
 0x3d1   : > { %v6562_v26 = vshrl.u32 %v16435_v19, 16  ;;  %v6545_v10 = vrot.slane %v6544_v17, 4  ;;  %v5767_v57 = vadd.f32 %v14644_v30, %v5728_v41  ;;  %v6565_v5 = vshll.u32 %v16435_v19, 16 }
 0x3d2   : > { %13429 = vmatmul.mubr.bf16.gmra.mrb[8].mxu1 %v11893_v24  ;;  %v6555_v50 = vrot.slane %v6554_v43, 4  ;;  %v12332_v31 = vpack.c.bf16 %v5800_v36, %v5800_v36  ;;  %v12330_v7 = vpack.c.bf16 %v5798_v12, %v5798_v12  ;;  %v5801_v23 = vmax.f32 %v5769_v58, 0.0  ;;  %v6319_v43 = vld [vmem:[#allocation2 + $0xbc] sm:$0x1]  ;;  %v16463_v12 = vld [vmem:[#allocation2 + $0x64] sm:$0xf] }
 0x3d3   : > { %v6564_v2 = vrot.slane %v6562_v26, 4  ;;  %v6550_v33 = vsel %vm14880_vm11, %v6545_v10, %v6549_v49  ;;  %v5799_v52 = vmax.f32 %v5767_v57, 0.0  ;;  %v6567_v16 = vrot.slane %v6565_v5, 5  ;;  %v16465_v57 = vld [vmem:[#allocation2 + $0x68] sm:$0x1] }
 0x3d4   : > { %v6560_v34 = vsel %vm14880_vm11, %v6555_v50, %v6559_v14  ;;  %v6154_v42 = vshrl.u32 %v12332_v31, 16  ;;  %v6157_v63 = vshll.u32 %v12332_v31, 16  ;;  %v6137_v48 = vshrl.u32 %v12330_v7, 16  ;;  %v6326_v14 = vld [vmem:[#allocation2 + $0xc8] sm:$0x1] }
 0x3d5   : > { %v11894_v39 = vcombine.low %v6550_v33, %v6560_v34  ;;  %v6140_v46 = vshll.u32 %v12330_v7, 16  ;;  %v12333_v60 = vpack.c.bf16 %v5801_v23, %v5801_v23  ;;  %v12331_v62 = vpack.c.bf16 %v5799_v52, %v5799_v52  ;;  %v16467_v5 = vld [vmem:[#allocation2 + $0x6c] sm:$0xf] }
 0x3d6   : > { %v6568_v28 = vor.u32 %v6567_v16, %v6564_v2  ;;  %v6156_v53 = vrot.slane %v6154_v42, 7  ;;  %v6139_v25 = vrot.slane %v6137_v48, 7  ;;  %v6571_v9 = vshll.u32 %v16450_v51, 16  ;;  %v16472_v2 = vld [vmem:[#allocation2 + $0x70] sm:$0xf] }
 0x3d7   : > { %13432 = vmatprep.mubr.bf16.mxu1 %v11894_v39  ;;  %v6575_v38 = vshrl.u32 %v16450_v51, 16  ;;  %v6162_v32 = vshrl.u32 %v12333_v60, 16  ;;  %v6165_v18 = vshll.u32 %v12333_v60, 16  ;;  %v6145_v35 = vshrl.u32 %v12331_v62, 16  ;;  %v16490_v60 = vld [vmem:[#allocation2 + $0x7c] sm:$0xf] }
 0x3d8   : > { %v6148_v61 = vshll.u32 %v12331_v62, 16  ;;  %v6159_v0 = vor.u32 %v6157_v63, %v6156_v53  ;;  %v6160_v55 = vrot.slane %v6156_v53, 4  ;;  %v6142_v49 = vor.u32 %v6140_v46, %v6139_v25 }
 0x3d9   : > { %v6143_v40 = vrot.slane %v6139_v25, 4  ;;  %v6164_v22 = vrot.slane %v6162_v32, 7  ;;  %v6147_v30 = vrot.slane %v6145_v35, 7  ;;  %v6569_v59 = vrot.slane %v6568_v28, 4  ;;  %v16494_v25 = vld [vmem:[#allocation2 + $0x74] sm:$0x1] }
 0x3da   : > { %v6573_v8 = vrot.slane %v6571_v9, 5  ;;  %v6323_v24 = vsel %vm14856_vm8, %v6159_v0, %v6322_v13  ;;  %v6316_v17 = vsel %vm14856_vm8, %v6142_v49, %v6315_v27  ;;  %v6577_v41 = vrot.slane %v6575_v38, 4  ;;  %v16484_v13 = vld [vmem:[#allocation2 + $0x78] sm:$0xf] }
 0x3db   : > { %v6581_v36 = vshll.u32 %v16454_v6, 16  ;;  %6324 = vst [vmem:[#allocation2 + $0xc0] sm:$0xf] %v6323_v24  ;;  %6317 = vst [vmem:[#allocation2 + $0xb4] sm:$0xf] %v6316_v17  ;;  %v6167_v58 = vor.u32 %v6165_v18, %v6164_v22  ;;  %v6169_v26 = vrot.slane %v6164_v22, 4  ;;  %v6150_v10 = vor.u32 %v6148_v61, %v6147_v30 }
 0x3dc   : > { %v6152_v50 = vrot.slane %v6147_v30, 4  ;;  %v6574_v45 = vsel %vm14880_vm11, %v6569_v59, %v6573_v8  ;;  %v6578_v31 = vor.u32 %v6577_v41, %v6573_v8  ;;  %v6586_v23 = vshrl.u32 %v16456_v21, 16  ;;  %v16499_v22 = vld [vmem:[#allocation2 + $0x80] sm:$0x1] }
 0x3dd   : > { %v6583_v7 = vrot.slane %v6581_v36, 5  ;;  %v6168_v33 = vsel %vm14865_vm10, %v6160_v55, %v6167_v58  ;;  %v6327_v34 = vsel %vm14822_vm3, %v6169_v26, %v6326_v14  ;;  %v6151_v52 = vsel %vm14865_vm10, %v6143_v40, %v6150_v10  ;;  %v16504_v10 = vld [vmem:[#allocation2 + $0x84] sm:$0xf] }
 0x3de   : > { %v6320_v16 = vsel %vm14822_vm3, %v6152_v50, %v6319_v43  ;;  %6325 = vst [vmem:[#allocation2 + $0xc4] sm:$0xf] %v6168_v33  ;;  %6328 = vst [vmem:[#allocation2 + $0xc8] sm:$0x1] %v6327_v34  ;;  %v6579_v39 = vrot.slane %v6578_v31, 4  ;;  %v6588_v42 = vrot.slane %v6586_v23, 4 }
 0x3df   : > { %6318 = vst [vmem:[#allocation2 + $0xb8] sm:$0xf] %v6151_v52  ;;  %6321 = vst [vmem:[#allocation2 + $0xbc] sm:$0x1] %v6320_v16  ;;  %v6589_v63 = vshll.u32 %v16456_v21, 16  ;;  %v6595_v48 = vshll.u32 %v16463_v12, 16 }
 0x3e0   : > { %v6599_v46 = vshrl.u32 %v16463_v12, 16  ;;  %v6605_v4 = vshll.u32 %v16465_v57, 16  ;;  %v6610_v27 = vshrl.u32 %v16467_v5, 16  ;;  %v6613_v20 = vshll.u32 %v16467_v5, 16  ;;  %v16512_v16 = vld [vmem:[#allocation2 + $0x88] sm:$0xf] }
 0x3e1   : > { %v6584_v62 = vsel %vm14880_vm11, %v6579_v39, %v6583_v7  ;;  %v6591_v28 = vrot.slane %v6589_v63, 5  ;;  %v6597_v53 = vrot.slane %v6595_v48, 5  ;;  %v6619_v9 = vshll.u32 %v16472_v2, 16 }
 0x3e2   : > { %v11895_v38 = vcombine.low %v6574_v45, %v6584_v62  ;;  %v6601_v32 = vrot.slane %v6599_v46, 4  ;;  %v6607_v18 = vrot.slane %v6605_v4, 5  ;;  %v6612_v35 = vrot.slane %v6610_v27, 4  ;;  %v16517_v46 = vld [vmem:[#allocation2 + $0x90] sm:$0xf] }
 0x3e3   : > { %v6592_v61 = vor.u32 %v6591_v28, %v6588_v42  ;;  %v6615_v0 = vrot.slane %v6613_v20, 5  ;;  %v6621_v55 = vrot.slane %v6619_v9, 5  ;;  %v6623_v49 = vshrl.u32 %v16472_v2, 16  ;;  %v16519_v62 = vld [vmem:[#allocation2 + $0x8c] sm:$0x1] }
 0x3e4   : > { %13433 = vmatmul.mubr.bf16.gmra.mrb[12].mxu1 %v11895_v38  ;;  %v6602_v40 = vor.u32 %v6601_v32, %v6597_v53  ;;  %v6629_v14 = vshll.u32 %v16494_v25, 16  ;;  %v6634_v30 = vshrl.u32 %v16484_v13, 16  ;;  %v6637_v59 = vshll.u32 %v16484_v13, 16 }
 0x3e5   : > { %v6593_v8 = vrot.slane %v6592_v61, 4  ;;  %v6616_v24 = vor.u32 %v6615_v0, %v6612_v35  ;;  %v6625_v17 = vrot.slane %v6623_v49, 4  ;;  %v6643_v43 = vshll.u32 %v16490_v60, 16 }
 0x3e6   : > { %v6603_v41 = vrot.slane %v6602_v40, 4  ;;  %v6631_v36 = vrot.slane %v6629_v14, 5  ;;  %v6636_v58 = vrot.slane %v6634_v30, 4  ;;  %v6639_v26 = vrot.slane %v6637_v59, 5  ;;  %v16531_v30 = vld [vmem:[#allocation2 + $0x98] sm:$0x1] }
 0x3e7   : > { %v6598_v50 = vsel %vm14880_vm11, %v6593_v8, %v6597_v53  ;;  %v6617_v45 = vrot.slane %v6616_v24, 4  ;;  %v6626_v31 = vor.u32 %v6625_v17, %v6621_v55  ;;  %v6645_v7 = vrot.slane %v6643_v43, 5 }
 0x3e8   : > { %v6608_v23 = vsel %vm14880_vm11, %v6603_v41, %v6607_v18  ;;  %v6640_v33 = vor.u32 %v6639_v26, %v6636_v58  ;;  %v6647_v34 = vshrl.u32 %v16490_v60, 16  ;;  %v6653_v52 = vshll.u32 %v16499_v22, 16  ;;  %v16526_v18 = vld [vmem:[#allocation2 + $0x94] sm:$0xf]  ;;  %v16536_v41 = vld [vmem:[#allocation2 + $0x9c] sm:$0xf] }
 0x3e9   : > { %v11896_v39 = vcombine.low %v6598_v50, %v6608_v23  ;;  %v6622_v42 = vsel %vm14880_vm11, %v6617_v45, %v6621_v55  ;;  %v6627_v63 = vrot.slane %v6626_v31, 4  ;;  %v6658_v48 = vshrl.u32 %v16504_v10, 16  ;;  %v16539_v45 = vld [vmem:[#allocation2 + $0xa0] sm:$0xf] }
 0x3ea   : > { %v6641_v4 = vrot.slane %v6640_v33, 4  ;;  %v6649_v27 = vrot.slane %v6647_v34, 4  ;;  %v6655_v20 = vrot.slane %v6653_v52, 5  ;;  %v6661_v28 = vshll.u32 %v16504_v10, 16  ;;  %v16543_v34 = vld [vmem:[#allocation2 + $0xa4] sm:$0x1] }
 0x3eb   : > { %13436 = vmatprep.mubr.bf16.mxu1 %v11896_v39  ;;  %v6632_v53 = vsel %vm14880_vm11, %v6627_v63, %v6631_v36  ;;  %v6660_v9 = vrot.slane %v6658_v48, 4  ;;  %v6667_v38 = vshll.u32 %v16512_v16, 16  ;;  %v6671_v32 = vshrl.u32 %v16512_v16, 16  ;;  %v16546_v48 = vld [vmem:[#allocation2 + $0xa8] sm:$0xf] }
 0x3ec   : > { %v11897_v35 = vcombine.low %v6622_v42, %v6632_v53  ;;  %v6646_v61 = vsel %vm14880_vm11, %v6641_v4, %v6645_v7  ;;  %v6650_v0 = vor.u32 %v6649_v27, %v6645_v7  ;;  %v6663_v55 = vrot.slane %v6661_v28, 5 }
 0x3ed   : > { %v6669_v49 = vrot.slane %v6667_v38, 5  ;;  %v6673_v40 = vrot.slane %v6671_v32, 4  ;;  %v6677_v14 = vshll.u32 %v16519_v62, 16  ;;  %v6682_v59 = vshrl.u32 %v16517_v46, 16 }
 0x3ee   : > { %13437 = vmatmul.mubr.bf16.gmra.mrb[16].mxu1 %v11897_v35  ;;  %v6651_v8 = vrot.slane %v6650_v0, 4  ;;  %v6664_v24 = vor.u32 %v6663_v55, %v6660_v9  ;;  %v6685_v17 = vshll.u32 %v16517_v46, 16  ;;  %v6691_v43 = vshll.u32 %v16526_v18, 16  ;;  %v16555_v35 = vld [vmem:[#allocation2 + $0xac] sm:$0xf] }
 0x3ef   : > { %v6674_v36 = vor.u32 %v6673_v40, %v6669_v49  ;;  %v6679_v58 = vrot.slane %v6677_v14, 5  ;;  %v6684_v26 = vrot.slane %v6682_v59, 4  ;;  %v6695_v50 = vshrl.u32 %v16526_v18, 16 }
 0x3f0   : > { %v6656_v31 = vsel %vm14880_vm11, %v6651_v8, %v6655_v20  ;;  %v6665_v7 = vrot.slane %v6664_v24, 4  ;;  %v6687_v23 = vrot.slane %v6685_v17, 5  ;;  %v6693_v33 = vrot.slane %v6691_v43, 5  ;;  %v16561_v17 = vld [vmem:[#allocation2 + $0xb4] sm:$0xf] }
 0x3f1   : > { %v11898_v52 = vcombine.low %v6646_v61, %v6656_v31  ;;  %v6675_v39 = vrot.slane %v6674_v36, 4  ;;  %v6697_v42 = vrot.slane %v6695_v50, 4  ;;  %v6701_v63 = vshll.u32 %v16531_v30, 16  ;;  %v16567_v50 = vld [vmem:[#allocation2 + $0xb8] sm:$0xf] }
 0x3f2   : > { %v6670_v4 = vsel %vm14880_vm11, %v6665_v7, %v6669_v49  ;;  %v6688_v27 = vor.u32 %v6687_v23, %v6684_v26  ;;  %v6706_v28 = vshrl.u32 %v16536_v41, 16  ;;  %v6709_v20 = vshll.u32 %v16536_v41, 16  ;;  %v16557_v49 = vld [vmem:[#allocation2 + $0xb0] sm:$0x1] }
 0x3f3   : > { %13440 = vmatprep.mubr.bf16.mxu1 %v11898_v52  ;;  %v6680_v53 = vsel %vm14880_vm11, %v6675_v39, %v6679_v58  ;;  %v6698_v9 = vor.u32 %v6697_v42, %v6693_v33  ;;  %v6703_v38 = vrot.slane %v6701_v63, 5  ;;  %v6715_v32 = vshll.u32 %v16539_v45, 16 }
 0x3f4   : > { %v11899_v61 = vcombine.low %v6670_v4, %v6680_v53  ;;  %v6689_v0 = vrot.slane %v6688_v27, 4  ;;  %v6708_v55 = vrot.slane %v6706_v28, 4  ;;  %v6711_v40 = vrot.slane %v6709_v20, 5  ;;  %v16572_v27 = vld [vmem:[#allocation2 + $0xbc] sm:$0x1] }
 0x3f5   : > { %v6699_v14 = vrot.slane %v6698_v9, 4  ;;  %v6717_v59 = vrot.slane %v6715_v32, 5  ;;  %v6719_v8 = vshrl.u32 %v16539_v45, 16  ;;  %v6725_v24 = vshll.u32 %v16543_v34, 16 }
 0x3f6   : > { %13441 = vmatmul.mubr.bf16.gmra.mrb[20].mxu1 %v11899_v61  ;;  %v6694_v43 = vsel %vm14880_vm11, %v6689_v0, %v6693_v33  ;;  %v6712_v36 = vor.u32 %v6711_v40, %v6708_v55  ;;  %v6730_v58 = vshrl.u32 %v16546_v48, 16  ;;  %v6733_v26 = vshll.u32 %v16546_v48, 16 }
 0x3f7   : > { %v6704_v31 = vsel %vm14880_vm11, %v6699_v14, %v6703_v38  ;;  %v6721_v7 = vrot.slane %v6719_v8, 4  ;;  %v6727_v23 = vrot.slane %v6725_v24, 5  ;;  %v6739_v52 = vshll.u32 %v16555_v35, 16 }
 0x3f8   : > { %v11900_v39 = vcombine.low %v6694_v43, %v6704_v31  ;;  %v6713_v42 = vrot.slane %v6712_v36, 4  ;;  %v6732_v63 = vrot.slane %v6730_v58, 4  ;;  %v6735_v4 = vrot.slane %v6733_v26, 5 }
 0x3f9   : > { %v6722_v33 = vor.u32 %v6721_v7, %v6717_v59  ;;  %v6741_v28 = vrot.slane %v6739_v52, 5  ;;  %v6743_v20 = vshrl.u32 %v16555_v35, 16  ;;  %v6749_v53 = vshll.u32 %v16557_v49, 16 }
 0x3fa   : > { %13444 = vmatprep.mubr.bf16.mxu1 %v11900_v39  ;;  %v6736_v9 = vor.u32 %v6735_v4, %v6732_v63  ;;  %v6754_v38 = vshrl.u32 %v16561_v17, 16  ;;  %v6757_v32 = vshll.u32 %v16561_v17, 16  ;;  %v6718_v61 = vsel %vm14880_vm11, %v6713_v42, %v6717_v59 }
 0x3fb   : > { %v6723_v0 = vrot.slane %v6722_v33, 4  ;;  %v6745_v55 = vrot.slane %v6743_v20, 4  ;;  %v6763_v40 = vshll.u32 %v16567_v50, 16  ;;  %v6767_v43 = vshrl.u32 %v16567_v50, 16 }
 0x3fc   : > { %v6737_v14 = vrot.slane %v6736_v9, 4  ;;  %v6756_v8 = vrot.slane %v6754_v38, 4  ;;  %v6759_v24 = vrot.slane %v6757_v32, 5  ;;  %v6773_v31 = vshll.u32 %v16572_v27, 16 }
 0x3fd   : > { %v6728_v36 = vsel %vm14880_vm11, %v6723_v0, %v6727_v23  ;;  %v6746_v58 = vor.u32 %v6745_v55, %v6741_v28  ;;  %v6765_v26 = vrot.slane %v6763_v40, 5  ;;  %v6769_v39 = vrot.slane %v6767_v43, 4 }
 0x3fe   : > { %v11901_v7 = vcombine.low %v6718_v61, %v6728_v36  ;;  %v6760_v52 = vor.u32 %v6759_v24, %v6756_v8  ;;  %v6751_v42 = vrot.slane %v6749_v53, 5  ;;  %v6742_v33 = vsel %vm14880_vm11, %v6737_v14, %v6741_v28  ;;  %v14645_v36 = vld [vmem:[#allocation2] sm:$0xf] }
 0x3ff   : > { %v6747_v59 = vrot.slane %v6746_v58, 4  ;;  %v6770_v4 = vor.u32 %v6769_v39, %v6765_v26  ;;  %v6775_v9 = vrot.slane %v6773_v31, 5  ;;  %v11919_v61 = vcombine.low %v16435_v19, %v16450_v51  ;;  %v16609_v58 = vld [vmem:[#allocation2 + $0x4] sm:$0xf] }
 0x400   : > { %13445 = vmatmul.mubr.bf16.gmra.mrb[24].mxu1 %v11901_v7  ;;  %v6761_v63 = vrot.slane %v6760_v52, 4  ;;  %v11920_v53 = vcombine.low %v16456_v21, %v16463_v12  ;;  %v11921_v0 = vcombine.low %v16467_v5, %v16472_v2  ;;  %v11922_v28 = vcombine.low %v16484_v13, %v16490_v60  ;;  %v14647_v7 = vld [vmem:[#allocation2 + $0xc] sm:$0xf]  ;;  %v16614_v52 = vld [vmem:[#allocation2 + $0x10] sm:$0xf] }
 0x401   : > { %v6752_v20 = vsel %vm14880_vm11, %v6747_v59, %v6751_v42  ;;  %v6771_v32 = vrot.slane %v6770_v4, 4  ;;  %v11913_v39 = vcombine.low %v14647_v7, %v16614_v52  ;;  %v14511_v59 = vld [vmem:[%s18013_s4 + $0x88] sm:$0xff]   ;;  %v7379_v42 = vld [vmem:[#allocation2 + $0x54] sm:$0xe]  ;;  %v16620_v4 = vld [vmem:[#allocation2 + $0x1c] sm:$0xf]  ;;  %v18141_v19 = vcombine.low %v16504_v10, %v16512_v16 }
 0x402   : > { %v11902_v23 = vcombine.low %v6742_v33, %v6752_v20  ;;  %v6766_v38 = vsel %vm14880_vm11, %v6761_v63, %v6765_v26  ;;  %v11912_v26 = vcombine.low %v14645_v36, %v16609_v58  ;;  %v14649_v63 = vld [vmem:[#allocation2 + $0x18] sm:$0xf]  ;;  %v7380_v20 = vld [vmem:[#allocation2 + $0x60] sm:$0xe]  ;;  %v7481_v31 = vrot.slane %v16465_v57, 5 }
 0x403   : > { %v6776_v40 = vsel %vm14880_vm11, %v6771_v32, %v6775_v9  ;;  %v11914_v33 = vcombine.low %v14649_v63, %v16620_v4  ;;  %v7471_v9 = vrot.slane %v16450_v51, 5  ;;  %v7381_v32 = vld [vmem:[#allocation2 + $0x6c] sm:$0xe]  ;;  %v11944_v63 = vrot.slane %v7380_v20, 9 }
 0x404   : > { %13448 = vmatprep.mubr.bf16.mxu1 %v11902_v23  ;;  %v11903_v43 = vcombine.low %v6766_v38, %v6776_v40  ;;  %v11943_v23 = vrot.slane %v7379_v42, 9  ;;  %v7478_v38 = vrot.slane %v16463_v12, 5  ;;  %v14651_v40 = vld [vmem:[#allocation2 + $0x24] sm:$0xf]  ;;  %v7485_v20 = vrot.slane %v16472_v2, 5 }
 0x405   : > { %v7473_v7 = vrot.slane %v7471_v9, 4  ;;  %v18142_v51 = vcombine.low %v16517_v46, %v16526_v18  ;;  %v7422_v21 = vrot.slane %v16609_v58, 5  ;;  %v7372_v12 = vld [vmem:[#allocation2] sm:$0xe]  ;;  %v18143_v2 = vcombine.low %v16536_v41, %v16539_v45  ;;  %v7374_v58 = vld [vmem:[#allocation2 + $0x18] sm:$0xe] }
 0x406   : > { %v16637_v42 = vsel %vm15266_vm14, %v11943_v23, %v7471_v9  ;;  %v16646_v8 = vsel %vm15266_vm14, %v11944_v63, %v7478_v38  ;;  %v7488_v9 = vrot.slane %v16494_v25, 5  ;;  %v7492_v23 = vrot.slane %v16490_v60, 5  ;;  %v7384_v63 = vld [vmem:[#allocation2 + $0x90] sm:$0xe] }
 0x407   : > { %v7424_v5 = vrot.slane %v7422_v21, 4  ;;  %v18144_v13 = vcombine.low %v16546_v48, %v16555_v35  ;;  %v7436_v46 = vrot.slane %v16620_v4, 5  ;;  %v18145_v41 = vcombine.low %v16561_v17, %v16567_v50  ;;  %v14654_v48 = vld [vmem:[#allocation2 + $0x14] sm:$0x1] }
 0x408   : > { %13449 = vmatmul.mubr.bf16.gmra.mrb[28].mxu1 %v11903_v43  ;;  %v16626_v43 = vld [vmem:[#allocation2 + $0x28] sm:$0xf]  ;;  %v7494_v25 = vrot.slane %v7492_v23, 4  ;;  %v14656_v17 = vld [vmem:[#allocation2 + $0x34] sm:$0xf] }
 0x409   : > { %13468 = vmatprep.mubr.bf16.mxu1 %v11912_v26  ;;  %v11915_v36 = vcombine.low %v14651_v40, %v16626_v43  ;;  %v14514_v26 = vld [vmem:[%s18013_s4 + $0x90] sm:$0xff]   ;;  %v7382_v40 = vld [vmem:[#allocation2 + $0x78] sm:$0xe]  ;;  %v7443_v4 = vrot.slane %v16626_v43, 5  ;;  %v7375_v43 = vld [vmem:[#allocation2 + $0x24] sm:$0xe] }
 0x410   : > { %13469 = vmatmul.mubr.bf16.vlgmr.msra.gmra.mrb[0].mxu1 %v11913_v39  ;;  %v7474_v39 = vrot.slane %v16454_v6, 5  ;;  %v11945_v6 = vrot.slane %v7381_v32, 9 }
 0x411   : > { %13472 = vmatprep.mubr.bf16.mxu1 %v11914_v33  ;;  %13501 = vmatpush3.bf16.msra.mxu1 %v16399_v15  ;;  %v11916_v15 = vcombine.low %v16337_v29, %v16346_v11  ;;  %v7480_v33 = vrot.slane %v7478_v38, 4  ;;  %v7383_v29 = vld [vmem:[#allocation2 + $0x84] sm:$0xe]  ;;  %v14517_v38 = vld [vmem:[%s18013_s4 + $0x98] sm:$0xff]   ;;  %v7499_v11 = vrot.slane %v16512_v16, 5  ;;  %v7429_v16 = vrot.slane %v16614_v52, 5 }
 0x412   : > { %13502 = vmatprep.subr.bf16.mxu1 %v14511_v59  ;;  %v16642_v24 = vsel %vm15266_vm14, %v7473_v7, %v7474_v39  ;;  %v11946_v7 = vrot.slane %v7382_v40, 9  ;;  %v7495_v39 = vrot.slane %v16499_v22, 5  ;;  %v7502_v22 = vrot.slane %v16519_v62, 5  ;;  %v14520_v62 = vld [vmem:[%s18013_s4 + $0xa0] sm:$0xff]  }
 0x413   : > { %v16653_v57 = vsel %vm15266_vm14, %v7480_v33, %v7481_v31  ;;  %v16665_v31 = vsel %vm15266_vm14, %v11945_v6, %v7485_v20  ;;  %v11947_v33 = vrot.slane %v7383_v29, 9  ;;  %v7506_v40 = vrot.slane %v16526_v18, 5 }
 0x414   : > { %v16674_v32 = vsel %vm15266_vm14, %v11946_v7, %v7492_v23  ;;  %v11948_v29 = vrot.slane %v7384_v63, 9  ;;  %v11917_v23 = vcombine.low %v16363_v1, %v16382_v56  ;;  %v7386_v7 = vld [vmem:[#allocation2 + $0xa8] sm:$0xe]  ;;  %v7513_v56 = vrot.slane %v16539_v45, 5  ;;  %v7373_v45 = vld [vmem:[#allocation2 + $0xc] sm:$0xe] }
 0x415   : > { %13503 = vmatpush3.bf16.msra.mxu1 %v14511_v59  ;;  %v7487_v59 = vrot.slane %v7485_v20, 4  ;;  %v7501_v20 = vrot.slane %v7499_v11, 4  ;;  %v11918_v6 = vcombine.low %v16405_v44, %v16409_v47 }
 0x416   : > { %13504 = vmatprep.subr.bf16.mxu1 %v14514_v26  ;;  %v16702_v1 = vsel %vm15266_vm14, %v11948_v29, %v7506_v40  ;;  %v11950_v29 = vrot.slane %v7386_v7, 9 }
 0x417   : > { %v16670_v14 = vsel %vm15266_vm14, %v7487_v59, %v7488_v9  ;;  %v7385_v9 = vld [vmem:[#allocation2 + $0x9c] sm:$0xe]  ;;  %v7509_v59 = vrot.slane %v16531_v30, 5  ;;  %v16698_v63 = vsel %vm15266_vm14, %v7501_v20, %v7502_v22  ;;  %v7515_v20 = vrot.slane %v7513_v56, 4 }
 0x418   : > { %13473 = vmatmul.mubr.bf16.gmra.mrb[4].mxu1 %v11915_v36  ;;  %v16682_v36 = vsel %vm15266_vm14, %v7494_v25, %v7495_v39  ;;  %v16694_v39 = vsel %vm15266_vm14, %v11947_v33, %v7499_v11  ;;  %v7520_v11 = vrot.slane %v16555_v35, 5  ;;  %v7387_v33 = vld [vmem:[#allocation2 + $0xb4] sm:$0xe]  ;;  %v7432_v35 = vrot.slane %v14654_v48, 5  ;;  %v7377_v48 = vld [vmem:[#allocation2 + $0x3c] sm:$0xe] }
 0x419   : > { %13476 = vmatprep.mubr.bf16.mxu1 %v11916_v15  ;;  %13505 = vmatpush3.bf16.msra.mxu1 %v14514_v26  ;;  %v7508_v15 = vrot.slane %v7506_v40, 4  ;;  %v11949_v26 = vrot.slane %v7385_v9, 9  ;;  %v7516_v40 = vrot.slane %v16543_v34, 5  ;;  %v11951_v7 = vrot.slane %v7387_v33, 9 }
 0x41a   : > { %13506 = vmatprep.subr.bf16.mxu1 %v14517_v38  ;;  %v7522_v9 = vrot.slane %v7520_v11, 4  ;;  %v16732_v44 = vsel %vm15266_vm14, %v11950_v29, %v7520_v11  ;;  %v11937_v29 = vrot.slane %v7373_v45, 9 }
 0x41b   : > { %v16709_v30 = vsel %vm15266_vm14, %v7508_v15, %v7509_v59  ;;  %v14523_v15 = vld [vmem:[%s18013_s4 + $0xa8] sm:$0xff]   ;;  %v7523_v59 = vrot.slane %v16557_v49, 5  ;;  %v16724_v22 = vsel %vm15266_vm14, %v11949_v26, %v7513_v56  ;;  %v16728_v34 = vsel %vm15266_vm14, %v7515_v20, %v7516_v40  ;;  %v14655_v20 = vld [vmem:[#allocation2 + $0x20] sm:$0x1] }
 0x41c   : > { %v7530_v26 = vrot.slane %v16572_v27, 5  ;;  %v7439_v40 = vrot.slane %v14655_v20, 5  ;;  %v7378_v20 = vld [vmem:[#allocation2 + $0x48] sm:$0xe]  ;;  %v8280_v56 = vld [vmem:[#allocation2 + $0xac] sm:$0xf] }
 0x41d   : > { %13507 = vmatpush3.bf16.msra.mxu1 %v14517_v38  ;;  %v7527_v38 = vrot.slane %v16567_v50, 5  ;;  %v16738_v49 = vsel %vm15266_vm14, %v7522_v9, %v7523_v59  ;;  %v7450_v50 = vrot.slane %v14656_v17, 5  ;;  %v7430_v59 = vsel %vm15266_vm14, %v11937_v29, %v7429_v16  ;;  %v14534_v29 = vld [vmem:[%s18013_s4 + $0xe0] sm:$0xff]  }
 0x41e   : > { %13508 = vmatprep.subr.bf16.mxu1 %v14520_v62 }
 0x41f   : > { %v7529_v55 = vrot.slane %v7527_v38, 4  ;;  %v16748_v11 = vsel %vm15266_vm14, %v11951_v7, %v7527_v38 }
 0x420   : > { %13477 = vmatmul.mubr.bf16.gmra.mrb[8].mxu1 %v11917_v23  ;;  %v14526_v23 = vld [vmem:[%s18013_s4 + $0xb0] sm:$0xff]  }
 0x421   : > { %13480 = vmatprep.mubr.bf16.mxu1 %v11918_v6  ;;  %13509 = vmatpush3.bf16.msra.mxu1 %v14520_v62  ;;  %v16752_v33 = vsel %vm15266_vm14, %v7529_v55, %v7530_v26  ;;  %v14529_v6 = vld [vmem:[%s18013_s4 + $0xb8] sm:$0xff]   ;;  %v14530_v55 = vld [vmem:[%s18013_s4 + $0xc0] sm:$0xff]   ;;  %v11936_v62 = vrot.slane %v7372_v12, 9  ;;  %v14531_v26 = vld [vmem:[%s18013_s4 + $0xc8] sm:$0xff]  }
 0x422   : > { %13510 = vmatprep.subr.bf16.mxu1 %v14523_v15  ;;  %v7376_v12 = vld [vmem:[#allocation2 + $0x30] sm:$0xe] }
 0x423   : > { %v7423_v60 = vsel %vm15266_vm14, %v11936_v62, %v7422_v21  ;;  %v14532_v62 = vld [vmem:[%s18013_s4 + $0xd0] sm:$0xff]  }
 0x425   : > { %13511 = vmatpush3.bf16.msra.mxu1 %v14523_v15  ;;  %v11938_v15 = vrot.slane %v7374_v58, 9 }
 0x426   : > { %13512 = vmatprep.subr.bf16.mxu1 %v14526_v23 }
 0x427   : > { %v7437_v7 = vsel %vm15266_vm14, %v11938_v15, %v7436_v46  ;;  %v11942_v15 = vrot.slane %v7378_v20, 9  ;;  %v16890_v20 = vld [vmem:[#allocation2 + $0x64] sm:$0xf] }
 0x428   : > { %13481 = vmatmul.mubr.bf16.gmra.mrb[12].mxu1 %v11919_v61  ;;  %v14653_v61 = vld [vmem:[#allocation2 + $0x8] sm:$0x1] }
 0x429   : > { %13484 = vmatprep.mubr.bf16.mxu1 %v11920_v53  ;;  %13513 = vmatpush3.bf16.msra.mxu1 %v14526_v23  ;;  %v7425_v53 = vrot.slane %v14653_v61, 5  ;;  %v14658_v61 = vld [vmem:[#allocation2 + $0x38] sm:$0x1] }
 0x42a   : > { %13514 = vmatprep.subr.bf16.mxu1 %v14529_v6 }
 0x42b   : > { %v7426_v10 = vsel %vm15266_vm14, %v7424_v5, %v7425_v53  ;;  %v7453_v53 = vrot.slane %v14658_v61, 5  ;;  %v11939_v5 = vrot.slane %v7375_v43, 9  ;;  %v8996_v43 = vld [vmem:[#allocation2 + $0x24] sm:$0xe]  ;;  %v16855_v61 = vld [vmem:[#allocation2 + $0x44] sm:$0x1] }
 0x42c   : > { %v11968_v18 = vcombine.low %v7423_v60, %v7426_v10  ;;  %v11940_v10 = vrot.slane %v7376_v12, 9 }
 0x42d   : > { %13515 = vmatpush3.bf16.msra.mxu1 %v14529_v6  ;;  %v7445_v6 = vrot.slane %v7443_v4, 4 }
 0x42e   : > { %13548 = vmatprep.subr.bf16.mxu1 %v14530_v55 }
 0x430   : > { %13485 = vmatmul.mubr.bf16.gmra.mrb[16].mxu1 %v11921_v0  ;;  %v7431_v0 = vrot.slane %v7429_v16, 4  ;;  %v7464_v16 = vrot.slane %v16409_v47, 5  ;;  %v14660_v47 = vld [vmem:[#allocation2 + $0x44] sm:$0x1] }
 0x431   : > { %13488 = vmatprep.mubr.bf16.mxu1 %v11922_v28  ;;  %v7438_v28 = vrot.slane %v7436_v46, 4  ;;  %v7444_v46 = vsel %vm15266_vm14, %v11939_v5, %v7443_v4  ;;  %v7460_v58 = vrot.slane %v14660_v47, 5  ;;  %v18146_v5 = vcombine.low %v16637_v42, %v16642_v24  ;;  %v16874_v24 = vld [vmem:[%s18013_s4 + $0x100] sm:$0xff]   ;;  %v16876_v42 = vld [vmem:[#allocation2 + $0x5c] sm:$0x1] }
 0x432   : > { %v7433_v52 = vsel %vm15266_vm14, %v7431_v0, %v7432_v35  ;;  %v7451_v0 = vsel %vm15266_vm14, %v11940_v10, %v7450_v50  ;;  %v7466_v35 = vrot.slane %v7464_v16, 4 }
 0x433   : > { %v7440_v9 = vsel %vm15266_vm14, %v7438_v28, %v7439_v40  ;;  %v11969_v38 = vcombine.low %v7430_v59, %v7433_v52  ;;  %v7467_v40 = vrot.slane %v16411_v37, 5  ;;  %v11941_v52 = vrot.slane %v7377_v48, 9  ;;  %v14535_v59 = vld [vmem:[%s18013_s4 + $0xe8] sm:$0xff]  }
 0x434   : > { %v11970_v23 = vcombine.low %v7437_v7, %v7440_v9  ;;  %v7465_v37 = vsel %vm15266_vm14, %v11942_v15, %v7464_v16  ;;  %v14536_v7 = vld [vmem:[%s18013_s4 + $0xf0] sm:$0xff]   ;;  %v18147_v16 = vcombine.low %v16646_v8, %v16653_v57 }
 0x435   : > { %v7468_v9 = vsel %vm15266_vm14, %v7466_v35, %v7467_v40 }
 0x438   : > { %13489 = vmatmul.mubr.bf16.gmra.mrb[20].mxu1 %v18141_v19  ;;  %v7452_v19 = vrot.slane %v7450_v50, 4 }
 0x439   : > { %13492 = vmatprep.mubr.bf16.mxu1 %v18142_v51  ;;  %v14657_v51 = vld [vmem:[#allocation2 + $0x2c] sm:$0x1] }
 0x43a   : > { %v7446_v21 = vrot.slane %v14657_v51, 5  ;;  %v16850_v51 = vld [vmem:[#allocation2 + $0x38] sm:$0x1] }
 0x440   : > { %13493 = vmatmul.mubr.bf16.gmra.mrb[24].mxu1 %v18143_v2  ;;  %v7447_v2 = vsel %vm15266_vm14, %v7445_v6, %v7446_v21  ;;  %v16845_v6 = vld [vmem:[#allocation2 + $0x34] sm:$0xf]  ;;  %v16852_v21 = vld [vmem:[#allocation2 + $0x40] sm:$0xf] }
 0x441   : > { %13496 = vmatprep.mubr.bf16.mxu1 %v18144_v13  ;;  %v14659_v13 = vld [vmem:[#allocation2 + $0x40] sm:$0xf]  ;;  %v9088_v47 = vrot.slane %v16852_v21, 5 }
 0x442   : > { %v7457_v60 = vrot.slane %v14659_v13, 5  ;;  %v12074_v13 = vrot.slane %v8996_v43, 9 }
 0x444   : > { %v7459_v28 = vrot.slane %v7457_v60, 4  ;;  %v7458_v17 = vsel %vm15266_vm14, %v11941_v52, %v7457_v60 }
 0x446   : > { %v7461_v4 = vsel %vm15266_vm14, %v7459_v28, %v7460_v58  ;;  %v9000_v58 = vld [vmem:[#allocation2 + $0x54] sm:$0xe] }
 0x447   : > { %v11973_v50 = vcombine.low %v7458_v17, %v7461_v4  ;;  %v9090_v17 = vrot.slane %v9088_v47, 4  ;;  %v12078_v43 = vrot.slane %v9000_v58, 9 }
 0x448   : > { %13497 = vmatmul.mubr.bf16.gmra.mrb[28].mxu1 %v18145_v41  ;;  %v14533_v41 = vld [vmem:[%s18013_s4 + $0xd8] sm:$0xff]  }
 0x449   : > { %13516 = vmatprep.mubr.bf16.mxu1 %v11968_v18  ;;  %v11971_v18 = vcombine.low %v7444_v46, %v7447_v2  ;;  %v16862_v2 = vld [vmem:[#allocation2 + $0x50] sm:$0x1]  ;;  %v16868_v46 = vld [vmem:[#allocation2 + $0x58] sm:$0xf] }
 0x450   : > { %13517 = vmatmul.mubr.bf16.vlgmr.msra.gmra.mrb[0].mxu1 %v11969_v38  ;;  %v11974_v38 = vcombine.low %v7465_v37, %v7468_v9  ;;  %v9001_v37 = vld [vmem:[#allocation2 + $0x60] sm:$0xe] }
 0x451   : > { %13520 = vmatprep.mubr.bf16.mxu1 %v11970_v23  ;;  %13549 = vmatpush3.bf16.msra.mxu1 %v14530_v55  ;;  %v7454_v55 = vsel %vm15266_vm14, %v7452_v19, %v7453_v53  ;;  %v16843_v23 = vld [vmem:[#allocation2 + $0x2c] sm:$0x1]  ;;  %v14537_v19 = vld [vmem:[%s18013_s4 + $0xf8] sm:$0xff]  }
 0x452   : > { %13550 = vmatprep.subr.bf16.mxu1 %v14531_v26  ;;  %v11972_v45 = vcombine.low %v7451_v0, %v7454_v55  ;;  %v16857_v53 = vld [vmem:[#allocation2 + $0x4c] sm:$0xf]  ;;  %v9077_v10 = vrot.slane %v16843_v23, 5  ;;  %v8998_v55 = vld [vmem:[#allocation2 + $0x3c] sm:$0xe] }
 0x453   : > { %v8999_v0 = vld [vmem:[#allocation2 + $0x48] sm:$0xe]  ;;  %v12076_v35 = vrot.slane %v8998_v55, 9  ;;  %v9095_v4 = vrot.slane %v16857_v53, 5  ;;  %v18150_v55 = vcombine.low %v16665_v31, %v16670_v14  ;;  %v16941_v14 = vld [vmem:[#allocation2 + $0x80] sm:$0x1] }
 0x454   : > { %v12077_v52 = vrot.slane %v8999_v0, 9 }
 0x455   : > { %13551 = vmatpush3.bf16.msra.mxu1 %v14531_v26  ;;  %v16841_v26 = vld [vmem:[#allocation2 + $0x28] sm:$0xf]  ;;  %v16904_v9 = vsel %vm15266_vm14, %v12076_v35, %v9088_v47  ;;  %v18152_v35 = vcombine.low %v16674_v32, %v16682_v36  ;;  %v16939_v47 = vld [vmem:[#allocation2 + $0x74] sm:$0x1] }
 0x456   : > { %13552 = vmatprep.subr.bf16.mxu1 %v14532_v62  ;;  %v9074_v12 = vrot.slane %v16841_v26, 5  ;;  %v9119_v31 = vrot.slane %v16939_v47, 5 }
 0x458   : > { %13521 = vmatmul.mubr.bf16.gmra.mrb[4].mxu1 %v11971_v18  ;;  %v9076_v60 = vrot.slane %v9074_v12, 4  ;;  %v9081_v18 = vrot.slane %v16845_v6, 5 }
 0x459   : > { %13524 = vmatprep.mubr.bf16.mxu1 %v11972_v45  ;;  %13553 = vmatpush3.bf16.msra.mxu1 %v14532_v62  ;;  %v8997_v62 = vld [vmem:[#allocation2 + $0x30] sm:$0xe]  ;;  %v9084_v45 = vrot.slane %v16850_v51, 5 }
 0x45a   : > { %13554 = vmatprep.subr.bf16.mxu1 %v14533_v41  ;;  %v16884_v8 = vsel %vm15266_vm14, %v9076_v60, %v9077_v10  ;;  %v12075_v57 = vrot.slane %v8997_v62, 9  ;;  %v9083_v48 = vrot.slane %v9081_v18, 4  ;;  %v9109_v60 = vrot.slane %v16890_v20, 5  ;;  %v9002_v10 = vld [vmem:[#allocation2 + $0x6c] sm:$0xe] }
 0x45c   : > { %v16894_v40 = vsel %vm15266_vm14, %v12075_v57, %v9081_v18  ;;  %v16900_v15 = vsel %vm15266_vm14, %v9083_v48, %v9084_v45  ;;  %v12079_v45 = vrot.slane %v9001_v37, 9  ;;  %v9003_v48 = vld [vmem:[#allocation2 + $0x78] sm:$0xe]  ;;  %v16979_v18 = vld [vmem:[#allocation2 + $0xa0] sm:$0xf] }
 0x45d   : > { %13555 = vmatpush3.bf16.msra.mxu1 %v14533_v41  ;;  %v16880_v41 = vsel %vm15266_vm14, %v12074_v13, %v9074_v12  ;;  %v16913_v12 = vld [vmem:[#allocation2 + $0x70] sm:$0xf]  ;;  %v9105_v13 = vrot.slane %v16876_v42, 5 }
 0x45e   : > { %13556 = vmatprep.subr.bf16.mxu1 %v14534_v29  ;;  %v16960_v36 = vsel %vm15266_vm14, %v12079_v45, %v9109_v60  ;;  %v9116_v37 = vrot.slane %v16913_v12, 5 }
 0x45f   : > { %18155 = vst [vmem:[#allocation8_spill] sm:$0xff] %v16960_v36  ;;  %v9006_v36 = vld [vmem:[#allocation2 + $0x9c] sm:$0xe] }
 0x460   : > { %13525 = vmatmul.mubr.bf16.gmra.mrb[8].mxu1 %v11973_v50  ;;  %v9098_v50 = vrot.slane %v16862_v2, 5  ;;  %v9118_v45 = vrot.slane %v9116_v37, 4 }
 0x461   : > { %13528 = vmatprep.mubr.bf16.mxu1 %v11974_v38  ;;  %13557 = vmatpush3.bf16.msra.mxu1 %v14534_v29  ;;  %v9091_v29 = vrot.slane %v16855_v61, 5 }
 0x462   : > { %13558 = vmatprep.subr.bf16.mxu1 %v14535_v59 }
 0x463   : > { %v16917_v62 = vsel %vm15266_vm14, %v9090_v17, %v9091_v29  ;;  %v9111_v29 = vrot.slane %v9109_v60, 4  ;;  %v16952_v17 = vld [vmem:[#allocation2 + $0x94] sm:$0xf]  ;;  %v8278_v60 = vld [vmem:[#allocation2 + $0xa4] sm:$0x1] }
 0x464   : > { %18148 = vst [vmem:[#allocation12_spill] sm:$0xff] %v16917_v62  ;;  %v9137_v27 = vrot.slane %v16952_v17, 5  ;;  %v9901_v62 = vld [vmem:[#allocation2 + $0x74] sm:$0x1] }
 0x465   : > { %13559 = vmatpush3.bf16.msra.mxu1 %v14535_v59  ;;  %v16908_v59 = vld [vmem:[#allocation2 + $0x68] sm:$0x1] }
 0x466   : > { %13560 = vmatprep.subr.bf16.mxu1 %v14536_v7 }
 0x468   : > { %13529 = vmatmul.mubr.bf16.gmra.mrb[12].mxu1 %v18146_v5  ;;  %v16921_v5 = vsel %vm15266_vm14, %v12077_v52, %v9095_v4  ;;  %v9112_v52 = vrot.slane %v16908_v59, 5 }
 0x469   : > { %13532 = vmatprep.mubr.bf16.mxu1 %v18147_v16  ;;  %13561 = vmatpush3.bf16.msra.mxu1 %v14536_v7  ;;  %v9097_v7 = vrot.slane %v9095_v4, 4  ;;  %18149 = vst [vmem:[#allocation13_spill] sm:$0xff] %v16921_v5  ;;  %v16928_v16 = vld [vmem:[#allocation2 + $0x7c] sm:$0xf]  ;;  %v16950_v4 = vld [vmem:[#allocation2 + $0x88] sm:$0xf] }
 0x46a   : > { %13562 = vmatprep.subr.bf16.mxu1 %v14537_v19  ;;  %v9130_v38 = vrot.slane %v16950_v4, 5  ;;  %v10639_v5 = vld [vmem:[#allocation2 + $0x6c] sm:$0xe] }
 0x46b   : > { %v16934_v0 = vsel %vm15266_vm14, %v9097_v7, %v9098_v50  ;;  %v12080_v50 = vrot.slane %v9002_v10, 9  ;;  %v16963_v7 = vld [vmem:[#allocation2 + $0x8c] sm:$0x1] }
 0x46c   : > { %18151 = vst [vmem:[#allocation7_spill] sm:$0xff] %v16934_v0  ;;  %v9133_v28 = vrot.slane %v16963_v7, 5  ;;  %v9132_v25 = vrot.slane %v9130_v38, 4  ;;  %v9007_v0 = vld [vmem:[#allocation2 + $0xa8] sm:$0xe] }
 0x46d   : > { %13563 = vmatpush3.bf16.msra.mxu1 %v14537_v19  ;;  %v9102_v19 = vrot.slane %v16868_v46, 5  ;;  %v16976_v10 = vsel %vm15266_vm14, %v12080_v50, %v9116_v37  ;;  %v16989_v50 = vsel %vm15266_vm14, %v9118_v45, %v9119_v31  ;;  %v18161_v31 = vcombine.low %v16694_v39, %v16698_v63  ;;  %v8287_v45 = vld [vmem:[#allocation2 + $0xc8] sm:$0x1] }
 0x46e   : > { %13596 = vmatprep.subr.bf16.mxu1 %v16874_v24  ;;  %18157 = vst [vmem:[#allocation6_spill] sm:$0xff] %v16976_v10  ;;  %18159 = vst [vmem:[#allocation15_spill] sm:$0xff] %v16989_v50  ;;  %v17015_v39 = vsel %vm15266_vm14, %v9132_v25, %v9133_v28  ;;  %v17095_v25 = vld [vmem:[#allocation2 + $0x14] sm:$0x1]  ;;  %v14551_v50 = vld [vmem:[#allocation2 + $0x78] sm:$0xff]  }
 0x46f   : > { %v9104_v57 = vrot.slane %v9102_v19, 4  ;;  %v16947_v58 = vsel %vm15266_vm14, %v12078_v43, %v9102_v19  ;;  %v16969_v19 = vsel %vm15266_vm14, %v9111_v29, %v9112_v52  ;;  %v9005_v43 = vld [vmem:[#allocation2 + $0x90] sm:$0xe]  ;;  %v9126_v52 = vrot.slane %v16941_v14, 5  ;;  %18164 = vst [vmem:[#allocation18_spill] sm:$0xff] %v17015_v39 }
 0x470   : > { %13533 = vmatmul.mubr.bf16.gmra.mrb[16].mxu1 %v18150_v55  ;;  %18153 = vst [vmem:[#allocation10_spill] sm:$0xff] %v16947_v58  ;;  %18156 = vst [vmem:[#allocation9_spill] sm:$0xff] %v16969_v19  ;;  %v12081_v55 = vrot.slane %v9003_v48, 9  ;;  %v12083_v19 = vrot.slane %v9005_v43, 9  ;;  %v17295_v10 = vld [vmem:[#allocation2 + $0x64] sm:$0xf] }
 0x471   : > { %13536 = vmatprep.mubr.bf16.mxu1 %v18152_v35  ;;  %v16956_v32 = vsel %vm15266_vm14, %v9104_v57, %v9105_v13  ;;  %v9123_v13 = vrot.slane %v16928_v16, 5  ;;  %v9004_v57 = vld [vmem:[#allocation2 + $0x84] sm:$0xe]  ;;  %v8275_v35 = vld [vmem:[#allocation2 + $0x98] sm:$0x1]  ;;  %18193 = vst [vmem:[#allocation44_spill] sm:$0xff] %v17295_v10 }
 0x472   : > { %18154 = vst [vmem:[#allocation11_spill] sm:$0xff] %v16956_v32  ;;  %v12082_v37 = vrot.slane %v9004_v57, 9  ;;  %v8281_v57 = vld [vmem:[#allocation2 + $0xb0] sm:$0x1]  ;;  %v9139_v32 = vrot.slane %v9137_v27, 4  ;;  %v9140_v58 = vrot.slane %v8275_v35, 5  ;;  %v17019_v63 = vsel %vm15266_vm14, %v12083_v19, %v9137_v27 }
 0x473   : > { %v16983_v48 = vsel %vm15266_vm14, %v12081_v55, %v9123_v13  ;;  %v9125_v29 = vrot.slane %v9123_v13, 4  ;;  %v18162_v55 = vcombine.low %v16702_v1, %v16709_v30  ;;  %18165 = vst [vmem:[#allocation19_spill] sm:$0xff] %v17019_v63  ;;  %v9144_v35 = vrot.slane %v16979_v18, 5 }
 0x474   : > { %18158 = vst [vmem:[#allocation14_spill] sm:$0xff] %v16983_v48  ;;  %v17011_v43 = vsel %vm15266_vm14, %v12082_v37, %v9130_v38  ;;  %v17026_v30 = vsel %vm15266_vm14, %v9139_v32, %v9140_v58  ;;  %v12084_v38 = vrot.slane %v9006_v36, 9  ;;  %v9151_v37 = vrot.slane %v8280_v56, 5  ;;  %v9009_v58 = vld [vmem:[#allocation2 + $0xc0] sm:$0xe] }
 0x475   : > { %v16997_v13 = vsel %vm15266_vm14, %v9125_v29, %v9126_v52  ;;  %v17007_v29 = vld [vmem:[#allocation2 + $0xb8] sm:$0xf]  ;;  %v8284_v52 = vld [vmem:[#allocation2 + $0xbc] sm:$0x1]  ;;  %18163 = vst [vmem:[#allocation17_spill] sm:$0xff] %v17011_v43  ;;  %18166 = vst [vmem:[#allocation20_spill] sm:$0xff] %v17026_v30 }
 0x476   : > { %18160 = vst [vmem:[#allocation16_spill] sm:$0xff] %v16997_v13  ;;  %v9146_v28 = vrot.slane %v9144_v35, 4  ;;  %v9147_v27 = vrot.slane %v8278_v60, 5  ;;  %v12085_v19 = vrot.slane %v9007_v0, 9  ;;  %v17032_v13 = vsel %vm15266_vm14, %v12084_v38, %v9144_v35  ;;  %v8246_v0 = vld [vmem:[#allocation2 + $0x24] sm:$0xf] }
 0x477   : > { %18167 = vst [vmem:[#allocation21_spill] sm:$0xff] %v17032_v13  ;;  %v9153_v48 = vrot.slane %v9151_v37, 4  ;;  %v9154_v1 = vrot.slane %v8281_v57, 5  ;;  %v9158_v39 = vrot.slane %v17007_v29, 5  ;;  %v9161_v38 = vrot.slane %v8284_v52, 5 }
 0x478   : > { %13537 = vmatmul.mubr.bf16.gmra.mrb[20].mxu1 %v18161_v31  ;;  %v8286_v31 = vld [vmem:[#allocation2 + $0xc4] sm:$0xf]  ;;  %v17037_v56 = vsel %vm15266_vm14, %v9146_v28, %v9147_v27  ;;  %v17041_v32 = vsel %vm15266_vm14, %v12085_v19, %v9151_v37  ;;  %v12087_v28 = vrot.slane %v9009_v58, 9  ;;  %v9168_v30 = vrot.slane %v8287_v45, 5  ;;  %v8240_v58 = vld [vmem:[#allocation2 + $0xc] sm:$0xf] }
 0x479   : > { %13540 = vmatprep.mubr.bf16.mxu1 %v18162_v55  ;;  %v9008_v55 = vld [vmem:[#allocation2 + $0xb4] sm:$0xe]  ;;  %18168 = vst [vmem:[#allocation22_spill] sm:$0xff] %v17037_v56  ;;  %18169 = vst [vmem:[#allocation23_spill] sm:$0xff] %v17041_v32  ;;  %v9165_v60 = vrot.slane %v8286_v31, 5  ;;  %v17047_v35 = vsel %vm15266_vm14, %v9153_v48, %v9154_v1  ;;  %v9160_v57 = vrot.slane %v9158_v39, 4  ;;  %v18171_v37 = vcombine.low %v16724_v22, %v16728_v34 }
 0x47a   : > { %v12086_v36 = vrot.slane %v9008_v55, 9  ;;  %18170 = vst [vmem:[#allocation24_spill] sm:$0xff] %v17047_v35  ;;  %v18174_v52 = vcombine.low %v16732_v44, %v16738_v49  ;;  %v18177_v55 = vcombine.low %v16748_v11, %v16752_v33  ;;  %v14539_v44 = vld [vmem:[#allocation2 + $0x18] sm:$0xff]   ;;  %v14543_v49 = vld [vmem:[%s18013_s4 + $0x108] sm:$0xff]   ;;  %v8289_v11 = vshrl.u32 %v8240_v58, 16 }
 0x47b   : > { %v9167_v27 = vrot.slane %v9165_v60, 4  ;;  %v17060_v48 = vsel %vm15266_vm14, %v9160_v57, %v9161_v38  ;;  %v17069_v45 = vsel %vm15266_vm14, %v12087_v28, %v9165_v60  ;;  %v14541_v19 = vld [vmem:[#allocation2 + $0x24] sm:$0xff]   ;;  %v8292_v33 = vshll.u32 %v8240_v58, 16  ;;  %v14542_v60 = vld [vmem:[#allocation2 + $0x30] sm:$0xff]   ;;  %v14544_v57 = vld [vmem:[#allocation2 + $0x3c] sm:$0xff]  }
 0x47c   : > { %v17056_v31 = vsel %vm15266_vm14, %v12086_v36, %v9158_v39  ;;  %18173 = vst [vmem:[#allocation26_spill] sm:$0xff] %v17060_v48  ;;  %18175 = vst [vmem:[#allocation27_spill] sm:$0xff] %v17069_v45  ;;  %v14538_v39 = vld [vmem:[#allocation2 + $0xc] sm:$0xff]   ;;  %v14549_v38 = vld [vmem:[%s18013_s4 + $0x118] sm:$0xff]   ;;  %v8374_v63 = vshrl.u32 %v16845_v6, 16 }
 0x47d   : > { %18172 = vst [vmem:[#allocation25_spill] sm:$0xff] %v17056_v31  ;;  %v17073_v22 = vsel %vm15266_vm14, %v9167_v27, %v9168_v30  ;;  %v14546_v30 = vld [vmem:[%s18013_s4 + $0x110] sm:$0xff]   ;;  %v8252_v32 = vld [vmem:[#allocation2 + $0x3c] sm:$0xf] }
 0x47e   : > { %18176 = vst [vmem:[#allocation28_spill] sm:$0xff] %v17073_v22  ;;  %v8241_v36 = vld [vmem:[#allocation2 + $0x10] sm:$0xf]  ;;  %v8308_v22 = vshll.u32 %v17095_v25, 16 }
 0x47f   : > { %v8298_v28 = vshll.u32 %v8241_v36, 16  ;;  %v8302_v27 = vshrl.u32 %v8241_v36, 16  ;;  %v14545_v36 = vld [vmem:[#allocation2 + $0x48] sm:$0xff]   ;;  %v8249_v45 = vld [vmem:[#allocation2 + $0x30] sm:$0xf] }
 0x480   : > { %13541 = vmatmul.mubr.bf16.gmra.mrb[24].mxu1 %v18171_v37  ;;  %v8244_v37 = vld [vmem:[#allocation2 + $0x1c] sm:$0xf]  ;;  %v8310_v35 = vrot.slane %v8308_v22, 5  ;;  %v8370_v22 = vshll.u32 %v16845_v6, 16  ;;  %v8418_v6 = vshll.u32 %v16857_v53, 16 }
 0x481   : > { %13544 = vmatprep.mubr.bf16.mxu1 %v18174_v52  ;;  %v8291_v52 = vrot.slane %v8289_v11, 4  ;;  %v17093_v58 = vrot.slane %v8298_v28, 5  ;;  %v8304_v34 = vrot.slane %v8302_v27, 4  ;;  %v8326_v1 = vshrl.u32 %v8244_v37, 16  ;;  %v17100_v11 = vld [vmem:[#allocation2 + $0x20] sm:$0x1] }
 0x482   : > { %v14547_v28 = vld [vmem:[#allocation2 + $0x54] sm:$0xff]  }
 0x483   : > { %v8305_v27 = vor.u32 %v8304_v34, %v17093_v58  ;;  %v8337_v34 = vshrl.u32 %v8246_v0, 16 }
 0x485   : > { %v8306_v48 = vrot.slane %v8305_v27, 4 }
 0x488   : > { %13545 = vmatmul.mubr.bf16.gmra.mrb[28].mxu1 %v18177_v55  ;;  %v14552_v55 = vld [vmem:[%s18013_s4 + $0x120] sm:$0xff]  }
 0x489   : > { %13564 = vmatprep.mubr.bf16.mxu1 %v14538_v39  ;;  %v8294_v39 = vrot.slane %v8292_v33, 5 }
 0x490   : > { %13565 = vmatmul.mubr.bf16.vlgmr.msra.gmra.mrb[0].mxu1 %v14539_v44 }
 0x491   : > { %13568 = vmatprep.mubr.bf16.mxu1 %v14541_v19  ;;  %13597 = vmatpush3.bf16.msra.mxu1 %v16874_v24  ;;  %v8243_v24 = vld [vmem:[#allocation2 + $0x18] sm:$0xf]  ;;  %v8322_v19 = vshll.u32 %v8244_v37, 16  ;;  %v8328_v37 = vrot.slane %v8326_v1, 4  ;;  %v8332_v1 = vshll.u32 %v17100_v11, 16 }
 0x492   : > { %13598 = vmatprep.subr.bf16.mxu1 %v14543_v49  ;;  %v8313_v44 = vshrl.u32 %v8243_v24, 16 }
 0x493   : > { %v8334_v27 = vrot.slane %v8332_v1, 5  ;;  %v8388_v1 = vshll.u32 %v8252_v32, 16 }
 0x494   : > { %v8315_v33 = vrot.slane %v8313_v44, 4  ;;  %v14558_v44 = vld [vmem:[%s18013_s4 + $0x130] sm:$0xff]  }
 0x495   : > { %13599 = vmatpush3.bf16.msra.mxu1 %v14543_v49  ;;  %v8316_v49 = vshll.u32 %v8243_v24, 16  ;;  %v17102_v24 = vrot.slane %v8322_v19, 5  ;;  %v8340_v19 = vshll.u32 %v8246_v0, 16  ;;  %v14561_v0 = vld [vmem:[%s18013_s4 + $0x138] sm:$0xff]  }
 0x496   : > { %13600 = vmatprep.subr.bf16.mxu1 %v14546_v30 }
 0x498   : > { %13569 = vmatmul.mubr.bf16.gmra.mrb[4].mxu1 %v14542_v60  ;;  %v8295_v60 = vor.u32 %v8294_v39, %v8291_v52  ;;  %v8350_v52 = vshrl.u32 %v16841_v26, 16 }
 0x499   : > { %13572 = vmatprep.mubr.bf16.mxu1 %v14544_v57  ;;  %13601 = vmatpush3.bf16.msra.mxu1 %v14546_v30  ;;  %v14555_v30 = vld [vmem:[%s18013_s4 + $0x128] sm:$0xff]   ;;  %v8318_v57 = vrot.slane %v8316_v49, 5 }
 0x49a   : > { %13602 = vmatprep.subr.bf16.mxu1 %v14549_v38  ;;  %v8296_v39 = vrot.slane %v8295_v60, 4  ;;  %v8361_v60 = vshrl.u32 %v8249_v45, 16 }
 0x49b   : > { %v8319_v49 = vor.u32 %v8318_v57, %v8315_v33  ;;  %v14548_v33 = vld [vmem:[#allocation2 + $0x60] sm:$0xff]  }
 0x49c   : > { %v8301_v31 = vsel %vm14880_vm11, %v8296_v39, %v17093_v58  ;;  %v8356_v58 = vshll.u32 %v16843_v23, 16  ;;  %v8363_v39 = vrot.slane %v8361_v60, 4  ;;  %v17134_v23 = vld [vmem:[%s18013_s4 + $0x140] sm:$0xff]   ;;  %v8258_v60 = vld [vmem:[#allocation2 + $0x54] sm:$0xf] }
 0x49d   : > { %13603 = vmatpush3.bf16.msra.mxu1 %v14549_v38  ;;  %v8346_v38 = vshll.u32 %v16841_v26, 16  ;;  %v8329_v26 = vor.u32 %v8328_v37, %v17102_v24  ;;  %v8320_v57 = vrot.slane %v8319_v49, 4  ;;  %v8339_v37 = vrot.slane %v8337_v34, 4 }
 0x49e   : > { %13604 = vmatprep.subr.bf16.mxu1 %v14552_v55  ;;  %v8385_v49 = vshrl.u32 %v8252_v32, 16  ;;  %v8394_v34 = vshll.u32 %v16852_v21, 16 }
 0x49f   : > { %v8325_v32 = vsel %vm14880_vm11, %v8320_v57, %v17102_v24  ;;  %v17148_v24 = vrot.slane %v8418_v6, 5 }
 0x4a0   : > { %13573 = vmatmul.mubr.bf16.gmra.mrb[8].mxu1 %v14545_v36  ;;  %v17113_v36 = vrot.slane %v8346_v38, 5  ;;  %v8342_v38 = vrot.slane %v8340_v19, 5  ;;  %v17145_v43 = vrot.slane %v8394_v34, 5 }
 0x4a1   : > { %13576 = vmatprep.mubr.bf16.mxu1 %v14547_v28  ;;  %13605 = vmatpush3.bf16.msra.mxu1 %v14552_v55  ;;  %v8352_v55 = vrot.slane %v8350_v52, 4  ;;  %v8364_v28 = vshll.u32 %v8249_v45, 16  ;;  %v14550_v52 = vld [vmem:[#allocation2 + $0x6c] sm:$0xff]   ;;  %v8311_v45 = vsel %vm14880_vm11, %v8306_v48, %v8310_v35  ;;  %v8398_v35 = vshrl.u32 %v16852_v21, 16  ;;  %v8255_v48 = vld [vmem:[#allocation2 + $0x48] sm:$0xf] }
 0x4a2   : > { %13606 = vmatprep.subr.bf16.mxu1 %v14555_v30  ;;  %v17129_v19 = vcombine.low %v8301_v31, %v8311_v45  ;;  %v17143_v31 = vrot.slane %v8370_v22, 5  ;;  %v8412_v45 = vshll.u32 %v8255_v48, 16 }
 0x4a3   : > { %v8353_v56 = vor.u32 %v8352_v55, %v17113_v36  ;;  %v8366_v13 = vrot.slane %v8364_v28, 5 }
 0x4a4   : > { %v8414_v34 = vrot.slane %v8412_v45, 5 }
 0x4a5   : > { %13607 = vmatpush3.bf16.msra.mxu1 %v14555_v30  ;;  %v8330_v30 = vrot.slane %v8329_v26, 4  ;;  %v8343_v26 = vor.u32 %v8342_v38, %v8339_v37  ;;  %v8354_v55 = vrot.slane %v8353_v56, 4  ;;  %v8367_v28 = vor.u32 %v8366_v13, %v8363_v39 }
 0x4a6   : > { %13608 = vmatprep.subr.bf16.mxu1 %v14558_v44  ;;  %v8387_v37 = vrot.slane %v8385_v49, 4  ;;  %v8390_v38 = vrot.slane %v8388_v1, 5  ;;  %v8433_v56 = vshrl.u32 %v8258_v60, 16  ;;  %v8358_v13 = vrot.slane %v8356_v58, 5 }
 0x4a7   : > { %v8335_v21 = vsel %vm14880_vm11, %v8330_v30, %v8334_v27  ;;  %v8436_v27 = vshll.u32 %v8258_v60, 16  ;;  %v14553_v30 = vld [vmem:[#allocation2 + $0x84] sm:$0xff]   ;;  %v8344_v22 = vrot.slane %v8343_v26, 4  ;;  %v8380_v49 = vshll.u32 %v16850_v51, 16 }
 0x4a8   : > { %13577 = vmatmul.mubr.bf16.gmra.mrb[12].mxu1 %v14548_v33  ;;  %v8376_v33 = vrot.slane %v8374_v63, 4  ;;  %v8442_v63 = vshll.u32 %v16868_v46, 16  ;;  %v8391_v6 = vor.u32 %v8390_v38, %v8387_v37  ;;  %v8359_v58 = vsel %vm14880_vm11, %v8354_v55, %v8358_v13  ;;  %v14556_v13 = vld [vmem:[#allocation2 + $0x9c] sm:$0xff]  }
 0x4a9   : > { %13580 = vmatprep.mubr.bf16.mxu1 %v14550_v52  ;;  %13609 = vmatpush3.bf16.msra.mxu1 %v14558_v44  ;;  %v8422_v44 = vshrl.u32 %v16857_v53, 16  ;;  %v8409_v52 = vshrl.u32 %v8255_v48, 16  ;;  %v8400_v53 = vrot.slane %v8398_v35, 4  ;;  %v17154_v35 = vcombine.low %v8325_v32, %v8335_v21  ;;  %v8261_v21 = vld [vmem:[#allocation2 + $0x60] sm:$0xf] }
 0x4aa   : > { %13610 = vmatprep.subr.bf16.mxu1 %v14561_v0  ;;  %v8377_v39 = vor.u32 %v8376_v33, %v17143_v31  ;;  %v8368_v48 = vrot.slane %v8367_v28, 4  ;;  %v8349_v51 = vsel %vm14880_vm11, %v8344_v22, %v17113_v36  ;;  %v8404_v60 = vshll.u32 %v16855_v61, 16  ;;  %v14554_v36 = vld [vmem:[#allocation2 + $0x90] sm:$0xff]   ;;  %v8264_v22 = vld [vmem:[#allocation2 + $0x6c] sm:$0xf] }
 0x4ab   : > { %v8424_v57 = vrot.slane %v8422_v44, 4  ;;  %v8411_v1 = vrot.slane %v8409_v52, 4  ;;  %v8401_v44 = vor.u32 %v8400_v53, %v17145_v43  ;;  %v17164_v33 = vrot.slane %v8442_v63, 5 }
 0x4ac   : > { %v8378_v28 = vrot.slane %v8377_v39, 4  ;;  %v8382_v52 = vrot.slane %v8380_v49, 5  ;;  %v8428_v37 = vshll.u32 %v16862_v2, 16  ;;  %v17167_v55 = vcombine.low %v8349_v51, %v8359_v58 }
 0x4ad   : > { %13611 = vmatpush3.bf16.msra.mxu1 %v14561_v0  ;;  %v8446_v0 = vshrl.u32 %v16868_v46, 16  ;;  %v8425_v26 = vor.u32 %v8424_v57, %v17148_v24  ;;  %v8435_v46 = vrot.slane %v8433_v56, 4  ;;  %v8415_v45 = vor.u32 %v8414_v34, %v8411_v1 }
 0x4ae   : > { %13644 = vmatprep.subr.bf16.mxu1 %v17134_v23  ;;  %v8373_v38 = vsel %vm14880_vm11, %v8368_v48, %v17143_v31  ;;  %v8392_v53 = vrot.slane %v8391_v6, 4  ;;  %v8402_v57 = vrot.slane %v8401_v44, 4  ;;  %v8406_v63 = vrot.slane %v8404_v60, 5 }
 0x4af   : > { %v8448_v32 = vrot.slane %v8446_v0, 4  ;;  %v8426_v56 = vrot.slane %v8425_v26, 4  ;;  %v8466_v2 = vshll.u32 %v16890_v20, 16  ;;  %v8470_v39 = vshrl.u32 %v16890_v20, 16 }
 0x4b0   : > { %13581 = vmatmul.mubr.bf16.gmra.mrb[16].mxu1 %v14551_v50  ;;  %v8438_v50 = vrot.slane %v8436_v27, 5  ;;  %v8457_v27 = vshrl.u32 %v8261_v21, 16  ;;  %v8383_v31 = vsel %vm14880_vm11, %v8378_v28, %v8382_v52  ;;  %v8416_v49 = vrot.slane %v8415_v45, 4 }
 0x4b1   : > { %13584 = vmatprep.mubr.bf16.mxu1 %v14553_v30  ;;  %v8460_v30 = vshll.u32 %v8261_v21, 16  ;;  %v8449_v0 = vor.u32 %v8448_v32, %v17164_v33  ;;  %v8430_v1 = vrot.slane %v8428_v37, 5  ;;  %v8452_v34 = vshll.u32 %v16876_v42, 16  ;;  %v17191_v42 = vld [vmem:[#allocation2 + $0x78] sm:$0xf] }
 0x4b2   : > { %v8439_v61 = vor.u32 %v8438_v50, %v8435_v46  ;;  %v8397_v48 = vsel %vm14880_vm11, %v8392_v53, %v17145_v43  ;;  %v8407_v6 = vsel %vm14880_vm11, %v8402_v57, %v8406_v63  ;;  %v8481_v44 = vshrl.u32 %v8264_v22, 16  ;;  %v17200_v21 = vld [vmem:[#allocation2 + $0x1c] sm:$0xf]  ;;  %v17211_v53 = vld [vmem:[#allocation2 + $0x20] sm:$0x1] }
 0x4b3   : > { %v8484_v58 = vshll.u32 %v8264_v22, 16  ;;  %v8431_v20 = vsel %vm14880_vm11, %v8426_v56, %v8430_v1  ;;  %v17187_v46 = vrot.slane %v8457_v27, 4  ;;  %v17189_v50 = vrot.slane %v8460_v30, 5  ;;  %18178 = vst [vmem:[#allocation29_spill] sm:$0xff] %v17200_v21  ;;  %18179 = vst [vmem:[#allocation30_spill] sm:$0xff] %v17211_v53  ;;  %v14557_v30 = vld [vmem:[#allocation2 + $0xa8] sm:$0xff]  }
 0x4b4   : > { %v17185_v26 = vrot.slane %v8439_v61, 4  ;;  %v17193_v51 = vrot.slane %v8449_v0, 4  ;;  %v17195_v60 = vrot.slane %v8466_v2, 5  ;;  %v17197_v43 = vrot.slane %v8470_v39, 4  ;;  %v10632_v57 = vld [vmem:[#allocation2 + $0x18] sm:$0xe] }
 0x4b5   : > { %v8490_v32 = vshll.u32 %v16913_v12, 16  ;;  %v17202_v28 = vcombine.low %v8373_v38, %v8383_v31  ;;  %v17204_v52 = vcombine.low %v8397_v48, %v8407_v6  ;;  %v8421_v45 = vsel %vm14880_vm11, %v8416_v49, %v17148_v24  ;;  %v17220_v27 = vld [vmem:[#allocation2 + $0x28] sm:$0xf]  ;;  %v14559_v22 = vld [vmem:[#allocation2 + $0xb4] sm:$0xff]   ;;  %v10633_v2 = vld [vmem:[#allocation2 + $0x24] sm:$0xe] }
 0x4b6   : > { %v17209_v37 = vrot.slane %v8452_v34, 5  ;;  %v17215_v56 = vrot.slane %v8481_v44, 4  ;;  %v17217_v61 = vrot.slane %v8484_v58, 5  ;;  %v8494_v38 = vshrl.u32 %v16913_v12, 16  ;;  %18180 = vst [vmem:[#allocation31_spill] sm:$0xff] %v17220_v27 }
 0x4b7   : > { %v10698_v0 = vrot.slane %v17200_v21, 5  ;;  %v17236_v31 = vrot.slane %v8490_v32, 5  ;;  %v17239_v1 = vld [vmem:[#allocation2 + $0x2c] sm:$0x1]  ;;  %v17241_v34 = vld [vmem:[#allocation2 + $0x34] sm:$0xf] }
 0x4b8   : > { %13585 = vmatmul.mubr.bf16.gmra.mrb[20].mxu1 %v14554_v36  ;;  %v17213_v36 = vcombine.low %v8421_v45, %v8431_v20  ;;  %18181 = vst [vmem:[#allocation32_spill] sm:$0xff] %v17239_v1  ;;  %18182 = vst [vmem:[#allocation33_spill] sm:$0xff] %v17241_v34  ;;  %v17243_v48 = vld [vmem:[#allocation2 + $0x38] sm:$0x1]  ;;  %v17245_v6 = vld [vmem:[#allocation2 + $0x40] sm:$0xf] }
 0x4b9   : > { %13588 = vmatprep.mubr.bf16.mxu1 %v14556_v13  ;;  %18183 = vst [vmem:[#allocation34_spill] sm:$0xff] %v17243_v48  ;;  %18184 = vst [vmem:[#allocation35_spill] sm:$0xff] %v17245_v6  ;;  %v12208_v44 = vrot.slane %v10632_v57, 9  ;;  %v10700_v58 = vrot.slane %v10698_v0, 4  ;;  %v10701_v20 = vrot.slane %v17211_v53, 5  ;;  %v10705_v45 = vrot.slane %v17220_v27, 5 }
 0x4ba   : > { %v17251_v63 = vrot.slane %v8494_v38, 4  ;;  %v12209_v12 = vrot.slane %v10633_v2, 9  ;;  %v17254_v39 = vld [vmem:[#allocation2 + $0x4c] sm:$0xf]  ;;  %v10708_v13 = vrot.slane %v17239_v1, 5  ;;  %v10719_v38 = vrot.slane %v17245_v6, 5 }
 0x4bb   : > { %18185 = vst [vmem:[#allocation36_spill] sm:$0xff] %v17254_v39  ;;  %v17258_v57 = vsel %vm15266_vm14, %v12208_v44, %v10698_v0  ;;  %v17262_v49 = vsel %vm15266_vm14, %v10700_v58, %v10701_v20  ;;  %v10635_v32 = vld [vmem:[#allocation2 + $0x3c] sm:$0xe]  ;;  %v17267_v2 = vld [vmem:[#allocation2 + $0x44] sm:$0x1]  ;;  %v10712_v0 = vrot.slane %v17241_v34, 5 }
 0x4bc   : > { %18186 = vst [vmem:[#allocation37_spill] sm:$0xff] %v17258_v57  ;;  %18187 = vst [vmem:[#allocation38_spill] sm:$0xff] %v17262_v49  ;;  %v9892_v44 = vld [vmem:[#allocation2 + $0x50] sm:$0x1]  ;;  %v17274_v58 = vsel %vm15266_vm14, %v12209_v12, %v10705_v45  ;;  %v10636_v24 = vld [vmem:[#allocation2 + $0x48] sm:$0xe] }
 0x4bd   : > { %18188 = vst [vmem:[#allocation39_spill] sm:$0xff] %v17267_v2  ;;  %18189 = vst [vmem:[#allocation40_spill] sm:$0xff] %v17274_v58  ;;  %v14560_v27 = vld [vmem:[#allocation2 + $0xc0] sm:$0xff]   ;;  %v17281_v21 = vld [vmem:[#allocation2 + $0x58] sm:$0xf]  ;;  %v10714_v49 = vrot.slane %v10712_v0, 4 }
 0x4be   : > { %v10715_v57 = vrot.slane %v17243_v48, 5  ;;  %v12211_v34 = vrot.slane %v10635_v32, 9  ;;  %v10637_v6 = vld [vmem:[#allocation2 + $0x54] sm:$0xe]  ;;  %v12212_v12 = vrot.slane %v10636_v24, 9 }
 0x4bf   : > { %v10638_v58 = vld [vmem:[#allocation2 + $0x60] sm:$0xe]  ;;  %v9903_v24 = vld [vmem:[#allocation2 + $0x7c] sm:$0xf] }
 0x4c0   : > { %13589 = vmatmul.mubr.bf16.gmra.mrb[24].mxu1 %v14557_v30  ;;  %v10634_v30 = vld [vmem:[#allocation2 + $0x30] sm:$0xe]  ;;  %v17299_v53 = vsel %vm15266_vm14, %v10714_v49, %v10715_v57  ;;  %v17303_v32 = vsel %vm15266_vm14, %v12211_v34, %v10719_v38  ;;  %v10729_v49 = vrot.slane %v9892_v44, 5  ;;  %v10733_v57 = vrot.slane %v17281_v21, 5 }
 0x4c1   : > { %13592 = vmatprep.mubr.bf16.mxu1 %v14559_v22  ;;  %v10707_v22 = vrot.slane %v10705_v45, 4  ;;  %v12210_v1 = vrot.slane %v10634_v30, 9  ;;  %v17288_v45 = vld [vmem:[#allocation2 + $0x5c] sm:$0x1]  ;;  %v10721_v30 = vrot.slane %v10719_v38, 4  ;;  %18194 = vst [vmem:[#allocation45_spill] sm:$0xff] %v17299_v53 }
 0x4c2   : > { %18191 = vst [vmem:[#allocation42_spill] sm:$0xff] %v17288_v45  ;;  %18195 = vst [vmem:[#allocation46_spill] sm:$0xff] %v17303_v32  ;;  %v12213_v38 = vrot.slane %v10637_v6, 9  ;;  %v12214_v44 = vrot.slane %v10638_v58, 9  ;;  %v9904_v53 = vld [vmem:[#allocation2 + $0x80] sm:$0x1] }
 0x4c3   : > { %v17278_v20 = vsel %vm15266_vm14, %v10707_v22, %v10708_v13  ;;  %v17292_v13 = vsel %vm15266_vm14, %v12210_v1, %v10712_v0  ;;  %v10722_v22 = vrot.slane %v17267_v2, 5  ;;  %v9898_v1 = vld [vmem:[#allocation2 + $0x68] sm:$0x1]  ;;  %v17306_v0 = vld [vmem:[#allocation2 + $0x70] sm:$0xf] }
 0x4c4   : > { %18190 = vst [vmem:[#allocation41_spill] sm:$0xff] %v17278_v20  ;;  %18192 = vst [vmem:[#allocation43_spill] sm:$0xff] %v17292_v13  ;;  %v10726_v20 = vrot.slane %v17254_v39, 5  ;;  %v10736_v39 = vrot.slane %v17288_v45, 5  ;;  %v17330_v6 = vsel %vm15266_vm14, %v12213_v38, %v10733_v57  ;;  %v10743_v34 = vrot.slane %v9898_v1, 5  ;;  %v14563_v58 = vld [vmem:[%s18013_s4 + $0x148] sm:$0xff]  }
 0x4c5   : > { %18196 = vst [vmem:[#allocation47_spill] sm:$0xff] %v17306_v0  ;;  %v17312_v48 = vsel %vm15266_vm14, %v10721_v30, %v10722_v22  ;;  %v10735_v30 = vrot.slane %v10733_v57, 4  ;;  %v10740_v22 = vrot.slane %v17295_v10, 5  ;;  %18200 = vst [vmem:[#allocation51_spill] sm:$0xff] %v17330_v6  ;;  %v10640_v32 = vld [vmem:[#allocation2 + $0x78] sm:$0xe] }
 0x4c6   : > { %18197 = vst [vmem:[#allocation48_spill] sm:$0xff] %v17312_v48  ;;  %v17321_v2 = vsel %vm15266_vm14, %v12212_v12, %v10726_v20  ;;  %v10747_v48 = vrot.slane %v17306_v0, 5  ;;  %v9906_v13 = vld [vmem:[#allocation2 + $0x88] sm:$0xf]  ;;  %v10750_v0 = vrot.slane %v9901_v62, 5  ;;  %v10754_v57 = vrot.slane %v9903_v24, 5 }
 0x4c7   : > { %18198 = vst [vmem:[#allocation49_spill] sm:$0xff] %v17321_v2  ;;  %v17337_v12 = vsel %vm15266_vm14, %v10735_v30, %v10736_v39  ;;  %v10742_v45 = vrot.slane %v10740_v22, 4  ;;  %v17343_v1 = vsel %vm15266_vm14, %v12214_v44, %v10740_v22  ;;  %v10641_v10 = vld [vmem:[#allocation2 + $0x84] sm:$0xe]  ;;  %v12216_v30 = vrot.slane %v10640_v32, 9 }
 0x4c8   : > { %13593 = vmatmul.mubr.bf16.gmra.mrb[28].mxu1 %v14560_v27  ;;  %v10728_v27 = vrot.slane %v10726_v20, 4  ;;  %v9909_v20 = vld [vmem:[#allocation2 + $0x94] sm:$0xf]  ;;  %18201 = vst [vmem:[#allocation52_spill] sm:$0xff] %v17337_v12  ;;  %v10749_v38 = vrot.slane %v10747_v48, 4  ;;  %v10761_v2 = vrot.slane %v9906_v13, 5 }
 0x4c9   : > { %13612 = vmatprep.mubr.bf16.mxu1 %v17129_v19  ;;  %v17350_v39 = vsel %vm15266_vm14, %v10742_v45, %v10743_v34  ;;  %v10642_v12 = vld [vmem:[#allocation2 + $0x90] sm:$0xe]  ;;  %v9910_v44 = vld [vmem:[#allocation2 + $0x98] sm:$0x1]  ;;  %v9912_v22 = vld [vmem:[#allocation2 + $0xa0] sm:$0xf] }
 0x4ca   : > { %v17326_v19 = vsel %vm15266_vm14, %v10728_v27, %v10729_v49  ;;  %v12215_v49 = vrot.slane %v10639_v5, 9  ;;  %v9907_v27 = vld [vmem:[#allocation2 + $0x8c] sm:$0x1]  ;;  %18202 = vst [vmem:[#allocation53_spill] sm:$0xff] %v17350_v39  ;;  %v17360_v6 = vsel %vm15266_vm14, %v10749_v38, %v10750_v0  ;;  %v10756_v32 = vrot.slane %v10754_v57, 4  ;;  %v14564_v38 = vld [vmem:[%s18013_s4 + $0x150] sm:$0xff]  }
 0x4cb   : > { %18199 = vst [vmem:[#allocation50_spill] sm:$0xff] %v17326_v19  ;;  %18204 = vst [vmem:[#allocation55_spill] sm:$0xff] %v17360_v6  ;;  %v10757_v19 = vrot.slane %v9904_v53, 5  ;;  %v9915_v45 = vld [vmem:[#allocation2 + $0xac] sm:$0xf]  ;;  %v12217_v24 = vrot.slane %v10641_v10, 9  ;;  %v17369_v0 = vsel %vm15266_vm14, %v12216_v30, %v10754_v57 }
 0x4cc   : > { %v17354_v5 = vsel %vm15266_vm14, %v12215_v49, %v10747_v48  ;;  %v10764_v34 = vrot.slane %v9907_v27, 5  ;;  %v10643_v49 = vld [vmem:[#allocation2 + $0x9c] sm:$0xe]  ;;  %v9913_v62 = vld [vmem:[#allocation2 + $0xa4] sm:$0x1]  ;;  %v10763_v53 = vrot.slane %v10761_v2, 4 }
 0x4cd   : > { %18203 = vst [vmem:[#allocation54_spill] sm:$0xff] %v17354_v5  ;;  %v12218_v13 = vrot.slane %v10642_v12, 9  ;;  %v9916_v10 = vld [vmem:[#allocation2 + $0xb0] sm:$0x1]  ;;  %v17376_v27 = vsel %vm15266_vm14, %v10756_v32, %v10757_v19  ;;  %v10775_v57 = vrot.slane %v9912_v22, 5  ;;  %v12219_v6 = vrot.slane %v10643_v49, 9 }
 0x4ce   : > { %18205 = vst [vmem:[#allocation56_spill] sm:$0xff] %v17376_v27  ;;  %v9918_v30 = vld [vmem:[#allocation2 + $0xb8] sm:$0xf]  ;;  %v17386_v12 = vsel %vm15266_vm14, %v10763_v53, %v10764_v34  ;;  %v10644_v5 = vld [vmem:[#allocation2 + $0xa8] sm:$0xe]  ;;  %v18208_v19 = vshll.u32 %v16928_v16, 16 }
 0x4cf   : > { %18207 = vst [vmem:[#allocation58_spill] sm:$0xff] %v17386_v12  ;;  %v10778_v22 = vrot.slane %v9913_v62, 5  ;;  %v9919_v39 = vld [vmem:[#allocation2 + $0xbc] sm:$0x1]  ;;  %v17404_v53 = vsel %vm15266_vm14, %v12219_v6, %v10775_v57  ;;  %v18282_v3 = vld [vmem:[#allocation49_spill] sm:$0xff] }
 0x4d0   : > { %13613 = vmatmul.mubr.bf16.vlgmr.msra.gmra.mrb[0].mxu1 %v17154_v35  ;;  %v10768_v35 = vrot.slane %v9909_v20, 5  ;;  %v17390_v32 = vrot.slane %v18208_v19, 5  ;;  %v9921_v20 = vld [vmem:[#allocation2 + $0xc4] sm:$0xf]  ;;  %v10782_v19 = vrot.slane %v9915_v45, 5 }
 0x4d1   : > { %13616 = vmatprep.mubr.bf16.mxu1 %v17167_v55  ;;  %13645 = vmatpush3.bf16.msra.mxu1 %v17134_v23  ;;  %v17380_v23 = vsel %vm15266_vm14, %v12217_v24, %v10761_v2  ;;  %v10771_v55 = vrot.slane %v9910_v44, 5  ;;  %v10777_v44 = vrot.slane %v10775_v57, 4  ;;  %v10645_v24 = vld [vmem:[#allocation2 + $0xb4] sm:$0xe]  ;;  %v9922_v2 = vld [vmem:[#allocation2 + $0xc8] sm:$0x1] }
 0x4d2   : > { %13646 = vmatprep.subr.bf16.mxu1 %v14563_v58  ;;  %18206 = vst [vmem:[#allocation57_spill] sm:$0xff] %v17380_v23  ;;  %v10770_v48 = vrot.slane %v10768_v35, 4  ;;  %v17396_v34 = vsel %vm15266_vm14, %v12218_v13, %v10768_v35  ;;  %v12220_v35 = vrot.slane %v10644_v5, 9  ;;  %v10784_v45 = vrot.slane %v10782_v19, 4 }
 0x4d3   : > { %18209 = vst [vmem:[#allocation59_spill] sm:$0xff] %v17396_v34  ;;  %v17413_v13 = vsel %vm15266_vm14, %v10777_v44, %v10778_v22  ;;  %v10785_v57 = vrot.slane %v9916_v10, 5  ;;  %v12221_v12 = vrot.slane %v10645_v24, 9  ;;  %v18211_v23 = vshrl.u32 %v16928_v16, 16 }
 0x4d4   : > { %v17400_v49 = vsel %vm15266_vm14, %v10770_v48, %v10771_v55  ;;  %v10789_v48 = vrot.slane %v9918_v30, 5  ;;  %v10646_v55 = vld [vmem:[#allocation2 + $0xc0] sm:$0xe]  ;;  %v12251_v6 = vcombine.low %v17404_v53, %v17413_v13  ;;  %v10796_v34 = vrot.slane %v9921_v20, 5 }
 0x4d5   : > { %13647 = vmatpush3.bf16.msra.mxu1 %v14563_v58  ;;  %18210 = vst [vmem:[#allocation60_spill] sm:$0xff] %v17400_v49  ;;  %v14565_v58 = vld [vmem:[%s18013_s4 + $0x158] sm:$0xff]   ;;  %v8520_v27 = vrot.slane %v18211_v23, 4  ;;  %v10792_v49 = vrot.slane %v9919_v39, 5  ;;  %v17423_v5 = vsel %vm15266_vm14, %v12220_v35, %v10782_v19  ;;  %v17427_v30 = vsel %vm15266_vm14, %v10784_v45, %v10785_v57  ;;  %v14566_v39 = vld [vmem:[%s18013_s4 + $0x160] sm:$0xff]  }
 0x4d6   : > { %13648 = vmatprep.subr.bf16.mxu1 %v14564_v38  ;;  %v10791_v62 = vrot.slane %v10789_v48, 4  ;;  %v12222_v16 = vrot.slane %v10646_v55, 9  ;;  %v10798_v23 = vrot.slane %v10796_v34, 4  ;;  %v10799_v20 = vrot.slane %v9922_v2, 5  ;;  %v12367_v53 = vld [vmem:[%s14836_s22] sm:$0xff]  }
 0x4d7   : > { %v8500_v22 = vshll.u32 %v16939_v47, 16  ;;  %v18213_v24 = vshrl.u32 %v17191_v42, 16  ;;  %v8542_v55 = vshrl.u32 %v16950_v4, 16  ;;  %v18214_v47 = vshll.u32 %v17191_v42, 16 }
 0x4d8   : > { %13617 = vmatmul.mubr.bf16.gmra.mrb[4].mxu1 %v17202_v28  ;;  %v17431_v28 = vsel %vm15266_vm14, %v12221_v12, %v10789_v48  ;;  %v17440_v10 = vsel %vm15266_vm14, %v10791_v62, %v10792_v49  ;;  %v18212_v12 = vor.u32 %v17189_v50, %v17187_v46  ;;  %v8538_v48 = vshll.u32 %v16950_v4, 16 }
 0x4d9   : > { %13620 = vmatprep.mubr.bf16.mxu1 %v17204_v52  ;;  %13649 = vmatpush3.bf16.msra.mxu1 %v14564_v38  ;;  %v8270_v52 = vld [vmem:[#allocation2 + $0x84] sm:$0xf]  ;;  %v12252_v38 = vcombine.low %v17423_v5, %v17427_v30  ;;  %v8507_v19 = vrot.slane %v18213_v24, 4  ;;  %v12253_v35 = vcombine.low %v17431_v28, %v17440_v10  ;;  %v17454_v49 = vsel %vm15266_vm14, %v12222_v16, %v10796_v34 }
 0x4da   : > { %13650 = vmatprep.subr.bf16.mxu1 %v14565_v58  ;;  %v8464_v44 = vrot.slane %v18212_v12, 4  ;;  %v17458_v46 = vsel %vm15266_vm14, %v10798_v23, %v10799_v20  ;;  %v8510_v50 = vrot.slane %v18214_v47, 5  ;;  %v8529_v2 = vshrl.u32 %v8270_v52, 16 }
 0x4db   : > { %v8532_v62 = vshll.u32 %v8270_v52, 16  ;;  %v12254_v45 = vcombine.low %v17454_v49, %v17458_v46  ;;  %v18215_v4 = vor.u32 %v17197_v43, %v17195_v60  ;;  %v18216_v34 = vor.u32 %v17217_v61, %v17215_v56  ;;  %v14567_v52 = vld [vmem:[%s18013_s4 + $0x168] sm:$0xff]  }
 0x4dc   : > { %v18217_v23 = vor.u32 %v17251_v63, %v17236_v31  ;;  %v8521_v42 = vor.u32 %v8520_v27, %v17390_v32  ;;  %v18218_v43 = vsel %vm14880_vm11, %v17193_v51, %v17209_v37  ;;  %v18219_v56 = vsel %vm14880_vm11, %v17185_v26, %v17164_v33 }
 0x4dd   : > { %13651 = vmatpush3.bf16.msra.mxu1 %v14565_v58  ;;  %v8474_v57 = vrot.slane %v18215_v4, 4  ;;  %v8488_v16 = vrot.slane %v18216_v34, 4  ;;  %v12054_v61 = vcombine.low %v18219_v56, %v18218_v43  ;;  %v18220_v63 = vshll.u32 %v16908_v59, 16  ;;  %v8273_v4 = vld [vmem:[#allocation2 + $0x90] sm:$0xf]  ;;  %v14569_v56 = vld [vmem:[%s18013_s4 + $0x178] sm:$0xff]  }
 0x4de   : > { %v8498_v58 = vrot.slane %v18217_v23, 4  ;;  %13652 = vmatprep.subr.bf16.mxu1 %v14566_v39  ;;  %v8502_v27 = vrot.slane %v8500_v22, 5  ;;  %v8524_v12 = vshll.u32 %v16941_v14, 16  ;;  %v17491_v24 = vrot.slane %v8538_v48, 5 }
 0x4df   : > { %v8478_v20 = vrot.slane %v18220_v63, 5  ;;  %v8544_v47 = vrot.slane %v8542_v55, 4  ;;  %v8469_v51 = vsel %vm14880_vm11, %v8464_v44, %v17195_v60  ;;  %v8511_v37 = vor.u32 %v8510_v50, %v8507_v19  ;;  %v14568_v60 = vld [vmem:[%s18013_s4 + $0x170] sm:$0xff]   ;;  %v8276_v55 = vld [vmem:[#allocation2 + $0x9c] sm:$0xf] }
 0x4e0   : > { %13621 = vmatmul.mubr.bf16.gmra.mrb[8].mxu1 %v17213_v36  ;;  %v8531_v33 = vrot.slane %v8529_v2, 4  ;;  %v8534_v26 = vrot.slane %v8532_v62, 5  ;;  %v8493_v14 = vsel %vm14880_vm11, %v8488_v16, %v17236_v31  ;;  %v8503_v36 = vsel %vm14880_vm11, %v8498_v58, %v8502_v27 }
 0x4e1   : > { %13624 = vmatprep.mubr.bf16.mxu1 %v12054_v61  ;;  %13653 = vmatpush3.bf16.msra.mxu1 %v14566_v39  ;;  %v8479_v59 = vsel %vm14880_vm11, %v8474_v57, %v8478_v20  ;;  %v8522_v22 = vrot.slane %v8521_v42, 4  ;;  %v8553_v44 = vshrl.u32 %v8273_v4, 16  ;;  %v8556_v19 = vshll.u32 %v8273_v4, 16 }
 0x4e2   : > { %13654 = vmatprep.subr.bf16.mxu1 %v14567_v52  ;;  %v8562_v39 = vshll.u32 %v16952_v17, 16  ;;  %v8566_v48 = vshrl.u32 %v16952_v17, 16  ;;  %v8526_v50 = vrot.slane %v8524_v12, 5  ;;  %v8545_v2 = vor.u32 %v8544_v47, %v17491_v24 }
 0x4e3   : > { %v8586_v31 = vshll.u32 %v16979_v18, 16  ;;  %v8590_v62 = vshrl.u32 %v16979_v18, 16  ;;  %v12055_v57 = vcombine.low %v8469_v51, %v8479_v59  ;;  %v12056_v34 = vcombine.low %v8493_v14, %v8503_v36  ;;  %v17527_v59 = vld [vmem:[%s18013_s4 + $0x180] sm:$0xff]  }
 0x4e4   : > { %v8512_v16 = vrot.slane %v8511_v37, 4  ;;  %v8535_v23 = vor.u32 %v8534_v26, %v8531_v33  ;;  %v8527_v58 = vsel %vm14880_vm11, %v8522_v22, %v8526_v50  ;;  %v8548_v42 = vshll.u32 %v16963_v7, 16  ;;  %v8279_v26 = vld [vmem:[#allocation2 + $0xa8] sm:$0xf]  ;;  %v14661_v22 = vld [vmem:[#allocation2 + $0xac] sm:$0xf] }
 0x4e5   : > { %13655 = vmatpush3.bf16.msra.mxu1 %v14567_v52  ;;  %v8577_v43 = vshrl.u32 %v8276_v55, 16  ;;  %v8580_v17 = vshll.u32 %v8276_v55, 16  ;;  %v8555_v61 = vrot.slane %v8553_v44, 4  ;;  %v8558_v63 = vrot.slane %v8556_v19, 5 }
 0x4e6   : > { %13656 = vmatprep.subr.bf16.mxu1 %v14568_v60  ;;  %v17517_v18 = vrot.slane %v8562_v39, 5  ;;  %v8568_v20 = vrot.slane %v8566_v48, 4  ;;  %v8546_v27 = vrot.slane %v8545_v2, 4  ;;  %v17519_v52 = vrot.slane %v8586_v31, 5  ;;  %v14662_v2 = vld [vmem:[#allocation2 + $0x98] sm:$0x1] }
 0x4e7   : > { %v8592_v12 = vrot.slane %v8590_v62, 4  ;;  %v8517_v7 = vsel %vm14880_vm11, %v8512_v16, %v17390_v32  ;;  %v8536_v47 = vrot.slane %v8535_v23, 4  ;;  %v8550_v51 = vrot.slane %v8548_v42, 5  ;;  %v8282_v32 = vld [vmem:[#allocation2 + $0xb4] sm:$0xf] }
 0x4e8   : > { %13625 = vmatmul.mubr.bf16.gmra.mrb[12].mxu1 %v12055_v57  ;;  %v12057_v4 = vcombine.low %v8517_v7, %v8527_v58  ;;  %v8579_v37 = vrot.slane %v8577_v43, 4  ;;  %v8582_v33 = vrot.slane %v8580_v17, 5  ;;  %v8559_v14 = vor.u32 %v8558_v63, %v8555_v61  ;;  %v14663_v16 = vld [vmem:[#allocation2 + $0xa4] sm:$0x1] }
 0x4e9   : > { %13628 = vmatprep.mubr.bf16.mxu1 %v12056_v34  ;;  %13657 = vmatpush3.bf16.msra.mxu1 %v14568_v60  ;;  %v8569_v36 = vor.u32 %v8568_v20, %v17517_v18  ;;  %v8610_v44 = vshll.u32 %v14661_v22, 16  ;;  %v8614_v19 = vshrl.u32 %v14661_v22, 16  ;;  %v8551_v60 = vsel %vm14880_vm11, %v8546_v27, %v8550_v51 }
 0x4ea   : > { %13658 = vmatprep.subr.bf16.mxu1 %v14569_v56  ;;  %v8593_v39 = vor.u32 %v8592_v12, %v17519_v52  ;;  %v8634_v48 = vshll.u32 %v17007_v29, 16  ;;  %v8638_v55 = vshrl.u32 %v17007_v29, 16  ;;  %v8541_v50 = vsel %vm14880_vm11, %v8536_v47, %v17491_v24 }
 0x4eb   : > { %v8572_v31 = vshll.u32 %v14662_v2, 16  ;;  %v8601_v62 = vshrl.u32 %v8279_v26, 16  ;;  %v8604_v57 = vshll.u32 %v8279_v26, 16  ;;  %v8583_v34 = vor.u32 %v8582_v33, %v8579_v37  ;;  %v8285_v26 = vld [vmem:[#allocation2 + $0xc0] sm:$0xf] }
 0x4ec   : > { %v8596_v23 = vshll.u32 %v14663_v16, 16  ;;  %v8625_v58 = vshrl.u32 %v8282_v32, 16  ;;  %v8628_v42 = vshll.u32 %v8282_v32, 16  ;;  %v12058_v43 = vcombine.low %v8541_v50, %v8551_v60 }
 0x4ed   : > { %13659 = vmatpush3.bf16.msra.mxu1 %v14569_v56  ;;  %v8570_v17 = vrot.slane %v8569_v36, 4  ;;  %v8612_v61 = vrot.slane %v8610_v44, 5  ;;  %v8616_v29 = vrot.slane %v8614_v19, 4  ;;  %v8560_v63 = vrot.slane %v8559_v14, 4  ;;  %v14664_v44 = vld [vmem:[#allocation2 + $0xc4] sm:$0xf] }
 0x4ee   : > { %13692 = vmatprep.subr.bf16.mxu1 %v17527_v59  ;;  %v8594_v20 = vrot.slane %v8593_v39, 4  ;;  %v8636_v24 = vrot.slane %v8634_v48, 5  ;;  %v8640_v27 = vrot.slane %v8638_v55, 4  ;;  %v8574_v12 = vrot.slane %v8572_v31, 5  ;;  %v14665_v48 = vld [vmem:[#allocation2 + $0xb0] sm:$0x1] }
 0x4ef   : > { %v8603_v7 = vrot.slane %v8601_v62, 4  ;;  %v8606_v56 = vrot.slane %v8604_v57, 5  ;;  %v8584_v47 = vrot.slane %v8583_v34, 4  ;;  %v8598_v51 = vrot.slane %v8596_v23, 5  ;;  %v14666_v34 = vld [vmem:[#allocation2 + $0xbc] sm:$0x1] }
 0x4f0   : > { %13629 = vmatmul.mubr.bf16.gmra.mrb[16].mxu1 %v12057_v4  ;;  %v8627_v37 = vrot.slane %v8625_v58, 4  ;;  %v8630_v33 = vrot.slane %v8628_v42, 5  ;;  %v8575_v22 = vsel %vm14880_vm11, %v8570_v17, %v8574_v12  ;;  %v8617_v36 = vor.u32 %v8616_v29, %v8612_v61 }
 0x4f1   : > { %13632 = vmatprep.mubr.bf16.mxu1 %v12058_v43  ;;  %v8658_v19 = vshll.u32 %v14664_v44, 16  ;;  %v8662_v4 = vshrl.u32 %v14664_v44, 16  ;;  %v8565_v14 = vsel %vm14880_vm11, %v8560_v63, %v17517_v18  ;;  %v8599_v32 = vsel %vm14880_vm11, %v8594_v20, %v8598_v51 }
 0x4f2   : > { %v8641_v60 = vor.u32 %v8640_v27, %v8636_v24  ;;  %v8607_v39 = vor.u32 %v8606_v56, %v8603_v7  ;;  %v8620_v55 = vshll.u32 %v14665_v48, 16  ;;  %v8649_v50 = vshrl.u32 %v8285_v26, 16 }
 0x4f3   : > { %v8652_v2 = vshll.u32 %v8285_v26, 16  ;;  %v12059_v31 = vcombine.low %v8565_v14, %v8575_v22  ;;  %v8589_v62 = vsel %vm14880_vm11, %v8584_v47, %v17519_v52  ;;  %v8631_v57 = vor.u32 %v8630_v33, %v8627_v37  ;;  %v14667_v47 = vld [vmem:[#allocation2 + $0x10] sm:$0xf]  ;;  %v14668_v26 = vld [vmem:[#allocation2 + $0xc8] sm:$0x1] }
 0x4f4   : > { %v8644_v16 = vshll.u32 %v14666_v34, 16  ;;  %v12060_v23 = vcombine.low %v8589_v62, %v8599_v32  ;;  %v8618_v58 = vrot.slane %v8617_v36, 4  ;;  %v8660_v18 = vrot.slane %v8658_v19, 5 }
 0x4f5   : > { %v8664_v42 = vrot.slane %v8662_v4, 4  ;;  %v8642_v43 = vrot.slane %v8641_v60, 4  ;;  %v8608_v17 = vrot.slane %v8607_v39, 4  ;;  %v8622_v29 = vrot.slane %v8620_v55, 5  ;;  %v8994_v39 = vld [vmem:[#allocation2 + $0xc] sm:$0xe] }
 0x4f6   : > { %v8651_v63 = vrot.slane %v8649_v50, 4  ;;  %v8654_v20 = vrot.slane %v8652_v2, 5  ;;  %v8632_v27 = vrot.slane %v8631_v57, 4  ;;  %v8646_v12 = vrot.slane %v8644_v16, 5  ;;  %v14669_v55 = vld [vmem:[#allocation2 + $0x1c] sm:$0xf] }
 0x4f7   : > { %v8623_v7 = vsel %vm14880_vm11, %v8618_v58, %v8622_v29  ;;  %v8665_v52 = vor.u32 %v8664_v42, %v8660_v18  ;;  %v9060_v51 = vrot.slane %v14667_v47, 5  ;;  %v8613_v37 = vsel %vm14880_vm11, %v8608_v17, %v8612_v61  ;;  %v14577_v47 = vld [vmem:[%s18013_s4 + $0x1b8] sm:$0xff]  }
 0x4f8   : > { %13633 = vmatmul.mubr.bf16.gmra.mrb[20].mxu1 %v12059_v31  ;;  %v8647_v56 = vsel %vm14880_vm11, %v8642_v43, %v8646_v12  ;;  %v8655_v33 = vor.u32 %v8654_v20, %v8651_v63  ;;  %v8668_v22 = vshll.u32 %v14668_v26, 16  ;;  %v12061_v36 = vcombine.low %v8613_v37, %v8623_v7  ;;  %v14573_v63 = vld [vmem:[%s18013_s4 + $0x198] sm:$0xff]   ;;  %v18225_v12 = vld [vmem:[#allocation13_spill] sm:$0xff]  ;;  %v18226_v7 = vld [vmem:[#allocation7_spill] sm:$0xff] }
 0x4f9   : > { %13636 = vmatprep.mubr.bf16.mxu1 %v12060_v23  ;;  %v8637_v44 = vsel %vm14880_vm11, %v8632_v27, %v8636_v24  ;;  %v8666_v4 = vrot.slane %v8665_v52, 4  ;;  %v9062_v14 = vrot.slane %v9060_v51, 4  ;;  %v9063_v48 = vrot.slane %v17095_v25, 5  ;;  %v8995_v25 = vld [vmem:[#allocation2 + $0x18] sm:$0xe]  ;;  %v14575_v27 = vld [vmem:[%s18013_s4 + $0x1a8] sm:$0xff]  }
 0x4fa   : > { %v12062_v19 = vcombine.low %v8637_v44, %v8647_v56  ;;  %v8656_v32 = vrot.slane %v8655_v33, 4  ;;  %v8670_v60 = vrot.slane %v8668_v22, 5  ;;  %v9067_v50 = vrot.slane %v14669_v55, 5  ;;  %v18229_v52 = vld [vmem:[#allocation11_spill] sm:$0xff]  ;;  %v14576_v56 = vld [vmem:[%s18013_s4 + $0x1b0] sm:$0xff]   ;;  %v18234_v26 = vld [vmem:[#allocation6_spill] sm:$0xff] }
 0x4fb   : > { %v12072_v2 = vrot.slane %v8994_v39, 9  ;;  %v9064_v31 = vsel %vm15266_vm14, %v9062_v14, %v9063_v48  ;;  %v9070_v23 = vrot.slane %v17100_v11, 5  ;;  %v12073_v58 = vrot.slane %v8995_v25, 9  ;;  %v14572_v11 = vld [vmem:[%s18013_s4 + $0x190] sm:$0xff]   ;;  %v18235_v22 = vld [vmem:[#allocation15_spill] sm:$0xff] }
 0x4fc   : > { %v8671_v61 = vsel %vm14880_vm11, %v8666_v4, %v8670_v60  ;;  %v8661_v24 = vsel %vm14880_vm11, %v8656_v32, %v8660_v18  ;;  %v9069_v16 = vrot.slane %v9067_v50, 4  ;;  %v14571_v18 = vld [vmem:[%s18013_s4 + $0x188] sm:$0xff]   ;;  %v18221_v29 = vcombine.low %v16880_v41, %v16884_v8  ;;  %v18232_v37 = vld [vmem:[#allocation9_spill] sm:$0xff]  ;;  %v14580_v44 = vld [vmem:[%s18013_s4 + $0x1c0] sm:$0xff]  }
 0x4fd   : > { %v12063_v62 = vcombine.low %v8661_v24, %v8671_v61  ;;  %v9061_v57 = vsel %vm15266_vm14, %v12072_v2, %v9060_v51  ;;  %v9068_v43 = vsel %vm15266_vm14, %v12073_v58, %v9067_v50  ;;  %v18222_v20 = vcombine.low %v16894_v40, %v16900_v15  ;;  %v18223_v41 = vld [vmem:[#allocation12_spill] sm:$0xff]  ;;  %v18228_v15 = vld [vmem:[#allocation10_spill] sm:$0xff]  ;;  %v18240_v32 = vld [vmem:[#allocation17_spill] sm:$0xff] }
 0x4fe   : > { %v12104_v34 = vcombine.low %v9061_v57, %v9064_v31  ;;  %v9071_v42 = vsel %vm15266_vm14, %v9069_v16, %v9070_v23  ;;  %v18224_v8 = vcombine.low %v16904_v9, %v18223_v41  ;;  %v18227_v40 = vcombine.low %v18225_v12, %v18226_v7  ;;  %v18231_v51 = vld [vmem:[#allocation8_spill] sm:$0xff]  ;;  %v18241_v60 = vld [vmem:[#allocation18_spill] sm:$0xff]  ;;  %v18243_v48 = vld [vmem:[#allocation19_spill] sm:$0xff] }
 0x4ff   : > { %v12105_v17 = vcombine.low %v9068_v43, %v9071_v42  ;;  %v18230_v9 = vcombine.low %v18228_v15, %v18229_v52  ;;  %v18233_v33 = vcombine.low %v18231_v51, %v18232_v37  ;;  %v18238_v4 = vld [vmem:[#allocation16_spill] sm:$0xff]  ;;  %v18242_v39 = vcombine.low %v18240_v32, %v18241_v60  ;;  %v18246_v50 = vld [vmem:[#allocation21_spill] sm:$0xff]  ;;  %v18247_v2 = vld [vmem:[#allocation22_spill] sm:$0xff] }
 0x500   : > { %13637 = vmatmul.mubr.bf16.gmra.mrb[24].mxu1 %v12061_v36  ;;  %v18236_v36 = vcombine.low %v18234_v26, %v18235_v22  ;;  %v18244_v61 = vld [vmem:[#allocation20_spill] sm:$0xff]  ;;  %v18248_v31 = vcombine.low %v18246_v50, %v18247_v2  ;;  %v18249_v24 = vld [vmem:[#allocation23_spill] sm:$0xff]  ;;  %v18253_v16 = vld [vmem:[#allocation26_spill] sm:$0xff] }
 0x501   : > { %13640 = vmatprep.mubr.bf16.mxu1 %v12062_v19  ;;  %v18237_v19 = vld [vmem:[#allocation14_spill] sm:$0xff]  ;;  %v18245_v55 = vcombine.low %v18243_v48, %v18244_v61  ;;  %v18255_v58 = vld [vmem:[#allocation27_spill] sm:$0xff]  ;;  %v18256_v42 = vld [vmem:[#allocation28_spill] sm:$0xff] }
 0x502   : > { %v18239_v14 = vcombine.low %v18237_v19, %v18238_v4  ;;  %v14578_v23 = vld [vmem:[#allocation2 + $0x18] sm:$0xff]   ;;  %v18257_v43 = vcombine.low %v18255_v58, %v18256_v42  ;;  %v14584_v41 = vld [vmem:[#allocation2 + $0x48] sm:$0xff]   ;;  %v14587_v12 = vld [vmem:[#allocation2 + $0x60] sm:$0xff]  }
 0x503   : > { %v14598_v7 = vld [vmem:[%s18013_s4 + $0x1f0] sm:$0xff]   ;;  %v14601_v15 = vld [vmem:[%s18013_s4 + $0x1f8] sm:$0xff]   ;;  %v14591_v26 = vld [vmem:[#allocation2 + $0x84] sm:$0xff]  }
 0x504   : > { %v14590_v52 = vld [vmem:[#allocation2 + $0x78] sm:$0xff]   ;;  %v18259_v48 = vld [vmem:[#allocation31_spill] sm:$0xff] }
 0x505   : > { %v9960_v61 = vshll.u32 %v18259_v48, 16 }
 0x508   : > { %13641 = vmatmul.mubr.bf16.gmra.mrb[28].mxu1 %v12063_v62  ;;  %v18250_v62 = vld [vmem:[#allocation24_spill] sm:$0xff] }
 0x509   : > { %13660 = vmatprep.mubr.bf16.mxu1 %v12104_v34  ;;  %v18251_v57 = vcombine.low %v18249_v24, %v18250_v62  ;;  %v18252_v34 = vld [vmem:[#allocation25_spill] sm:$0xff]  ;;  %v14594_v62 = vld [vmem:[#allocation2 + $0x9c] sm:$0xff]  }
 0x50a   : > { %v18254_v25 = vcombine.low %v18252_v34, %v18253_v16  ;;  %v9884_v24 = vld [vmem:[#allocation2 + $0x30] sm:$0xf]  ;;  %v18260_v34 = vld [vmem:[#allocation30_spill] sm:$0xff] }
 0x50b   : > { %v9946_v16 = vshll.u32 %v18260_v34, 16  ;;  %v9975_v58 = vshrl.u32 %v9884_v24, 16  ;;  %v10647_v34 = vld [vmem:[#allocation2 + $0xcc] sm:$0xe] }
 0x510   : > { %13661 = vmatmul.mubr.bf16.vlgmr.msra.gmra.mrb[0].mxu1 %v12105_v17  ;;  %v14579_v17 = vld [vmem:[#allocation2 + $0x24] sm:$0xff]  }
 0x511   : > { %13664 = vmatprep.mubr.bf16.mxu1 %v18221_v29  ;;  %13693 = vmatpush3.bf16.msra.mxu1 %v17527_v59  ;;  %v14574_v59 = vld [vmem:[%s18013_s4 + $0x1a0] sm:$0xff]   ;;  %v14581_v29 = vld [vmem:[#allocation2 + $0x30] sm:$0xff]  }
 0x512   : > { %13694 = vmatprep.subr.bf16.mxu1 %v14571_v18 }
 0x515   : > { %13695 = vmatpush3.bf16.msra.mxu1 %v14571_v18  ;;  %v14583_v18 = vld [vmem:[%s18013_s4 + $0x1c8] sm:$0xff]  }
 0x516   : > { %13696 = vmatprep.subr.bf16.mxu1 %v14572_v11 }
 0x518   : > { %13665 = vmatmul.mubr.bf16.gmra.mrb[4].mxu1 %v18222_v20  ;;  %v14589_v20 = vld [vmem:[%s18013_s4 + $0x1d8] sm:$0xff]  }
 0x519   : > { %13668 = vmatprep.mubr.bf16.mxu1 %v18224_v8  ;;  %13697 = vmatpush3.bf16.msra.mxu1 %v14572_v11  ;;  %v14586_v11 = vld [vmem:[%s18013_s4 + $0x1d0] sm:$0xff]   ;;  %v14592_v8 = vld [vmem:[%s18013_s4 + $0x1e0] sm:$0xff]  }
 0x51a   : > { %13698 = vmatprep.subr.bf16.mxu1 %v14573_v63 }
 0x51d   : > { %13699 = vmatpush3.bf16.msra.mxu1 %v14573_v63  ;;  %v14582_v63 = vld [vmem:[#allocation2 + $0x3c] sm:$0xff]  }
 0x51e   : > { %13700 = vmatprep.subr.bf16.mxu1 %v14574_v59 }
 0x520   : > { %13669 = vmatmul.mubr.bf16.gmra.mrb[8].mxu1 %v18227_v40  ;;  %v14588_v40 = vld [vmem:[#allocation2 + $0x6c] sm:$0xff]  }
 0x521   : > { %13672 = vmatprep.mubr.bf16.mxu1 %v18230_v9  ;;  %13701 = vmatpush3.bf16.msra.mxu1 %v14574_v59  ;;  %v14585_v59 = vld [vmem:[#allocation2 + $0x54] sm:$0xff]   ;;  %v17662_v9 = vld [vmem:[%s18013_s4 + $0x200] sm:$0xff]  }
 0x522   : > { %13702 = vmatprep.subr.bf16.mxu1 %v14575_v27 }
 0x525   : > { %13703 = vmatpush3.bf16.msra.mxu1 %v14575_v27  ;;  %v14595_v27 = vld [vmem:[%s18013_s4 + $0x1e8] sm:$0xff]  }
 0x526   : > { %13704 = vmatprep.subr.bf16.mxu1 %v14576_v56 }
 0x528   : > { %13673 = vmatmul.mubr.bf16.gmra.mrb[12].mxu1 %v18233_v33  ;;  %v9881_v33 = vld [vmem:[#allocation2 + $0x24] sm:$0xf] }
 0x529   : > { %13676 = vmatprep.mubr.bf16.mxu1 %v18236_v36  ;;  %13705 = vmatpush3.bf16.msra.mxu1 %v14576_v56  ;;  %v9878_v56 = vld [vmem:[#allocation2 + $0x18] sm:$0xf]  ;;  %v9954_v32 = vshll.u32 %v9881_v33, 16 }
 0x52a   : > { %13706 = vmatprep.subr.bf16.mxu1 %v14577_v47  ;;  %v9927_v22 = vshrl.u32 %v9878_v56, 16  ;;  %v9930_v36 = vshll.u32 %v9878_v56, 16 }
 0x52b   : > { %v9956_v2 = vrot.slane %v9954_v32, 5  ;;  %v18264_v32 = vld [vmem:[#allocation35_spill] sm:$0xff] }
 0x52c   : > { %v9929_v60 = vrot.slane %v9927_v22, 4 }
 0x52d   : > { %13707 = vmatpush3.bf16.msra.mxu1 %v14577_v47  ;;  %v18258_v47 = vld [vmem:[#allocation29_spill] sm:$0xff] }
 0x52e   : > { %13740 = vmatprep.subr.bf16.mxu1 %v14580_v44  ;;  %v9936_v51 = vshll.u32 %v18258_v47, 16  ;;  %v9940_v37 = vshrl.u32 %v18258_v47, 16 }
 0x530   : > { %13677 = vmatmul.mubr.bf16.gmra.mrb[16].mxu1 %v18239_v14  ;;  %v9938_v19 = vrot.slane %v9936_v51, 5  ;;  %v9942_v4 = vrot.slane %v9940_v37, 4  ;;  %v9951_v14 = vshrl.u32 %v9881_v33, 16  ;;  %v14597_v51 = vld [vmem:[#allocation2 + $0xb4] sm:$0xff]  }
 0x531   : > { %13680 = vmatprep.mubr.bf16.mxu1 %v18242_v39  ;;  %v9932_v39 = vrot.slane %v9930_v36, 5 }
 0x532   : > { %v9953_v50 = vrot.slane %v9951_v14, 4 }
 0x538   : > { %13681 = vmatmul.mubr.bf16.gmra.mrb[20].mxu1 %v18245_v55  ;;  %v9943_v55 = vor.u32 %v9942_v4, %v9938_v19 }
 0x539   : > { %13684 = vmatprep.mubr.bf16.mxu1 %v18248_v31  ;;  %v9964_v31 = vshrl.u32 %v18259_v48, 16  ;;  %v9890_v48 = vld [vmem:[#allocation2 + $0x48] sm:$0xf] }
 0x53a   : > { %v9944_v42 = vrot.slane %v9943_v55, 4 }
 0x540   : > { %13685 = vmatmul.mubr.bf16.gmra.mrb[24].mxu1 %v18251_v57  ;;  %v9933_v57 = vor.u32 %v9932_v39, %v9929_v60  ;;  %v10008_v60 = vshll.u32 %v18264_v32, 16  ;;  %v10012_v39 = vshrl.u32 %v18264_v32, 16 }
 0x541   : > { %13688 = vmatprep.mubr.bf16.mxu1 %v18254_v25  ;;  %v14596_v25 = vld [vmem:[#allocation2 + $0xa8] sm:$0xff]  }
 0x548   : > { %13689 = vmatmul.mubr.bf16.gmra.mrb[28].mxu1 %v18257_v43  ;;  %v9957_v43 = vor.u32 %v9956_v2, %v9953_v50  ;;  %v18265_v50 = vld [vmem:[#allocation36_spill] sm:$0xff] }
 0x549   : > { %13708 = vmatprep.mubr.bf16.mxu1 %v14578_v23  ;;  %v17670_v23 = vrot.slane %v9960_v61, 5  ;;  %v10032_v2 = vshll.u32 %v18265_v50, 16 }
 0x550   : > { %13709 = vmatmul.mubr.bf16.vlgmr.msra.gmra.mrb[0].mxu1 %v14579_v17  ;;  %v9966_v17 = vrot.slane %v9964_v31, 4  ;;  %v17694_v31 = vld [vmem:[#allocation2 + $0xd0] sm:$0xf] }
 0x551   : > { %13712 = vmatprep.mubr.bf16.mxu1 %v14581_v29  ;;  %13741 = vmatpush3.bf16.msra.mxu1 %v14580_v44  ;;  %v14593_v44 = vld [vmem:[#allocation2 + $0x90] sm:$0xff]  }
 0x552   : > { %13742 = vmatprep.subr.bf16.mxu1 %v14583_v18  ;;  %v18261_v29 = vld [vmem:[#allocation33_spill] sm:$0xff] }
 0x555   : > { %13743 = vmatpush3.bf16.msra.mxu1 %v14583_v18  ;;  %v9978_v18 = vshll.u32 %v9884_v24, 16  ;;  %v17696_v24 = vld [vmem:[#allocation2 + $0xd4] sm:$0x1] }
 0x556   : > { %13744 = vmatprep.subr.bf16.mxu1 %v14586_v11 }
 0x558   : > { %13713 = vmatmul.mubr.bf16.gmra.mrb[4].mxu1 %v14582_v63  ;;  %v9988_v63 = vshrl.u32 %v18261_v29, 16 }
 0x559   : > { %13716 = vmatprep.mubr.bf16.mxu1 %v14584_v41  ;;  %13745 = vmatpush3.bf16.msra.mxu1 %v14586_v11  ;;  %v9984_v11 = vshll.u32 %v18261_v29, 16  ;;  %v9948_v41 = vrot.slane %v9946_v16, 5  ;;  %v10803_v16 = vrot.slane %v17694_v31, 5  ;;  %v17704_v29 = vrot.slane %v10008_v60, 5 }
 0x55a   : > { %13746 = vmatprep.subr.bf16.mxu1 %v14589_v20  ;;  %v9990_v47 = vrot.slane %v9988_v63, 4 }
 0x55b   : > { %v17680_v56 = vrot.slane %v9984_v11, 5  ;;  %v10014_v11 = vrot.slane %v10012_v39, 4  ;;  %v10805_v63 = vrot.slane %v10803_v16, 4 }
 0x55d   : > { %13747 = vmatpush3.bf16.msra.mxu1 %v14589_v20  ;;  %v9934_v20 = vrot.slane %v9933_v57, 4  ;;  %v10036_v57 = vshrl.u32 %v18265_v50, 16  ;;  %v10015_v60 = vor.u32 %v10014_v11, %v17704_v29 }
 0x55e   : > { %13748 = vmatprep.subr.bf16.mxu1 %v14592_v8 }
 0x55f   : > { %v9939_v37 = vsel %vm14880_vm11, %v9934_v20, %v9938_v19  ;;  %v14600_v20 = vld [vmem:[#allocation2 + $0xcc] sm:$0xff]  }
 0x560   : > { %13717 = vmatmul.mubr.bf16.gmra.mrb[8].mxu1 %v14585_v59 }
 0x561   : > { %13720 = vmatprep.mubr.bf16.mxu1 %v14587_v12  ;;  %13749 = vmatpush3.bf16.msra.mxu1 %v14592_v8  ;;  %v18262_v8 = vld [vmem:[#allocation32_spill] sm:$0xff]  ;;  %v9887_v12 = vld [vmem:[#allocation2 + $0x3c] sm:$0xf] }
 0x562   : > { %13750 = vmatprep.subr.bf16.mxu1 %v14595_v27  ;;  %v9970_v59 = vshll.u32 %v18262_v8, 16  ;;  %v9999_v36 = vshrl.u32 %v9887_v12, 16  ;;  %v10002_v14 = vshll.u32 %v9887_v12, 16  ;;  %v10026_v8 = vshll.u32 %v9890_v48, 16 }
 0x563   : > { %v10038_v12 = vrot.slane %v10036_v57, 4 }
 0x564   : > { %v17684_v33 = vrot.slane %v9970_v59, 5  ;;  %v17706_v59 = vrot.slane %v10032_v2, 5  ;;  %v10028_v39 = vrot.slane %v10026_v8, 5 }
 0x565   : > { %13751 = vmatpush3.bf16.msra.mxu1 %v14595_v27  ;;  %v9977_v27 = vrot.slane %v9975_v58, 4  ;;  %v10001_v58 = vrot.slane %v9999_v36, 4 }
 0x566   : > { %13752 = vmatprep.subr.bf16.mxu1 %v14598_v7 }
 0x568   : > { %13721 = vmatmul.mubr.bf16.gmra.mrb[12].mxu1 %v14588_v40  ;;  %v17677_v40 = vrot.slane %v9957_v43, 4  ;;  %v10060_v43 = vshrl.u32 %v17281_v21, 16 }
 0x569   : > { %13724 = vmatprep.mubr.bf16.mxu1 %v14590_v52  ;;  %13753 = vmatpush3.bf16.msra.mxu1 %v14598_v7  ;;  %v9949_v7 = vsel %vm14880_vm11, %v9944_v42, %v9948_v41  ;;  %v9980_v52 = vrot.slane %v9978_v18, 5  ;;  %v10056_v42 = vshll.u32 %v17281_v21, 16  ;;  %v10004_v18 = vrot.slane %v10002_v14, 5  ;;  %v18266_v14 = vld [vmem:[#allocation39_spill] sm:$0xff] }
 0x56a   : > { %13754 = vmatprep.subr.bf16.mxu1 %v14601_v15  ;;  %v12184_v4 = vcombine.low %v9939_v37, %v9949_v7  ;;  %v9963_v61 = vsel %vm14880_vm11, %v17677_v40, %v17670_v23  ;;  %v10023_v41 = vshrl.u32 %v9890_v48, 16  ;;  %v10018_v32 = vshll.u32 %v18266_v14, 16 }
 0x56b   : > { %v9981_v55 = vor.u32 %v9980_v52, %v9977_v27  ;;  %v17716_v52 = vrot.slane %v10056_v42, 5  ;;  %v10005_v54 = vor.u32 %v10004_v18, %v10001_v58  ;;  %v10039_v48 = vor.u32 %v10038_v12, %v17706_v59  ;;  %v14670_v58 = vld [vmem:[#allocation2 + $0x50] sm:$0x1]  ;;  %v18268_v18 = vld [vmem:[#allocation42_spill] sm:$0xff]  ;;  %v9899_v12 = vld [vmem:[#allocation2 + $0x6c] sm:$0xf] }
 0x56c   : > { %v10066_v11 = vshll.u32 %v18268_v18, 16 }
 0x56d   : > { %13755 = vmatpush3.bf16.msra.mxu1 %v14601_v15  ;;  %v9967_v15 = vor.u32 %v9966_v17, %v17670_v23  ;;  %v9893_v23 = vld [vmem:[#allocation2 + $0x54] sm:$0xf]  ;;  %v12223_v17 = vrot.slane %v10647_v34, 9  ;;  %v9982_v36 = vrot.slane %v9981_v55, 4  ;;  %v10006_v42 = vrot.slane %v10005_v54, 4 }
 0x56e   : > { %13788 = vmatprep.subr.bf16.mxu1 %v17662_v9  ;;  %v10047_v7 = vshrl.u32 %v9893_v23, 16  ;;  %v10050_v40 = vshll.u32 %v9893_v23, 16  ;;  %v10042_v23 = vshll.u32 %v14670_v58, 16  ;;  %v10095_v54 = vshrl.u32 %v9899_v12, 16 }
 0x56f   : > { %v9968_v19 = vrot.slane %v9967_v15, 4  ;;  %v17710_v27 = vsel %vm15266_vm14, %v12223_v17, %v10803_v16  ;;  %v10020_v17 = vrot.slane %v10018_v32, 5  ;;  %v10011_v14 = vsel %vm14880_vm11, %v10006_v42, %v17704_v29  ;;  %v14604_v29 = vld [vmem:[%s18013_s4 + $0x210] sm:$0xff]  }
 0x570   : > { %13725 = vmatmul.mubr.bf16.gmra.mrb[16].mxu1 %v14591_v26  ;;  %v18263_v26 = vld [vmem:[#allocation34_spill] sm:$0xff]  ;;  %v10049_v50 = vrot.slane %v10047_v7, 4  ;;  %v10052_v2 = vrot.slane %v10050_v40, 5  ;;  %v10068_v32 = vrot.slane %v10066_v11, 5 }
 0x571   : > { %13728 = vmatprep.mubr.bf16.mxu1 %v14593_v44  ;;  %v9994_v22 = vshll.u32 %v18263_v26, 16  ;;  %v14599_v44 = vld [vmem:[#allocation2 + $0xc0] sm:$0xff]   ;;  %v9973_v26 = vsel %vm14880_vm11, %v9968_v19, %v17684_v33  ;;  %v18267_v33 = vld [vmem:[#allocation44_spill] sm:$0xff] }
 0x572   : > { %v10080_v19 = vshll.u32 %v18267_v33, 16  ;;  %v10084_v55 = vshrl.u32 %v18267_v33, 16 }
 0x573   : > { %v9996_v15 = vrot.slane %v9994_v22, 5  ;;  %v10025_v22 = vrot.slane %v10023_v41, 4  ;;  %v10053_v41 = vor.u32 %v10052_v2, %v10049_v50 }
 0x574   : > { %v17738_v40 = vrot.slane %v10080_v19, 5 }
 0x575   : > { %v10054_v2 = vrot.slane %v10053_v41, 4 }
 0x577   : > { %v10059_v11 = vsel %vm14880_vm11, %v10054_v2, %v17716_v52  ;;  %v14675_v2 = vld [vmem:[#allocation2 + $0x94] sm:$0xf] }
 0x578   : > { %13729 = vmatmul.mubr.bf16.gmra.mrb[20].mxu1 %v14594_v62  ;;  %v9991_v62 = vor.u32 %v9990_v47, %v17680_v56  ;;  %v10062_v47 = vrot.slane %v10060_v43, 4  ;;  %v10016_v43 = vrot.slane %v10015_v60, 4  ;;  %v10098_v60 = vshll.u32 %v9899_v12, 16  ;;  %v14605_v12 = vld [vmem:[%s18013_s4 + $0x218] sm:$0xff]  }
 0x579   : > { %13732 = vmatprep.mubr.bf16.mxu1 %v14596_v25  ;;  %v10806_v25 = vrot.slane %v17696_v24, 5 }
 0x57a   : > { %v10063_v34 = vor.u32 %v10062_v47, %v17716_v52  ;;  %v10100_v58 = vrot.slane %v10098_v60, 5 }
 0x57b   : > { %v17714_v21 = vsel %vm15266_vm14, %v10805_v63, %v10806_v25  ;;  %v9987_v25 = vsel %vm14880_vm11, %v9982_v36, %v17680_v56  ;;  %v10029_v63 = vor.u32 %v10028_v39, %v10025_v22  ;;  %v9902_v22 = vld [vmem:[#allocation2 + $0x78] sm:$0xf]  ;;  %v10021_v39 = vsel %vm14880_vm11, %v10016_v43, %v10020_v17 }
 0x57c   : > { %v12255_v37 = vcombine.low %v17710_v27, %v17714_v21  ;;  %v10064_v56 = vrot.slane %v10063_v34, 4  ;;  %v12187_v17 = vcombine.low %v10011_v14, %v10021_v39  ;;  %v14606_v39 = vld [vmem:[%s18013_s4 + $0x220] sm:$0xff]  }
 0x580   : > { %13733 = vmatmul.mubr.bf16.gmra.mrb[24].mxu1 %v14597_v51  ;;  %v9896_v51 = vld [vmem:[#allocation2 + $0x60] sm:$0xf] }
 0x581   : > { %13736 = vmatprep.mubr.bf16.mxu1 %v14599_v44  ;;  %v9992_v44 = vrot.slane %v9991_v62, 4  ;;  %v10071_v57 = vshrl.u32 %v9896_v51, 16  ;;  %v10074_v16 = vshll.u32 %v9896_v51, 16  ;;  %v12185_v62 = vcombine.low %v9963_v61, %v9973_v26  ;;  %v14603_v61 = vld [vmem:[%s18013_s4 + $0x208] sm:$0xff]   ;;  %v18269_v26 = vld [vmem:[#allocation47_spill] sm:$0xff] }
 0x582   : > { %v10044_v51 = vrot.slane %v10042_v23, 5  ;;  %v10104_v36 = vshll.u32 %v18269_v26, 16  ;;  %v14672_v23 = vld [vmem:[#allocation2 + $0x7c] sm:$0xf] }
 0x583   : > { %v10073_v8 = vrot.slane %v10071_v57, 4  ;;  %v10076_v7 = vrot.slane %v10074_v16, 5  ;;  %v10069_v57 = vsel %vm14880_vm11, %v10064_v56, %v10068_v32  ;;  %v10128_v42 = vshll.u32 %v14672_v23, 16  ;;  %v9905_v56 = vld [vmem:[#allocation2 + $0x84] sm:$0xf] }
 0x584   : > { %v17756_v19 = vrot.slane %v10104_v36, 5  ;;  %v10132_v43 = vshrl.u32 %v14672_v23, 16  ;;  %v10143_v14 = vshrl.u32 %v9905_v56, 16  ;;  %v10146_v32 = vshll.u32 %v9905_v56, 16 }
 0x585   : > { %v10077_v34 = vor.u32 %v10076_v7, %v10073_v8  ;;  %v17768_v36 = vrot.slane %v10128_v42, 5 }
 0x586   : > { %v10145_v23 = vrot.slane %v10143_v14, 4  ;;  %v10148_v42 = vrot.slane %v10146_v32, 5 }
 0x587   : > { %v10078_v41 = vrot.slane %v10077_v34, 4  ;;  %v10180_v34 = vshrl.u32 %v14675_v2, 16 }
 0x588   : > { %13737 = vmatmul.mubr.bf16.gmra.mrb[28].mxu1 %v14600_v20  ;;  %v10040_v20 = vrot.slane %v10039_v48, 4  ;;  %v10030_v48 = vrot.slane %v10029_v63, 4 }
 0x589   : > { %13756 = vmatprep.mubr.bf16.mxu1 %v12184_v4  ;;  %v9997_v4 = vsel %vm14880_vm11, %v9992_v44, %v9996_v15  ;;  %v10086_v15 = vrot.slane %v10084_v55, 4  ;;  %v10108_v44 = vshrl.u32 %v18269_v26, 16  ;;  %v14673_v26 = vld [vmem:[#allocation2 + $0x74] sm:$0x1] }
 0x58a   : > { %v12186_v47 = vcombine.low %v9987_v25, %v9997_v4  ;;  %v10045_v50 = vsel %vm14880_vm11, %v10040_v20, %v10044_v51  ;;  %v10122_v25 = vshll.u32 %v9902_v22, 16  ;;  %v10097_v4 = vrot.slane %v10095_v54, 4  ;;  %v14674_v54 = vld [vmem:[#allocation2 + $0x88] sm:$0xf] }
 0x58b   : > { %v10087_v16 = vor.u32 %v10086_v15, %v17738_v40  ;;  %v10110_v55 = vrot.slane %v10108_v44, 4  ;;  %v10035_v18 = vsel %vm14880_vm11, %v10030_v48, %v17706_v59  ;;  %v12189_v20 = vcombine.low %v10059_v11, %v10069_v57 }
 0x58c   : > { %v12188_v63 = vcombine.low %v10035_v18, %v10045_v50  ;;  %v10124_v59 = vrot.slane %v10122_v25, 5  ;;  %v10101_v51 = vor.u32 %v10100_v58, %v10097_v4  ;;  %v10114_v52 = vshll.u32 %v14673_v26, 16  ;;  %v14676_v4 = vld [vmem:[#allocation2 + $0x80] sm:$0x1]  ;;  %v9911_v18 = vld [vmem:[#allocation2 + $0x9c] sm:$0xf] }
 0x58d   : > { %v10088_v7 = vrot.slane %v10087_v16, 4  ;;  %v10111_v15 = vor.u32 %v10110_v55, %v17756_v19  ;;  %v10134_v44 = vrot.slane %v10132_v43, 4  ;;  %v10152_v60 = vshll.u32 %v14674_v54, 16 }
 0x58e   : > { %v10176_v57 = vshll.u32 %v14675_v2, 16  ;;  %v10083_v16 = vsel %vm14880_vm11, %v10078_v41, %v17738_v40  ;;  %v10102_v55 = vrot.slane %v10101_v51, 4  ;;  %v10138_v58 = vshll.u32 %v14676_v4, 16 }
 0x58f   : > { %v10135_v25 = vor.u32 %v10134_v44, %v17768_v36  ;;  %v17779_v43 = vrot.slane %v10152_v60, 5  ;;  %v10182_v41 = vrot.slane %v10180_v34, 4  ;;  %v10191_v51 = vshrl.u32 %v9911_v18, 16 }
 0x590   : > { %13757 = vmatmul.mubr.bf16.vlgmr.msra.gmra.mrb[0].mxu1 %v12185_v62  ;;  %v10119_v62 = vshrl.u32 %v9902_v22, 16  ;;  %v10156_v22 = vshrl.u32 %v14674_v54, 16  ;;  %v10194_v26 = vshll.u32 %v9911_v18, 16  ;;  %v10140_v44 = vrot.slane %v10138_v58, 5  ;;  %v14677_v54 = vld [vmem:[#allocation2 + $0x8c] sm:$0x1] }
 0x591   : > { %13760 = vmatprep.mubr.bf16.mxu1 %v12186_v47  ;;  %13789 = vmatpush3.bf16.msra.mxu1 %v17662_v9  ;;  %v14671_v9 = vld [vmem:[#allocation2 + $0x68] sm:$0x1]  ;;  %v10162_v60 = vshll.u32 %v14677_v54, 16 }
 0x592   : > { %13790 = vmatprep.subr.bf16.mxu1 %v14603_v61  ;;  %v10090_v33 = vshll.u32 %v14671_v9, 16  ;;  %v10121_v47 = vrot.slane %v10119_v62, 4  ;;  %v10112_v9 = vrot.slane %v10111_v15, 4  ;;  %v10116_v62 = vrot.slane %v10114_v52, 5 }
 0x593   : > { %v10107_v15 = vsel %vm14880_vm11, %v10102_v55, %v17756_v19  ;;  %v10164_v18 = vrot.slane %v10162_v60, 5  ;;  %v9920_v60 = vld [vmem:[#allocation2 + $0xc0] sm:$0xf] }
 0x594   : > { %v10092_v8 = vrot.slane %v10090_v33, 5  ;;  %v10125_v33 = vor.u32 %v10124_v59, %v10121_v47  ;;  %v10136_v47 = vrot.slane %v10135_v25, 4  ;;  %v10149_v59 = vor.u32 %v10148_v42, %v10145_v23  ;;  %v14609_v42 = vld [vmem:[%s18013_s4 + $0x238] sm:$0xff]  }
 0x595   : > { %13791 = vmatpush3.bf16.msra.mxu1 %v14603_v61  ;;  %v9908_v61 = vld [vmem:[#allocation2 + $0x90] sm:$0xf]  ;;  %v10196_v25 = vrot.slane %v10194_v26, 5 }
 0x596   : > { %13792 = vmatprep.subr.bf16.mxu1 %v14604_v29  ;;  %v10167_v48 = vshrl.u32 %v9908_v61, 16  ;;  %v10170_v50 = vshll.u32 %v9908_v61, 16  ;;  %v10141_v2 = vsel %vm14880_vm11, %v10136_v47, %v10140_v44 }
 0x598   : > { %13761 = vmatmul.mubr.bf16.gmra.mrb[4].mxu1 %v12187_v17  ;;  %v10158_v17 = vrot.slane %v10156_v22, 4  ;;  %v10169_v40 = vrot.slane %v10167_v48, 4  ;;  %v10172_v11 = vrot.slane %v10170_v50, 5  ;;  %v14678_v22 = vld [vmem:[#allocation2 + $0xa0] sm:$0xf] }
 0x599   : > { %13764 = vmatprep.mubr.bf16.mxu1 %v12188_v63  ;;  %13793 = vmatpush3.bf16.msra.mxu1 %v14604_v29  ;;  %v10093_v29 = vsel %vm14880_vm11, %v10088_v7, %v10092_v8  ;;  %v17781_v63 = vrot.slane %v10176_v57, 5  ;;  %v14607_v8 = vld [vmem:[%s18013_s4 + $0x228] sm:$0xff]   ;;  %v10126_v7 = vrot.slane %v10125_v33, 4  ;;  %v10204_v48 = vshrl.u32 %v14678_v22, 16  ;;  %v14679_v57 = vld [vmem:[#allocation2 + $0x98] sm:$0x1] }
 0x59a   : > { %13794 = vmatprep.subr.bf16.mxu1 %v14605_v12  ;;  %v12190_v56 = vcombine.low %v10083_v16, %v10093_v29  ;;  %v10159_v61 = vor.u32 %v10158_v17, %v17779_v43  ;;  %v10173_v14 = vor.u32 %v10172_v11, %v10169_v40  ;;  %v9914_v50 = vld [vmem:[#allocation2 + $0xa8] sm:$0xf]  ;;  %v10186_v34 = vshll.u32 %v14679_v57, 16  ;;  %v14680_v16 = vld [vmem:[#allocation2 + $0xac] sm:$0xf] }
 0x59b   : > { %v10183_v32 = vor.u32 %v10182_v41, %v17781_v63  ;;  %v10131_v19 = vsel %vm14880_vm11, %v10126_v7, %v17768_v36  ;;  %v10224_v29 = vshll.u32 %v14680_v16, 16  ;;  %v10150_v33 = vrot.slane %v10149_v59, 4  ;;  %v14681_v59 = vld [vmem:[#allocation2 + $0xa4] sm:$0x1] }
 0x59c   : > { %v10160_v55 = vrot.slane %v10159_v61, 4  ;;  %v10174_v36 = vrot.slane %v10173_v14, 4  ;;  %v10215_v58 = vshrl.u32 %v9914_v50, 16  ;;  %v10218_v23 = vshll.u32 %v9914_v50, 16 }
 0x59d   : > { %13795 = vmatpush3.bf16.msra.mxu1 %v14605_v12  ;;  %v10117_v12 = vsel %vm14880_vm11, %v10112_v9, %v10116_v62  ;;  %v10228_v9 = vshrl.u32 %v14680_v16, 16  ;;  %v10193_v62 = vrot.slane %v10191_v51, 4  ;;  %v10184_v4 = vrot.slane %v10183_v32, 4  ;;  %v14682_v32 = vld [vmem:[#allocation2 + $0xb8] sm:$0xf] }
 0x59e   : > { %13796 = vmatprep.subr.bf16.mxu1 %v14606_v39  ;;  %v12191_v52 = vcombine.low %v10107_v15, %v10117_v12  ;;  %v12192_v17 = vcombine.low %v10131_v19, %v10141_v2  ;;  %v10206_v11 = vrot.slane %v10204_v48, 4  ;;  %v10188_v41 = vrot.slane %v10186_v34, 5 }
 0x59f   : > { %v10230_v12 = vrot.slane %v10228_v9, 4  ;;  %v10155_v7 = vsel %vm14880_vm11, %v10150_v33, %v17779_v43  ;;  %v10165_v15 = vsel %vm14880_vm11, %v10160_v55, %v10164_v18  ;;  %v10197_v47 = vor.u32 %v10196_v25, %v10193_v62  ;;  %v9923_v62 = vld [vmem:[#allocation2 + $0xcc] sm:$0xf] }
 0x5a0   : > { %13765 = vmatmul.mubr.bf16.gmra.mrb[8].mxu1 %v12189_v20  ;;  %v14608_v20 = vld [vmem:[%s18013_s4 + $0x230] sm:$0xff]   ;;  %v10210_v61 = vshll.u32 %v14681_v59, 16  ;;  %v10179_v51 = vsel %vm14880_vm11, %v10174_v36, %v17781_v63  ;;  %v10189_v26 = vsel %vm14880_vm11, %v10184_v4, %v10188_v41  ;;  %v10220_v44 = vrot.slane %v10218_v23, 5 }
 0x5a1   : > { %13768 = vmatprep.mubr.bf16.mxu1 %v12190_v56  ;;  %13797 = vmatpush3.bf16.msra.mxu1 %v14606_v39  ;;  %v10200_v39 = vshll.u32 %v14678_v22, 16  ;;  %v17806_v56 = vrot.slane %v10224_v29, 5  ;;  %v10248_v19 = vshll.u32 %v14682_v32, 16  ;;  %v10252_v54 = vshrl.u32 %v14682_v32, 16  ;;  %v14684_v29 = vld [vmem:[#allocation2 + $0xb0] sm:$0x1] }
 0x5a2   : > { %13798 = vmatprep.subr.bf16.mxu1 %v14607_v8  ;;  %v12193_v63 = vcombine.low %v10155_v7, %v10165_v15  ;;  %v12194_v2 = vcombine.low %v10179_v51, %v10189_v26  ;;  %v10198_v57 = vrot.slane %v10197_v47, 4  ;;  %v10212_v34 = vrot.slane %v10210_v61, 5 }
 0x5a3   : > { %v17804_v40 = vrot.slane %v10200_v39, 5  ;;  %v10231_v22 = vor.u32 %v10230_v12, %v17806_v56  ;;  %v14683_v39 = vld [vmem:[#allocation2 + $0xc4] sm:$0xf]  ;;  %v10234_v9 = vshll.u32 %v14684_v29, 16  ;;  %v10263_v33 = vshrl.u32 %v9920_v60, 16 }
 0x5a4   : > { %v10272_v48 = vshll.u32 %v14683_v39, 16  ;;  %v10276_v50 = vshrl.u32 %v14683_v39, 16  ;;  %v10266_v55 = vshll.u32 %v9920_v60, 16  ;;  %v10250_v4 = vrot.slane %v10248_v19, 5  ;;  %v14686_v39 = vld [vmem:[#allocation2 + $0xc8] sm:$0x1] }
 0x5a5   : > { %13799 = vmatpush3.bf16.msra.mxu1 %v14607_v8  ;;  %v9917_v8 = vld [vmem:[#allocation2 + $0xb4] sm:$0xf]  ;;  %v10207_v14 = vor.u32 %v10206_v11, %v17804_v40  ;;  %v10232_v23 = vrot.slane %v10231_v22, 4  ;;  %v10287_v41 = vshrl.u32 %v9923_v62, 16  ;;  %v10290_v12 = vshll.u32 %v9923_v62, 16 }
 0x5a6   : > { %13800 = vmatprep.subr.bf16.mxu1 %v14608_v20  ;;  %v10239_v43 = vshrl.u32 %v9917_v8, 16  ;;  %v10274_v18 = vrot.slane %v10272_v48, 5  ;;  %v10278_v11 = vrot.slane %v10276_v50, 4  ;;  %v10236_v15 = vrot.slane %v10234_v9, 5 }
 0x5a7   : > { %v10208_v25 = vrot.slane %v10207_v14, 4  ;;  %v10265_v47 = vrot.slane %v10263_v33, 4  ;;  %v10268_v59 = vrot.slane %v10266_v55, 5  ;;  %v10203_v61 = vsel %vm14880_vm11, %v10198_v57, %v17804_v40  ;;  %v14685_v14 = vld [vmem:[#allocation2 + $0xbc] sm:$0x1] }
 0x5a8   : > { %13769 = vmatmul.mubr.bf16.gmra.mrb[12].mxu1 %v12191_v52  ;;  %v10217_v52 = vrot.slane %v10215_v58, 4  ;;  %v10241_v36 = vrot.slane %v10239_v43, 4  ;;  %v10254_v58 = vrot.slane %v10252_v54, 4  ;;  %v10258_v43 = vshll.u32 %v14685_v14, 16  ;;  %v18283_v14 = vld [vmem:[#allocation50_spill] sm:$0xff] }
 0x5a9   : > { %13772 = vmatprep.mubr.bf16.mxu1 %v12192_v17  ;;  %13801 = vmatpush3.bf16.msra.mxu1 %v14608_v20  ;;  %v10242_v20 = vshll.u32 %v9917_v8, 16  ;;  %v10300_v8 = vshrl.u32 %v17694_v31, 16  ;;  %v10213_v51 = vsel %vm14880_vm11, %v10208_v25, %v10212_v34  ;;  %v10279_v32 = vor.u32 %v10278_v11, %v10274_v18 }
 0x5aa   : > { %13802 = vmatprep.subr.bf16.mxu1 %v14609_v42  ;;  %v10221_v16 = vor.u32 %v10220_v44, %v10217_v52  ;;  %v10255_v26 = vor.u32 %v10254_v58, %v10250_v4  ;;  %v10237_v52 = vsel %vm14880_vm11, %v10232_v23, %v10236_v15  ;;  %v10292_v19 = vrot.slane %v10290_v12, 5  ;;  %v18273_v15 = vld [vmem:[#allocation40_spill] sm:$0xff] }
 0x5ab   : > { %v10244_v17 = vrot.slane %v10242_v20, 5  ;;  %v10302_v60 = vrot.slane %v10300_v8, 4  ;;  %v12195_v22 = vcombine.low %v10203_v61, %v10213_v51  ;;  %v10269_v20 = vor.u32 %v10268_v59, %v10265_v47  ;;  %v18270_v8 = vld [vmem:[#allocation37_spill] sm:$0xff] }
 0x5ac   : > { %v10222_v7 = vrot.slane %v10221_v16, 4  ;;  %v10282_v48 = vshll.u32 %v14686_v39, 16  ;;  %v10280_v57 = vrot.slane %v10279_v32, 4  ;;  %v10306_v9 = vshll.u32 %v17696_v24, 16  ;;  %v18274_v47 = vld [vmem:[#allocation41_spill] sm:$0xff]  ;;  %v18285_v32 = vld [vmem:[#allocation51_spill] sm:$0xff] }
 0x5ad   : > { %13803 = vmatpush3.bf16.msra.mxu1 %v14609_v42  ;;  %v10296_v42 = vshll.u32 %v17694_v31, 16  ;;  %v10245_v44 = vor.u32 %v10244_v17, %v10241_v36  ;;  %v10289_v31 = vrot.slane %v10287_v41, 4  ;;  %v10270_v33 = vrot.slane %v10269_v20, 4  ;;  %v18277_v61 = vld [vmem:[#allocation45_spill] sm:$0xff]  ;;  %v18293_v39 = vld [vmem:[#allocation56_spill] sm:$0xff] }
 0x5ae   : > { %v10227_v40 = vsel %vm14880_vm11, %v10222_v7, %v17806_v56  ;;  %v10284_v55 = vrot.slane %v10282_v48, 5  ;;  %v10308_v23 = vrot.slane %v10306_v9, 5  ;;  %v18275_v59 = vcombine.low %v18273_v15, %v18274_v47 }
 0x5af   : > { %v10298_v54 = vrot.slane %v10296_v42, 5  ;;  %v12196_v50 = vcombine.low %v10227_v40, %v10237_v52  ;;  %v10246_v34 = vrot.slane %v10245_v44, 4  ;;  %v10293_v16 = vor.u32 %v10292_v19, %v10289_v31  ;;  %v18280_v52 = vld [vmem:[#allocation48_spill] sm:$0xff]  ;;  %v18291_v40 = vld [vmem:[#allocation55_spill] sm:$0xff] }
 0x5b0   : > { %13773 = vmatmul.mubr.bf16.gmra.mrb[16].mxu1 %v12193_v63  ;;  %v10256_v63 = vrot.slane %v10255_v26, 4  ;;  %v10285_v56 = vsel %vm14880_vm11, %v10280_v57, %v10284_v55  ;;  %v10275_v11 = vsel %vm14880_vm11, %v10270_v33, %v10274_v18  ;;  %v18276_v18 = vld [vmem:[#allocation43_spill] sm:$0xff]  ;;  %v18279_v26 = vld [vmem:[#allocation46_spill] sm:$0xff]  ;;  %v18286_v31 = vld [vmem:[#allocation52_spill] sm:$0xff]  ;;  %v18294_v48 = vcombine.low %v17369_v0, %v18293_v39 }
 0x5b1   : > { %13776 = vmatprep.mubr.bf16.mxu1 %v12194_v2  ;;  %v10260_v2 = vrot.slane %v10258_v43, 5  ;;  %v10303_v29 = vor.u32 %v10302_v60, %v10298_v54  ;;  %v10251_v25 = vsel %vm14880_vm11, %v10246_v34, %v10250_v4  ;;  %v10294_v36 = vrot.slane %v10293_v16, 4  ;;  %v18271_v4 = vld [vmem:[#allocation38_spill] sm:$0xff]  ;;  %v18298_v57 = vld [vmem:[#allocation59_spill] sm:$0xff]  ;;  %v18299_v34 = vld [vmem:[#allocation60_spill] sm:$0xff] }
 0x5b2   : > { %v12198_v41 = vcombine.low %v10275_v11, %v10285_v56  ;;  %v18272_v7 = vcombine.low %v18270_v8, %v18271_v4  ;;  %v18278_v51 = vcombine.low %v18276_v18, %v18277_v61  ;;  %v18281_v44 = vcombine.low %v18279_v26, %v18280_v52  ;;  %v17897_v0 = vld [vmem:[%s18014_s5] ss:$0 sm:$0xff]  ;;  %v12512_v56 = vld [vmem:[%s14836_s22 + $0x18] sm:$0xff]  }
 0x5b3   : > { %v10261_v62 = vsel %vm14880_vm11, %v10256_v63, %v10260_v2  ;;  %v10304_v58 = vrot.slane %v10303_v29, 4  ;;  %v10299_v24 = vsel %vm14880_vm11, %v10294_v36, %v10298_v54  ;;  %v18284_v43 = vcombine.low %v18282_v3, %v18283_v14  ;;  %v18288_v54 = vld [vmem:[#allocation53_spill] sm:$0xff]  ;;  %v18296_v63 = vld [vmem:[#allocation58_spill] sm:$0xff] }
 0x5b4   : > { %v12197_v17 = vcombine.low %v10251_v25, %v10261_v62  ;;  %v18287_v19 = vcombine.low %v18285_v32, %v18286_v31  ;;  %v18289_v60 = vcombine.low %v17343_v1, %v18288_v54  ;;  %v18300_v16 = vcombine.low %v18298_v57, %v18299_v34  ;;  %v12510_v1 = vld [vmem:[%s14836_s22 + $0x8] sm:$0xff]   ;;  %v12511_v36 = vld [vmem:[%s14836_s22 + $0x10] sm:$0xff]  }
 0x5b5   : > { %v10309_v12 = vsel %vm14880_vm11, %v10304_v58, %v10308_v23  ;;  %v12372_v5 = vunpack.c.l.bf16 %v12510_v1  ;;  %v12373_v46 = vunpack.c.h.bf16 %v12510_v1  ;;  %v12376_v4 = vunpack.c.l.bf16 %v12511_v36 }
 0x5b6   : > { %v12199_v42 = vcombine.low %v10299_v24, %v10309_v12  ;;  %v12381_v18 = vunpack.c.h.bf16 %v12512_v56 }
 0x5b8   : > { %13777 = vmatmul.mubr.bf16.gmra.mrb[20].mxu1 %v12195_v22  ;;  %v18290_v22 = vld [vmem:[#allocation54_spill] sm:$0xff] }
 0x5b9   : > { %13780 = vmatprep.mubr.bf16.mxu1 %v12196_v50  ;;  %v18292_v20 = vcombine.low %v18290_v22, %v18291_v40  ;;  %v18295_v50 = vld [vmem:[#allocation57_spill] sm:$0xff] }
 0x5ba   : > { %v18297_v2 = vcombine.low %v18295_v50, %v18296_v63 }
 0x5c0   : > { %13781 = vmatmul.mubr.bf16.gmra.mrb[24].mxu1 %v12197_v17 }
 0x5c1   : > { %13784 = vmatprep.mubr.bf16.mxu1 %v12198_v41  ;;  %v12380_v41 = vunpack.c.l.bf16 %v12512_v56 }
 0x5c8   : > { %13785 = vmatmul.mubr.bf16.gmra.mrb[28].mxu1 %v12199_v42 }
 0x5c9   : > { %13804 = vmatprep.mubr.bf16.mxu1 %v18272_v7 }
 0x5d0   : > { %13805 = vmatmul.mubr.bf16.vlgmr.msra.gmra.mrb[0].mxu1 %v18275_v59 }
 0x5d1   : > { %13808 = vmatprep.mubr.bf16.mxu1 %v18278_v51 }
 0x5d8   : > { %13809 = vmatmul.mubr.bf16.gmra.mrb[4].mxu1 %v18281_v44  ;;  %v12377_v44 = vunpack.c.h.bf16 %v12511_v36 }
 0x5d9   : > { %13812 = vmatprep.mubr.bf16.mxu1 %v18284_v43 }
 0x5e0   : > { %13813 = vmatmul.mubr.bf16.gmra.mrb[8].mxu1 %v18287_v19  ;;  %v12514_v19 = vld [vmem:[%s14836_s22 + $0x28] sm:$0xff]  }
 0x5e1   : > { %13816 = vmatprep.mubr.bf16.mxu1 %v18289_v60  ;;  %v12513_v60 = vld [vmem:[%s14836_s22 + $0x20] sm:$0xff]  }
 0x5e2   : > { %v12384_v34 = vunpack.c.l.bf16 %v12513_v60 }
 0x5e8   : > { %13817 = vmatmul.mubr.bf16.gmra.mrb[12].mxu1 %v18292_v20 }
 0x5e9   : > { %13820 = vmatprep.mubr.bf16.mxu1 %v18294_v48  ;;  %v12388_v48 = vunpack.c.l.bf16 %v12514_v19 }
 0x5f0   : > { %13821 = vmatmul.mubr.bf16.gmra.mrb[16].mxu1 %v18297_v2 }
 0x5f1   : > { %13824 = vmatprep.mubr.bf16.mxu1 %v18300_v16 }
 0x5f8   : > { %13825 = vmatmul.mubr.bf16.gmra.mrb[20].mxu1 %v12251_v6  ;;  %v17903_v6 = vld [vmem:[%s18015_s6] ss:$0 sm:$0xff] }
 0x5f9   : > { %13828 = vmatprep.mubr.bf16.mxu1 %v12252_v38  ;;  %v12368_v38 = vunpack.c.l.bf16 %v12367_v53 }
 0x600   : > { %13829 = vmatmul.mubr.bf16.gmra.mrb[24].mxu1 %v12253_v35 }
 0x601   : > { %13832 = vmatprep.mubr.bf16.mxu1 %v12254_v45 }
 0x608   : > { %13833 = vmatmul.mubr.bf16.gmra.mrb[28].mxu1 %v12255_v37  ;;  %v12369_v37 = vunpack.c.h.bf16 %v12367_v53 }
 0x6a3   : > { %v13806_v13 = vpop.f32.mrb[0].mxu1 }
 0x6a4   : > { %v11203_v30 = vmul.f32 %v13806_v13, %v17897_v0  ;;  %v10971_v28 = vpop.f32.mrb[1].mxu1 }
 0x6a5   : > { %v11201_v10 = vmul.f32 %v17897_v0, %v10971_v28  ;;  %v13807_v35 = vpop.f32.mrb[2].mxu1 }
 0x6a6   : > { %v11242_v49 = vadd.f32 %v17903_v6, %v11203_v30  ;;  %v11204_v45 = vmul.f32 %v13807_v35, %v17897_v0  ;;  %v10974_v27 = vpop.f32.mrb[3].mxu1  ;;  %v12385_v35 = vunpack.c.h.bf16 %v12513_v60 }
 0x6a7   : > { %v11240_v21 = vadd.f32 %v17903_v6, %v11201_v10  ;;  %v11202_v29 = vmul.f32 %v17897_v0, %v10974_v27 }
 0x6a8   : > { %v11274_v9 = vadd.f32 %v12372_v5, %v11242_v49  ;;  %v11243_v33 = vadd.f32 %v17903_v6, %v11204_v45  ;;  %v12389_v5 = vunpack.c.h.bf16 %v12514_v19 }
 0x6a9   : > { %v11272_v55 = vadd.f32 %v12368_v38, %v11240_v21  ;;  %v11241_v62 = vadd.f32 %v17903_v6, %v11202_v29 }
 0x6aa   : > { %v11275_v25 = vadd.f32 %v12373_v46, %v11243_v33  ;;  %v11306_v17 = vmax.f32 %v11274_v9, 0.0  ;;  %v12515_v9 = vld [vmem:[%s14836_s22 + $0x30] sm:$0xff]  }
 0x6ab   : > { %v11273_v58 = vadd.f32 %v12369_v37, %v11241_v62  ;;  %v13810_v23 = vpop.f32.mrb[4].mxu1  ;;  %v11304_v42 = vmax.f32 %v11272_v55, 0.0  ;;  %v12516_v37 = vld [vmem:[%s14836_s22 + $0x38] sm:$0xff]  }
 0x6ac   : > { %v11307_v11 = vmax.f32 %v11275_v25, 0.0  ;;  %v11207_v24 = vmul.f32 %v13810_v23, %v17897_v0  ;;  %v10987_v12 = vpop.f32.mrb[5].mxu1  ;;  %v12396_v25 = vunpack.c.l.bf16 %v12516_v37 }
 0x6ad   : > { %v11305_v8 = vmax.f32 %v11273_v58, 0.0  ;;  %v11205_v7 = vmul.f32 %v17897_v0, %v10987_v12  ;;  %v13811_v15 = vpop.f32.mrb[6].mxu1 }
 0x6ae   : > { %v12438_v47 = vpack.c.bf16 %v11307_v11, %v11306_v17  ;;  %v11246_v59 = vadd.f32 %v17903_v6, %v11207_v24  ;;  %v11208_v61 = vmul.f32 %v13811_v15, %v17897_v0  ;;  %v10990_v51 = vpop.f32.mrb[7].mxu1  ;;  %v12392_v11 = vunpack.c.l.bf16 %v12515_v9 }
 0x6af   : > { %v12433_v26 = vpack.c.bf16 %v11305_v8, %v11304_v42  ;;  %v11244_v52 = vadd.f32 %v17903_v6, %v11205_v7  ;;  %v11206_v3 = vmul.f32 %v17897_v0, %v10990_v51  ;;  %v12397_v8 = vunpack.c.h.bf16 %v12516_v37 }
 0x6b0   : > { %12525 = vst [vmem:[%s17921_s8 + $0x8] sm:$0xff] %v12438_v47   ;;  %v11278_v14 = vadd.f32 %v12380_v41, %v11246_v59  ;;  %v11247_v43 = vadd.f32 %v17903_v6, %v11208_v61  ;;  %v12393_v59 = vunpack.c.h.bf16 %v12515_v9 }
 0x6b1   : > { %12434 = vst [vmem:[%s17921_s8] sm:$0xff] %v12433_v26   ;;  %v11276_v32 = vadd.f32 %v12376_v4, %v11244_v52  ;;  %v11245_v31 = vadd.f32 %v17903_v6, %v11206_v3 }
 0x6b2   : > { %v11279_v54 = vadd.f32 %v12381_v18, %v11247_v43  ;;  %v11310_v20 = vmax.f32 %v11278_v14, 0.0  ;;  %v12517_v14 = vld [vmem:[%s14836_s22 + $0x40] sm:$0xff]  }
 0x6b3   : > { %v11277_v22 = vadd.f32 %v12377_v44, %v11245_v31  ;;  %v13814_v40 = vpop.f32.mrb[8].mxu1  ;;  %v11308_v2 = vmax.f32 %v11276_v32, 0.0  ;;  %v12518_v44 = vld [vmem:[%s14836_s22 + $0x48] sm:$0xff]  }
 0x6b4   : > { %v11311_v39 = vmax.f32 %v11279_v54, 0.0  ;;  %v11211_v50 = vmul.f32 %v13814_v40, %v17897_v0  ;;  %v11003_v63 = vpop.f32.mrb[9].mxu1  ;;  %v12404_v54 = vunpack.c.l.bf16 %v12518_v44 }
 0x6b5   : > { %v11309_v57 = vmax.f32 %v11277_v22, 0.0  ;;  %v11209_v16 = vmul.f32 %v17897_v0, %v11003_v63  ;;  %v13815_v1 = vpop.f32.mrb[10].mxu1 }
 0x6b6   : > { %v12448_v53 = vpack.c.bf16 %v11311_v39, %v11310_v20  ;;  %v11250_v13 = vadd.f32 %v17903_v6, %v11211_v50  ;;  %v11212_v30 = vmul.f32 %v13815_v1, %v17897_v0  ;;  %v11006_v28 = vpop.f32.mrb[11].mxu1  ;;  %v12400_v39 = vunpack.c.l.bf16 %v12517_v14 }
 0x6b7   : > { %v12443_v38 = vpack.c.bf16 %v11309_v57, %v11308_v2  ;;  %v11248_v10 = vadd.f32 %v17903_v6, %v11209_v16  ;;  %v11210_v49 = vmul.f32 %v17897_v0, %v11006_v28  ;;  %v12405_v57 = vunpack.c.h.bf16 %v12518_v44 }
 0x6b8   : > { %12527 = vst [vmem:[%s17921_s8 + $0x18] sm:$0xff] %v12448_v53   ;;  %v11282_v46 = vadd.f32 %v12388_v48, %v11250_v13  ;;  %v11251_v45 = vadd.f32 %v17903_v6, %v11212_v30  ;;  %v12401_v13 = vunpack.c.h.bf16 %v12517_v14 }
 0x6b9   : > { %12526 = vst [vmem:[%s17921_s8 + $0x10] sm:$0xff] %v12443_v38   ;;  %v11280_v27 = vadd.f32 %v12384_v34, %v11248_v10  ;;  %v11249_v21 = vadd.f32 %v17903_v6, %v11210_v49 }
 0x6ba   : > { %v11283_v29 = vadd.f32 %v12389_v5, %v11251_v45  ;;  %v11314_v62 = vmax.f32 %v11282_v46, 0.0  ;;  %v12519_v46 = vld [vmem:[%s14836_s22 + $0x50] sm:$0xff]  }
 0x6bb   : > { %v11281_v33 = vadd.f32 %v12385_v35, %v11249_v21  ;;  %v13818_v55 = vpop.f32.mrb[12].mxu1  ;;  %v11312_v23 = vmax.f32 %v11280_v27, 0.0  ;;  %v12520_v35 = vld [vmem:[%s14836_s22 + $0x58] sm:$0xff]  }
 0x6bc   : > { %v11315_v56 = vmax.f32 %v11283_v29, 0.0  ;;  %v11215_v36 = vmul.f32 %v13818_v55, %v17897_v0  ;;  %v11019_v58 = vpop.f32.mrb[13].mxu1  ;;  %v12412_v29 = vunpack.c.l.bf16 %v12520_v35 }
 0x6bd   : > { %v11313_v17 = vmax.f32 %v11281_v33, 0.0  ;;  %v11213_v41 = vmul.f32 %v17897_v0, %v11019_v58  ;;  %v13819_v24 = vpop.f32.mrb[14].mxu1 }
 0x6be   : > { %v12458_v12 = vpack.c.bf16 %v11315_v56, %v11314_v62  ;;  %v11254_v42 = vadd.f32 %v17903_v6, %v11215_v36  ;;  %v11216_v4 = vmul.f32 %v13819_v24, %v17897_v0  ;;  %v11022_v7 = vpop.f32.mrb[15].mxu1  ;;  %v12408_v56 = vunpack.c.l.bf16 %v12519_v46 }
 0x6bf   : > { %v12453_v15 = vpack.c.bf16 %v11313_v17, %v11312_v23  ;;  %v11252_v47 = vadd.f32 %v17903_v6, %v11213_v41  ;;  %v11214_v18 = vmul.f32 %v17897_v0, %v11022_v7  ;;  %v12413_v17 = vunpack.c.h.bf16 %v12520_v35 }
 0x6c0   : > { %12529 = vst [vmem:[%s17921_s8 + $0x28] sm:$0xff] %v12458_v12   ;;  %v11286_v61 = vadd.f32 %v12396_v25, %v11254_v42  ;;  %v11255_v51 = vadd.f32 %v17903_v6, %v11216_v4  ;;  %v12409_v42 = vunpack.c.h.bf16 %v12519_v46 }
 0x6c1   : > { %12528 = vst [vmem:[%s17921_s8 + $0x20] sm:$0xff] %v12453_v15   ;;  %v11284_v26 = vadd.f32 %v12392_v11, %v11252_v47  ;;  %v11253_v52 = vadd.f32 %v17903_v6, %v11214_v18 }
 0x6c2   : > { %v11287_v3 = vadd.f32 %v12397_v8, %v11255_v51  ;;  %v11318_v31 = vmax.f32 %v11286_v61, 0.0  ;;  %v12521_v61 = vld [vmem:[%s14836_s22 + $0x60] sm:$0xff]  }
 0x6c3   : > { %v11285_v43 = vadd.f32 %v12393_v59, %v11253_v52  ;;  %v13822_v32 = vpop.f32.mrb[16].mxu1  ;;  %v11316_v40 = vmax.f32 %v11284_v26, 0.0  ;;  %v12522_v59 = vld [vmem:[%s14836_s22 + $0x68] sm:$0xff]  }
 0x6c4   : > { %v11319_v19 = vmax.f32 %v11287_v3, 0.0  ;;  %v11219_v60 = vmul.f32 %v13822_v32, %v17897_v0  ;;  %v11035_v22 = vpop.f32.mrb[17].mxu1  ;;  %v12420_v3 = vunpack.c.l.bf16 %v12522_v59 }
 0x6c5   : > { %v11317_v20 = vmax.f32 %v11285_v43, 0.0  ;;  %v11217_v48 = vmul.f32 %v17897_v0, %v11035_v22  ;;  %v13823_v50 = vpop.f32.mrb[18].mxu1 }
 0x6c6   : > { %v12468_v63 = vpack.c.bf16 %v11319_v19, %v11318_v31  ;;  %v11258_v2 = vadd.f32 %v17903_v6, %v11219_v60  ;;  %v11220_v34 = vmul.f32 %v13823_v50, %v17897_v0  ;;  %v11038_v16 = vpop.f32.mrb[19].mxu1  ;;  %v12416_v19 = vunpack.c.l.bf16 %v12521_v61 }
 0x6c7   : > { %v12463_v1 = vpack.c.bf16 %v11317_v20, %v11316_v40  ;;  %v11256_v53 = vadd.f32 %v17903_v6, %v11217_v48  ;;  %v11218_v5 = vmul.f32 %v17897_v0, %v11038_v16  ;;  %v12421_v20 = vunpack.c.h.bf16 %v12522_v59 }
 0x6c8   : > { %12531 = vst [vmem:[%s17921_s8 + $0x38] sm:$0xff] %v12468_v63   ;;  %v11290_v30 = vadd.f32 %v12404_v54, %v11258_v2  ;;  %v11259_v28 = vadd.f32 %v17903_v6, %v11220_v34  ;;  %v12417_v2 = vunpack.c.h.bf16 %v12521_v61 }
 0x6c9   : > { %12530 = vst [vmem:[%s17921_s8 + $0x30] sm:$0xff] %v12463_v1   ;;  %v11288_v38 = vadd.f32 %v12400_v39, %v11256_v53  ;;  %v11257_v10 = vadd.f32 %v17903_v6, %v11218_v5 }
 0x6ca   : > { %v11291_v49 = vadd.f32 %v12405_v57, %v11259_v28  ;;  %v11322_v21 = vmax.f32 %v11290_v30, 0.0  ;;  %v12523_v30 = vld [vmem:[%s14836_s22 + $0x70] sm:$0xff]  }
 0x6cb   : > { %v11289_v45 = vadd.f32 %v12401_v13, %v11257_v10  ;;  %v13826_v27 = vpop.f32.mrb[20].mxu1  ;;  %v11320_v55 = vmax.f32 %v11288_v38, 0.0  ;;  %v12524_v13 = vld [vmem:[%s14836_s22 + $0x78] sm:$0xff]  }
 0x6cc   : > { %v11323_v37 = vmax.f32 %v11291_v49, 0.0  ;;  %v11223_v9 = vmul.f32 %v13826_v27, %v17897_v0  ;;  %v11051_v33 = vpop.f32.mrb[21].mxu1  ;;  %v12428_v49 = vunpack.c.l.bf16 %v12524_v13 }
 0x6cd   : > { %v11321_v62 = vmax.f32 %v11289_v45, 0.0  ;;  %v11221_v25 = vmul.f32 %v17897_v0, %v11051_v33  ;;  %v13827_v36 = vpop.f32.mrb[22].mxu1 }
 0x6ce   : > { %v12478_v58 = vpack.c.bf16 %v11323_v37, %v11322_v21  ;;  %v11262_v23 = vadd.f32 %v17903_v6, %v11223_v9  ;;  %v11224_v11 = vmul.f32 %v13827_v36, %v17897_v0  ;;  %v11054_v41 = vpop.f32.mrb[23].mxu1  ;;  %v12424_v37 = vunpack.c.l.bf16 %v12523_v30 }
 0x6cf   : > { %v12473_v24 = vpack.c.bf16 %v11321_v62, %v11320_v55  ;;  %v11260_v12 = vadd.f32 %v17903_v6, %v11221_v25  ;;  %v11222_v8 = vmul.f32 %v17897_v0, %v11054_v41  ;;  %v12429_v62 = vunpack.c.h.bf16 %v12524_v13 }
 0x6d0   : > { %12533 = vst [vmem:[%s17921_s8 + $0x48] sm:$0xff] %v12478_v58   ;;  %v11294_v4 = vadd.f32 %v12412_v29, %v11262_v23  ;;  %v11263_v7 = vadd.f32 %v17903_v6, %v11224_v11  ;;  %v12425_v23 = vunpack.c.h.bf16 %v12523_v30 }
 0x6d1   : > { %12532 = vst [vmem:[%s17921_s8 + $0x40] sm:$0xff] %v12473_v24   ;;  %v11292_v15 = vadd.f32 %v12408_v56, %v11260_v12  ;;  %v11261_v47 = vadd.f32 %v17903_v6, %v11222_v8 }
 0x6d2   : > { %v11295_v18 = vadd.f32 %v12413_v17, %v11263_v7  ;;  %v11326_v52 = vmax.f32 %v11294_v4, 0.0 }
 0x6d3   : > { %v11293_v51 = vadd.f32 %v12409_v42, %v11261_v47  ;;  %v13830_v26 = vpop.f32.mrb[24].mxu1  ;;  %v11324_v32 = vmax.f32 %v11292_v15, 0.0 }
 0x6d4   : > { %v11327_v44 = vmax.f32 %v11295_v18, 0.0  ;;  %v11227_v14 = vmul.f32 %v13830_v26, %v17897_v0  ;;  %v11067_v43 = vpop.f32.mrb[25].mxu1 }
 0x6d5   : > { %v11325_v31 = vmax.f32 %v11293_v51, 0.0  ;;  %v11225_v54 = vmul.f32 %v17897_v0, %v11067_v43  ;;  %v13831_v60 = vpop.f32.mrb[26].mxu1 }
 0x6d6   : > { %v12488_v22 = vpack.c.bf16 %v11327_v44, %v11326_v52  ;;  %v11266_v40 = vadd.f32 %v17903_v6, %v11227_v14  ;;  %v11228_v39 = vmul.f32 %v13831_v60, %v17897_v0  ;;  %v11070_v48 = vpop.f32.mrb[27].mxu1 }
 0x6d7   : > { %v12483_v50 = vpack.c.bf16 %v11325_v31, %v11324_v32  ;;  %v11264_v63 = vadd.f32 %v17903_v6, %v11225_v54  ;;  %v11226_v57 = vmul.f32 %v17897_v0, %v11070_v48 }
 0x6d8   : > { %12535 = vst [vmem:[%s17921_s8 + $0x58] sm:$0xff] %v12488_v22   ;;  %v11298_v34 = vadd.f32 %v12420_v3, %v11266_v40  ;;  %v11267_v16 = vadd.f32 %v17903_v6, %v11228_v39 }
 0x6d9   : > { %12534 = vst [vmem:[%s17921_s8 + $0x50] sm:$0xff] %v12483_v50   ;;  %v11296_v1 = vadd.f32 %v12416_v19, %v11264_v63  ;;  %v11265_v53 = vadd.f32 %v17903_v6, %v11226_v57 }
 0x6da   : > { %v11299_v5 = vadd.f32 %v12421_v20, %v11267_v16  ;;  %v11330_v10 = vmax.f32 %v11298_v34, 0.0 }
 0x6db   : > { %v11297_v28 = vadd.f32 %v12417_v2, %v11265_v53  ;;  %v13834_v38 = vpop.f32.mrb[28].mxu1  ;;  %v11328_v27 = vmax.f32 %v11296_v1, 0.0 }
 0x6dc   : > { %v11331_v35 = vmax.f32 %v11299_v5, 0.0  ;;  %v11231_v46 = vmul.f32 %v13834_v38, %v17897_v0  ;;  %v11083_v45 = vpop.f32.mrb[29].mxu1 }
 0x6dd   : > { %v11329_v21 = vmax.f32 %v11297_v28, 0.0  ;;  %v11229_v29 = vmul.f32 %v17897_v0, %v11083_v45  ;;  %v13835_v9 = vpop.f32.mrb[30].mxu1 }
 0x6de   : > { %v12498_v33 = vpack.c.bf16 %v11331_v35, %v11330_v10  ;;  %v11270_v55 = vadd.f32 %v17903_v6, %v11231_v46  ;;  %v11232_v56 = vmul.f32 %v13835_v9, %v17897_v0  ;;  %v11086_v25 = vpop.f32.mrb[31].mxu1 }
 0x6df   : > { %v12493_v36 = vpack.c.bf16 %v11329_v21, %v11328_v27  ;;  %v11268_v58 = vadd.f32 %v17903_v6, %v11229_v29  ;;  %v11230_v17 = vmul.f32 %v17897_v0, %v11086_v25 }
 0x6e0   : > { %12537 = vst [vmem:[%s17921_s8 + $0x68] sm:$0xff] %v12498_v33   ;;  %v11302_v11 = vadd.f32 %v12428_v49, %v11270_v55  ;;  %v11271_v41 = vadd.f32 %v17903_v6, %v11232_v56 }
 0x6e1   : > { %12536 = vst [vmem:[%s17921_s8 + $0x60] sm:$0xff] %v12493_v36   ;;  %v11300_v24 = vadd.f32 %v12424_v37, %v11268_v58  ;;  %v11269_v12 = vadd.f32 %v17903_v6, %v11230_v17 }
 0x6e2   : > { %v11303_v42 = vadd.f32 %v12429_v62, %v11271_v41  ;;  %v11334_v4 = vmax.f32 %v11302_v11, 0.0 }
 0x6e3   : > { %v11301_v8 = vadd.f32 %v12425_v23, %v11269_v12  ;;  %v11332_v15 = vmax.f32 %v11300_v24, 0.0 }
 0x6e4   : > { %v11335_v7 = vmax.f32 %v11303_v42, 0.0 }
 0x6e5   : > { %v11333_v47 = vmax.f32 %v11301_v8, 0.0 }
 0x6e6   : > { %v12508_v59 = vpack.c.bf16 %v11335_v7, %v11334_v4 }
 0x6e7   : > { %v12503_v18 = vpack.c.bf16 %v11333_v47, %v11332_v15 }
 0x6e8   : > { %12539 = vst [vmem:[%s17921_s8 + $0x78] sm:$0xff] %v12508_v59  }
 0x6e9   : > { %12538 = vst [vmem:[%s17921_s8 + $0x70] sm:$0xff] %v12503_v18  }
 0x6ea PF: > { %s18_s24 = sadd.s32 1, %s14725_s24  }
 0x6eb   : > { %p15_p3 = scmp.ge.s32.totalorder %s18_s24, 4  }
 0x6ed   :  { %17 = sbr.rel (!%p15_p3) target bundleno = 1 (0x1), region = 102 }
 0x6f4   :  { %11517 = vsyncpa [#allocation4], 1 }
 0x6f5   :  { %11519 = vsyncpa [#allocation4 + $0x1], 1 }

</bundles_post_ra>
